<compile_context>
chip_gen: v7x
topology: tpu7x:2x2x1
jax: 0.10.0
libtpu: 0.0.40
codegen_flags: <defaults>
</compile_context>

<pallas_src>
import functools

import jax
import jax.numpy as jnp
from jax.experimental import pallas as pl
from jax.experimental.pallas import tpu as pltpu

_VMEM = pl.BlockSpec(memory_space=pltpu.MemorySpace.VMEM)
_SMALL_GEMM_VMEM_BUDGET = 12 << 20  # full-footprint gate; v7x default scoped = 32 MiB


# ----------------------------------------------------------------------------
# GEMM kernels (conv via im2col, fully-connected). bf16 operands, f32 accum.
# ----------------------------------------------------------------------------
def _gemm_kernel(x_ref, w_ref, b_ref, o_ref, *, relu):
    acc = jnp.dot(x_ref[...], w_ref[...], preferred_element_type=jnp.float32)
    acc = acc + b_ref[...]
    if relu:
        acc = jnp.maximum(acc, 0.0)
    o_ref[...] = acc


def _gemm_relu_bn_kernel(x_ref, w_ref, b_ref, g_ref, be_ref, o_ref, *, eps,
                         inv_count):
    # conv (GEMM) + bias + ReLU + training-mode BatchNorm fused.  The GEMM
    # rows are (N*H*W), so axis-0 statistics are exactly per-channel batch
    # stats on a flat 2D view (sublane reduction, no 4D reshuffle).
    acc = jnp.dot(x_ref[...], w_ref[...], preferred_element_type=jnp.float32)
    acc = jnp.maximum(acc + b_ref[...], 0.0)
    mean = jnp.sum(acc, axis=0, keepdims=True) * inv_count
    d = acc - mean
    var = jnp.sum(d * d, axis=0, keepdims=True) * inv_count
    o_ref[...] = d * jax.lax.rsqrt(var + eps) * g_ref[...] + be_ref[...]


def _gemm_tiled_kernel(x_ref, w_ref, b_ref, o_ref):
    # K-tiled GEMM; the output block is resident across the (arbitrary) K
    # grid axis.  Bias is folded into the accumulator init at k == 0 so it is
    # not re-applied (and effectively not re-fetched) every step.
    k = pl.program_id(0)

    @pl.when(k == 0)
    def _():
        o_ref[...] = jnp.zeros_like(o_ref) + b_ref[...]

    o_ref[...] += jnp.dot(x_ref[...], w_ref[...],
                          preferred_element_type=jnp.float32)


def _pick_tk(k, cap=2048):
    """Largest multiple of 128 <= cap that divides k (k already 128-aligned)."""
    best = 128
    for t in range(128, cap + 1, 128):
        if k % t == 0:
            best = t
    return best


def pallas_matmul(x, w, b, *, relu=False, bn=None, eps=1e-5):
    """(M, K) @ (K, N) + b on the MXU (bf16 operands, f32 accumulation).

    Optional fused epilogues: ReLU, or ReLU + training-mode BatchNorm over
    axis 0 when bn=(gamma, beta).
    """
    x = x.astype(jnp.bfloat16)
    w = w.astype(jnp.bfloat16)
    M, K = x.shape
    Nout = w.shape[1]
    b2 = b.reshape(1, Nout).astype(jnp.float32)

    # Full VMEM footprint (operands + bias + output), not weight-only.
    footprint = (M * K + K * Nout) * 2 + (M * Nout + 2 * Nout) * 4
    if footprint <= _SMALL_GEMM_VMEM_BUDGET:
        cparams = pltpu.CompilerParams(vmem_limit_bytes=32 << 20)
        if bn is None:
            kern = functools.partial(_gemm_kernel, relu=relu)
            return pl.pallas_call(
                kern,
                out_shape=jax.ShapeDtypeStruct((M, Nout), jnp.float32),
                in_specs=[_VMEM, _VMEM, _VMEM],
                out_specs=_VMEM,
                compiler_params=cparams,
            )(x, w, b2)
        gamma, beta = bn
        kern = functools.partial(_gemm_relu_bn_kernel, eps=eps,
                                 inv_count=1.0 / float(M))
        return pl.pallas_call(
            kern,
            out_shape=jax.ShapeDtypeStruct((M, Nout), jnp.float32),
            in_specs=[_VMEM] * 5,
            out_specs=_VMEM,
            compiler_params=cparams,
        )(x, w, b2,
          gamma.reshape(1, Nout).astype(jnp.float32),
          beta.reshape(1, Nout).astype(jnp.float32))

    # Large weight (fc1): K-tiled path with lane-dense (multiple-of-128)
    # output / weight blocks so stores are unmasked and DMAs are aligned.
    assert bn is None and not relu
    padn = (-Nout) % 128
    if padn:
        w = jnp.pad(w, ((0, 0), (0, padn)))
        b2 = jnp.pad(b2, ((0, 0), (0, padn)))
    Np = Nout + padn
    padk = (-K) % 128
    if padk:
        x = jnp.pad(x, ((0, 0), (0, padk)))
        w = jnp.pad(w, ((0, padk), (0, 0)))
    Kp = K + padk
    tk = _pick_tk(Kp)

    out = pl.pallas_call(
        _gemm_tiled_kernel,
        out_shape=jax.ShapeDtypeStruct((M, Np), jnp.float32),
        grid_spec=pltpu.PrefetchScalarGridSpec(
            num_scalar_prefetch=0,
            grid=(Kp // tk,),
            in_specs=[
                pl.BlockSpec((M, tk), lambda k: (0, k)),
                pl.BlockSpec((tk, Np), lambda k: (k, 0)),
                pl.BlockSpec((1, Np), lambda k: (0, 0)),
            ],
            out_specs=pl.BlockSpec((M, Np), lambda k: (0, 0)),
        ),
        compiler_params=pltpu.CompilerParams(
            dimension_semantics=("arbitrary",),
            vmem_limit_bytes=32 << 20),
    )(x, w, b2)
    return out if padn == 0 else out[:, :Nout]


# ----------------------------------------------------------------------------
# Conv2d = im2col (glue) + fused Pallas GEMM.
# ----------------------------------------------------------------------------
def conv2d(x, w, b, padding, relu=False, bn=None):
    # x: (N, H, W, Cin) f32, w: (KH, KW, Cin, Cout) bf16.
    N, H, W, Cin = x.shape
    KH, KW, _, Cout = w.shape
    if padding:
        x = jnp.pad(x, ((0, 0), (padding, padding), (padding, padding), (0, 0)))
    Ho = H + 2 * padding - KH + 1
    Wo = W + 2 * padding - KW + 1
    if KH == 1 and KW == 1:
        patches = x.reshape(N * Ho * Wo, Cin)
    else:
        # TODO(synk): at larger batch/resolution replace this KH*KW-way HBM
        # im2col with in-kernel accumulation over (kh, kw) taps.
        cols = [x[:, kh:kh + Ho, kw:kw + Wo, :]
                for kh in range(KH) for kw in range(KW)]
        patches = jnp.stack(cols, axis=3).reshape(N * Ho * Wo, KH * KW * Cin)
    wmat = w.reshape(KH * KW * Cin, Cout)
    out = pallas_matmul(patches, wmat, b, relu=relu, bn=bn)
    return out.reshape(N, Ho, Wo, Cout)


# ----------------------------------------------------------------------------
# MaxPool2d (optionally fused with BatchNorm): the k*k window max is computed
# in one kernel via strided pl.ds window reads of the padded activation.
# ----------------------------------------------------------------------------
def _window_max(x_ref, ksize, stride, Ho, Wo):
    r = None
    for dh in range(ksize):
        for dw in range(ksize):
            if stride == 1:
                v = x_ref[:, pl.ds(dh, Ho), pl.ds(dw, Wo), :]
            else:
                v = x_ref[:, pl.ds(dh, Ho, stride), pl.ds(dw, Wo, stride), :]
            r = v if r is None else jnp.maximum(r, v)
    return r


def _maxpool_kernel(x_ref, o_ref, *, ksize, stride, Ho, Wo):
    o_ref[...] = _window_max(x_ref, ksize, stride, Ho, Wo)


def _maxpool_bn_kernel(x_ref, g_ref, be_ref, o_ref, *, ksize, stride, Ho, Wo,
                       eps, inv_count):
    r = _window_max(x_ref, ksize, stride, Ho, Wo)
    s = jnp.sum(r, axis=0, keepdims=True)
    s = jnp.sum(s, axis=1, keepdims=True)
    s = jnp.sum(s, axis=2, keepdims=True)
    mean = s * inv_count
    d = r - mean
    v = jnp.sum(d * d, axis=0, keepdims=True)
    v = jnp.sum(v, axis=1, keepdims=True)
    v = jnp.sum(v, axis=2, keepdims=True)
    var = v * inv_count
    o_ref[...] = d * jax.lax.rsqrt(var + eps) * g_ref[...] + be_ref[...]


def maxpool2d(x, ksize, stride, padding=0, bn=None, eps=1e-5):
    x = x.astype(jnp.float32)
    N, H, W, C = x.shape
    if padding:
        x = jnp.pad(x, ((0, 0), (padding, padding), (padding, padding), (0, 0)),
                    constant_values=-jnp.inf)
        H += 2 * padding
        W += 2 * padding
    Ho = (H - ksize) // stride + 1
    Wo = (W - ksize) // stride + 1
    out_shape = jax.ShapeDtypeStruct((N, Ho, Wo, C), jnp.float32)
    if bn is None:
        kern = functools.partial(_maxpool_kernel, ksize=ksize, stride=stride,
                                 Ho=Ho, Wo=Wo)
        return pl.pallas_call(kern, out_shape=out_shape,
                              in_specs=[_VMEM], out_specs=_VMEM)(x)
    gamma, beta = bn
    kern = functools.partial(_maxpool_bn_kernel, ksize=ksize, stride=stride,
                             Ho=Ho, Wo=Wo, eps=eps,
                             inv_count=1.0 / float(N * Ho * Wo))
    return pl.pallas_call(kern, out_shape=out_shape,
                          in_specs=[_VMEM, _VMEM, _VMEM], out_specs=_VMEM)(
        x, gamma.reshape(1, 1, 1, C).astype(jnp.float32),
        beta.reshape(1, 1, 1, C).astype(jnp.float32))


# ----------------------------------------------------------------------------
# Fused fc2 + softmax(dim=1).
# ----------------------------------------------------------------------------
def _linear_softmax_kernel(x_ref, w_ref, b_ref, o_ref):
    z = jnp.dot(x_ref[...], w_ref[...], preferred_element_type=jnp.float32)
    z = z + b_ref[...]
    z = z - jnp.max(z, axis=1, keepdims=True)
    e = jnp.exp(z)
    o_ref[...] = e / jnp.sum(e, axis=1, keepdims=True)


def pallas_linear_softmax(x, w, b):
    M = x.shape[0]
    Nout = w.shape[1]
    return pl.pallas_call(
        _linear_softmax_kernel,
        out_shape=jax.ShapeDtypeStruct((M, Nout), jnp.float32),
        in_specs=[_VMEM, _VMEM, _VMEM],
        out_specs=_VMEM,
    )(x.astype(jnp.bfloat16), w.astype(jnp.bfloat16),
      b.reshape(1, Nout).astype(jnp.float32))


# ----------------------------------------------------------------------------
# Parameters (deterministic synthetic init; shapes mirror the module), plus a
# one-time (outside-jit) device-layout preparation: bf16 weight packing, fused
# inception-1x1 weight concat, fc1/fc2 lane-dense padding.
# ----------------------------------------------------------------------------
def init_params(key, flat_features):
    keys = iter(jax.random.split(key, 32))

    def conv_w(kh, kw, cin, cout):
        scale = 1.0 / jnp.sqrt(jnp.float32(kh * kw * cin))
        return jax.random.normal(next(keys), (kh, kw, cin, cout),
                                 jnp.float32) * scale

    def lin_w(fin, fout):
        scale = 1.0 / jnp.sqrt(jnp.float32(fin))
        return jax.random.normal(next(keys), (fin, fout), jnp.float32) * scale

    p = {}
    p["w1"], p["b1"] = conv_w(7, 7, 3, 16), jnp.zeros((16,), jnp.float32)
    p["g1"], p["be1"] = jnp.ones((16,), jnp.float32), jnp.zeros((16,), jnp.float32)
    p["w2"], p["b2"] = conv_w(1, 1, 16, 32), jnp.zeros((32,), jnp.float32)
    p["w3"], p["b3"] = conv_w(3, 3, 32, 64), jnp.zeros((64,), jnp.float32)
    p["g3"], p["be3"] = jnp.ones((64,), jnp.float32), jnp.zeros((64,), jnp.float32)
    p["wi1"], p["bi1"] = conv_w(1, 1, 64, 128), jnp.zeros((128,), jnp.float32)
    p["wi2a"], p["bi2a"] = conv_w(1, 1, 64, 128), jnp.zeros((128,), jnp.float32)
    p["wi2b"], p["bi2b"] = conv_w(3, 3, 128, 192), jnp.zeros((192,), jnp.float32)
    p["wi3a"], p["bi3a"] = conv_w(1, 1, 64, 128), jnp.zeros((128,), jnp.float32)
    p["wi3b"], p["bi3b"] = conv_w(5, 5, 128, 256), jnp.zeros((256,), jnp.float32)
    p["wi4"], p["bi4"] = conv_w(1, 1, 64, 128), jnp.zeros((128,), jnp.float32)
    # TODO(synk): the module declares fc1 = Linear(64*8*8, 1000), which is
    # inconsistent with the 704-channel inception concat; fc1 in_features is
    # adapted to the actual flattened size so the forward is runnable.
    p["wfc1"], p["bfc1"] = lin_w(flat_features, 1000), jnp.zeros((1000,), jnp.float32)
    p["wfc2"], p["bfc2"] = lin_w(1000, 10), jnp.zeros((10,), jnp.float32)
    return p


def prepare_params(p):
    f32, bf16 = jnp.float32, jnp.bfloat16
    dp = {}
    for k in ("w1", "w2", "w3", "wi2b", "wi3b"):
        dp[k] = p[k].astype(bf16)
    for k in ("b1", "b2", "b3", "bi2b", "bi3b", "bi4",
              "g1", "be1", "g3", "be3"):
        dp[k] = p[k].astype(f32)
    # Fuse the three inception 1x1 convs that share the same input into one
    # (64, 384) GEMM weight; inception4's 1x1 (different, pooled input) stays
    # separate as a (64, 128) matrix.
    dp["wi_fused"] = jnp.concatenate(
        [p["wi1"].reshape(64, 128), p["wi2a"].reshape(64, 128),
         p["wi3a"].reshape(64, 128)], axis=1).astype(bf16)
    dp["bi_fused"] = jnp.concatenate([p["bi1"], p["bi2a"], p["bi3a"]]).astype(f32)
    dp["wi4m"] = p["wi4"].reshape(64, 128).astype(bf16)
    # fc1: pad Nout 1000 -> 1024 (lane-dense stores); the padded columns are
    # exactly zero (zero weights + zero bias), so padding fc2 with zero rows
    # carries them through with identical results.
    padn = (-p["wfc1"].shape[1]) % 128
    dp["wfc1"] = jnp.pad(p["wfc1"], ((0, 0), (0, padn))).astype(bf16)
    dp["bfc1"] = jnp.pad(p["bfc1"], (0, padn)).astype(f32)
    dp["wfc2"] = jnp.pad(p["wfc2"], ((0, padn), (0, 0))).astype(bf16)
    dp["bfc2"] = p["bfc2"].astype(f32)
    return dp


# ----------------------------------------------------------------------------
# Forward pass (mirrors CNNInception.forward).
# ----------------------------------------------------------------------------
def forward(p, x_nchw):
    x = jnp.transpose(x_nchw, (0, 2, 3, 1)).astype(jnp.float32)  # NCHW -> NHWC
    # layer1: Conv(3->16, k7, p2) + ReLU (fused GEMM) -> MaxPool2 + BN (fused)
    out = conv2d(x, p["w1"], p["b1"], padding=2, relu=True)
    out = maxpool2d(out, 2, 2, bn=(p["g1"], p["be1"]))
    # layer2: Conv(16->32, k1, p2) + ReLU
    out = conv2d(out, p["w2"], p["b2"], padding=2, relu=True)
    # layer3: Conv(32->64, k3, p1) + ReLU + BN (fused GEMM) -> MaxPool2
    out = conv2d(out, p["w3"], p["b3"], padding=1, relu=True,
                 bn=(p["g3"], p["be3"]))
    out = maxpool2d(out, 2, 2)
    # inception branches (no activations, as in the original module)
    n, h, w_, c = out.shape
    flat_sp = out.reshape(n * h * w_, c)
    y = pallas_matmul(flat_sp, p["wi_fused"], p["bi_fused"])  # wi1|wi2a|wi3a
    o1 = y[:, 0:128].reshape(n, h, w_, 128)
    o2 = conv2d(y[:, 128:256].reshape(n, h, w_, 128), p["wi2b"], p["bi2b"],
                padding=1)
    o3 = conv2d(y[:, 256:384].reshape(n, h, w_, 128), p["wi3b"], p["bi3b"],
                padding=2)
    o4 = maxpool2d(out, 3, 1, padding=1)
    o4 = pallas_matmul(o4.reshape(n * h * w_, c), p["wi4m"],
                       p["bi4"]).reshape(n, h, w_, 128)
    cat = jnp.concatenate([o1, o2, o3, o4], axis=-1)  # channel concat (torch dim=1)
    flat = jnp.transpose(cat, (0, 3, 1, 2)).reshape(n, -1)  # NCHW flatten order
    h1 = pallas_matmul(flat, p["wfc1"], p["bfc1"])          # fc1 (K-tiled, bf16)
    return pallas_linear_softmax(h1, p["wfc2"], p["bfc2"])  # fc2 + softmax fused


if __name__ == "__main__":
    key = jax.random.PRNGKey(0)
    kx, kp = jax.random.split(key)
    # small input (N, C, H, W) = (2, 3, 10, 10) -> inception grid 4x4,
    # flatten size = 704 * 4 * 4 = 11264
    x = jax.random.normal(kx, (2, 3, 10, 10), jnp.float32)
    params = init_params(kp, flat_features=704 * 4 * 4)
    dev_params = prepare_params(params)   # one-time bf16 packing / padding

    out = jax.jit(forward)(dev_params, x)
    out = jax.block_until_ready(out)

    assert out.shape == (2, 10), out.shape
    assert bool(jnp.all(jnp.isfinite(out)))
    assert bool(jnp.allclose(jnp.sum(out, axis=1), 1.0, atol=1e-4))
    print("KERNEL_OK")
</pallas_src>

<mosaic_0001>
module attributes {stable_mosaic.version = 11 : i64} {
  func.func @_gemm_kernel(%arg0: memref<128x16xbf16, #tpu.memory_space<vmem>>, %arg1: memref<16x32xbf16, #tpu.memory_space<vmem>>, %arg2: memref<1x32xf32, #tpu.memory_space<vmem>>, %arg3: memref<128x32xf32, #tpu.memory_space<vmem>>) attributes {dimension_semantics = [], scalar_prefetch = 0 : i64, scratch_operands = 0 : i64, tpu.core_type = #tpu.core_type<tc>} {
    %c0 = arith.constant 0 : index
    %c0_0 = arith.constant 0 : index
    %0 = vector.load %arg0[%c0, %c0_0] : memref<128x16xbf16, #tpu.memory_space<vmem>>, vector<128x16xbf16>
    %c0_1 = arith.constant 0 : index
    %c0_2 = arith.constant 0 : index
    %1 = vector.load %arg1[%c0_1, %c0_2] : memref<16x32xbf16, #tpu.memory_space<vmem>>, vector<16x32xbf16>
    %cst = arith.constant dense<0.000000e+00> : vector<128x32xf32>
    %2 = tpu.matmul %0, %1, %cst {dimension_numbers = #tpu.dot_dimension_numbers<[1], [0], [0], [1], [0, 0, 1, 1], [], []>} : vector<128x16xbf16>, vector<16x32xbf16>, vector<128x32xf32> -> vector<128x32xf32>
    %c0_3 = arith.constant 0 : index
    %c0_4 = arith.constant 0 : index
    %3 = vector.load %arg2[%c0_3, %c0_4] : memref<1x32xf32, #tpu.memory_space<vmem>>, vector<1x32xf32>
    %4 = vector.broadcast %3 : vector<1x32xf32> to vector<128x32xf32>
    %5 = arith.addf %2, %4 : vector<128x32xf32>
    %cst_5 = arith.constant 0.000000e+00 : f32
    %6 = vector.broadcast %cst_5 : f32 to vector<128x32xf32>
    %7 = arith.maximumf %5, %6 : vector<128x32xf32>
    %c0_6 = arith.constant 0 : index
    %c0_7 = arith.constant 0 : index
    %8 = vector.load %arg3[%c0_6, %c0_7] : memref<128x32xf32, #tpu.memory_space<vmem>>, vector<128x32xf32>
    tpu.vector_store %arg3[%c0_6, %c0_7], %7 {strides = array<i32>} : memref<128x32xf32, #tpu.memory_space<vmem>>, vector<128x32xf32>,
    return
  }
}

module attributes {stable_mosaic.version = 11 : i64} {
  func.func @_gemm_kernel(%arg0: memref<128x147xbf16, #tpu.memory_space<vmem>>, %arg1: memref<147x16xbf16, #tpu.memory_space<vmem>>, %arg2: memref<1x16xf32, #tpu.memory_space<vmem>>, %arg3: memref<128x16xf32, #tpu.memory_space<vmem>>) attributes {dimension_semantics = [], scalar_prefetch = 0 : i64, scratch_operands = 0 : i64, tpu.core_type = #tpu.core_type<tc>} {
    %c0 = arith.constant 0 : index
    %c0_0 = arith.constant 0 : index
    %0 = vector.load %arg0[%c0, %c0_0] : memref<128x147xbf16, #tpu.memory_space<vmem>>, vector<128x147xbf16>
    %c0_1 = arith.constant 0 : index
    %c0_2 = arith.constant 0 : index
    %1 = vector.load %arg1[%c0_1, %c0_2] : memref<147x16xbf16, #tpu.memory_space<vmem>>, vector<147x16xbf16>
    %cst = arith.constant dense<0.000000e+00> : vector<128x16xf32>
    %2 = tpu.matmul %0, %1, %cst {dimension_numbers = #tpu.dot_dimension_numbers<[1], [0], [0], [1], [0, 0, 1, 1], [], []>} : vector<128x147xbf16>, vector<147x16xbf16>, vector<128x16xf32> -> vector<128x16xf32>
    %c0_3 = arith.constant 0 : index
    %c0_4 = arith.constant 0 : index
    %3 = vector.load %arg2[%c0_3, %c0_4] : memref<1x16xf32, #tpu.memory_space<vmem>>, vector<1x16xf32>
    %4 = vector.broadcast %3 : vector<1x16xf32> to vector<128x16xf32>
    %5 = arith.addf %2, %4 : vector<128x16xf32>
    %cst_5 = arith.constant 0.000000e+00 : f32
    %6 = vector.broadcast %cst_5 : f32 to vector<128x16xf32>
    %7 = arith.maximumf %5, %6 : vector<128x16xf32>
    %c0_6 = arith.constant 0 : index
    %c0_7 = arith.constant 0 : index
    %8 = vector.load %arg3[%c0_6, %c0_7] : memref<128x16xf32, #tpu.memory_space<vmem>>, vector<128x16xf32>
    tpu.vector_store %arg3[%c0_6, %c0_7], %7 {strides = array<i32>} : memref<128x16xf32, #tpu.memory_space<vmem>>, vector<128x16xf32>,
    return
  }
}

module attributes {stable_mosaic.version = 11 : i64} {
  func.func @_maxpool_bn_kernel(%arg0: memref<2x8x8x16xf32, #tpu.memory_space<vmem>>, %arg1: memref<1x1x1x16xf32, #tpu.memory_space<vmem>>, %arg2: memref<1x1x1x16xf32, #tpu.memory_space<vmem>>, %arg3: memref<2x4x4x16xf32, #tpu.memory_space<vmem>>) attributes {dimension_semantics = [], scalar_prefetch = 0 : i64, scratch_operands = 0 : i64, tpu.core_type = #tpu.core_type<tc>} {
    %c0 = arith.constant 0 : index
    %c0_0 = arith.constant 0 : index
    %c0_1 = arith.constant 0 : index
    %c0_2 = arith.constant 0 : index
    %0 = tpu.strided_load %arg0[%c0, %c0_0, %c0_1, %c0_2] {strides = array<i32: 1, 2, 2, 1>} : memref<2x8x8x16xf32, #tpu.memory_space<vmem>>, vector<2x4x4x16xf32>
    %c0_3 = arith.constant 0 : index
    %c0_4 = arith.constant 0 : index
    %c1 = arith.constant 1 : index
    %c0_5 = arith.constant 0 : index
    %1 = tpu.strided_load %arg0[%c0_3, %c0_4, %c1, %c0_5] {strides = array<i32: 1, 2, 2, 1>} : memref<2x8x8x16xf32, #tpu.memory_space<vmem>>, vector<2x4x4x16xf32>
    %2 = arith.maximumf %0, %1 : vector<2x4x4x16xf32>
    %c0_6 = arith.constant 0 : index
    %c1_7 = arith.constant 1 : index
    %c0_8 = arith.constant 0 : index
    %c0_9 = arith.constant 0 : index
    %3 = tpu.strided_load %arg0[%c0_6, %c1_7, %c0_8, %c0_9] {strides = array<i32: 1, 2, 2, 1>} : memref<2x8x8x16xf32, #tpu.memory_space<vmem>>, vector<2x4x4x16xf32>
    %4 = arith.maximumf %2, %3 : vector<2x4x4x16xf32>
    %c0_10 = arith.constant 0 : index
    %c1_11 = arith.constant 1 : index
    %c1_12 = arith.constant 1 : index
    %c0_13 = arith.constant 0 : index
    %5 = tpu.strided_load %arg0[%c0_10, %c1_11, %c1_12, %c0_13] {strides = array<i32: 1, 2, 2, 1>} : memref<2x8x8x16xf32, #tpu.memory_space<vmem>>, vector<2x4x4x16xf32>
    %6 = arith.maximumf %4, %5 : vector<2x4x4x16xf32>
    %cst = arith.constant dense<0.000000e+00> : vector<4x4x16xf32>
    %7 = vector.multi_reduction <add>, %6, %cst [0] : vector<2x4x4x16xf32> to vector<4x4x16xf32>
    %8 = vector.shape_cast %7 : vector<4x4x16xf32> to vector<1x4x4x16xf32>
    %cst_14 = arith.constant dense<0.000000e+00> : vector<1x4x16xf32>
    %9 = vector.multi_reduction <add>, %8, %cst_14 [1] : vector<1x4x4x16xf32> to vector<1x4x16xf32>
    %10 = vector.shape_cast %9 : vector<1x4x16xf32> to vector<1x1x4x16xf32>
    %cst_15 = arith.constant dense<0.000000e+00> : vector<1x1x16xf32>
    %11 = vector.multi_reduction <add>, %10, %cst_15 [2] : vector<1x1x4x16xf32> to vector<1x1x16xf32>
    %12 = vector.shape_cast %11 : vector<1x1x16xf32> to vector<1x1x1x16xf32>
    %cst_16 = arith.constant 3.125000e-02 : f32
    %13 = vector.broadcast %cst_16 : f32 to vector<1x1x1x16xf32>
    %14 = arith.mulf %12, %13 : vector<1x1x1x16xf32>
    %15 = vector.broadcast %14 : vector<1x1x1x16xf32> to vector<2x4x4x16xf32>
    %16 = arith.subf %6, %15 : vector<2x4x4x16xf32>
    %17 = arith.mulf %16, %16 : vector<2x4x4x16xf32>
    %cst_17 = arith.constant dense<0.000000e+00> : vector<4x4x16xf32>
    %18 = vector.multi_reduction <add>, %17, %cst_17 [0] : vector<2x4x4x16xf32> to vector<4x4x16xf32>
    %19 = vector.shape_cast %18 : vector<4x4x16xf32> to vector<1x4x4x16xf32>
    %cst_18 = arith.constant dense<0.000000e+00> : vector<1x4x16xf32>
    %20 = vector.multi_reduction <add>, %19, %cst_18 [1] : vector<1x4x4x16xf32> to vector<1x4x16xf32>
    %21 = vector.shape_cast %20 : vector<1x4x16xf32> to vector<1x1x4x16xf32>
    %cst_19 = arith.constant dense<0.000000e+00> : vector<1x1x16xf32>
    %22 = vector.multi_reduction <add>, %21, %cst_19 [2] : vector<1x1x4x16xf32> to vector<1x1x16xf32>
    %23 = vector.shape_cast %22 : vector<1x1x16xf32> to vector<1x1x1x16xf32>
    %cst_20 = arith.constant 3.125000e-02 : f32
    %24 = vector.broadcast %cst_20 : f32 to vector<1x1x1x16xf32>
    %25 = arith.mulf %23, %24 : vector<1x1x1x16xf32>
    %cst_21 = arith.constant 9.99999974E-6 : f32
    %26 = vector.broadcast %cst_21 : f32 to vector<1x1x1x16xf32>
    %27 = arith.addf %25, %26 : vector<1x1x1x16xf32>
    %28 = math.rsqrt %27 : vector<1x1x1x16xf32>
    %29 = vector.broadcast %28 : vector<1x1x1x16xf32> to vector<2x4x4x16xf32>
    %30 = arith.mulf %16, %29 : vector<2x4x4x16xf32>
    %c0_22 = arith.constant 0 : index
    %c0_23 = arith.constant 0 : index
    %c0_24 = arith.constant 0 : index
    %c0_25 = arith.constant 0 : index
    %31 = vector.load %arg1[%c0_22, %c0_23, %c0_24, %c0_25] : memref<1x1x1x16xf32, #tpu.memory_space<vmem>>, vector<1x1x1x16xf32>
    %32 = vector.broadcast %31 : vector<1x1x1x16xf32> to vector<2x4x4x16xf32>
    %33 = arith.mulf %30, %32 : vector<2x4x4x16xf32>
    %c0_26 = arith.constant 0 : index
    %c0_27 = arith.constant 0 : index
    %c0_28 = arith.constant 0 : index
    %c0_29 = arith.constant 0 : index
    %34 = vector.load %arg2[%c0_26, %c0_27, %c0_28, %c0_29] : memref<1x1x1x16xf32, #tpu.memory_space<vmem>>, vector<1x1x1x16xf32>
    %35 = vector.broadcast %34 : vector<1x1x1x16xf32> to vector<2x4x4x16xf32>
    %36 = arith.addf %33, %35 : vector<2x4x4x16xf32>
    %c0_30 = arith.constant 0 : index
    %c0_31 = arith.constant 0 : index
    %c0_32 = arith.constant 0 : index
    %c0_33 = arith.constant 0 : index
    %37 = vector.load %arg3[%c0_30, %c0_31, %c0_32, %c0_33] : memref<2x4x4x16xf32, #tpu.memory_space<vmem>>, vector<2x4x4x16xf32>
    tpu.vector_store %arg3[%c0_30, %c0_31, %c0_32, %c0_33], %36 {strides = array<i32>} : memref<2x4x4x16xf32, #tpu.memory_space<vmem>>, vector<2x4x4x16xf32>,
    return
  }
}

module attributes {stable_mosaic.version = 11 : i64} {
  func.func @_gemm_relu_bn_kernel(%arg0: memref<128x288xbf16, #tpu.memory_space<vmem>>, %arg1: memref<288x64xbf16, #tpu.memory_space<vmem>>, %arg2: memref<1x64xf32, #tpu.memory_space<vmem>>, %arg3: memref<1x64xf32, #tpu.memory_space<vmem>>, %arg4: memref<1x64xf32, #tpu.memory_space<vmem>>, %arg5: memref<128x64xf32, #tpu.memory_space<vmem>>) attributes {dimension_semantics = [], scalar_prefetch = 0 : i64, scratch_operands = 0 : i64, tpu.core_type = #tpu.core_type<tc>} {
    %c0 = arith.constant 0 : index
    %c0_0 = arith.constant 0 : index
    %0 = vector.load %arg0[%c0, %c0_0] : memref<128x288xbf16, #tpu.memory_space<vmem>>, vector<128x288xbf16>
    %c0_1 = arith.constant 0 : index
    %c0_2 = arith.constant 0 : index
    %1 = vector.load %arg1[%c0_1, %c0_2] : memref<288x64xbf16, #tpu.memory_space<vmem>>, vector<288x64xbf16>
    %cst = arith.constant dense<0.000000e+00> : vector<128x64xf32>
    %2 = tpu.matmul %0, %1, %cst {dimension_numbers = #tpu.dot_dimension_numbers<[1], [0], [0], [1], [0, 0, 1, 1], [], []>} : vector<128x288xbf16>, vector<288x64xbf16>, vector<128x64xf32> -> vector<128x64xf32>
    %c0_3 = arith.constant 0 : index
    %c0_4 = arith.constant 0 : index
    %3 = vector.load %arg2[%c0_3, %c0_4] : memref<1x64xf32, #tpu.memory_space<vmem>>, vector<1x64xf32>
    %4 = vector.broadcast %3 : vector<1x64xf32> to vector<128x64xf32>
    %5 = arith.addf %2, %4 : vector<128x64xf32>
    %cst_5 = arith.constant 0.000000e+00 : f32
    %6 = vector.broadcast %cst_5 : f32 to vector<128x64xf32>
    %7 = arith.maximumf %5, %6 : vector<128x64xf32>
    %cst_6 = arith.constant dense<0.000000e+00> : vector<64xf32>
    %8 = vector.multi_reduction <add>, %7, %cst_6 [0] : vector<128x64xf32> to vector<64xf32>
    %9 = vector.shape_cast %8 : vector<64xf32> to vector<1x64xf32>
    %cst_7 = arith.constant 7.812500e-03 : f32
    %10 = vector.broadcast %cst_7 : f32 to vector<1x64xf32>
    %11 = arith.mulf %9, %10 : vector<1x64xf32>
    %12 = vector.broadcast %11 : vector<1x64xf32> to vector<128x64xf32>
    %13 = arith.subf %7, %12 : vector<128x64xf32>
    %14 = arith.mulf %13, %13 : vector<128x64xf32>
    %cst_8 = arith.constant dense<0.000000e+00> : vector<64xf32>
    %15 = vector.multi_reduction <add>, %14, %cst_8 [0] : vector<128x64xf32> to vector<64xf32>
    %16 = vector.shape_cast %15 : vector<64xf32> to vector<1x64xf32>
    %cst_9 = arith.constant 7.812500e-03 : f32
    %17 = vector.broadcast %cst_9 : f32 to vector<1x64xf32>
    %18 = arith.mulf %16, %17 : vector<1x64xf32>
    %cst_10 = arith.constant 9.99999974E-6 : f32
    %19 = vector.broadcast %cst_10 : f32 to vector<1x64xf32>
    %20 = arith.addf %18, %19 : vector<1x64xf32>
    %21 = math.rsqrt %20 : vector<1x64xf32>
    %22 = vector.broadcast %21 : vector<1x64xf32> to vector<128x64xf32>
    %23 = arith.mulf %13, %22 : vector<128x64xf32>
    %c0_11 = arith.constant 0 : index
    %c0_12 = arith.constant 0 : index
    %24 = vector.load %arg3[%c0_11, %c0_12] : memref<1x64xf32, #tpu.memory_space<vmem>>, vector<1x64xf32>
    %25 = vector.broadcast %24 : vector<1x64xf32> to vector<128x64xf32>
    %26 = arith.mulf %23, %25 : vector<128x64xf32>
    %c0_13 = arith.constant 0 : index
    %c0_14 = arith.constant 0 : index
    %27 = vector.load %arg4[%c0_13, %c0_14] : memref<1x64xf32, #tpu.memory_space<vmem>>, vector<1x64xf32>
    %28 = vector.broadcast %27 : vector<1x64xf32> to vector<128x64xf32>
    %29 = arith.addf %26, %28 : vector<128x64xf32>
    %c0_15 = arith.constant 0 : index
    %c0_16 = arith.constant 0 : index
    %30 = vector.load %arg5[%c0_15, %c0_16] : memref<128x64xf32, #tpu.memory_space<vmem>>, vector<128x64xf32>
    tpu.vector_store %arg5[%c0_15, %c0_16], %29 {strides = array<i32>} : memref<128x64xf32, #tpu.memory_space<vmem>>, vector<128x64xf32>,
    return
  }
}

module attributes {stable_mosaic.version = 11 : i64} {
  func.func @_maxpool_kernel(%arg0: memref<2x8x8x64xf32, #tpu.memory_space<vmem>>, %arg1: memref<2x4x4x64xf32, #tpu.memory_space<vmem>>) attributes {dimension_semantics = [], scalar_prefetch = 0 : i64, scratch_operands = 0 : i64, tpu.core_type = #tpu.core_type<tc>} {
    %c0 = arith.constant 0 : index
    %c0_0 = arith.constant 0 : index
    %c0_1 = arith.constant 0 : index
    %c0_2 = arith.constant 0 : index
    %0 = tpu.strided_load %arg0[%c0, %c0_0, %c0_1, %c0_2] {strides = array<i32: 1, 2, 2, 1>} : memref<2x8x8x64xf32, #tpu.memory_space<vmem>>, vector<2x4x4x64xf32>
    %c0_3 = arith.constant 0 : index
    %c0_4 = arith.constant 0 : index
    %c1 = arith.constant 1 : index
    %c0_5 = arith.constant 0 : index
    %1 = tpu.strided_load %arg0[%c0_3, %c0_4, %c1, %c0_5] {strides = array<i32: 1, 2, 2, 1>} : memref<2x8x8x64xf32, #tpu.memory_space<vmem>>, vector<2x4x4x64xf32>
    %2 = arith.maximumf %0, %1 : vector<2x4x4x64xf32>
    %c0_6 = arith.constant 0 : index
    %c1_7 = arith.constant 1 : index
    %c0_8 = arith.constant 0 : index
    %c0_9 = arith.constant 0 : index
    %3 = tpu.strided_load %arg0[%c0_6, %c1_7, %c0_8, %c0_9] {strides = array<i32: 1, 2, 2, 1>} : memref<2x8x8x64xf32, #tpu.memory_space<vmem>>, vector<2x4x4x64xf32>
    %4 = arith.maximumf %2, %3 : vector<2x4x4x64xf32>
    %c0_10 = arith.constant 0 : index
    %c1_11 = arith.constant 1 : index
    %c1_12 = arith.constant 1 : index
    %c0_13 = arith.constant 0 : index
    %5 = tpu.strided_load %arg0[%c0_10, %c1_11, %c1_12, %c0_13] {strides = array<i32: 1, 2, 2, 1>} : memref<2x8x8x64xf32, #tpu.memory_space<vmem>>, vector<2x4x4x64xf32>
    %6 = arith.maximumf %4, %5 : vector<2x4x4x64xf32>
    %c0_14 = arith.constant 0 : index
    %c0_15 = arith.constant 0 : index
    %c0_16 = arith.constant 0 : index
    %c0_17 = arith.constant 0 : index
    %7 = vector.load %arg1[%c0_14, %c0_15, %c0_16, %c0_17] : memref<2x4x4x64xf32, #tpu.memory_space<vmem>>, vector<2x4x4x64xf32>
    tpu.vector_store %arg1[%c0_14, %c0_15, %c0_16, %c0_17], %6 {strides = array<i32>} : memref<2x4x4x64xf32, #tpu.memory_space<vmem>>, vector<2x4x4x64xf32>,
    return
  }
}

module attributes {stable_mosaic.version = 11 : i64} {
  func.func @_gemm_kernel(%arg0: memref<32x64xbf16, #tpu.memory_space<vmem>>, %arg1: memref<64x384xbf16, #tpu.memory_space<vmem>>, %arg2: memref<1x384xf32, #tpu.memory_space<vmem>>, %arg3: memref<32x384xf32, #tpu.memory_space<vmem>>) attributes {dimension_semantics = [], scalar_prefetch = 0 : i64, scratch_operands = 0 : i64, tpu.core_type = #tpu.core_type<tc>} {
    %c0 = arith.constant 0 : index
    %c0_0 = arith.constant 0 : index
    %0 = vector.load %arg0[%c0, %c0_0] : memref<32x64xbf16, #tpu.memory_space<vmem>>, vector<32x64xbf16>
    %c0_1 = arith.constant 0 : index
    %c0_2 = arith.constant 0 : index
    %1 = vector.load %arg1[%c0_1, %c0_2] : memref<64x384xbf16, #tpu.memory_space<vmem>>, vector<64x384xbf16>
    %cst = arith.constant dense<0.000000e+00> : vector<32x384xf32>
    %2 = tpu.matmul %0, %1, %cst {dimension_numbers = #tpu.dot_dimension_numbers<[1], [0], [0], [1], [0, 0, 1, 1], [], []>} : vector<32x64xbf16>, vector<64x384xbf16>, vector<32x384xf32> -> vector<32x384xf32>
    %c0_3 = arith.constant 0 : index
    %c0_4 = arith.constant 0 : index
    %3 = vector.load %arg2[%c0_3, %c0_4] : memref<1x384xf32, #tpu.memory_space<vmem>>, vector<1x384xf32>
    %4 = vector.broadcast %3 : vector<1x384xf32> to vector<32x384xf32>
    %5 = arith.addf %2, %4 : vector<32x384xf32>
    %c0_5 = arith.constant 0 : index
    %c0_6 = arith.constant 0 : index
    %6 = vector.load %arg3[%c0_5, %c0_6] : memref<32x384xf32, #tpu.memory_space<vmem>>, vector<32x384xf32>
    tpu.vector_store %arg3[%c0_5, %c0_6], %5 {strides = array<i32>} : memref<32x384xf32, #tpu.memory_space<vmem>>, vector<32x384xf32>,
    return
  }
}

module attributes {stable_mosaic.version = 11 : i64} {
  func.func @_gemm_kernel(%arg0: memref<32x1152xbf16, #tpu.memory_space<vmem>>, %arg1: memref<1152x192xbf16, #tpu.memory_space<vmem>>, %arg2: memref<1x192xf32, #tpu.memory_space<vmem>>, %arg3: memref<32x192xf32, #tpu.memory_space<vmem>>) attributes {dimension_semantics = [], scalar_prefetch = 0 : i64, scratch_operands = 0 : i64, tpu.core_type = #tpu.core_type<tc>} {
    %c0 = arith.constant 0 : index
    %c0_0 = arith.constant 0 : index
    %0 = vector.load %arg0[%c0, %c0_0] : memref<32x1152xbf16, #tpu.memory_space<vmem>>, vector<32x1152xbf16>
    %c0_1 = arith.constant 0 : index
    %c0_2 = arith.constant 0 : index
    %1 = vector.load %arg1[%c0_1, %c0_2] : memref<1152x192xbf16, #tpu.memory_space<vmem>>, vector<1152x192xbf16>
    %cst = arith.constant dense<0.000000e+00> : vector<32x192xf32>
    %2 = tpu.matmul %0, %1, %cst {dimension_numbers = #tpu.dot_dimension_numbers<[1], [0], [0], [1], [0, 0, 1, 1], [], []>} : vector<32x1152xbf16>, vector<1152x192xbf16>, vector<32x192xf32> -> vector<32x192xf32>
    %c0_3 = arith.constant 0 : index
    %c0_4 = arith.constant 0 : index
    %3 = vector.load %arg2[%c0_3, %c0_4] : memref<1x192xf32, #tpu.memory_space<vmem>>, vector<1x192xf32>
    %4 = vector.broadcast %3 : vector<1x192xf32> to vector<32x192xf32>
    %5 = arith.addf %2, %4 : vector<32x192xf32>
    %c0_5 = arith.constant 0 : index
    %c0_6 = arith.constant 0 : index
    %6 = vector.load %arg3[%c0_5, %c0_6] : memref<32x192xf32, #tpu.memory_space<vmem>>, vector<32x192xf32>
    tpu.vector_store %arg3[%c0_5, %c0_6], %5 {strides = array<i32>} : memref<32x192xf32, #tpu.memory_space<vmem>>, vector<32x192xf32>,
    return
  }
}

module attributes {stable_mosaic.version = 11 : i64} {
  func.func @_gemm_kernel(%arg0: memref<32x3200xbf16, #tpu.memory_space<vmem>>, %arg1: memref<3200x256xbf16, #tpu.memory_space<vmem>>, %arg2: memref<1x256xf32, #tpu.memory_space<vmem>>, %arg3: memref<32x256xf32, #tpu.memory_space<vmem>>) attributes {dimension_semantics = [], scalar_prefetch = 0 : i64, scratch_operands = 0 : i64, tpu.core_type = #tpu.core_type<tc>} {
    %c0 = arith.constant 0 : index
    %c0_0 = arith.constant 0 : index
    %0 = vector.load %arg0[%c0, %c0_0] : memref<32x3200xbf16, #tpu.memory_space<vmem>>, vector<32x3200xbf16>
    %c0_1 = arith.constant 0 : index
    %c0_2 = arith.constant 0 : index
    %1 = vector.load %arg1[%c0_1, %c0_2] : memref<3200x256xbf16, #tpu.memory_space<vmem>>, vector<3200x256xbf16>
    %cst = arith.constant dense<0.000000e+00> : vector<32x256xf32>
    %2 = tpu.matmul %0, %1, %cst {dimension_numbers = #tpu.dot_dimension_numbers<[1], [0], [0], [1], [0, 0, 1, 1], [], []>} : vector<32x3200xbf16>, vector<3200x256xbf16>, vector<32x256xf32> -> vector<32x256xf32>
    %c0_3 = arith.constant 0 : index
    %c0_4 = arith.constant 0 : index
    %3 = vector.load %arg2[%c0_3, %c0_4] : memref<1x256xf32, #tpu.memory_space<vmem>>, vector<1x256xf32>
    %4 = vector.broadcast %3 : vector<1x256xf32> to vector<32x256xf32>
    %5 = arith.addf %2, %4 : vector<32x256xf32>
    %c0_5 = arith.constant 0 : index
    %c0_6 = arith.constant 0 : index
    %6 = vector.load %arg3[%c0_5, %c0_6] : memref<32x256xf32, #tpu.memory_space<vmem>>, vector<32x256xf32>
    tpu.vector_store %arg3[%c0_5, %c0_6], %5 {strides = array<i32>} : memref<32x256xf32, #tpu.memory_space<vmem>>, vector<32x256xf32>,
    return
  }
}

module attributes {stable_mosaic.version = 11 : i64} {
  func.func @_maxpool_kernel(%arg0: memref<2x6x6x64xf32, #tpu.memory_space<vmem>>, %arg1: memref<2x4x4x64xf32, #tpu.memory_space<vmem>>) attributes {dimension_semantics = [], scalar_prefetch = 0 : i64, scratch_operands = 0 : i64, tpu.core_type = #tpu.core_type<tc>} {
    %c0 = arith.constant 0 : index
    %c0_0 = arith.constant 0 : index
    %c0_1 = arith.constant 0 : index
    %c0_2 = arith.constant 0 : index
    %0 = vector.load %arg0[%c0, %c0_0, %c0_1, %c0_2] : memref<2x6x6x64xf32, #tpu.memory_space<vmem>>, vector<2x4x4x64xf32>
    %c0_3 = arith.constant 0 : index
    %c0_4 = arith.constant 0 : index
    %c1 = arith.constant 1 : index
    %c0_5 = arith.constant 0 : index
    %1 = vector.load %arg0[%c0_3, %c0_4, %c1, %c0_5] : memref<2x6x6x64xf32, #tpu.memory_space<vmem>>, vector<2x4x4x64xf32>
    %2 = arith.maximumf %0, %1 : vector<2x4x4x64xf32>
    %c0_6 = arith.constant 0 : index
    %c0_7 = arith.constant 0 : index
    %c2 = arith.constant 2 : index
    %c0_8 = arith.constant 0 : index
    %3 = vector.load %arg0[%c0_6, %c0_7, %c2, %c0_8] : memref<2x6x6x64xf32, #tpu.memory_space<vmem>>, vector<2x4x4x64xf32>
    %4 = arith.maximumf %2, %3 : vector<2x4x4x64xf32>
    %c0_9 = arith.constant 0 : index
    %c1_10 = arith.constant 1 : index
    %c0_11 = arith.constant 0 : index
    %c0_12 = arith.constant 0 : index
    %5 = vector.load %arg0[%c0_9, %c1_10, %c0_11, %c0_12] : memref<2x6x6x64xf32, #tpu.memory_space<vmem>>, vector<2x4x4x64xf32>
    %6 = arith.maximumf %4, %5 : vector<2x4x4x64xf32>
    %c0_13 = arith.constant 0 : index
    %c1_14 = arith.constant 1 : index
    %c1_15 = arith.constant 1 : index
    %c0_16 = arith.constant 0 : index
    %7 = vector.load %arg0[%c0_13, %c1_14, %c1_15, %c0_16] : memref<2x6x6x64xf32, #tpu.memory_space<vmem>>, vector<2x4x4x64xf32>
    %8 = arith.maximumf %6, %7 : vector<2x4x4x64xf32>
    %c0_17 = arith.constant 0 : index
    %c1_18 = arith.constant 1 : index
    %c2_19 = arith.constant 2 : index
    %c0_20 = arith.constant 0 : index
    %9 = vector.load %arg0[%c0_17, %c1_18, %c2_19, %c0_20] : memref<2x6x6x64xf32, #tpu.memory_space<vmem>>, vector<2x4x4x64xf32>
    %10 = arith.maximumf %8, %9 : vector<2x4x4x64xf32>
    %c0_21 = arith.constant 0 : index
    %c2_22 = arith.constant 2 : index
    %c0_23 = arith.constant 0 : index
    %c0_24 = arith.constant 0 : index
    %11 = vector.load %arg0[%c0_21, %c2_22, %c0_23, %c0_24] : memref<2x6x6x64xf32, #tpu.memory_space<vmem>>, vector<2x4x4x64xf32>
    %12 = arith.maximumf %10, %11 : vector<2x4x4x64xf32>
    %c0_25 = arith.constant 0 : index
    %c2_26 = arith.constant 2 : index
    %c1_27 = arith.constant 1 : index
    %c0_28 = arith.constant 0 : index
    %13 = vector.load %arg0[%c0_25, %c2_26, %c1_27, %c0_28] : memref<2x6x6x64xf32, #tpu.memory_space<vmem>>, vector<2x4x4x64xf32>
    %14 = arith.maximumf %12, %13 : vector<2x4x4x64xf32>
    %c0_29 = arith.constant 0 : index
    %c2_30 = arith.constant 2 : index
    %c2_31 = arith.constant 2 : index
    %c0_32 = arith.constant 0 : index
    %15 = vector.load %arg0[%c0_29, %c2_30, %c2_31, %c0_32] : memref<2x6x6x64xf32, #tpu.memory_space<vmem>>, vector<2x4x4x64xf32>
    %16 = arith.maximumf %14, %15 : vector<2x4x4x64xf32>
    %c0_33 = arith.constant 0 : index
    %c0_34 = arith.constant 0 : index
    %c0_35 = arith.constant 0 : index
    %c0_36 = arith.constant 0 : index
    %17 = vector.load %arg1[%c0_33, %c0_34, %c0_35, %c0_36] : memref<2x4x4x64xf32, #tpu.memory_space<vmem>>, vector<2x4x4x64xf32>
    tpu.vector_store %arg1[%c0_33, %c0_34, %c0_35, %c0_36], %16 {strides = array<i32>} : memref<2x4x4x64xf32, #tpu.memory_space<vmem>>, vector<2x4x4x64xf32>,
    return
  }
}

module attributes {stable_mosaic.version = 11 : i64} {
  func.func @_gemm_kernel(%arg0: memref<32x64xbf16, #tpu.memory_space<vmem>>, %arg1: memref<64x128xbf16, #tpu.memory_space<vmem>>, %arg2: memref<1x128xf32, #tpu.memory_space<vmem>>, %arg3: memref<32x128xf32, #tpu.memory_space<vmem>>) attributes {dimension_semantics = [], scalar_prefetch = 0 : i64, scratch_operands = 0 : i64, tpu.core_type = #tpu.core_type<tc>} {
    %c0 = arith.constant 0 : index
    %c0_0 = arith.constant 0 : index
    %0 = vector.load %arg0[%c0, %c0_0] : memref<32x64xbf16, #tpu.memory_space<vmem>>, vector<32x64xbf16>
    %c0_1 = arith.constant 0 : index
    %c0_2 = arith.constant 0 : index
    %1 = vector.load %arg1[%c0_1, %c0_2] : memref<64x128xbf16, #tpu.memory_space<vmem>>, vector<64x128xbf16>
    %cst = arith.constant dense<0.000000e+00> : vector<32x128xf32>
    %2 = tpu.matmul %0, %1, %cst {dimension_numbers = #tpu.dot_dimension_numbers<[1], [0], [0], [1], [0, 0, 1, 1], [], []>} : vector<32x64xbf16>, vector<64x128xbf16>, vector<32x128xf32> -> vector<32x128xf32>
    %c0_3 = arith.constant 0 : index
    %c0_4 = arith.constant 0 : index
    %3 = vector.load %arg2[%c0_3, %c0_4] : memref<1x128xf32, #tpu.memory_space<vmem>>, vector<1x128xf32>
    %4 = vector.broadcast %3 : vector<1x128xf32> to vector<32x128xf32>
    %5 = arith.addf %2, %4 : vector<32x128xf32>
    %c0_5 = arith.constant 0 : index
    %c0_6 = arith.constant 0 : index
    %6 = vector.load %arg3[%c0_5, %c0_6] : memref<32x128xf32, #tpu.memory_space<vmem>>, vector<32x128xf32>
    tpu.vector_store %arg3[%c0_5, %c0_6], %5 {strides = array<i32>} : memref<32x128xf32, #tpu.memory_space<vmem>>, vector<32x128xf32>,
    return
  }
}

module attributes {stable_mosaic.version = 11 : i64} {
  func.func @_gemm_tiled_kernel(%arg0: i32, %arg1: memref<2x1408xbf16, #tpu.memory_space<vmem>>, %arg2: memref<1408x1024xbf16, #tpu.memory_space<vmem>>, %arg3: memref<1x1024xf32, #tpu.memory_space<vmem>>, %arg4: memref<2x1024xf32, #tpu.memory_space<vmem>>) attributes {dimension_semantics = [#tpu.dimension_semantics<arbitrary>], iteration_bounds = array<i64: 8>, scalar_prefetch = 0 : i64, scratch_operands = 0 : i64, tpu.core_type = #tpu.core_type<tc>, window_params = [{transform_indices = @transform_0, window_bounds = array<i64: 2, 1408>}, {transform_indices = @transform_1, window_bounds = array<i64: 1408, 1024>}, {pipeline_mode = #tpu.pipeline_mode<synchronous>, transform_indices = @transform_2, window_bounds = array<i64: 1, 1024>}, {pipeline_mode = #tpu.pipeline_mode<synchronous>, transform_indices = @transform_3, window_bounds = array<i64: 2, 1024>}]} {
    %c0_i32 = arith.constant 0 : i32
    %0 = arith.cmpi eq, %arg0, %c0_i32 : i32
    %1 = arith.extui %0 : i1 to i32
    %c0_i32_0 = arith.constant 0 : i32
    %2 = arith.cmpi ne, %1, %c0_i32_0 : i32
    scf.if %2 {
      %cst_8 = arith.constant 0.000000e+00 : f32
      %9 = vector.broadcast %cst_8 : f32 to vector<2x1024xf32>
      %c0_9 = arith.constant 0 : index
      %c0_10 = arith.constant 0 : index
      %10 = vector.load %arg3[%c0_9, %c0_10] : memref<1x1024xf32, #tpu.memory_space<vmem>>, vector<1x1024xf32>
      %11 = vector.broadcast %10 : vector<1x1024xf32> to vector<2x1024xf32>
      %12 = arith.addf %9, %11 : vector<2x1024xf32>
      %c0_11 = arith.constant 0 : index
      %c0_12 = arith.constant 0 : index
      %13 = vector.load %arg4[%c0_11, %c0_12] : memref<2x1024xf32, #tpu.memory_space<vmem>>, vector<2x1024xf32>
      tpu.vector_store %arg4[%c0_11, %c0_12], %12 {strides = array<i32>} : memref<2x1024xf32, #tpu.memory_space<vmem>>, vector<2x1024xf32>,
    } else {
    }
    %c0 = arith.constant 0 : index
    %c0_1 = arith.constant 0 : index
    %3 = vector.load %arg4[%c0, %c0_1] : memref<2x1024xf32, #tpu.memory_space<vmem>>, vector<2x1024xf32>
    %c0_2 = arith.constant 0 : index
    %c0_3 = arith.constant 0 : index
    %4 = vector.load %arg1[%c0_2, %c0_3] : memref<2x1408xbf16, #tpu.memory_space<vmem>>, vector<2x1408xbf16>
    %c0_4 = arith.constant 0 : index
    %c0_5 = arith.constant 0 : index
    %5 = vector.load %arg2[%c0_4, %c0_5] : memref<1408x1024xbf16, #tpu.memory_space<vmem>>, vector<1408x1024xbf16>
    %cst = arith.constant dense<0.000000e+00> : vector<2x1024xf32>
    %6 = tpu.matmul %4, %5, %cst {dimension_numbers = #tpu.dot_dimension_numbers<[1], [0], [0], [1], [0, 0, 1, 1], [], []>} : vector<2x1408xbf16>, vector<1408x1024xbf16>, vector<2x1024xf32> -> vector<2x1024xf32>
    %7 = arith.addf %3, %6 : vector<2x1024xf32>
    %c0_6 = arith.constant 0 : index
    %c0_7 = arith.constant 0 : index
    %8 = vector.load %arg4[%c0_6, %c0_7] : memref<2x1024xf32, #tpu.memory_space<vmem>>, vector<2x1024xf32>
    tpu.vector_store %arg4[%c0_6, %c0_7], %7 {strides = array<i32>} : memref<2x1024xf32, #tpu.memory_space<vmem>>, vector<2x1024xf32>,
    return
  }
  func.func @transform_0(%arg0: i32) -> (i32, i32) {
    %c0_i32 = arith.constant 0 : i32
    %c0_i32_0 = arith.constant 0 : i32
    return %c0_i32, %arg0 : i32, i32
  }
  func.func @transform_1(%arg0: i32) -> (i32, i32) {
    %c0_i32 = arith.constant 0 : i32
    %c0_i32_0 = arith.constant 0 : i32
    return %arg0, %c0_i32 : i32, i32
  }
  func.func @transform_2(%arg0: i32) -> (i32, i32) {
    %c0_i32 = arith.constant 0 : i32
    %c0_i32_0 = arith.constant 0 : i32
    %c0_i32_1 = arith.constant 0 : i32
    return %c0_i32, %c0_i32_0 : i32, i32
  }
  func.func @transform_3(%arg0: i32) -> (i32, i32) {
    %c0_i32 = arith.constant 0 : i32
    %c0_i32_0 = arith.constant 0 : i32
    %c0_i32_1 = arith.constant 0 : i32
    return %c0_i32, %c0_i32_0 : i32, i32
  }
}

module attributes {stable_mosaic.version = 11 : i64} {
  func.func @_linear_softmax_kernel(%arg0: memref<2x1024xbf16, #tpu.memory_space<vmem>>, %arg1: memref<1024x10xbf16, #tpu.memory_space<vmem>>, %arg2: memref<1x10xf32, #tpu.memory_space<vmem>>, %arg3: memref<2x10xf32, #tpu.memory_space<vmem>>) attributes {dimension_semantics = [], scalar_prefetch = 0 : i64, scratch_operands = 0 : i64, tpu.core_type = #tpu.core_type<tc>} {
    %c0 = arith.constant 0 : index
    %c0_0 = arith.constant 0 : index
    %0 = vector.load %arg0[%c0, %c0_0] : memref<2x1024xbf16, #tpu.memory_space<vmem>>, vector<2x1024xbf16>
    %c0_1 = arith.constant 0 : index
    %c0_2 = arith.constant 0 : index
    %1 = vector.load %arg1[%c0_1, %c0_2] : memref<1024x10xbf16, #tpu.memory_space<vmem>>, vector<1024x10xbf16>
    %cst = arith.constant dense<0.000000e+00> : vector<2x10xf32>
    %2 = tpu.matmul %0, %1, %cst {dimension_numbers = #tpu.dot_dimension_numbers<[1], [0], [0], [1], [0, 0, 1, 1], [], []>} : vector<2x1024xbf16>, vector<1024x10xbf16>, vector<2x10xf32> -> vector<2x10xf32>
    %c0_3 = arith.constant 0 : index
    %c0_4 = arith.constant 0 : index
    %3 = vector.load %arg2[%c0_3, %c0_4] : memref<1x10xf32, #tpu.memory_space<vmem>>, vector<1x10xf32>
    %4 = vector.broadcast %3 : vector<1x10xf32> to vector<2x10xf32>
    %5 = arith.addf %2, %4 : vector<2x10xf32>
    %cst_5 = arith.constant dense<0xFF800000> : vector<2xf32>
    %6 = vector.multi_reduction <maximumf>, %5, %cst_5 [1] : vector<2x10xf32> to vector<2xf32>
    %7 = vector.shape_cast %6 : vector<2xf32> to vector<2x1xf32>
    %8 = vector.broadcast %7 : vector<2x1xf32> to vector<2x10xf32>
    %9 = arith.subf %5, %8 : vector<2x10xf32>
    %10 = math.exp %9 : vector<2x10xf32>
    %cst_6 = arith.constant dense<0.000000e+00> : vector<2xf32>
    %11 = vector.multi_reduction <add>, %10, %cst_6 [1] : vector<2x10xf32> to vector<2xf32>
    %12 = vector.shape_cast %11 : vector<2xf32> to vector<2x1xf32>
    %13 = vector.broadcast %12 : vector<2x1xf32> to vector<2x10xf32>
    %14 = arith.divf %10, %13 : vector<2x10xf32>
    %c0_7 = arith.constant 0 : index
    %c0_8 = arith.constant 0 : index
    %15 = vector.load %arg3[%c0_7, %c0_8] : memref<2x10xf32, #tpu.memory_space<vmem>>, vector<2x10xf32>
    tpu.vector_store %arg3[%c0_7, %c0_8], %14 {strides = array<i32>} : memref<2x10xf32, #tpu.memory_space<vmem>>, vector<2x10xf32>,
    return
  }
}

</mosaic_0001>

<bundles_post_ra>
// kernel: forward.14
= control target key start
LH: loop header
LB: loop body
LE: loop exit
PB: predicated region body
PF: predicated region fallthrough
CT: control target
= control target key end

     0   :  { %vm86_vm0 = vcmask 130048   ;;  %vm224_vm1 = vcmask 261120   ;;  %s423_s1 = inlined_call_operand.vmem [shape: bf16[16,32], index: 1, kind: input, shape index: {}]   ;;  %s424_s0 = inlined_call_operand.vmem [shape: bf16[128,16], index: 0, kind: input, shape index: {}]   ;;  %s425_s2 = inlined_call_operand.vmem [shape: f32[1,32], index: 2, kind: input, shape index: {}]   ;;  %s426_s3 = inlined_call_operand.vmem [shape: f32[128,32], index: 3, kind: output, shape index: {}]  }
   0x1   :  { %v292_v0 = vld [vmem:[%s423_s1] sm:$0xff]   ;;  %v295_v3 = vld [vmem:[%s424_s0 + $0x8] sm:$0xff]   ;;  %v297_v5 = vld [vmem:[%s424_s0 + $0x10] sm:$0xff]  }
   0x2   :  { %v293_v1 = vld [vmem:[%s424_s0] sm:$0xff]   ;;  %272 = vmatprep.subr.bf16.mxu0 %v292_v0  ;;  %290 = vmatprep.subr.bf16.mxu1 %v292_v0  ;;  %v296_v4 = vld [vmem:[%s424_s0 + $0x28] sm:$0xff]   ;;  %v298_v6 = vld [vmem:[%s424_s0 + $0x30] sm:$0xff]  }
   0x3   :  { %v294_v2 = vld [vmem:[%s424_s0 + $0x20] sm:$0xff]   ;;  %273 = vmatpush3.bf16.msra.mxu0 %v292_v0  ;;  %291 = vmatpush3.bf16.msra.mxu1 %v292_v0  ;;  %v299_v7 = vld [vmem:[%s424_s0 + $0x18] sm:$0xff]  }
   0x4   :  { %274 = vmatprep.mubr.msk.bf16.mxu0 %vm86_vm0, %v293_v1  ;;  %282 = vmatprep.mubr.msk.bf16.mxu1 %vm86_vm0, %v294_v2  ;;  %v300_v8 = vld [vmem:[%s424_s0 + $0x38] sm:$0xff]   ;;  %v245_v9 = vld [vmem:[%s425_s2] ss:$0 sm:$0xff] }
   0x6   :  { %275 = vmatmul.mubr.msk.bf16.vlgmr.msra.gmra.mrb[0].mxu0 %vm86_vm0, %v295_v3  ;;  %283 = vmatmul.mubr.msk.bf16.vlgmr.msra.gmra.mrb[0].mxu1 %vm86_vm0, %v296_v4 }
   0x7   :  { %278 = vmatprep.mubr.msk.bf16.mxu0 %vm86_vm0, %v297_v5  ;;  %286 = vmatprep.mubr.msk.bf16.mxu1 %vm86_vm0, %v298_v6 }
   0xe   :  { %279 = vmatmul.mubr.msk.bf16.gmra.mrb[4].mxu0 %vm86_vm0, %v299_v7  ;;  %287 = vmatmul.mubr.msk.bf16.gmra.mrb[4].mxu1 %vm86_vm0, %v300_v8 }
  0xd9   :  { %v276_v10 = vpop.f32.mrb[0].mxu0  ;;  %v284_v11 = vpop.f32.mrb[0].mxu1 }
  0xda   :  { %v154_v12 = vadd.f32 %v276_v10, %v245_v9  ;;  %v186_v13 = vadd.f32 %v284_v11, %v245_v9  ;;  %v145_v14 = vpop.f32.mrb[1].mxu0  ;;  %v177_v15 = vpop.f32.mrb[1].mxu1 }
  0xdb   :  { %v146_v16 = vadd.f32 %v245_v9, %v145_v14  ;;  %v178_v17 = vadd.f32 %v245_v9, %v177_v15  ;;  %v277_v18 = vpop.f32.mrb[2].mxu0  ;;  %v285_v19 = vpop.f32.mrb[2].mxu1 }
  0xdc   :  { %v210_v20 = vmax.f32 %v154_v12, 0.0  ;;  %v218_v21 = vmax.f32 %v186_v13, 0.0  ;;  %v157_v22 = vadd.f32 %v277_v18, %v245_v9  ;;  %v189_v23 = vadd.f32 %v285_v19, %v245_v9  ;;  %v148_v24 = vpop.f32.mrb[3].mxu0  ;;  %v180_v25 = vpop.f32.mrb[3].mxu1 }
  0xdd   :  { %v208_v26 = vmax.f32 %v146_v16, 0.0  ;;  %v216_v27 = vmax.f32 %v178_v17, 0.0  ;;  %v149_v28 = vadd.f32 %v245_v9, %v148_v24  ;;  %v181_v29 = vadd.f32 %v245_v9, %v180_v25 }
  0xde   :  { %227 = vst.msk [vmem:[%s426_s3 + $0x10] sm:$0xff] %vm224_vm1, %v210_v20  ;;  %235 = vst.msk [vmem:[%s426_s3 + $0x50] sm:$0xff] %vm224_vm1, %v218_v21  ;;  %v211_v30 = vmax.f32 %v157_v22, 0.0  ;;  %v219_v31 = vmax.f32 %v189_v23, 0.0 }
  0xdf   :  { %225 = vst.msk [vmem:[%s426_s3] sm:$0xff] %vm224_vm1, %v208_v26  ;;  %233 = vst.msk [vmem:[%s426_s3 + $0x40] sm:$0xff] %vm224_vm1, %v216_v27  ;;  %v209_v32 = vmax.f32 %v149_v28, 0.0  ;;  %v217_v33 = vmax.f32 %v181_v29, 0.0 }
  0xe0   :  { %228 = vst.msk [vmem:[%s426_s3 + $0x18] sm:$0xff] %vm224_vm1, %v211_v30  ;;  %236 = vst.msk [vmem:[%s426_s3 + $0x58] sm:$0xff] %vm224_vm1, %v219_v31 }
  0xe1   :  { %226 = vst.msk [vmem:[%s426_s3 + $0x8] sm:$0xff] %vm224_vm1, %v209_v32  ;;  %234 = vst.msk [vmem:[%s426_s3 + $0x48] sm:$0xff] %vm224_vm1, %v217_v33  ;;  %v280_v34 = vpop.f32.mrb[4].mxu0  ;;  %v288_v35 = vpop.f32.mrb[4].mxu1 }
  0xe2   :  { %v170_v36 = vadd.f32 %v280_v34, %v245_v9  ;;  %v202_v37 = vadd.f32 %v288_v35, %v245_v9  ;;  %v161_v38 = vpop.f32.mrb[5].mxu0  ;;  %v193_v39 = vpop.f32.mrb[5].mxu1 }
  0xe3   :  { %v162_v40 = vadd.f32 %v245_v9, %v161_v38  ;;  %v194_v41 = vadd.f32 %v245_v9, %v193_v39  ;;  %v281_v42 = vpop.f32.mrb[6].mxu0  ;;  %v289_v43 = vpop.f32.mrb[6].mxu1 }
  0xe4   :  { %v214_v44 = vmax.f32 %v170_v36, 0.0  ;;  %v222_v45 = vmax.f32 %v202_v37, 0.0  ;;  %v173_v46 = vadd.f32 %v281_v42, %v245_v9  ;;  %v205_v47 = vadd.f32 %v289_v43, %v245_v9  ;;  %v164_v48 = vpop.f32.mrb[7].mxu0  ;;  %v196_v49 = vpop.f32.mrb[7].mxu1 }
  0xe5   :  { %v212_v50 = vmax.f32 %v162_v40, 0.0  ;;  %v220_v51 = vmax.f32 %v194_v41, 0.0  ;;  %v165_v52 = vadd.f32 %v245_v9, %v164_v48  ;;  %v197_v53 = vadd.f32 %v245_v9, %v196_v49 }
  0xe6   :  { %231 = vst.msk [vmem:[%s426_s3 + $0x30] sm:$0xff] %vm224_vm1, %v214_v44  ;;  %239 = vst.msk [vmem:[%s426_s3 + $0x70] sm:$0xff] %vm224_vm1, %v222_v45  ;;  %v215_v54 = vmax.f32 %v173_v46, 0.0  ;;  %v223_v55 = vmax.f32 %v205_v47, 0.0 }
  0xe7   :  { %229 = vst.msk [vmem:[%s426_s3 + $0x20] sm:$0xff] %vm224_vm1, %v212_v50  ;;  %237 = vst.msk [vmem:[%s426_s3 + $0x60] sm:$0xff] %vm224_vm1, %v220_v51  ;;  %v213_v56 = vmax.f32 %v165_v52, 0.0  ;;  %v221_v57 = vmax.f32 %v197_v53, 0.0 }
  0xe8   :  { %232 = vst.msk [vmem:[%s426_s3 + $0x38] sm:$0xff] %vm224_vm1, %v215_v54  ;;  %240 = vst.msk [vmem:[%s426_s3 + $0x78] sm:$0xff] %vm224_vm1, %v223_v55 }
  0xe9   :  { %230 = vst.msk [vmem:[%s426_s3 + $0x28] sm:$0xff] %vm224_vm1, %v213_v56  ;;  %238 = vst.msk [vmem:[%s426_s3 + $0x68] sm:$0xff] %vm224_vm1, %v221_v57 }

// kernel: forward.12
= control target key start
LH: loop header
LB: loop body
LE: loop exit
PB: predicated region body
PF: predicated region fallthrough
CT: control target
= control target key end

     0   :  { %v443_v0 = vmov 0   ;;  %vm186_vm0 = vcmask 154624   ;;  %vm211_vm1 = vcmask 1040384   ;;  %vm212_vm2 = vcmask 1041408   ;;  %s636_s1 = inlined_call_operand.vmem [shape: bf16[147,16], index: 1, kind: input, shape index: {}]   ;;  %s637_s0 = inlined_call_operand.vmem [shape: bf16[128,147], index: 0, kind: input, shape index: {}]   ;;  %s638_s2 = inlined_call_operand.vmem [shape: f32[1,16], index: 2, kind: input, shape index: {}]   ;;  %s639_s3 = inlined_call_operand.vmem [shape: f32[128,16], index: 3, kind: output, shape index: {}]  }
   0x1   :  { %218 = vmatprep.subr.bf16.mxu0 %v443_v0  ;;  %387 = vmatprep.subr.bf16.mxu1 %v443_v0  ;;  %v409_v1 = vld [vmem:[%s636_s1] sm:$0xff]   ;;  %v410_v2 = vld [vmem:[%s636_s1 + $0x8] sm:$0xff]   ;;  %v411_v3 = vld [vmem:[%s636_s1 + $0x10] sm:$0xff]   ;;  %v444_v11 = vmov 65535   ;;  %vm331_vm3 = vcmask 130048  }
   0x2   :  { %219 = vmatpush1.bf16.msra.mxu0 %v409_v1  ;;  %397 = vmatpush1.bf16.msra.mxu1 %v409_v1  ;;  %v412_v4 = vld [vmem:[%s636_s1 + $0x18] sm:$0xff]   ;;  %v421_v5 = vld [vmem:[%s637_s0 + $0x4] ss:$8 sps:$4 sm:$0xff]   ;;  %v415_v9 = vld [vmem:[%s636_s1 + $0x30] sm:$0xff]   ;;  %v213_v12 = vsel %vm211_vm1, 4294967295, %v444_v11 }
   0x3   :  { %220 = vmatprep.subr.bf16.mxu0 %v443_v0  ;;  %388 = vmatprep.subr.bf16.mxu1 %v443_v0  ;;  %v424_v6 = vld [vmem:[%s637_s0 + $0x44] ss:$8 sps:$4 sm:$0xff]   ;;  %v416_v10 = vld [vmem:[%s636_s1 + $0x38] sm:$0xff]   ;;  %v418_v14 = vld [vmem:[%s636_s1 + $0x48] ss:$0 sps:$4 sm:$0x33]  }
   0x4   :  { %379 = vmatprep.mubr.msk.bf16.mxu0 %vm186_vm0, %v421_v5  ;;  %v413_v7 = vld [vmem:[%s636_s1 + $0x20] sm:$0xff]   ;;  %383 = vmatprep.mubr.msk.bf16.mxu1 %vm186_vm0, %v424_v6  ;;  %v414_v8 = vld [vmem:[%s636_s1 + $0x28] sm:$0xff]   ;;  %v214_v15 = vsel %vm212_vm2, %v213_v12, 0  ;;  %v425_v19 = vld [vmem:[%s637_s0 + $0x14] ss:$8 sps:$4 sm:$0xff]  }
   0x5   :  { %v417_v13 = vld [vmem:[%s636_s1 + $0x40] sm:$0xff]   ;;  %v216_v16 = vand.u32 %v418_v14, %v214_v15  ;;  %v427_v20 = vld [vmem:[%s637_s0 + $0x54] ss:$8 sps:$4 sm:$0xff]   ;;  %v429_v21 = vld [vmem:[%s637_s0 + $0x10] ss:$8 sps:$4 sm:$0xff]  }
   0x6   :  { %221 = vmatpush1.bf16.msra.mxu0 %v410_v2  ;;  %398 = vmatpush1.bf16.msra.mxu1 %v410_v2  ;;  %v419_v17 = vld [vmem:[%s637_s0] ss:$8 sps:$4 sm:$0xff]   ;;  %v430_v22 = vld [vmem:[%s637_s0 + $0x50] ss:$8 sps:$4 sm:$0xff]   ;;  %v431_v23 = vld [vmem:[%s637_s0 + $0x24] ss:$8 sps:$4 sm:$0xff]  }
   0x7   :  { %222 = vmatprep.subr.bf16.mxu0 %v443_v0  ;;  %389 = vmatprep.subr.bf16.mxu1 %v443_v0  ;;  %v422_v18 = vld [vmem:[%s637_s0 + $0x40] ss:$8 sps:$4 sm:$0xff]   ;;  %v433_v24 = vld [vmem:[%s637_s0 + $0x64] ss:$8 sps:$4 sm:$0xff]   ;;  %v437_v27 = vld [vmem:[%s637_s0 + $0x34] ss:$8 sps:$4 sm:$0xff]  }
   0x8   :  { %v435_v25 = vld [vmem:[%s637_s0 + $0x20] ss:$8 sps:$4 sm:$0xff]   ;;  %v439_v28 = vld [vmem:[%s637_s0 + $0x74] ss:$8 sps:$4 sm:$0xff]   ;;  %v441_v29 = vld [vmem:[%s637_s0 + $0x30] ss:$8 sps:$4 sm:$0xff]  }
   0x9   :  { %v436_v26 = vld [vmem:[%s637_s0 + $0x60] ss:$8 sps:$4 sm:$0xff]   ;;  %v442_v30 = vld [vmem:[%s637_s0 + $0x70] ss:$8 sps:$4 sm:$0xff]  }
   0xa   :  { %223 = vmatpush1.bf16.msra.mxu0 %v411_v3  ;;  %399 = vmatpush1.bf16.msra.mxu1 %v411_v3  ;;  %v554_v31 = vld [vmem:[%s638_s2] ss:$0 sm:$0xff] }
   0xb   :  { %224 = vmatprep.subr.bf16.mxu0 %v443_v0  ;;  %390 = vmatprep.subr.bf16.mxu1 %v443_v0 }
   0xe   :  { %225 = vmatpush1.bf16.msra.mxu0 %v412_v4  ;;  %400 = vmatpush1.bf16.msra.mxu1 %v412_v4 }
   0xf   :  { %226 = vmatprep.subr.bf16.mxu0 %v443_v0  ;;  %391 = vmatprep.subr.bf16.mxu1 %v443_v0 }
  0x12   :  { %227 = vmatpush1.bf16.msra.mxu0 %v413_v7  ;;  %401 = vmatpush1.bf16.msra.mxu1 %v413_v7 }
  0x13   :  { %228 = vmatprep.subr.bf16.mxu0 %v443_v0  ;;  %392 = vmatprep.subr.bf16.mxu1 %v443_v0 }
  0x16   :  { %229 = vmatpush1.bf16.msra.mxu0 %v414_v8  ;;  %402 = vmatpush1.bf16.msra.mxu1 %v414_v8 }
  0x17   :  { %230 = vmatprep.subr.bf16.mxu0 %v443_v0  ;;  %393 = vmatprep.subr.bf16.mxu1 %v443_v0 }
  0x1a   :  { %231 = vmatpush1.bf16.msra.mxu0 %v415_v9  ;;  %403 = vmatpush1.bf16.msra.mxu1 %v415_v9 }
  0x1b   :  { %232 = vmatprep.subr.bf16.mxu0 %v443_v0  ;;  %394 = vmatprep.subr.bf16.mxu1 %v443_v0 }
  0x1e   :  { %233 = vmatpush1.bf16.msra.mxu0 %v416_v10  ;;  %404 = vmatpush1.bf16.msra.mxu1 %v416_v10 }
  0x1f   :  { %234 = vmatprep.subr.bf16.mxu0 %v443_v0  ;;  %395 = vmatprep.subr.bf16.mxu1 %v443_v0 }
  0x22   :  { %235 = vmatpush1.bf16.msra.mxu0 %v417_v13  ;;  %405 = vmatpush1.bf16.msra.mxu1 %v417_v13 }
  0x23   :  { %236 = vmatprep.subr.bf16.mxu0 %v443_v0  ;;  %396 = vmatprep.subr.bf16.mxu1 %v443_v0 }
  0x26   :  { %237 = vmatpush1.bf16.msra.mxu0 %v216_v16  ;;  %406 = vmatpush1.bf16.msra.mxu1 %v216_v16 }
  0x29   :  { %251 = vmatmul.mubr.bf16.vlgmr.msra.gmra.mrb[0].mxu0 %v419_v17  ;;  %283 = vmatmul.mubr.bf16.vlgmr.msra.gmra.mrb[0].mxu1 %v422_v18 }
  0x2a   :  { %380 = vmatprep.mubr.msk.bf16.mxu0 %vm186_vm0, %v425_v19  ;;  %384 = vmatprep.mubr.msk.bf16.mxu1 %vm186_vm0, %v427_v20 }
  0x31   :  { %259 = vmatmul.mubr.bf16.gmra.mrb[4].mxu0 %v429_v21  ;;  %291 = vmatmul.mubr.bf16.gmra.mrb[4].mxu1 %v430_v22 }
  0x32   :  { %381 = vmatprep.mubr.msk.bf16.mxu0 %vm186_vm0, %v431_v23  ;;  %385 = vmatprep.mubr.msk.bf16.mxu1 %vm186_vm0, %v433_v24 }
  0x39   :  { %267 = vmatmul.mubr.bf16.gmra.mrb[8].mxu0 %v435_v25  ;;  %299 = vmatmul.mubr.bf16.gmra.mrb[8].mxu1 %v436_v26 }
  0x3a   :  { %382 = vmatprep.mubr.msk.bf16.mxu0 %vm186_vm0, %v437_v27  ;;  %386 = vmatprep.mubr.msk.bf16.mxu1 %vm186_vm0, %v439_v28 }
  0x41   :  { %275 = vmatmul.mubr.bf16.gmra.mrb[12].mxu0 %v441_v29  ;;  %307 = vmatmul.mubr.bf16.gmra.mrb[12].mxu1 %v442_v30 }
  0xfc   :  { %v252_v32 = vpop.f32.mrb[0].mxu0  ;;  %v284_v33 = vpop.f32.mrb[0].mxu1 }
  0xfd   :  { %v253_v34 = vadd.f32 %v554_v31, %v252_v32  ;;  %v285_v35 = vadd.f32 %v554_v31, %v284_v33  ;;  %v254_v36 = vpop.f32.mrb[1].mxu0  ;;  %v286_v37 = vpop.f32.mrb[1].mxu1 }
  0xfe   :  { %v255_v38 = vpop.f32.mrb[2].mxu0  ;;  %v287_v39 = vpop.f32.mrb[2].mxu1 }
  0xff   :  { %v315_v40 = vmax.f32 %v253_v34, 0.0  ;;  %v323_v41 = vmax.f32 %v285_v35, 0.0  ;;  %v256_v42 = vadd.f32 %v554_v31, %v255_v38  ;;  %v288_v43 = vadd.f32 %v554_v31, %v287_v39  ;;  %v257_v44 = vpop.f32.mrb[3].mxu0  ;;  %v289_v45 = vpop.f32.mrb[3].mxu1 }
 0x101   :  { %332 = vst.msk [vmem:[%s639_s3] sm:$0xff] %vm331_vm3, %v315_v40  ;;  %340 = vst.msk [vmem:[%s639_s3 + $0x40] sm:$0xff] %vm331_vm3, %v323_v41  ;;  %v316_v46 = vmax.f32 %v256_v42, 0.0  ;;  %v324_v47 = vmax.f32 %v288_v43, 0.0 }
 0x103   :  { %333 = vst.msk [vmem:[%s639_s3 + $0x8] sm:$0xff] %vm331_vm3, %v316_v46  ;;  %341 = vst.msk [vmem:[%s639_s3 + $0x48] sm:$0xff] %vm331_vm3, %v324_v47 }
 0x104   :  { %v260_v48 = vpop.f32.mrb[4].mxu0  ;;  %v292_v49 = vpop.f32.mrb[4].mxu1 }
 0x105   :  { %v261_v50 = vadd.f32 %v554_v31, %v260_v48  ;;  %v293_v51 = vadd.f32 %v554_v31, %v292_v49  ;;  %v262_v52 = vpop.f32.mrb[5].mxu0  ;;  %v294_v53 = vpop.f32.mrb[5].mxu1 }
 0x106   :  { %v263_v54 = vpop.f32.mrb[6].mxu0  ;;  %v295_v55 = vpop.f32.mrb[6].mxu1 }
 0x107   :  { %v317_v56 = vmax.f32 %v261_v50, 0.0  ;;  %v325_v57 = vmax.f32 %v293_v51, 0.0  ;;  %v264_v58 = vadd.f32 %v554_v31, %v263_v54  ;;  %v296_v59 = vadd.f32 %v554_v31, %v295_v55  ;;  %v265_v60 = vpop.f32.mrb[7].mxu0  ;;  %v297_v61 = vpop.f32.mrb[7].mxu1 }
 0x109   :  { %334 = vst.msk [vmem:[%s639_s3 + $0x10] sm:$0xff] %vm331_vm3, %v317_v56  ;;  %342 = vst.msk [vmem:[%s639_s3 + $0x50] sm:$0xff] %vm331_vm3, %v325_v57  ;;  %v318_v62 = vmax.f32 %v264_v58, 0.0  ;;  %v326_v63 = vmax.f32 %v296_v59, 0.0 }
 0x10b   :  { %335 = vst.msk [vmem:[%s639_s3 + $0x18] sm:$0xff] %vm331_vm3, %v318_v62  ;;  %343 = vst.msk [vmem:[%s639_s3 + $0x58] sm:$0xff] %vm331_vm3, %v326_v63 }
 0x10c   :  { %v268_v0 = vpop.f32.mrb[8].mxu0  ;;  %v300_v1 = vpop.f32.mrb[8].mxu1 }
 0x10d   :  { %v269_v2 = vadd.f32 %v554_v31, %v268_v0  ;;  %v301_v3 = vadd.f32 %v554_v31, %v300_v1  ;;  %v270_v4 = vpop.f32.mrb[9].mxu0  ;;  %v302_v5 = vpop.f32.mrb[9].mxu1 }
 0x10e   :  { %v271_v6 = vpop.f32.mrb[10].mxu0  ;;  %v303_v7 = vpop.f32.mrb[10].mxu1 }
 0x10f   :  { %v319_v8 = vmax.f32 %v269_v2, 0.0  ;;  %v327_v9 = vmax.f32 %v301_v3, 0.0  ;;  %v272_v10 = vadd.f32 %v554_v31, %v271_v6  ;;  %v304_v11 = vadd.f32 %v554_v31, %v303_v7  ;;  %v273_v12 = vpop.f32.mrb[11].mxu0  ;;  %v305_v13 = vpop.f32.mrb[11].mxu1 }
 0x111   :  { %336 = vst.msk [vmem:[%s639_s3 + $0x20] sm:$0xff] %vm331_vm3, %v319_v8  ;;  %344 = vst.msk [vmem:[%s639_s3 + $0x60] sm:$0xff] %vm331_vm3, %v327_v9  ;;  %v320_v14 = vmax.f32 %v272_v10, 0.0  ;;  %v328_v15 = vmax.f32 %v304_v11, 0.0 }
 0x113   :  { %337 = vst.msk [vmem:[%s639_s3 + $0x28] sm:$0xff] %vm331_vm3, %v320_v14  ;;  %345 = vst.msk [vmem:[%s639_s3 + $0x68] sm:$0xff] %vm331_vm3, %v328_v15 }
 0x114   :  { %v276_v16 = vpop.f32.mrb[12].mxu0  ;;  %v308_v17 = vpop.f32.mrb[12].mxu1 }
 0x115   :  { %v277_v18 = vadd.f32 %v554_v31, %v276_v16  ;;  %v309_v19 = vadd.f32 %v554_v31, %v308_v17  ;;  %v278_v20 = vpop.f32.mrb[13].mxu0  ;;  %v310_v21 = vpop.f32.mrb[13].mxu1 }
 0x116   :  { %v279_v22 = vpop.f32.mrb[14].mxu0  ;;  %v311_v23 = vpop.f32.mrb[14].mxu1 }
 0x117   :  { %v321_v24 = vmax.f32 %v277_v18, 0.0  ;;  %v329_v25 = vmax.f32 %v309_v19, 0.0  ;;  %v280_v26 = vadd.f32 %v554_v31, %v279_v22  ;;  %v312_v27 = vadd.f32 %v554_v31, %v311_v23  ;;  %v281_v28 = vpop.f32.mrb[15].mxu0  ;;  %v313_v29 = vpop.f32.mrb[15].mxu1 }
 0x119   :  { %338 = vst.msk [vmem:[%s639_s3 + $0x30] sm:$0xff] %vm331_vm3, %v321_v24  ;;  %346 = vst.msk [vmem:[%s639_s3 + $0x70] sm:$0xff] %vm331_vm3, %v329_v25  ;;  %v322_v30 = vmax.f32 %v280_v26, 0.0  ;;  %v330_v32 = vmax.f32 %v312_v27, 0.0 }
 0x11b   :  { %339 = vst.msk [vmem:[%s639_s3 + $0x38] sm:$0xff] %vm331_vm3, %v322_v30  ;;  %347 = vst.msk [vmem:[%s639_s3 + $0x78] sm:$0xff] %vm331_vm3, %v330_v32 }

// kernel: forward.13
= control target key start
LH: loop header
LB: loop body
LE: loop exit
PB: predicated region body
PF: predicated region fallthrough
CT: control target
= control target key end

     0   :  { %vm101_vm0 = vcmask 125952   ;;  %s454_s0 = inlined_call_operand.vmem [shape: f32[2,8,8,16], index: 0, kind: input, shape index: {}]   ;;  %s455_s1 = inlined_call_operand.vmem [shape: f32[1,1,1,16], index: 1, kind: input, shape index: {}]   ;;  %s456_s2 = inlined_call_operand.vmem [shape: f32[1,1,1,16], index: 2, kind: input, shape index: {}]   ;;  %s457_s3 = inlined_call_operand.vmem [shape: f32[2,4,4,16], index: 3, kind: output, shape index: {}]  }
   0x1   :  { %v14_v0 = vld [vmem:[%s454_s0] ss:$2 sm:$0xf]  ;;  %v239_v1 = vld [vmem:[%s454_s0 + $0x10] ss:$2 sm:$0xf] }
   0x2   :  { %v240_v2 = vld [vmem:[%s454_s0 + $0x20] ss:$2 sm:$0xf]  ;;  %v241_v3 = vld [vmem:[%s454_s0 + $0x30] ss:$2 sm:$0xf] }
   0x3   :  { %v242_v4 = vld [vmem:[%s454_s0 + $0x40] ss:$2 sm:$0xf]  ;;  %v243_v5 = vld [vmem:[%s454_s0 + $0x50] ss:$2 sm:$0xf] }
   0x4   :  { %v244_v6 = vld [vmem:[%s454_s0 + $0x60] ss:$2 sm:$0xf]  ;;  %v245_v7 = vld [vmem:[%s454_s0 + $0x70] ss:$2 sm:$0xf] }
   0x5   :  { %v246_v8 = vld [vmem:[%s454_s0 + $0x1] ss:$2 sm:$0xf]  ;;  %v247_v9 = vld [vmem:[%s454_s0 + $0x11] ss:$2 sm:$0xf] }
   0x6   :  { %v248_v10 = vld [vmem:[%s454_s0 + $0x21] ss:$2 sm:$0xf]  ;;  %v249_v11 = vld [vmem:[%s454_s0 + $0x31] ss:$2 sm:$0xf]  ;;  %v45_v12 = vmax.f32 %v14_v0, %v246_v8  ;;  %v46_v13 = vmax.f32 %v239_v1, %v247_v9 }
   0x7   :  { %v250_v14 = vld [vmem:[%s454_s0 + $0x41] ss:$2 sm:$0xf]  ;;  %v251_v15 = vld [vmem:[%s454_s0 + $0x51] ss:$2 sm:$0xf]  ;;  %v47_v16 = vmax.f32 %v240_v2, %v248_v10  ;;  %v48_v17 = vmax.f32 %v241_v3, %v249_v11 }
   0x8   :  { %v252_v18 = vld [vmem:[%s454_s0 + $0x61] ss:$2 sm:$0xf]  ;;  %v253_v19 = vld [vmem:[%s454_s0 + $0x71] ss:$2 sm:$0xf]  ;;  %v49_v20 = vmax.f32 %v242_v4, %v250_v14  ;;  %v50_v21 = vmax.f32 %v243_v5, %v251_v15 }
   0x9   :  { %v51_v22 = vmax.f32 %v244_v6, %v252_v18  ;;  %v52_v23 = vmax.f32 %v245_v7, %v253_v19  ;;  %v254_v24 = vld [vmem:[%s454_s0 + $0x8] ss:$2 sm:$0xf]  ;;  %v255_v25 = vld [vmem:[%s454_s0 + $0x18] ss:$2 sm:$0xf] }
   0xa   :  { %v256_v26 = vld [vmem:[%s454_s0 + $0x28] ss:$2 sm:$0xf]  ;;  %v257_v27 = vld [vmem:[%s454_s0 + $0x38] ss:$2 sm:$0xf]  ;;  %v69_v28 = vmax.f32 %v45_v12, %v254_v24  ;;  %v70_v29 = vmax.f32 %v46_v13, %v255_v25 }
   0xb   :  { %v258_v30 = vld [vmem:[%s454_s0 + $0x48] ss:$2 sm:$0xf]  ;;  %v259_v31 = vld [vmem:[%s454_s0 + $0x58] ss:$2 sm:$0xf]  ;;  %v71_v32 = vmax.f32 %v47_v16, %v256_v26  ;;  %v72_v33 = vmax.f32 %v48_v17, %v257_v27 }
   0xc   :  { %v260_v34 = vld [vmem:[%s454_s0 + $0x68] ss:$2 sm:$0xf]  ;;  %v261_v35 = vld [vmem:[%s454_s0 + $0x78] ss:$2 sm:$0xf]  ;;  %v73_v36 = vmax.f32 %v49_v20, %v258_v30  ;;  %v74_v37 = vmax.f32 %v50_v21, %v259_v31 }
   0xd   :  { %v75_v38 = vmax.f32 %v51_v22, %v260_v34  ;;  %v76_v39 = vmax.f32 %v52_v23, %v261_v35  ;;  %v262_v40 = vld [vmem:[%s454_s0 + $0x9] ss:$2 sm:$0xf]  ;;  %v263_v41 = vld [vmem:[%s454_s0 + $0x19] ss:$2 sm:$0xf] }
   0xe   :  { %v264_v42 = vld [vmem:[%s454_s0 + $0x29] ss:$2 sm:$0xf]  ;;  %v265_v43 = vld [vmem:[%s454_s0 + $0x39] ss:$2 sm:$0xf]  ;;  %v93_v44 = vmax.f32 %v69_v28, %v262_v40  ;;  %v94_v45 = vmax.f32 %v70_v29, %v263_v41 }
   0xf   :  { %v266_v46 = vld [vmem:[%s454_s0 + $0x49] ss:$2 sm:$0xf]  ;;  %v267_v47 = vld [vmem:[%s454_s0 + $0x59] ss:$2 sm:$0xf]  ;;  %v95_v48 = vmax.f32 %v71_v32, %v264_v42  ;;  %v96_v49 = vmax.f32 %v72_v33, %v265_v43 }
  0x10   :  { %v268_v50 = vld [vmem:[%s454_s0 + $0x69] ss:$2 sm:$0xf]  ;;  %v269_v51 = vld [vmem:[%s454_s0 + $0x79] ss:$2 sm:$0xf]  ;;  %v97_v52 = vmax.f32 %v73_v36, %v266_v46  ;;  %v98_v53 = vmax.f32 %v74_v37, %v267_v47 }
  0x11   :  { %v99_v54 = vmax.f32 %v75_v38, %v268_v50  ;;  %v100_v55 = vmax.f32 %v76_v39, %v269_v51  ;;  %v102_v56 = vsel %vm101_vm0, %v93_v44, 0.0  ;;  %v105_v57 = vsel %vm101_vm0, %v94_v45, 0.0 }
  0x12   :  { %v103_v58 = vsel %vm101_vm0, %v97_v52, 0.0  ;;  %v106_v59 = vsel %vm101_vm0, %v98_v53, 0.0  ;;  %v108_v60 = vsel %vm101_vm0, %v95_v48, 0.0  ;;  %v111_v61 = vsel %vm101_vm0, %v96_v49, 0.0 }
  0x13   :  { %v104_v62 = vadd.f32 %v103_v58, %v102_v56  ;;  %v107_v63 = vadd.f32 %v106_v59, %v105_v57  ;;  %v109_v0 = vsel %vm101_vm0, %v99_v54, 0.0  ;;  %v112_v1 = vsel %vm101_vm0, %v100_v55, 0.0 }
  0x14   :  { %v110_v2 = vadd.f32 %v109_v0, %v108_v60  ;;  %v113_v3 = vadd.f32 %v112_v1, %v111_v61  ;;  %v270_v0 = vld [vmem:[%s455_s1] ss:$0 sm:$0xff] }
  0x15   :  { %v114_v4 = vsel %vm101_vm0, %v104_v62, 0.0  ;;  %v115_v5 = vsel %vm101_vm0, %v107_v63, 0.0 }
  0x16   :  { %v116_v6 = vadd.f32 %v115_v5, %v114_v4  ;;  %v117_v7 = vsel %vm101_vm0, %v110_v2, 0.0  ;;  %v119_v8 = vsel %vm101_vm0, %v113_v3, 0.0  ;;  %v271_v5 = vld [vmem:[%s456_s2] ss:$0 sm:$0xff] }
  0x18   :  { %v118_v9 = vadd.f32 %v117_v7, %v116_v6 }
  0x1a   :  { %v120_v10 = vadd.f32 %v119_v8, %v118_v9 }
  0x1c   :  { %v121_v11 = vsel %vm101_vm0, %v120_v10, 0.0 }
  0x1d   :  { %v122_v12 = vrot.slane %v121_v11, 4 }
  0x1f   :  { %v123_v13 = vadd.f32 %v122_v12, %v121_v11 }
  0x21   :  { %v124_v14 = vrot.slane %v123_v13, 2 }
  0x23   :  { %v125_v15 = vadd.f32 %v124_v14, %v123_v13 }
  0x25   :  { %v126_v16 = vrot.slane %v125_v15, 1 }
  0x27   :  { %v127_v17 = vadd.f32 %v126_v16, %v125_v15 }
  0x29   :  { %v128_v18 = vmul.f32 0.03125, %v127_v17 }
  0x2b   :  { %v129_v19 = vsub.f32 %v93_v44, %v128_v18  ;;  %v130_v20 = vsub.f32 %v94_v45, %v128_v18  ;;  %v131_v21 = vsub.f32 %v95_v48, %v128_v18  ;;  %v132_v22 = vsub.f32 %v96_v49, %v128_v18 }
  0x2c   :  { %v133_v23 = vsub.f32 %v97_v52, %v128_v18  ;;  %v134_v24 = vsub.f32 %v98_v53, %v128_v18  ;;  %v135_v25 = vsub.f32 %v99_v54, %v128_v18  ;;  %v136_v26 = vsub.f32 %v100_v55, %v128_v18 }
  0x2d   :  { %v137_v27 = vmul.f32 %v129_v19, %v129_v19  ;;  %v138_v28 = vmul.f32 %v130_v20, %v130_v20  ;;  %v139_v29 = vmul.f32 %v131_v21, %v131_v21  ;;  %v140_v30 = vmul.f32 %v132_v22, %v132_v22 }
  0x2e   :  { %v141_v31 = vmul.f32 %v133_v23, %v133_v23  ;;  %v142_v32 = vmul.f32 %v134_v24, %v134_v24  ;;  %v143_v33 = vmul.f32 %v135_v25, %v135_v25  ;;  %v144_v34 = vmul.f32 %v136_v26, %v136_v26 }
  0x2f   :  { %v145_v35 = vsel %vm101_vm0, %v137_v27, 0.0  ;;  %v148_v36 = vsel %vm101_vm0, %v138_v28, 0.0  ;;  %v151_v37 = vsel %vm101_vm0, %v139_v29, 0.0  ;;  %v154_v38 = vsel %vm101_vm0, %v140_v30, 0.0 }
  0x30   :  { %v146_v39 = vsel %vm101_vm0, %v141_v31, 0.0  ;;  %v149_v40 = vsel %vm101_vm0, %v142_v32, 0.0  ;;  %v152_v41 = vsel %vm101_vm0, %v143_v33, 0.0  ;;  %v155_v42 = vsel %vm101_vm0, %v144_v34, 0.0 }
  0x31   :  { %v147_v43 = vadd.f32 %v146_v39, %v145_v35  ;;  %v150_v44 = vadd.f32 %v149_v40, %v148_v36  ;;  %v153_v45 = vadd.f32 %v152_v41, %v151_v37  ;;  %v156_v46 = vadd.f32 %v155_v42, %v154_v38 }
  0x33   :  { %v157_v47 = vsel %vm101_vm0, %v147_v43, 0.0  ;;  %v158_v48 = vsel %vm101_vm0, %v150_v44, 0.0  ;;  %v160_v49 = vsel %vm101_vm0, %v153_v45, 0.0  ;;  %v162_v51 = vsel %vm101_vm0, %v156_v46, 0.0 }
  0x34   :  { %v159_v50 = vadd.f32 %v158_v48, %v157_v47 }
  0x36   :  { %v161_v52 = vadd.f32 %v160_v49, %v159_v50 }
  0x38   :  { %v163_v53 = vadd.f32 %v162_v51, %v161_v52 }
  0x3a   :  { %v164_v54 = vsel %vm101_vm0, %v163_v53, 0.0 }
  0x3b   :  { %v165_v55 = vrot.slane %v164_v54, 4 }
  0x3d   :  { %v166_v56 = vadd.f32 %v165_v55, %v164_v54 }
  0x3f   :  { %v167_v57 = vrot.slane %v166_v56, 2 }
  0x41   :  { %v168_v58 = vadd.f32 %v167_v57, %v166_v56 }
  0x43   :  { %v169_v59 = vrot.slane %v168_v58, 1 }
  0x45   :  { %v170_v60 = vadd.f32 %v169_v59, %v168_v58 }
  0x47   :  { %v171_v61 = vmul.f32 0.03125, %v170_v60 }
  0x49   :  { %v172_v62 = vadd.f32 1e-05, %v171_v61 }
  0x4b   :  { %272 = vrsqrt.f32 %v172_v62 }
  0x55   :  { %v273_v63 = vpop.eup %272 }
  0x56   :  { %v174_v1 = vmul.f32 %v273_v63, %v129_v19  ;;  %v175_v2 = vmul.f32 %v273_v63, %v130_v20  ;;  %v176_v3 = vmul.f32 %v273_v63, %v131_v21  ;;  %v177_v4 = vmul.f32 %v273_v63, %v132_v22 }
  0x57   :  { %v178_v6 = vmul.f32 %v273_v63, %v133_v23  ;;  %v179_v7 = vmul.f32 %v273_v63, %v134_v24  ;;  %v180_v8 = vmul.f32 %v273_v63, %v135_v25  ;;  %v181_v9 = vmul.f32 %v273_v63, %v136_v26 }
  0x58   :  { %v189_v10 = vmul.f32 %v270_v0, %v174_v1  ;;  %v190_v11 = vmul.f32 %v270_v0, %v175_v2  ;;  %v191_v12 = vmul.f32 %v270_v0, %v176_v3  ;;  %v192_v13 = vmul.f32 %v270_v0, %v177_v4 }
  0x59   :  { %v193_v14 = vmul.f32 %v270_v0, %v178_v6  ;;  %v194_v15 = vmul.f32 %v270_v0, %v179_v7  ;;  %v195_v16 = vmul.f32 %v270_v0, %v180_v8  ;;  %v196_v17 = vmul.f32 %v270_v0, %v181_v9 }
  0x5a   :  { %v204_v18 = vadd.f32 %v271_v5, %v189_v10  ;;  %v205_v19 = vadd.f32 %v271_v5, %v190_v11  ;;  %v206_v20 = vadd.f32 %v271_v5, %v191_v12  ;;  %v207_v21 = vadd.f32 %v271_v5, %v192_v13 }
  0x5b   :  { %v208_v22 = vadd.f32 %v271_v5, %v193_v14  ;;  %v209_v27 = vadd.f32 %v271_v5, %v194_v15  ;;  %v210_v28 = vadd.f32 %v271_v5, %v195_v16  ;;  %v211_v29 = vadd.f32 %v271_v5, %v196_v17 }
  0x5c   :  { %212 = vst.msk [vmem:[%s457_s3] sm:$0xf] %vm101_vm0, %v204_v18  ;;  %213 = vst.msk [vmem:[%s457_s3 + $0x4] sm:$0xf] %vm101_vm0, %v205_v19 }
  0x5d   :  { %214 = vst.msk [vmem:[%s457_s3 + $0x8] sm:$0xf] %vm101_vm0, %v206_v20  ;;  %215 = vst.msk [vmem:[%s457_s3 + $0xc] sm:$0xf] %vm101_vm0, %v207_v21 }
  0x5e   :  { %216 = vst.msk [vmem:[%s457_s3 + $0x10] sm:$0xf] %vm101_vm0, %v208_v22  ;;  %217 = vst.msk [vmem:[%s457_s3 + $0x14] sm:$0xf] %vm101_vm0, %v209_v27 }
  0x5f   :  { %218 = vst.msk [vmem:[%s457_s3 + $0x18] sm:$0xf] %vm101_vm0, %v210_v28  ;;  %219 = vst.msk [vmem:[%s457_s3 + $0x1c] sm:$0xf] %vm101_vm0, %v211_v29 }

// kernel: forward.15
= control target key start
LH: loop header
LB: loop body
LE: loop exit
PB: predicated region body
PF: predicated region fallthrough
CT: control target
= control target key end

     0   :  { %vm324_vm0 = vcmask 261120   ;;  %vm559_vm1 = vcmask 523264   ;;  %s1408_s1 = inlined_call_operand.vmem [shape: bf16[288,64], index: 1, kind: input, shape index: {}]   ;;  %s1409_s0 = inlined_call_operand.vmem [shape: bf16[128,288], index: 0, kind: input, shape index: {}]   ;;  %s1410_s2 = inlined_call_operand.vmem [shape: f32[1,64], index: 2, kind: input, shape index: {}]   ;;  %s1411_s3 = inlined_call_operand.vmem [shape: f32[1,64], index: 3, kind: input, shape index: {}]   ;;  %s1412_s4 = inlined_call_operand.vmem [shape: f32[1,64], index: 4, kind: input, shape index: {}]   ;;  %s1413_s5 = inlined_call_operand.vmem [shape: f32[128,64], index: 5, kind: output, shape index: {}]  }
   0x1   :  { %v915_v0 = vld [vmem:[%s1408_s1 + $0x40] sm:$0xff]   ;;  %v917_v2 = vld [vmem:[%s1408_s1 + $0x48] sm:$0xff]   ;;  %v919_v4 = vld [vmem:[%s1408_s1 + $0x50] sm:$0xff]  }
   0x2   :  { %v916_v1 = vld [vmem:[%s1408_s1] sm:$0xff]   ;;  %805 = vmatprep.subr.bf16.mxu0 %v915_v0  ;;  %899 = vmatprep.subr.bf16.mxu1 %v915_v0  ;;  %v918_v3 = vld [vmem:[%s1408_s1 + $0x8] sm:$0xff]   ;;  %v920_v5 = vld [vmem:[%s1408_s1 + $0x10] sm:$0xff]  }
   0x3   :  { %806 = vmatpush3.bf16.msra.mxu0 %v916_v1  ;;  %907 = vmatpush3.bf16.msra.mxu1 %v916_v1  ;;  %v921_v6 = vld [vmem:[%s1408_s1 + $0x58] sm:$0xff]   ;;  %v923_v8 = vld [vmem:[%s1408_s1 + $0x60] sm:$0xff]   ;;  %v925_v10 = vld [vmem:[%s1408_s1 + $0x68] sm:$0xff]  }
   0x4   :  { %807 = vmatprep.subr.bf16.mxu0 %v917_v2  ;;  %900 = vmatprep.subr.bf16.mxu1 %v917_v2  ;;  %v922_v7 = vld [vmem:[%s1408_s1 + $0x18] sm:$0xff]   ;;  %v924_v9 = vld [vmem:[%s1408_s1 + $0x20] sm:$0xff]   ;;  %v926_v13 = vld [vmem:[%s1408_s1 + $0x28] sm:$0xff]  }
   0x5   :  { %v933_v11 = vld [vmem:[%s1409_s0 + $0x4] ss:$12 sps:$4 sm:$0xff]   ;;  %v936_v12 = vld [vmem:[%s1409_s0 + $0x94] ss:$12 sps:$4 sm:$0xff]   ;;  %v929_v16 = vld [vmem:[%s1408_s1 + $0x78] sm:$0xff]  }
   0x6   :  { %v927_v14 = vld [vmem:[%s1408_s1 + $0x70] sm:$0xff]   ;;  %381 = vmatprep.mubr.bf16.mxu0 %v933_v11  ;;  %429 = vmatprep.mubr.bf16.mxu1 %v936_v12  ;;  %v930_v17 = vld [vmem:[%s1408_s1 + $0x38] sm:$0xff]   ;;  %v931_v18 = vld [vmem:[%s1409_s0] ss:$12 sps:$4 sm:$0xff]  }
   0x7   :  { %808 = vmatpush3.bf16.msra.mxu0 %v918_v3  ;;  %908 = vmatpush3.bf16.msra.mxu1 %v918_v3  ;;  %v928_v15 = vld [vmem:[%s1408_s1 + $0x30] sm:$0xff]   ;;  %v941_v19 = vld [vmem:[%s1408_s1 + $0x80] sm:$0xff]   ;;  %v937_v21 = vld [vmem:[%s1409_s0 + $0x1c] ss:$12 sps:$4 sm:$0xff]  }
   0x8   :  { %809 = vmatprep.subr.bf16.mxu0 %v919_v4  ;;  %901 = vmatprep.subr.bf16.mxu1 %v919_v4  ;;  %v934_v20 = vld [vmem:[%s1409_s0 + $0x90] ss:$12 sps:$4 sm:$0xff]   ;;  %v939_v22 = vld [vmem:[%s1409_s0 + $0xac] ss:$12 sps:$4 sm:$0xff]   ;;  %v943_v25 = vld [vmem:[%s1409_s0 + $0xa8] ss:$12 sps:$4 sm:$0xff]  }
   0x9   :  { %v944_v23 = vld [vmem:[%s1408_s1 + $0x88] sm:$0xff]   ;;  %v942_v24 = vld [vmem:[%s1409_s0 + $0x18] ss:$12 sps:$4 sm:$0xff]   ;;  %v945_v26 = vld [vmem:[%s1409_s0 + $0x34] ss:$12 sps:$4 sm:$0xff]  }
   0xa   :  { %v947_v27 = vld [vmem:[%s1409_s0 + $0x8] ss:$12 sps:$4 sm:$0xff]   ;;  %v948_v28 = vld [vmem:[%s1409_s0 + $0x30] ss:$12 sps:$4 sm:$0xff]   ;;  %v949_v29 = vld [vmem:[%s1409_s0 + $0x20] ss:$12 sps:$4 sm:$0xff]  }
   0xb   :  { %810 = vmatpush3.bf16.msra.mxu0 %v920_v5  ;;  %909 = vmatpush3.bf16.msra.mxu1 %v920_v5  ;;  %v950_v30 = vld [vmem:[%s1409_s0 + $0x4c] ss:$12 sps:$4 sm:$0xff]   ;;  %v953_v32 = vld [vmem:[%s1409_s0 + $0x48] ss:$12 sps:$4 sm:$0xff]   ;;  %v954_v33 = vld [vmem:[%s1409_s0 + $0x50] ss:$12 sps:$4 sm:$0xff]  }
   0xc   :  { %811 = vmatprep.subr.bf16.mxu0 %v921_v6  ;;  %902 = vmatprep.subr.bf16.mxu1 %v921_v6  ;;  %v952_v31 = vld [vmem:[%s1409_s0 + $0x38] ss:$12 sps:$4 sm:$0xff]   ;;  %v957_v35 = vld [vmem:[%s1409_s0 + $0x68] ss:$12 sps:$4 sm:$0xff]   ;;  %v958_v36 = vld [vmem:[%s1409_s0 + $0x60] ss:$12 sps:$4 sm:$0xff]  }
   0xd   :  { %v955_v34 = vld [vmem:[%s1409_s0 + $0x64] ss:$12 sps:$4 sm:$0xff]   ;;  %v959_v37 = vld [vmem:[%s1409_s0 + $0x80] ss:$12 sps:$4 sm:$0xff]   ;;  %v960_v38 = vld [vmem:[%s1409_s0 + $0x7c] ss:$12 sps:$4 sm:$0xff]  }
   0xe   :  { %v962_v39 = vld [vmem:[%s1409_s0 + $0x98] ss:$12 sps:$4 sm:$0xff]   ;;  %v964_v41 = vld [vmem:[%s1409_s0 + $0xb0] ss:$12 sps:$4 sm:$0xff]   ;;  %v1142_v2 = vld [vmem:[%s1410_s2] ss:$0 sm:$0xff] }
   0xf   :  { %812 = vmatpush3.bf16.msra.mxu0 %v922_v7  ;;  %910 = vmatpush3.bf16.msra.mxu1 %v922_v7  ;;  %v963_v40 = vld [vmem:[%s1409_s0 + $0x78] ss:$12 sps:$4 sm:$0xff]  }
  0x10   :  { %813 = vmatprep.subr.bf16.mxu0 %v923_v8  ;;  %903 = vmatprep.subr.bf16.mxu1 %v923_v8 }
  0x13   :  { %814 = vmatpush3.bf16.msra.mxu0 %v924_v9  ;;  %911 = vmatpush3.bf16.msra.mxu1 %v924_v9 }
  0x14   :  { %815 = vmatprep.subr.bf16.mxu0 %v925_v10  ;;  %904 = vmatprep.subr.bf16.mxu1 %v925_v10 }
  0x17   :  { %816 = vmatpush3.bf16.msra.mxu0 %v926_v13  ;;  %912 = vmatpush3.bf16.msra.mxu1 %v926_v13 }
  0x18   :  { %817 = vmatprep.subr.bf16.mxu0 %v927_v14  ;;  %905 = vmatprep.subr.bf16.mxu1 %v927_v14 }
  0x1b   :  { %818 = vmatpush3.bf16.msra.mxu0 %v928_v15  ;;  %913 = vmatpush3.bf16.msra.mxu1 %v928_v15 }
  0x1c   :  { %819 = vmatprep.subr.bf16.mxu0 %v929_v16  ;;  %906 = vmatprep.subr.bf16.mxu1 %v929_v16 }
  0x1f   :  { %820 = vmatpush3.bf16.msra.mxu0 %v930_v17  ;;  %914 = vmatpush3.bf16.msra.mxu1 %v930_v17 }
  0x20   :  { %879 = vmatprep.subr.bf16.mxu1 %v941_v19 }
  0x22   :  { %382 = vmatmul.mubr.bf16.vlgmr.msra.gmra.mrb[0].mxu0 %v931_v18  ;;  %430 = vmatmul.mubr.bf16.vlgmr.msra.gmra.mrb[0].mxu1 %v934_v20 }
  0x23   :  { %389 = vmatprep.mubr.bf16.mxu0 %v937_v21  ;;  %437 = vmatprep.mubr.bf16.mxu1 %v939_v22 }
  0x24   :  { %880 = vmatpush3.bf16.msra.mxu1 %v941_v19 }
  0x25   :  { %881 = vmatprep.subr.bf16.mxu1 %v944_v23 }
  0x28   :  { %882 = vmatpush3.bf16.msra.mxu1 %v944_v23 }
  0x2a   :  { %390 = vmatmul.mubr.bf16.gmra.mrb[4].mxu0 %v942_v24  ;;  %438 = vmatmul.mubr.bf16.gmra.mrb[4].mxu1 %v943_v25 }
  0x2b   :  { %397 = vmatprep.mubr.bf16.mxu0 %v945_v26  ;;  %883 = vmatprep.mubr.msk.bf16.mxu1 %vm324_vm0, %v947_v27 }
  0x32   :  { %398 = vmatmul.mubr.bf16.gmra.mrb[8].mxu0 %v948_v28  ;;  %884 = vmatmul.mubr.msk.bf16.vlgmr.msra.gmra.mrb[8].mxu1 %vm324_vm0, %v949_v29 }
  0x33   :  { %405 = vmatprep.mubr.bf16.mxu0 %v950_v30  ;;  %887 = vmatprep.mubr.msk.bf16.mxu1 %vm324_vm0, %v952_v31 }
  0x3a   :  { %406 = vmatmul.mubr.bf16.gmra.mrb[12].mxu0 %v953_v32  ;;  %888 = vmatmul.mubr.msk.bf16.gmra.mrb[12].mxu1 %vm324_vm0, %v954_v33 }
  0x3b   :  { %413 = vmatprep.mubr.bf16.mxu0 %v955_v34  ;;  %891 = vmatprep.mubr.msk.bf16.mxu1 %vm324_vm0, %v957_v35 }
  0x42   :  { %414 = vmatmul.mubr.bf16.gmra.mrb[16].mxu0 %v958_v36  ;;  %892 = vmatmul.mubr.msk.bf16.gmra.mrb[16].mxu1 %vm324_vm0, %v959_v37 }
  0x43   :  { %421 = vmatprep.mubr.bf16.mxu0 %v960_v38  ;;  %895 = vmatprep.mubr.msk.bf16.mxu1 %vm324_vm0, %v962_v39 }
  0x4a   :  { %422 = vmatmul.mubr.bf16.gmra.mrb[20].mxu0 %v963_v40  ;;  %896 = vmatmul.mubr.msk.bf16.gmra.mrb[20].mxu1 %vm324_vm0, %v964_v41 }
  0xf5   :  { %v821_v42 = vpop.f32.mrb[0].mxu0  ;;  %v857_v43 = vpop.f32.mrb[0].mxu1 }
  0xf6   :  { %v822_v44 = vpop.f32.mrb[1].mxu0  ;;  %v858_v45 = vpop.f32.mrb[1].mxu1 }
  0xf7   :  { %v823_v46 = vadd.f32 %v822_v44, %v821_v42  ;;  %v824_v47 = vpop.f32.mrb[2].mxu0  ;;  %v1131_v48 = vadd.f32 %v858_v45, %v857_v43  ;;  %v860_v49 = vpop.f32.mrb[2].mxu1 }
  0xf8   :  { %v825_v50 = vpop.f32.mrb[3].mxu0  ;;  %v861_v51 = vpop.f32.mrb[3].mxu1 }
  0xf9   :  { %v826_v52 = vadd.f32 %v825_v50, %v824_v47  ;;  %v1133_v53 = vadd.f32 %v861_v51, %v860_v49  ;;  %v384_v6 = vadd.f32 %v823_v46, %v1142_v2 }
  0xfb   :  { %v387_v15 = vadd.f32 %v826_v52, %v1142_v2 }
  0xfd   :  { %v827_v54 = vpop.f32.mrb[4].mxu0  ;;  %v863_v55 = vpop.f32.mrb[4].mxu1 }
  0xfe   :  { %v828_v56 = vpop.f32.mrb[5].mxu0  ;;  %v864_v57 = vpop.f32.mrb[5].mxu1 }
  0xff   :  { %v829_v58 = vadd.f32 %v828_v56, %v827_v54  ;;  %v830_v59 = vpop.f32.mrb[6].mxu0  ;;  %v1135_v60 = vadd.f32 %v864_v57, %v863_v55  ;;  %v866_v61 = vpop.f32.mrb[6].mxu1 }
 0x100   :  { %v831_v62 = vpop.f32.mrb[7].mxu0  ;;  %v867_v63 = vpop.f32.mrb[7].mxu1 }
 0x101   :  { %v832_v0 = vadd.f32 %v831_v62, %v830_v59  ;;  %v1137_v1 = vadd.f32 %v867_v63, %v866_v61  ;;  %v392_v3 = vadd.f32 %v829_v58, %v1142_v2 }
 0x103   :  { %v395_v10 = vadd.f32 %v832_v0, %v1142_v2 }
 0x105   :  { %v833_v4 = vpop.f32.mrb[8].mxu0  ;;  %v885_v5 = vpop.f32.mrb[8].mxu1 }
 0x106   :  { %v1146_v7 = vadd.f32 %v885_v5, %v392_v3  ;;  %v834_v8 = vpop.f32.mrb[9].mxu0  ;;  %v480_v9 = vpop.f32.mrb[9].mxu1 }
 0x107   :  { %v835_v11 = vadd.f32 %v834_v8, %v833_v4  ;;  %v1149_v12 = vadd.f32 %v480_v9, %v384_v6  ;;  %v836_v13 = vpop.f32.mrb[10].mxu0  ;;  %v886_v14 = vpop.f32.mrb[10].mxu1 }
 0x108   :  { %v1152_v16 = vadd.f32 %v886_v14, %v395_v10  ;;  %v837_v17 = vpop.f32.mrb[11].mxu0  ;;  %v483_v18 = vpop.f32.mrb[11].mxu1  ;;  %v545_v22 = vmax.f32 %v1146_v7, 0.0 }
 0x109   :  { %v543_v19 = vmax.f32 %v1149_v12, 0.0  ;;  %v838_v20 = vadd.f32 %v837_v17, %v836_v13  ;;  %v1155_v21 = vadd.f32 %v483_v18, %v387_v15  ;;  %v400_v29 = vadd.f32 %v835_v11, %v1142_v2 }
 0x10a   :  { %v546_v24 = vmax.f32 %v1152_v16, 0.0  ;;  %v563_v33 = vsel %vm559_vm1, %v545_v22, 0.0 }
 0x10b   :  { %v544_v23 = vmax.f32 %v1155_v21, 0.0  ;;  %v560_v25 = vsel %vm559_vm1, %v543_v19, 0.0  ;;  %v403_v38 = vadd.f32 %v838_v20, %v1142_v2  ;;  %v440_v20 = vadd.f32 %v1135_v60, %v1142_v2 }
 0x10c   :  { %v565_v39 = vsel %vm559_vm1, %v546_v24, 0.0 }
 0x10d   :  { %v561_v26 = vsel %vm559_vm1, %v544_v23, 0.0  ;;  %v839_v27 = vpop.f32.mrb[12].mxu0  ;;  %v889_v28 = vpop.f32.mrb[12].mxu1 }
 0x10e   :  { %v562_v30 = vadd.f32 %v561_v26, %v560_v25  ;;  %v840_v31 = vpop.f32.mrb[13].mxu0  ;;  %v496_v32 = vpop.f32.mrb[13].mxu1 }
 0x10f   :  { %v841_v34 = vadd.f32 %v840_v31, %v839_v27  ;;  %v1170_v35 = vadd.f32 %v496_v32, %v400_v29  ;;  %v842_v36 = vpop.f32.mrb[14].mxu0  ;;  %v890_v37 = vpop.f32.mrb[14].mxu1  ;;  %v432_v29 = vadd.f32 %v1131_v48, %v1142_v2  ;;  %v435_v48 = vadd.f32 %v1133_v53, %v1142_v2 }
 0x110   :  { %v564_v40 = vadd.f32 %v563_v33, %v562_v30  ;;  %v843_v41 = vpop.f32.mrb[15].mxu0  ;;  %v499_v42 = vpop.f32.mrb[15].mxu1  ;;  %v443_v33 = vadd.f32 %v1137_v1, %v1142_v2 }
 0x111   :  { %v408_v43 = vadd.f32 %v841_v34, %v1142_v2  ;;  %v547_v44 = vmax.f32 %v1170_v35, 0.0  ;;  %v844_v45 = vadd.f32 %v843_v41, %v842_v36  ;;  %v1178_v46 = vadd.f32 %v499_v42, %v403_v38 }
 0x112   :  { %v566_v47 = vadd.f32 %v565_v39, %v564_v40 }
 0x113   :  { %v1180_v49 = vadd.f32 %v889_v28, %v408_v43  ;;  %v567_v50 = vsel %vm559_vm1, %v547_v44, 0.0  ;;  %v411_v51 = vadd.f32 %v844_v45, %v1142_v2  ;;  %v548_v52 = vmax.f32 %v1178_v46, 0.0 }
 0x114   :  { %v568_v54 = vadd.f32 %v567_v50, %v566_v47 }
 0x115   :  { %v549_v55 = vmax.f32 %v1180_v49, 0.0  ;;  %v1188_v56 = vadd.f32 %v890_v37, %v411_v51  ;;  %v569_v57 = vsel %vm559_vm1, %v548_v52, 0.0  ;;  %v845_v58 = vpop.f32.mrb[16].mxu0  ;;  %v893_v59 = vpop.f32.mrb[16].mxu1 }
 0x116   :  { %v570_v61 = vadd.f32 %v569_v57, %v568_v54  ;;  %v846_v62 = vpop.f32.mrb[17].mxu0  ;;  %v512_v63 = vpop.f32.mrb[17].mxu1 }
 0x117   :  { %v550_v0 = vmax.f32 %v1188_v56, 0.0  ;;  %v571_v3 = vsel %vm559_vm1, %v549_v55, 0.0  ;;  %v847_v4 = vadd.f32 %v846_v62, %v845_v58  ;;  %v848_v5 = vpop.f32.mrb[18].mxu0  ;;  %v894_v6 = vpop.f32.mrb[18].mxu1 }
 0x118   :  { %v572_v8 = vadd.f32 %v571_v3, %v570_v61  ;;  %v849_v9 = vpop.f32.mrb[19].mxu0  ;;  %v515_v10 = vpop.f32.mrb[19].mxu1 }
 0x119   :  { %v850_v11 = vadd.f32 %v849_v9, %v848_v5  ;;  %v416_v13 = vadd.f32 %v847_v4, %v1142_v2  ;;  %v573_v14 = vsel %vm559_vm1, %v550_v0, 0.0 }
 0x11a   :  { %v574_v15 = vadd.f32 %v573_v14, %v572_v8 }
 0x11b   :  { %v1201_v17 = vadd.f32 %v512_v63, %v416_v13  ;;  %v419_v18 = vadd.f32 %v850_v11, %v1142_v2 }
 0x11d   :  { %v551_v25 = vmax.f32 %v1201_v17, 0.0  ;;  %v516_v26 = vadd.f32 %v515_v10, %v419_v18  ;;  %v851_v27 = vpop.f32.mrb[20].mxu0  ;;  %v897_v28 = vpop.f32.mrb[20].mxu1 }
 0x11e   :  { %v1209_v30 = vadd.f32 %v897_v28, %v440_v20  ;;  %v852_v31 = vpop.f32.mrb[21].mxu0  ;;  %v528_v32 = vpop.f32.mrb[21].mxu1 }
 0x11f   :  { %v575_v34 = vsel %vm559_vm1, %v551_v25, 0.0  ;;  %v552_v36 = vmax.f32 %v516_v26, 0.0  ;;  %v853_v37 = vadd.f32 %v852_v31, %v851_v27  ;;  %v529_v60 = vadd.f32 %v528_v32, %v432_v29  ;;  %v854_v38 = vpop.f32.mrb[22].mxu0  ;;  %v898_v39 = vpop.f32.mrb[22].mxu1 }
 0x120   :  { %v576_v40 = vadd.f32 %v575_v34, %v574_v15  ;;  %v540_v41 = vadd.f32 %v898_v39, %v443_v33  ;;  %v855_v42 = vpop.f32.mrb[23].mxu0  ;;  %v531_v43 = vpop.f32.mrb[23].mxu1  ;;  %v557_v9 = vmax.f32 %v1209_v30, 0.0 }
 0x121   :  { %v577_v45 = vsel %vm559_vm1, %v552_v36, 0.0  ;;  %v424_v47 = vadd.f32 %v853_v37, %v1142_v2  ;;  %v856_v50 = vadd.f32 %v855_v42, %v854_v38  ;;  %v532_v51 = vadd.f32 %v531_v43, %v435_v48 }
 0x122   :  { %v578_v1 = vadd.f32 %v577_v45, %v576_v40  ;;  %v555_v63 = vmax.f32 %v529_v60, 0.0  ;;  %v558_v13 = vmax.f32 %v540_v41, 0.0 }
 0x123   :  { %v521_v54 = vadd.f32 %v893_v59, %v424_v47  ;;  %v427_v57 = vadd.f32 %v856_v50, %v1142_v2  ;;  %v556_v5 = vmax.f32 %v532_v51, 0.0 }
 0x124   :  { %v583_v10 = vsel %vm559_vm1, %v555_v63, 0.0  ;;  %v589_v15 = vsel %vm559_vm1, %v558_v13, 0.0 }
 0x125   :  { %v553_v58 = vmax.f32 %v521_v54, 0.0  ;;  %v524_v61 = vadd.f32 %v894_v6, %v427_v57  ;;  %v585_v59 = vsel %vm559_vm1, %v556_v5, 0.0  ;;  %v587_v6 = vsel %vm559_vm1, %v557_v9, 0.0 }
 0x127   :  { %v579_v62 = vsel %vm559_vm1, %v553_v58, 0.0  ;;  %v554_v3 = vmax.f32 %v524_v61, 0.0 }
 0x128   :  { %v580_v4 = vadd.f32 %v579_v62, %v578_v1 }
 0x129   :  { %v581_v53 = vsel %vm559_vm1, %v554_v3, 0.0 }
 0x12a   :  { %v582_v8 = vadd.f32 %v581_v53, %v580_v4 }
 0x12c   :  { %v584_v11 = vadd.f32 %v583_v10, %v582_v8 }
 0x12e   :  { %v586_v2 = vadd.f32 %v585_v59, %v584_v11 }
 0x130   :  { %v588_v14 = vadd.f32 %v587_v6, %v586_v2 }
 0x132   :  { %v590_v17 = vadd.f32 %v589_v15, %v588_v14 }
 0x134   :  { %v591_v18 = vrot.slane %v590_v17, 4 }
 0x136   :  { %v592_v20 = vadd.f32 %v591_v18, %v590_v17 }
 0x138   :  { %v593_v26 = vrot.slane %v592_v20, 2 }
 0x13a   :  { %v594_v27 = vadd.f32 %v593_v26, %v592_v20 }
 0x13c   :  { %v595_v28 = vrot.slane %v594_v27, 1 }
 0x13e   :  { %v596_v29 = vadd.f32 %v595_v28, %v594_v27 }
 0x140   :  { %v597_v30 = vmul.f32 0.0078125, %v596_v29 }
 0x142   :  { %v1228_v31 = vsub.f32 %v543_v19, %v597_v30  ;;  %v1232_v32 = vsub.f32 %v544_v23, %v597_v30  ;;  %v1236_v33 = vsub.f32 %v545_v22, %v597_v30  ;;  %v1240_v34 = vsub.f32 %v546_v24, %v597_v30 }
 0x143   :  { %v1244_v37 = vsub.f32 %v547_v44, %v597_v30  ;;  %v1248_v12 = vsub.f32 %v548_v52, %v597_v30  ;;  %v1252_v19 = vsub.f32 %v549_v55, %v597_v30  ;;  %v1256_v7 = vsub.f32 %v550_v0, %v597_v30 }
 0x144   :  { %v1258_v21 = vsub.f32 %v551_v25, %v597_v30  ;;  %v1260_v16 = vsub.f32 %v552_v36, %v597_v30  ;;  %v1262_v22 = vsub.f32 %v553_v58, %v597_v30  ;;  %v1264_v23 = vsub.f32 %v554_v3, %v597_v30 }
 0x145   :  { %v1266_v24 = vsub.f32 %v555_v63, %v597_v30  ;;  %v1268_v35 = vsub.f32 %v556_v5, %v597_v30  ;;  %v1270_v44 = vsub.f32 %v557_v9, %v597_v30  ;;  %v1272_v46 = vsub.f32 %v558_v13, %v597_v30 }
 0x146   :  { %v614_v49 = vmul.f32 %v1228_v31, %v1228_v31  ;;  %v615_v52 = vmul.f32 %v1232_v32, %v1232_v32  ;;  %v616_v55 = vmul.f32 %v1236_v33, %v1236_v33  ;;  %v617_v56 = vmul.f32 %v1240_v34, %v1240_v34 }
 0x147   :  { %v618_v60 = vmul.f32 %v1244_v37, %v1244_v37  ;;  %v619_v40 = vmul.f32 %v1248_v12, %v1248_v12  ;;  %v620_v48 = vmul.f32 %v1252_v19, %v1252_v19  ;;  %v621_v47 = vmul.f32 %v1256_v7, %v1256_v7 }
 0x148   :  { %v630_v0 = vsel %vm559_vm1, %v614_v49, 0.0  ;;  %v631_v25 = vsel %vm559_vm1, %v615_v52, 0.0  ;;  %v633_v38 = vsel %vm559_vm1, %v616_v55, 0.0  ;;  %v635_v41 = vsel %vm559_vm1, %v617_v56, 0.0 }
 0x149   :  { %v632_v36 = vadd.f32 %v631_v25, %v630_v0  ;;  %v637_v43 = vsel %vm559_vm1, %v618_v60, 0.0  ;;  %v639_v50 = vsel %vm559_vm1, %v619_v40, 0.0  ;;  %v622_v51 = vmul.f32 %v1258_v21, %v1258_v21 }
 0x14a   :  { %v641_v54 = vsel %vm559_vm1, %v620_v48, 0.0  ;;  %v623_v58 = vmul.f32 %v1260_v16, %v1260_v16  ;;  %v643_v61 = vsel %vm559_vm1, %v621_v47, 0.0  ;;  %v624_v63 = vmul.f32 %v1262_v22, %v1262_v22  ;;  %v803_v47 = vld [vmem:[%s1411_s3] ss:$0 sm:$0xff] }
 0x14b   :  { %v634_v39 = vadd.f32 %v633_v38, %v632_v36  ;;  %v645_v3 = vsel %vm559_vm1, %v622_v51, 0.0  ;;  %v625_v53 = vmul.f32 %v1264_v23, %v1264_v23  ;;  %v626_v9 = vmul.f32 %v1266_v24, %v1266_v24 }
 0x14c   :  { %v647_v5 = vsel %vm559_vm1, %v623_v58, 0.0  ;;  %v649_v10 = vsel %vm559_vm1, %v624_v63, 0.0  ;;  %v627_v13 = vmul.f32 %v1268_v35, %v1268_v35  ;;  %v628_v6 = vmul.f32 %v1270_v44, %v1270_v44 }
 0x14d   :  { %v636_v42 = vadd.f32 %v635_v41, %v634_v39  ;;  %v651_v59 = vsel %vm559_vm1, %v625_v53, 0.0  ;;  %v653_v14 = vsel %vm559_vm1, %v626_v9, 0.0  ;;  %v629_v17 = vmul.f32 %v1272_v46, %v1272_v46 }
 0x14e   :  { %v655_v18 = vsel %vm559_vm1, %v627_v13, 0.0  ;;  %v657_v26 = vsel %vm559_vm1, %v628_v6, 0.0 }
 0x14f   :  { %v638_v45 = vadd.f32 %v637_v43, %v636_v42  ;;  %v659_v28 = vsel %vm559_vm1, %v629_v17, 0.0 }
 0x151   :  { %v640_v1 = vadd.f32 %v639_v50, %v638_v45 }
 0x153   :  { %v642_v57 = vadd.f32 %v641_v54, %v640_v1 }
 0x155   :  { %v644_v62 = vadd.f32 %v643_v61, %v642_v57 }
 0x157   :  { %v646_v4 = vadd.f32 %v645_v3, %v644_v62 }
 0x159   :  { %v648_v8 = vadd.f32 %v647_v5, %v646_v4 }
 0x15b   :  { %v650_v11 = vadd.f32 %v649_v10, %v648_v8 }
 0x15d   :  { %v652_v2 = vadd.f32 %v651_v59, %v650_v11 }
 0x15f   :  { %v654_v15 = vadd.f32 %v653_v14, %v652_v2 }
 0x161   :  { %v656_v20 = vadd.f32 %v655_v18, %v654_v15 }
 0x163   :  { %v658_v27 = vadd.f32 %v657_v26, %v656_v20 }
 0x165   :  { %v660_v29 = vadd.f32 %v659_v28, %v658_v27 }
 0x167   :  { %v661_v30 = vrot.slane %v660_v29, 4 }
 0x169   :  { %v662_v49 = vadd.f32 %v661_v30, %v660_v29 }
 0x16b   :  { %v663_v52 = vrot.slane %v662_v49, 2 }
 0x16d   :  { %v664_v55 = vadd.f32 %v663_v52, %v662_v49 }
 0x16f   :  { %v665_v56 = vrot.slane %v664_v55, 1 }
 0x171   :  { %v666_v0 = vadd.f32 %v665_v56, %v664_v55 }
 0x173   :  { %v667_v25 = vmul.f32 0.0078125, %v666_v0 }
 0x175   :  { %v668_v36 = vadd.f32 1e-05, %v667_v25 }
 0x177   :  { %965 = vrsqrt.f32 %v668_v36 }
 0x181   :  { %v966_v60 = vpop.eup %965 }
 0x182   :  { %v670_v38 = vmul.f32 %v966_v60, %v1228_v31  ;;  %v671_v39 = vmul.f32 %v966_v60, %v1232_v32  ;;  %v672_v40 = vmul.f32 %v966_v60, %v1236_v33  ;;  %v673_v41 = vmul.f32 %v966_v60, %v1240_v34 }
 0x183   :  { %v674_v42 = vmul.f32 %v966_v60, %v1244_v37  ;;  %v675_v48 = vmul.f32 %v966_v60, %v1248_v12  ;;  %v676_v43 = vmul.f32 %v966_v60, %v1252_v19  ;;  %v677_v45 = vmul.f32 %v966_v60, %v1256_v7 }
 0x184   :  { %v678_v31 = vmul.f32 %v966_v60, %v1258_v21  ;;  %v679_v32 = vmul.f32 %v966_v60, %v1260_v16  ;;  %v680_v33 = vmul.f32 %v966_v60, %v1262_v22  ;;  %v681_v34 = vmul.f32 %v966_v60, %v1264_v23  ;;  %v804_v22 = vld [vmem:[%s1412_s4] ss:$0 sm:$0xff] }
 0x185   :  { %v682_v37 = vmul.f32 %v966_v60, %v1266_v24  ;;  %v683_v12 = vmul.f32 %v966_v60, %v1268_v35  ;;  %v684_v19 = vmul.f32 %v966_v60, %v1270_v44  ;;  %v685_v7 = vmul.f32 %v966_v60, %v1272_v46 }
 0x186   :  { %v693_v50 = vmul.f32 %v803_v47, %v670_v38  ;;  %v694_v1 = vmul.f32 %v803_v47, %v671_v39  ;;  %v695_v51 = vmul.f32 %v803_v47, %v672_v40  ;;  %v696_v54 = vmul.f32 %v803_v47, %v673_v41 }
 0x187   :  { %v697_v57 = vmul.f32 %v803_v47, %v674_v42  ;;  %v698_v21 = vmul.f32 %v803_v47, %v675_v48  ;;  %v699_v58 = vmul.f32 %v803_v47, %v676_v43  ;;  %v700_v16 = vmul.f32 %v803_v47, %v677_v45 }
 0x188   :  { %v701_v23 = vmul.f32 %v803_v47, %v678_v31  ;;  %v702_v24 = vmul.f32 %v803_v47, %v679_v32  ;;  %v703_v61 = vmul.f32 %v803_v47, %v680_v33  ;;  %v704_v35 = vmul.f32 %v803_v47, %v681_v34 }
 0x189   :  { %v705_v62 = vmul.f32 %v803_v47, %v682_v37  ;;  %v706_v44 = vmul.f32 %v803_v47, %v683_v12  ;;  %v707_v63 = vmul.f32 %v803_v47, %v684_v19  ;;  %v708_v46 = vmul.f32 %v803_v47, %v685_v7 }
 0x18a   :  { %v716_v3 = vadd.f32 %v804_v22, %v693_v50  ;;  %v717_v4 = vadd.f32 %v804_v22, %v694_v1  ;;  %v718_v53 = vadd.f32 %v804_v22, %v695_v51  ;;  %v719_v5 = vadd.f32 %v804_v22, %v696_v54 }
 0x18b   :  { %v720_v8 = vadd.f32 %v804_v22, %v697_v57  ;;  %v721_v9 = vadd.f32 %v804_v22, %v698_v21  ;;  %v722_v10 = vadd.f32 %v804_v22, %v699_v58  ;;  %v723_v11 = vadd.f32 %v804_v22, %v700_v16 }
 0x18c   :  { %v724_v13 = vadd.f32 %v804_v22, %v701_v23  ;;  %v725_v59 = vadd.f32 %v804_v22, %v702_v24  ;;  %v726_v2 = vadd.f32 %v804_v22, %v703_v61  ;;  %v727_v6 = vadd.f32 %v804_v22, %v704_v35  ;;  %732 = vst.msk [vmem:[%s1413_s5] sm:$0xff] %vm559_vm1, %v716_v3 }
 0x18d   :  { %733 = vst.msk [vmem:[%s1413_s5 + $0x8] sm:$0xff] %vm559_vm1, %v717_v4  ;;  %734 = vst.msk [vmem:[%s1413_s5 + $0x10] sm:$0xff] %vm559_vm1, %v718_v53  ;;  %v728_v14 = vadd.f32 %v804_v22, %v705_v62  ;;  %v729_v15 = vadd.f32 %v804_v22, %v706_v44  ;;  %v730_v17 = vadd.f32 %v804_v22, %v707_v63 }
 0x18e   :  { %735 = vst.msk [vmem:[%s1413_s5 + $0x18] sm:$0xff] %vm559_vm1, %v719_v5  ;;  %v731_v18 = vadd.f32 %v804_v22, %v708_v46  ;;  %736 = vst.msk [vmem:[%s1413_s5 + $0x20] sm:$0xff] %vm559_vm1, %v720_v8 }
 0x18f   :  { %737 = vst.msk [vmem:[%s1413_s5 + $0x28] sm:$0xff] %vm559_vm1, %v721_v9  ;;  %738 = vst.msk [vmem:[%s1413_s5 + $0x30] sm:$0xff] %vm559_vm1, %v722_v10 }
 0x190   :  { %739 = vst.msk [vmem:[%s1413_s5 + $0x38] sm:$0xff] %vm559_vm1, %v723_v11  ;;  %740 = vst.msk [vmem:[%s1413_s5 + $0x40] sm:$0xff] %vm559_vm1, %v724_v13 }
 0x191   :  { %741 = vst.msk [vmem:[%s1413_s5 + $0x48] sm:$0xff] %vm559_vm1, %v725_v59  ;;  %742 = vst.msk [vmem:[%s1413_s5 + $0x50] sm:$0xff] %vm559_vm1, %v726_v2 }
 0x192   :  { %743 = vst.msk [vmem:[%s1413_s5 + $0x58] sm:$0xff] %vm559_vm1, %v727_v6  ;;  %744 = vst.msk [vmem:[%s1413_s5 + $0x60] sm:$0xff] %vm559_vm1, %v728_v14 }
 0x193   :  { %745 = vst.msk [vmem:[%s1413_s5 + $0x68] sm:$0xff] %vm559_vm1, %v729_v15  ;;  %746 = vst.msk [vmem:[%s1413_s5 + $0x70] sm:$0xff] %vm559_vm1, %v730_v17 }
 0x194   :  { %747 = vst.msk [vmem:[%s1413_s5 + $0x78] sm:$0xff] %vm559_vm1, %v731_v18 }

// kernel: forward.16
= control target key start
LH: loop header
LB: loop body
LE: loop exit
PB: predicated region body
PF: predicated region fallthrough
CT: control target
= control target key end

     0   :  { %vm95_vm0 = vcmask 519168   ;;  %s292_s0 = inlined_call_operand.vmem [shape: f32[2,8,8,64], index: 0, kind: input, shape index: {}]   ;;  %s293_s1 = inlined_call_operand.vmem [shape: f32[2,4,4,64], index: 1, kind: output, shape index: {}]  }
   0x1   :  { %v8_v0 = vld [vmem:[%s292_s0] ss:$2 sm:$0xf]  ;;  %v130_v1 = vld [vmem:[%s292_s0 + $0x1] ss:$2 sm:$0xf] }
   0x2   :  { %v39_v2 = vmax.f32 %v8_v0, %v130_v1  ;;  %v138_v3 = vld [vmem:[%s292_s0 + $0x8] ss:$2 sm:$0xf]  ;;  %v146_v4 = vld [vmem:[%s292_s0 + $0x9] ss:$2 sm:$0xf] }
   0x3   :  { %v123_v5 = vld [vmem:[%s292_s0 + $0x10] ss:$2 sm:$0xf]  ;;  %v131_v6 = vld [vmem:[%s292_s0 + $0x11] ss:$2 sm:$0xf] }
   0x4   :  { %v63_v7 = vmax.f32 %v39_v2, %v138_v3  ;;  %v40_v8 = vmax.f32 %v123_v5, %v131_v6  ;;  %v139_v9 = vld [vmem:[%s292_s0 + $0x18] ss:$2 sm:$0xf]  ;;  %v147_v10 = vld [vmem:[%s292_s0 + $0x19] ss:$2 sm:$0xf] }
   0x5   :  { %v124_v11 = vld [vmem:[%s292_s0 + $0x20] ss:$2 sm:$0xf]  ;;  %v132_v12 = vld [vmem:[%s292_s0 + $0x21] ss:$2 sm:$0xf] }
   0x6   :  { %v87_v13 = vmax.f32 %v63_v7, %v146_v4  ;;  %v64_v14 = vmax.f32 %v40_v8, %v139_v9  ;;  %v41_v15 = vmax.f32 %v124_v11, %v132_v12  ;;  %v140_v16 = vld [vmem:[%s292_s0 + $0x28] ss:$2 sm:$0xf]  ;;  %v148_v17 = vld [vmem:[%s292_s0 + $0x29] ss:$2 sm:$0xf] }
   0x7   :  { %v125_v18 = vld [vmem:[%s292_s0 + $0x30] ss:$2 sm:$0xf]  ;;  %v133_v19 = vld [vmem:[%s292_s0 + $0x31] ss:$2 sm:$0xf] }
   0x8   :  { %96 = vst.msk [vmem:[%s293_s1] sm:$0xf] %vm95_vm0, %v87_v13  ;;  %v88_v20 = vmax.f32 %v64_v14, %v147_v10  ;;  %v65_v21 = vmax.f32 %v41_v15, %v140_v16  ;;  %v42_v22 = vmax.f32 %v125_v18, %v133_v19  ;;  %v141_v23 = vld [vmem:[%s292_s0 + $0x38] ss:$2 sm:$0xf] }
   0x9   :  { %v149_v24 = vld [vmem:[%s292_s0 + $0x39] ss:$2 sm:$0xf]  ;;  %v126_v25 = vld [vmem:[%s292_s0 + $0x40] ss:$2 sm:$0xf] }
   0xa   :  { %v134_v26 = vld [vmem:[%s292_s0 + $0x41] ss:$2 sm:$0xf]  ;;  %97 = vst.msk [vmem:[%s293_s1 + $0x4] sm:$0xf] %vm95_vm0, %v88_v20  ;;  %v89_v27 = vmax.f32 %v65_v21, %v148_v17  ;;  %v66_v28 = vmax.f32 %v42_v22, %v141_v23 }
   0xb   :  { %v43_v29 = vmax.f32 %v126_v25, %v134_v26  ;;  %v142_v30 = vld [vmem:[%s292_s0 + $0x48] ss:$2 sm:$0xf]  ;;  %v150_v31 = vld [vmem:[%s292_s0 + $0x49] ss:$2 sm:$0xf] }
   0xc   :  { %v127_v32 = vld [vmem:[%s292_s0 + $0x50] ss:$2 sm:$0xf]  ;;  %v135_v33 = vld [vmem:[%s292_s0 + $0x51] ss:$2 sm:$0xf]  ;;  %v90_v34 = vmax.f32 %v66_v28, %v149_v24 }
   0xd   :  { %98 = vst.msk [vmem:[%s293_s1 + $0x8] sm:$0xf] %vm95_vm0, %v89_v27  ;;  %v67_v35 = vmax.f32 %v43_v29, %v142_v30  ;;  %v44_v36 = vmax.f32 %v127_v32, %v135_v33  ;;  %v143_v37 = vld [vmem:[%s292_s0 + $0x58] ss:$2 sm:$0xf] }
   0xe   :  { %v151_v38 = vld [vmem:[%s292_s0 + $0x59] ss:$2 sm:$0xf]  ;;  %v128_v39 = vld [vmem:[%s292_s0 + $0x60] ss:$2 sm:$0xf] }
   0xf   :  { %v136_v40 = vld [vmem:[%s292_s0 + $0x61] ss:$2 sm:$0xf]  ;;  %99 = vst.msk [vmem:[%s293_s1 + $0xc] sm:$0xf] %vm95_vm0, %v90_v34  ;;  %v91_v41 = vmax.f32 %v67_v35, %v150_v31  ;;  %v68_v42 = vmax.f32 %v44_v36, %v143_v37 }
  0x10   :  { %v45_v43 = vmax.f32 %v128_v39, %v136_v40  ;;  %v144_v44 = vld [vmem:[%s292_s0 + $0x68] ss:$2 sm:$0xf]  ;;  %v152_v45 = vld [vmem:[%s292_s0 + $0x69] ss:$2 sm:$0xf] }
  0x11   :  { %v129_v46 = vld [vmem:[%s292_s0 + $0x70] ss:$2 sm:$0xf]  ;;  %v137_v47 = vld [vmem:[%s292_s0 + $0x71] ss:$2 sm:$0xf]  ;;  %v92_v48 = vmax.f32 %v68_v42, %v151_v38 }
  0x12   :  { %100 = vst.msk [vmem:[%s293_s1 + $0x10] sm:$0xf] %vm95_vm0, %v91_v41  ;;  %v69_v49 = vmax.f32 %v45_v43, %v144_v44  ;;  %v46_v50 = vmax.f32 %v129_v46, %v137_v47  ;;  %v145_v51 = vld [vmem:[%s292_s0 + $0x78] ss:$2 sm:$0xf] }
  0x13   :  { %v153_v52 = vld [vmem:[%s292_s0 + $0x79] ss:$2 sm:$0xf]  ;;  %101 = vst.msk [vmem:[%s293_s1 + $0x14] sm:$0xf] %vm95_vm0, %v92_v48 }
  0x14   :  { %v93_v53 = vmax.f32 %v69_v49, %v152_v45  ;;  %v70_v54 = vmax.f32 %v46_v50, %v145_v51 }
  0x16   :  { %102 = vst.msk [vmem:[%s293_s1 + $0x18] sm:$0xf] %vm95_vm0, %v93_v53  ;;  %v94_v55 = vmax.f32 %v70_v54, %v153_v52 }
  0x18   :  { %103 = vst.msk [vmem:[%s293_s1 + $0x1c] sm:$0xf] %vm95_vm0, %v94_v55 }

// kernel: forward.17
= control target key start
LH: loop header
LB: loop body
LE: loop exit
PB: predicated region body
PF: predicated region fallthrough
CT: control target
= control target key end

     0   :  { %v306_v1 = vmov 0   ;;  %vm126_vm0 = vcmask 523264   ;;  %v37_v15 = vlaneseq  ;;  %s408_s1 = inlined_call_operand.vmem [shape: bf16[64,384], index: 1, kind: input, shape index: {}]   ;;  %s409_s0 = inlined_call_operand.vmem [shape: bf16[32,64], index: 0, kind: input, shape index: {}]   ;;  %s410_s2 = inlined_call_operand.vmem [shape: f32[1,384], index: 2, kind: input, shape index: {}]   ;;  %s411_s3 = inlined_call_operand.vmem [shape: f32[32,384], index: 3, kind: output, shape index: {}]  }
   0x1   :  { %v288_v0 = vld [vmem:[%s408_s1 + $0x4] ss:$12 sps:$4 sm:$0xff]   ;;  %165 = vmatprep.mubr.bf16.mxu0 %v306_v1  ;;  %v290_v2 = vld [vmem:[%s408_s1] ss:$12 sps:$4 sm:$0xff]   ;;  %v291_v3 = vld [vmem:[%s408_s1 + $0x1c] ss:$12 sps:$4 sm:$0xff]  }
   0x2   :  { %133 = vmatprep.subr.bf16.mxu0 %v288_v0  ;;  %v293_v4 = vld [vmem:[%s408_s1 + $0x18] ss:$12 sps:$4 sm:$0xff]   ;;  %v294_v5 = vld [vmem:[%s408_s1 + $0x8] ss:$12 sps:$4 sm:$0xff]   ;;  %v298_v7 = vld [vmem:[%s408_s1 + $0x20] ss:$12 sps:$4 sm:$0xff]  }
   0x3   :  { %134 = vmatpush1.bf16.msra.mxu0 %v290_v2  ;;  %v295_v6 = vld [vmem:[%s408_s1 + $0x34] ss:$12 sps:$4 sm:$0xff]   ;;  %275 = vmatprep.subr.bf16.mxu1 %v294_v5  ;;  %v297_v8 = vld [vmem:[%s408_s1 + $0x30] ss:$12 sps:$4 sm:$0xff]   ;;  %v299_v9 = vld [vmem:[%s408_s1 + $0x4c] ss:$12 sps:$4 sm:$0xff]  }
   0x4   :  { %135 = vmatprep.subr.bf16.mxu0 %v291_v3  ;;  %276 = vmatpush3.bf16.msra.mxu1 %v294_v5  ;;  %v302_v10 = vld [vmem:[%s408_s1 + $0x38] ss:$12 sps:$4 sm:$0xff]   ;;  %v301_v12 = vld [vmem:[%s408_s1 + $0x48] ss:$12 sps:$4 sm:$0xff]   ;;  %v304_v13 = vld [vmem:[%s408_s1 + $0x50] ss:$12 sps:$4 sm:$0xff]  }
   0x5   :  { %277 = vmatprep.subr.bf16.mxu1 %v298_v7  ;;  %v303_v11 = vld [vmem:[%s409_s0] sm:$0xff]   ;;  %v305_v14 = vld [vmem:[%s409_s0 + $0x8] sm:$0xff]   ;;  %v38_v16 = vshrl.u32 %v37_v15, 7 }
   0x6   :  { %283 = vmatprep.mubr.msk.bf16.mxu1 %vm126_vm0, %v303_v11  ;;  %v35_v18 = vld [vmem:[%s410_s2] sm:$0x7] }
   0x7   :  { %136 = vmatpush1.bf16.msra.mxu0 %v293_v4  ;;  %v39_v17 = vsub.s32 0, %v38_v16  ;;  %v43_v19 = vsub.s32 1, %v38_v16  ;;  %v47_v20 = vsub.s32 2, %v38_v16 }
   0x8   :  { %137 = vmatprep.subr.bf16.mxu0 %v295_v6  ;;  %278 = vmatpush3.bf16.msra.mxu1 %v298_v7 }
   0x9   :  { %279 = vmatprep.subr.bf16.mxu1 %v302_v10  ;;  %v40_v21 = vrot.slane %v35_v18, %v39_v17  ;;  %v44_v22 = vrot.slane %v35_v18, %v43_v19  ;;  %v48_v24 = vrot.slane %v35_v18, %v47_v20 }
   0xb   :  { %138 = vmatpush1.bf16.msra.mxu0 %v297_v8 }
   0xc   :  { %139 = vmatprep.subr.bf16.mxu0 %v299_v9  ;;  %280 = vmatpush3.bf16.msra.mxu1 %v302_v10 }
   0xd   :  { %281 = vmatprep.subr.bf16.mxu1 %v304_v13 }
   0xf   :  { %140 = vmatpush1.bf16.msra.mxu0 %v301_v12 }
  0x10   :  { %282 = vmatpush3.bf16.msra.mxu1 %v304_v13 }
  0x12   :  { %265 = vmatmul.mubr.msk.bf16.vlgmr.msra.gmra.mrb[0].mxu0 %vm126_vm0, %v303_v11 }
  0x13   :  { %175 = vmatprep.mubr.bf16.mxu0 %v306_v1  ;;  %284 = vmatmul.mubr.msk.bf16.vlgmr.msra.gmra.mrb[0].mxu1 %vm126_vm0, %v305_v14 }
  0x1a   :  { %266 = vmatmul.mubr.msk.bf16.gmra.mrb[4].mxu0 %vm126_vm0, %v305_v14 }
  0xe5   :  { %v167_v23 = vpop.f32.mrb[0].mxu0 }
  0xe6   :  { %v168_v25 = vadd.f32 %v167_v23, %v40_v21  ;;  %v169_v26 = vpop.f32.mrb[1].mxu0  ;;  %v285_v31 = vpop.f32.mrb[0].mxu1 }
  0xe7   :  { %v170_v27 = vadd.f32 %v169_v26, %v44_v22  ;;  %v171_v28 = vpop.f32.mrb[2].mxu0  ;;  %v229_v33 = vadd.f32 %v285_v31, %v48_v24  ;;  %v220_v34 = vpop.f32.mrb[1].mxu1 }
  0xe8   :  { %235 = vst [vmem:[%s411_s3] sm:$0xff] %v168_v25  ;;  %v172_v29 = vadd.f32 %v171_v28, %v40_v21  ;;  %v173_v30 = vpop.f32.mrb[3].mxu0  ;;  %v221_v35 = vadd.f32 %v220_v34, %v48_v24  ;;  %v286_v36 = vpop.f32.mrb[2].mxu1 }
  0xe9   :  { %236 = vst [vmem:[%s411_s3 + $0x8] sm:$0xff] %v170_v27  ;;  %v174_v32 = vadd.f32 %v173_v30, %v44_v22  ;;  %243 = vst [vmem:[%s411_s3 + $0x40] sm:$0xff] %v229_v33  ;;  %v232_v37 = vadd.f32 %v286_v36, %v48_v24  ;;  %v223_v38 = vpop.f32.mrb[3].mxu1 }
  0xea   :  { %238 = vst [vmem:[%s411_s3 + $0x18] sm:$0xff] %v172_v29  ;;  %237 = vst [vmem:[%s411_s3 + $0x10] sm:$0xff] %v221_v35  ;;  %v224_v39 = vadd.f32 %v223_v38, %v48_v24 }
  0xeb   :  { %239 = vst [vmem:[%s411_s3 + $0x20] sm:$0xff] %v174_v32  ;;  %246 = vst [vmem:[%s411_s3 + $0x58] sm:$0xff] %v232_v37 }
  0xec   :  { %240 = vst [vmem:[%s411_s3 + $0x28] sm:$0xff] %v224_v39 }
  0xed   :  { %v177_v40 = vpop.f32.mrb[4].mxu0 }
  0xee   :  { %v178_v41 = vadd.f32 %v177_v40, %v40_v21  ;;  %v179_v42 = vpop.f32.mrb[5].mxu0 }
  0xef   :  { %v180_v43 = vadd.f32 %v179_v42, %v44_v22  ;;  %v181_v44 = vpop.f32.mrb[6].mxu0 }
  0xf0   :  { %241 = vst [vmem:[%s411_s3 + $0x30] sm:$0xff] %v178_v41  ;;  %v182_v45 = vadd.f32 %v181_v44, %v40_v21  ;;  %v183_v46 = vpop.f32.mrb[7].mxu0 }
  0xf1   :  { %242 = vst [vmem:[%s411_s3 + $0x38] sm:$0xff] %v180_v43  ;;  %v184_v47 = vadd.f32 %v183_v46, %v44_v22 }
  0xf2   :  { %244 = vst [vmem:[%s411_s3 + $0x48] sm:$0xff] %v182_v45 }
  0xf3   :  { %245 = vst [vmem:[%s411_s3 + $0x50] sm:$0xff] %v184_v47 }

// kernel: forward.18
= control target key start
LH: loop header
LB: loop body
LE: loop exit
PB: predicated region body
PF: predicated region fallthrough
CT: control target
= control target key end

     0   :  { %vm1269_vm0 = vcmask 523264   ;;  %s2280_s1 = inlined_call_operand.vmem [shape: bf16[1152,192], index: 1, kind: input, shape index: {}]   ;;  %s2281_s0 = inlined_call_operand.vmem [shape: bf16[32,1152], index: 0, kind: input, shape index: {}]   ;;  %s2282_s2 = inlined_call_operand.vmem [shape: f32[1,192], index: 2, kind: input, shape index: {}]   ;;  %s2283_s3 = inlined_call_operand.vmem [shape: f32[32,192], index: 3, kind: output, shape index: {}]  }
   0x1   :  { %v1500_v0 = vld [vmem:[%s2280_s1 + $0x4] ss:$8 sps:$4 sm:$0xff]   ;;  %v1504_v2 = vld [vmem:[%s2280_s1] ss:$8 sps:$4 sm:$0xff]   ;;  %v1506_v4 = vld [vmem:[%s2280_s1 + $0x14] ss:$8 sps:$4 sm:$0xff]  }
   0x2   :  { %v1502_v1 = vld [vmem:[%s2280_s1 + $0x204] ss:$8 sps:$4 sm:$0xff]   ;;  %1003 = vmatprep.subr.bf16.mxu1 %v1500_v0  ;;  %v1505_v3 = vld [vmem:[%s2280_s1 + $0x200] ss:$8 sps:$4 sm:$0xff]   ;;  %v1508_v5 = vld [vmem:[%s2280_s1 + $0x214] ss:$8 sps:$4 sm:$0xff]  }
   0x3   :  { %1109 = vmatprep.subr.bf16.mxu0 %v1502_v1  ;;  %1004 = vmatpush1.bf16.msra.mxu1 %v1504_v2  ;;  %v1510_v6 = vld [vmem:[%s2280_s1 + $0x10] ss:$8 sps:$4 sm:$0xff]   ;;  %v1512_v8 = vld [vmem:[%s2280_s1 + $0x24] ss:$8 sps:$4 sm:$0xff]   ;;  %v1516_v10 = vld [vmem:[%s2280_s1 + $0x20] ss:$8 sps:$4 sm:$0xff]  }
   0x4   :  { %1110 = vmatpush1.bf16.msra.mxu0 %v1505_v3  ;;  %1005 = vmatprep.subr.bf16.mxu1 %v1506_v4  ;;  %v1511_v7 = vld [vmem:[%s2280_s1 + $0x210] ss:$8 sps:$4 sm:$0xff]   ;;  %v1514_v9 = vld [vmem:[%s2280_s1 + $0x224] ss:$8 sps:$4 sm:$0xff]   ;;  %v1517_v11 = vld [vmem:[%s2280_s1 + $0x220] ss:$8 sps:$4 sm:$0xff]  }
   0x5   :  { %1111 = vmatprep.subr.bf16.mxu0 %v1508_v5  ;;  %v1518_v12 = vld [vmem:[%s2280_s1 + $0x34] ss:$8 sps:$4 sm:$0xff]   ;;  %v1522_v14 = vld [vmem:[%s2280_s1 + $0x30] ss:$8 sps:$4 sm:$0xff]   ;;  %v1524_v16 = vld [vmem:[%s2280_s1 + $0x44] ss:$8 sps:$4 sm:$0xff]  }
   0x6   :  { %v1520_v13 = vld [vmem:[%s2280_s1 + $0x234] ss:$8 sps:$4 sm:$0xff]   ;;  %v1523_v15 = vld [vmem:[%s2280_s1 + $0x230] ss:$8 sps:$4 sm:$0xff]   ;;  %v1526_v17 = vld [vmem:[%s2280_s1 + $0x244] ss:$8 sps:$4 sm:$0xff]  }
   0x7   :  { %1006 = vmatpush1.bf16.msra.mxu1 %v1510_v6  ;;  %v1528_v18 = vld [vmem:[%s2280_s1 + $0x40] ss:$8 sps:$4 sm:$0xff]   ;;  %v1530_v20 = vld [vmem:[%s2280_s1 + $0x54] ss:$8 sps:$4 sm:$0xff]   ;;  %v1534_v22 = vld [vmem:[%s2280_s1 + $0x50] ss:$8 sps:$4 sm:$0xff]  }
   0x8   :  { %1112 = vmatpush1.bf16.msra.mxu0 %v1511_v7  ;;  %1007 = vmatprep.subr.bf16.mxu1 %v1512_v8  ;;  %v1529_v19 = vld [vmem:[%s2280_s1 + $0x240] ss:$8 sps:$4 sm:$0xff]   ;;  %v1532_v21 = vld [vmem:[%s2280_s1 + $0x254] ss:$8 sps:$4 sm:$0xff]   ;;  %v1535_v23 = vld [vmem:[%s2280_s1 + $0x250] ss:$8 sps:$4 sm:$0xff]  }
   0x9   :  { %1113 = vmatprep.subr.bf16.mxu0 %v1514_v9  ;;  %v1536_v24 = vld [vmem:[%s2280_s1 + $0x64] ss:$8 sps:$4 sm:$0xff]   ;;  %v1540_v26 = vld [vmem:[%s2280_s1 + $0x60] ss:$8 sps:$4 sm:$0xff]   ;;  %v1542_v28 = vld [vmem:[%s2280_s1 + $0x74] ss:$8 sps:$4 sm:$0xff]  }
   0xa   :  { %v1538_v25 = vld [vmem:[%s2280_s1 + $0x264] ss:$8 sps:$4 sm:$0xff]   ;;  %v1541_v27 = vld [vmem:[%s2280_s1 + $0x260] ss:$8 sps:$4 sm:$0xff]   ;;  %v1544_v29 = vld [vmem:[%s2280_s1 + $0x274] ss:$8 sps:$4 sm:$0xff]  }
   0xb   :  { %1008 = vmatpush1.bf16.msra.mxu1 %v1516_v10  ;;  %v1546_v30 = vld [vmem:[%s2280_s1 + $0x70] ss:$8 sps:$4 sm:$0xff]   ;;  %v1548_v32 = vld [vmem:[%s2280_s1 + $0x84] ss:$8 sps:$4 sm:$0xff]   ;;  %v1552_v34 = vld [vmem:[%s2280_s1 + $0x80] ss:$8 sps:$4 sm:$0xff]  }
   0xc   :  { %1114 = vmatpush1.bf16.msra.mxu0 %v1517_v11  ;;  %1009 = vmatprep.subr.bf16.mxu1 %v1518_v12  ;;  %v1547_v31 = vld [vmem:[%s2280_s1 + $0x270] ss:$8 sps:$4 sm:$0xff]   ;;  %v1550_v33 = vld [vmem:[%s2280_s1 + $0x284] ss:$8 sps:$4 sm:$0xff]   ;;  %v1553_v35 = vld [vmem:[%s2280_s1 + $0x280] ss:$8 sps:$4 sm:$0xff]  }
   0xd   :  { %1115 = vmatprep.subr.bf16.mxu0 %v1520_v13  ;;  %v1554_v36 = vld [vmem:[%s2280_s1 + $0x94] ss:$8 sps:$4 sm:$0xff]   ;;  %v1558_v38 = vld [vmem:[%s2280_s1 + $0x90] ss:$8 sps:$4 sm:$0xff]   ;;  %v1560_v40 = vld [vmem:[%s2280_s1 + $0xa4] ss:$8 sps:$4 sm:$0xff]  }
   0xe   :  { %v1556_v37 = vld [vmem:[%s2280_s1 + $0x294] ss:$8 sps:$4 sm:$0xff]   ;;  %v1559_v39 = vld [vmem:[%s2280_s1 + $0x290] ss:$8 sps:$4 sm:$0xff]   ;;  %v1562_v41 = vld [vmem:[%s2280_s1 + $0x2a4] ss:$8 sps:$4 sm:$0xff]  }
   0xf   :  { %1010 = vmatpush1.bf16.msra.mxu1 %v1522_v14  ;;  %v1564_v42 = vld [vmem:[%s2280_s1 + $0xa0] ss:$8 sps:$4 sm:$0xff]   ;;  %v1566_v44 = vld [vmem:[%s2280_s1 + $0xb4] ss:$8 sps:$4 sm:$0xff]   ;;  %v1570_v46 = vld [vmem:[%s2280_s1 + $0xb0] ss:$8 sps:$4 sm:$0xff]  }
  0x10   :  { %1116 = vmatpush1.bf16.msra.mxu0 %v1523_v15  ;;  %1011 = vmatprep.subr.bf16.mxu1 %v1524_v16  ;;  %v1565_v43 = vld [vmem:[%s2280_s1 + $0x2a0] ss:$8 sps:$4 sm:$0xff]   ;;  %v1568_v45 = vld [vmem:[%s2280_s1 + $0x2b4] ss:$8 sps:$4 sm:$0xff]   ;;  %v1571_v47 = vld [vmem:[%s2280_s1 + $0x2b0] ss:$8 sps:$4 sm:$0xff]  }
  0x11   :  { %1117 = vmatprep.subr.bf16.mxu0 %v1526_v17  ;;  %v1598_v48 = vld [vmem:[%s2281_s0 + $0x4] ss:$36 sps:$4 sm:$0xff]   ;;  %v1604_v51 = vld [vmem:[%s2281_s0 + $0x14] ss:$36 sps:$4 sm:$0xff]  }
  0x12   :  { %v1572_v49 = vld [vmem:[%s2280_s1 + $0xc4] ss:$8 sps:$4 sm:$0xff]   ;;  %1035 = vmatprep.mubr.bf16.mxu1 %v1598_v48  ;;  %v1576_v52 = vld [vmem:[%s2280_s1 + $0xc0] ss:$8 sps:$4 sm:$0xff]   ;;  %v1578_v54 = vld [vmem:[%s2280_s1 + $0xd4] ss:$8 sps:$4 sm:$0xff]   ;;  %1141 = vmatprep.mubr.bf16.mxu0 %v1604_v51 }
  0x13   :  { %1012 = vmatpush1.bf16.msra.mxu1 %v1528_v18  ;;  %v1574_v50 = vld [vmem:[%s2280_s1 + $0x2c4] ss:$8 sps:$4 sm:$0xff]   ;;  %v1577_v53 = vld [vmem:[%s2280_s1 + $0x2c0] ss:$8 sps:$4 sm:$0xff]   ;;  %v1580_v55 = vld [vmem:[%s2280_s1 + $0x2d4] ss:$8 sps:$4 sm:$0xff]  }
  0x14   :  { %1118 = vmatpush1.bf16.msra.mxu0 %v1529_v19  ;;  %1013 = vmatprep.subr.bf16.mxu1 %v1530_v20  ;;  %v1582_v56 = vld [vmem:[%s2280_s1 + $0xd0] ss:$8 sps:$4 sm:$0xff]   ;;  %v1584_v58 = vld [vmem:[%s2280_s1 + $0xe4] ss:$8 sps:$4 sm:$0xff]   ;;  %v1588_v60 = vld [vmem:[%s2280_s1 + $0xe0] ss:$8 sps:$4 sm:$0xff]  }
  0x15   :  { %1119 = vmatprep.subr.bf16.mxu0 %v1532_v21  ;;  %v1583_v57 = vld [vmem:[%s2280_s1 + $0x2d0] ss:$8 sps:$4 sm:$0xff]   ;;  %v1586_v59 = vld [vmem:[%s2280_s1 + $0x2e4] ss:$8 sps:$4 sm:$0xff]   ;;  %v1589_v61 = vld [vmem:[%s2280_s1 + $0x2e0] ss:$8 sps:$4 sm:$0xff]  }
  0x16   :  { %v1590_v62 = vld [vmem:[%s2280_s1 + $0xf4] ss:$8 sps:$4 sm:$0xff]   ;;  %v1594_v0 = vld [vmem:[%s2280_s1 + $0xf0] ss:$8 sps:$4 sm:$0xff]   ;;  %v1601_v2 = vld [vmem:[%s2280_s1 + $0x104] ss:$8 sps:$4 sm:$0xff]  }
  0x17   :  { %1014 = vmatpush1.bf16.msra.mxu1 %v1534_v22  ;;  %v1592_v63 = vld [vmem:[%s2280_s1 + $0x2f4] ss:$8 sps:$4 sm:$0xff]   ;;  %v1595_v1 = vld [vmem:[%s2280_s1 + $0x2f0] ss:$8 sps:$4 sm:$0xff]   ;;  %v1607_v3 = vld [vmem:[%s2280_s1 + $0x304] ss:$8 sps:$4 sm:$0xff]  }
  0x18   :  { %1120 = vmatpush1.bf16.msra.mxu0 %v1535_v23  ;;  %1015 = vmatprep.subr.bf16.mxu1 %v1536_v24  ;;  %v1596_v4 = vld [vmem:[%s2281_s0] ss:$36 sps:$4 sm:$0xff]   ;;  %v1602_v6 = vld [vmem:[%s2281_s0 + $0x10] ss:$36 sps:$4 sm:$0xff]  }
  0x19   :  { %1121 = vmatprep.subr.bf16.mxu0 %v1538_v25  ;;  %v1599_v5 = vld [vmem:[%s2280_s1 + $0x100] ss:$8 sps:$4 sm:$0xff]   ;;  %v1610_v8 = vld [vmem:[%s2280_s1 + $0x114] ss:$8 sps:$4 sm:$0xff]   ;;  %v1608_v10 = vld [vmem:[%s2280_s1 + $0x110] ss:$8 sps:$4 sm:$0xff]  }
  0x1a   :  { %v1605_v7 = vld [vmem:[%s2280_s1 + $0x300] ss:$8 sps:$4 sm:$0xff]   ;;  %v1613_v9 = vld [vmem:[%s2280_s1 + $0x314] ss:$8 sps:$4 sm:$0xff]   ;;  %v1611_v11 = vld [vmem:[%s2280_s1 + $0x310] ss:$8 sps:$4 sm:$0xff]  }
  0x1b   :  { %1016 = vmatpush1.bf16.msra.mxu1 %v1540_v26  ;;  %v1616_v12 = vld [vmem:[%s2280_s1 + $0x124] ss:$8 sps:$4 sm:$0xff]   ;;  %v1614_v14 = vld [vmem:[%s2280_s1 + $0x120] ss:$8 sps:$4 sm:$0xff]   ;;  %v1622_v16 = vld [vmem:[%s2280_s1 + $0x134] ss:$8 sps:$4 sm:$0xff]  }
  0x1c   :  { %1122 = vmatpush1.bf16.msra.mxu0 %v1541_v27  ;;  %1017 = vmatprep.subr.bf16.mxu1 %v1542_v28  ;;  %v1619_v13 = vld [vmem:[%s2280_s1 + $0x324] ss:$8 sps:$4 sm:$0xff]   ;;  %v1617_v15 = vld [vmem:[%s2280_s1 + $0x320] ss:$8 sps:$4 sm:$0xff]   ;;  %v1625_v17 = vld [vmem:[%s2280_s1 + $0x334] ss:$8 sps:$4 sm:$0xff]  }
  0x1d   :  { %1123 = vmatprep.subr.bf16.mxu0 %v1544_v29  ;;  %v1620_v18 = vld [vmem:[%s2280_s1 + $0x130] ss:$8 sps:$4 sm:$0xff]   ;;  %v1628_v20 = vld [vmem:[%s2280_s1 + $0x144] ss:$8 sps:$4 sm:$0xff]   ;;  %v1626_v22 = vld [vmem:[%s2280_s1 + $0x140] ss:$8 sps:$4 sm:$0xff]  }
  0x1e   :  { %v1623_v19 = vld [vmem:[%s2280_s1 + $0x330] ss:$8 sps:$4 sm:$0xff]   ;;  %v1631_v21 = vld [vmem:[%s2280_s1 + $0x344] ss:$8 sps:$4 sm:$0xff]   ;;  %v1629_v23 = vld [vmem:[%s2280_s1 + $0x340] ss:$8 sps:$4 sm:$0xff]  }
  0x1f   :  { %1018 = vmatpush1.bf16.msra.mxu1 %v1546_v30  ;;  %v1634_v24 = vld [vmem:[%s2280_s1 + $0x154] ss:$8 sps:$4 sm:$0xff]   ;;  %v1632_v26 = vld [vmem:[%s2280_s1 + $0x150] ss:$8 sps:$4 sm:$0xff]   ;;  %v1640_v28 = vld [vmem:[%s2280_s1 + $0x164] ss:$8 sps:$4 sm:$0xff]  }
  0x20   :  { %1124 = vmatpush1.bf16.msra.mxu0 %v1547_v31  ;;  %1019 = vmatprep.subr.bf16.mxu1 %v1548_v32  ;;  %v1637_v25 = vld [vmem:[%s2280_s1 + $0x354] ss:$8 sps:$4 sm:$0xff]   ;;  %v1635_v27 = vld [vmem:[%s2280_s1 + $0x350] ss:$8 sps:$4 sm:$0xff]   ;;  %v1690_v31 = vld [vmem:[%s2281_s0 + $0x48] ss:$36 sps:$4 sm:$0xff]  }
  0x21   :  { %1125 = vmatprep.subr.bf16.mxu0 %v1550_v33  ;;  %v1686_v29 = vld [vmem:[%s2281_s0 + $0x4c] ss:$36 sps:$4 sm:$0xff]   ;;  %v1688_v30 = vld [vmem:[%s2281_s0 + $0x5c] ss:$36 sps:$4 sm:$0xff]  }
  0x22   :  { %v1643_v32 = vld [vmem:[%s2280_s1 + $0x364] ss:$8 sps:$4 sm:$0xff]   ;;  %v1694_v33 = vld [vmem:[%s2281_s0 + $0x58] ss:$36 sps:$4 sm:$0xff]  }
  0x23   :  { %1020 = vmatpush1.bf16.msra.mxu1 %v1552_v34  ;;  %v1638_v34 = vld [vmem:[%s2280_s1 + $0x160] ss:$8 sps:$4 sm:$0xff]   ;;  %v1656_v48 = vld [vmem:[%s2280_s1 + $0x190] ss:$8 sps:$4 sm:$0xff]   ;;  %v1667_v51 = vld [vmem:[%s2280_s1 + $0x3a4] ss:$8 sps:$4 sm:$0xff]  }
  0x24   :  { %1126 = vmatpush1.bf16.msra.mxu0 %v1553_v35  ;;  %1021 = vmatprep.subr.bf16.mxu1 %v1554_v36  ;;  %v1641_v35 = vld [vmem:[%s2280_s1 + $0x360] ss:$8 sps:$4 sm:$0xff]   ;;  %v1646_v36 = vld [vmem:[%s2280_s1 + $0x174] ss:$8 sps:$4 sm:$0xff]  }
  0x25   :  { %1127 = vmatprep.subr.bf16.mxu0 %v1556_v37  ;;  %v1649_v37 = vld [vmem:[%s2280_s1 + $0x374] ss:$8 sps:$4 sm:$0xff]  }
  0x27   :  { %1022 = vmatpush1.bf16.msra.mxu1 %v1558_v38  ;;  %v1644_v38 = vld [vmem:[%s2280_s1 + $0x170] ss:$8 sps:$4 sm:$0xff]  }
  0x28   :  { %1128 = vmatpush1.bf16.msra.mxu0 %v1559_v39  ;;  %1023 = vmatprep.subr.bf16.mxu1 %v1560_v40  ;;  %v1647_v39 = vld [vmem:[%s2280_s1 + $0x370] ss:$8 sps:$4 sm:$0xff]   ;;  %v1652_v40 = vld [vmem:[%s2280_s1 + $0x184] ss:$8 sps:$4 sm:$0xff]  }
  0x29   :  { %1129 = vmatprep.subr.bf16.mxu0 %v1562_v41  ;;  %v1706_v41 = vld [vmem:[%s2281_s0 + $0xc] ss:$36 sps:$4 sm:$0xff]  }
  0x2b   :  { %1024 = vmatpush1.bf16.msra.mxu1 %v1564_v42  ;;  %v1655_v42 = vld [vmem:[%s2280_s1 + $0x384] ss:$8 sps:$4 sm:$0xff]  }
  0x2c   :  { %1130 = vmatpush1.bf16.msra.mxu0 %v1565_v43  ;;  %1025 = vmatprep.subr.bf16.mxu1 %v1566_v44  ;;  %v1709_v43 = vld [vmem:[%s2281_s0 + $0x1c] ss:$36 sps:$4 sm:$0xff]  }
  0x2d   :  { %1131 = vmatprep.subr.bf16.mxu0 %v1568_v45  ;;  %v1650_v44 = vld [vmem:[%s2280_s1 + $0x180] ss:$8 sps:$4 sm:$0xff]  }
  0x2e   :  { %v1653_v45 = vld [vmem:[%s2280_s1 + $0x380] ss:$8 sps:$4 sm:$0xff]  }
  0x2f   :  { %1026 = vmatpush1.bf16.msra.mxu1 %v1570_v46  ;;  %v1658_v46 = vld [vmem:[%s2280_s1 + $0x194] ss:$8 sps:$4 sm:$0xff]  }
  0x30   :  { %1132 = vmatpush1.bf16.msra.mxu0 %v1571_v47  ;;  %1027 = vmatprep.subr.bf16.mxu1 %v1572_v49  ;;  %v1661_v47 = vld [vmem:[%s2280_s1 + $0x394] ss:$8 sps:$4 sm:$0xff]   ;;  %v1659_v49 = vld [vmem:[%s2280_s1 + $0x390] ss:$8 sps:$4 sm:$0xff]  }
  0x31   :  { %1133 = vmatprep.subr.bf16.mxu0 %v1574_v50  ;;  %v1664_v50 = vld [vmem:[%s2280_s1 + $0x1a4] ss:$8 sps:$4 sm:$0xff]  }
  0x33   :  { %1028 = vmatpush1.bf16.msra.mxu1 %v1576_v52  ;;  %v1662_v52 = vld [vmem:[%s2280_s1 + $0x1a0] ss:$8 sps:$4 sm:$0xff]  }
  0x34   :  { %1134 = vmatpush1.bf16.msra.mxu0 %v1577_v53  ;;  %1029 = vmatprep.subr.bf16.mxu1 %v1578_v54  ;;  %v1665_v53 = vld [vmem:[%s2280_s1 + $0x3a0] ss:$8 sps:$4 sm:$0xff]   ;;  %v1670_v54 = vld [vmem:[%s2280_s1 + $0x1b4] ss:$8 sps:$4 sm:$0xff]  }
  0x35   :  { %1135 = vmatprep.subr.bf16.mxu0 %v1580_v55  ;;  %v1673_v55 = vld [vmem:[%s2280_s1 + $0x3b4] ss:$8 sps:$4 sm:$0xff]  }
  0x37   :  { %1030 = vmatpush1.bf16.msra.mxu1 %v1582_v56  ;;  %v1668_v56 = vld [vmem:[%s2280_s1 + $0x1b0] ss:$8 sps:$4 sm:$0xff]  }
  0x38   :  { %1136 = vmatpush1.bf16.msra.mxu0 %v1583_v57  ;;  %1031 = vmatprep.subr.bf16.mxu1 %v1584_v58  ;;  %v1671_v57 = vld [vmem:[%s2280_s1 + $0x3b0] ss:$8 sps:$4 sm:$0xff]   ;;  %v1676_v58 = vld [vmem:[%s2280_s1 + $0x1c4] ss:$8 sps:$4 sm:$0xff]  }
  0x39   :  { %1137 = vmatprep.subr.bf16.mxu0 %v1586_v59  ;;  %v1679_v59 = vld [vmem:[%s2280_s1 + $0x3c4] ss:$8 sps:$4 sm:$0xff]  }
  0x3b   :  { %1032 = vmatpush1.bf16.msra.mxu1 %v1588_v60  ;;  %v1674_v60 = vld [vmem:[%s2280_s1 + $0x1c0] ss:$8 sps:$4 sm:$0xff]  }
  0x3c   :  { %1138 = vmatpush1.bf16.msra.mxu0 %v1589_v61  ;;  %1033 = vmatprep.subr.bf16.mxu1 %v1590_v62  ;;  %v1677_v61 = vld [vmem:[%s2280_s1 + $0x3c0] ss:$8 sps:$4 sm:$0xff]   ;;  %v1682_v62 = vld [vmem:[%s2280_s1 + $0x1d4] ss:$8 sps:$4 sm:$0xff]  }
  0x3d   :  { %1139 = vmatprep.subr.bf16.mxu0 %v1592_v63  ;;  %v1685_v63 = vld [vmem:[%s2280_s1 + $0x3d4] ss:$8 sps:$4 sm:$0xff]  }
  0x3f   :  { %1034 = vmatpush1.bf16.msra.mxu1 %v1594_v0  ;;  %v1680_v0 = vld [vmem:[%s2280_s1 + $0x1d0] ss:$8 sps:$4 sm:$0xff]  }
  0x40   :  { %1140 = vmatpush1.bf16.msra.mxu0 %v1595_v1  ;;  %1056 = vmatprep.subr.bf16.mxu1 %v1601_v2  ;;  %v1683_v1 = vld [vmem:[%s2280_s1 + $0x3d0] ss:$8 sps:$4 sm:$0xff]   ;;  %v1693_v2 = vld [vmem:[%s2280_s1 + $0x1e4] ss:$8 sps:$4 sm:$0xff]  }
  0x41   :  { %1162 = vmatprep.subr.bf16.mxu0 %v1607_v3  ;;  %v1697_v3 = vld [vmem:[%s2280_s1 + $0x3e4] ss:$8 sps:$4 sm:$0xff]  }
  0x42   :  { %1036 = vmatmul.mubr.bf16.vlgmr.msra.gmra.mrb[0].mxu1 %v1596_v4  ;;  %v1691_v4 = vld [vmem:[%s2280_s1 + $0x1e0] ss:$8 sps:$4 sm:$0xff]  }
  0x43   :  { %1142 = vmatmul.mubr.bf16.vlgmr.msra.gmra.mrb[0].mxu0 %v1602_v6  ;;  %1057 = vmatpush1.bf16.msra.mxu1 %v1599_v5  ;;  %v1695_v5 = vld [vmem:[%s2280_s1 + $0x3e0] ss:$8 sps:$4 sm:$0xff]   ;;  %v1700_v6 = vld [vmem:[%s2280_s1 + $0x1f4] ss:$8 sps:$4 sm:$0xff]  }
  0x44   :  { %1163 = vmatpush1.bf16.msra.mxu0 %v1605_v7  ;;  %1058 = vmatprep.subr.bf16.mxu1 %v1610_v8  ;;  %v1703_v7 = vld [vmem:[%s2280_s1 + $0x3f4] ss:$8 sps:$4 sm:$0xff]   ;;  %v1698_v8 = vld [vmem:[%s2280_s1 + $0x1f0] ss:$8 sps:$4 sm:$0xff]  }
  0x45   :  { %1164 = vmatprep.subr.bf16.mxu0 %v1613_v9  ;;  %1045 = vmatprep.mubr.bf16.mxu1 %v1686_v29  ;;  %v1701_v9 = vld [vmem:[%s2280_s1 + $0x3f0] ss:$8 sps:$4 sm:$0xff]   ;;  %v1736_v29 = vld [vmem:[%s2280_s1 + $0x464] ss:$8 sps:$4 sm:$0xff]  }
  0x46   :  { %1151 = vmatprep.mubr.bf16.mxu0 %v1688_v30  ;;  %v1734_v30 = vld [vmem:[%s2280_s1 + $0x460] ss:$8 sps:$4 sm:$0xff]  }
  0x47   :  { %1059 = vmatpush1.bf16.msra.mxu1 %v1608_v10  ;;  %v1712_v10 = vld [vmem:[%s2280_s1 + $0x404] ss:$8 sps:$4 sm:$0xff]  }
  0x48   :  { %1165 = vmatpush1.bf16.msra.mxu0 %v1611_v11  ;;  %1060 = vmatprep.subr.bf16.mxu1 %v1616_v12  ;;  %v1704_v11 = vld [vmem:[%s2281_s0 + $0x8] ss:$36 sps:$4 sm:$0xff]   ;;  %v1707_v12 = vld [vmem:[%s2281_s0 + $0x18] ss:$36 sps:$4 sm:$0xff]  }
  0x49   :  { %1166 = vmatprep.subr.bf16.mxu0 %v1619_v13  ;;  %v1710_v13 = vld [vmem:[%s2280_s1 + $0x400] ss:$8 sps:$4 sm:$0xff]  }
  0x4a   :  { %1046 = vmatmul.mubr.bf16.gmra.mrb[4].mxu1 %v1690_v31  ;;  %v1739_v31 = vld [vmem:[%s2280_s1 + $0x474] ss:$8 sps:$4 sm:$0xff]  }
  0x4b   :  { %1061 = vmatpush1.bf16.msra.mxu1 %v1614_v14  ;;  %1152 = vmatmul.mubr.bf16.gmra.mrb[4].mxu0 %v1694_v33  ;;  %v1715_v14 = vld [vmem:[%s2280_s1 + $0x414] ss:$8 sps:$4 sm:$0xff]   ;;  %v1740_v33 = vld [vmem:[%s2281_s0 + $0x20] ss:$36 sps:$4 sm:$0xff]  }
  0x4c   :  { %1167 = vmatpush1.bf16.msra.mxu0 %v1617_v15  ;;  %1062 = vmatprep.subr.bf16.mxu1 %v1622_v16  ;;  %v1716_v15 = vld [vmem:[%s2281_s0 + $0x54] ss:$36 sps:$4 sm:$0xff]   ;;  %v1718_v16 = vld [vmem:[%s2281_s0 + $0x64] ss:$36 sps:$4 sm:$0xff]  }
  0x4d   :  { %1168 = vmatprep.subr.bf16.mxu0 %v1625_v17  ;;  %1088 = vmatprep.mubr.bf16.mxu1 %v1706_v41  ;;  %v1713_v17 = vld [vmem:[%s2280_s1 + $0x410] ss:$8 sps:$4 sm:$0xff]  }
  0x4e   :  { %1194 = vmatprep.mubr.bf16.mxu0 %v1709_v43 }
  0x4f   :  { %1063 = vmatpush1.bf16.msra.mxu1 %v1620_v18  ;;  %v1724_v18 = vld [vmem:[%s2280_s1 + $0x424] ss:$8 sps:$4 sm:$0xff]  }
  0x50   :  { %1169 = vmatpush1.bf16.msra.mxu0 %v1623_v19  ;;  %1064 = vmatprep.subr.bf16.mxu1 %v1628_v20  ;;  %v1720_v19 = vld [vmem:[%s2281_s0 + $0x50] ss:$36 sps:$4 sm:$0xff]   ;;  %v1721_v20 = vld [vmem:[%s2281_s0 + $0x60] ss:$36 sps:$4 sm:$0xff]  }
  0x51   :  { %1170 = vmatprep.subr.bf16.mxu0 %v1631_v21  ;;  %v1722_v21 = vld [vmem:[%s2280_s1 + $0x420] ss:$8 sps:$4 sm:$0xff]  }
  0x53   :  { %1065 = vmatpush1.bf16.msra.mxu1 %v1626_v22  ;;  %v1727_v22 = vld [vmem:[%s2280_s1 + $0x434] ss:$8 sps:$4 sm:$0xff]  }
  0x54   :  { %1171 = vmatpush1.bf16.msra.mxu0 %v1629_v23  ;;  %1066 = vmatprep.subr.bf16.mxu1 %v1634_v24  ;;  %v1725_v23 = vld [vmem:[%s2280_s1 + $0x430] ss:$8 sps:$4 sm:$0xff]   ;;  %v1730_v24 = vld [vmem:[%s2280_s1 + $0x444] ss:$8 sps:$4 sm:$0xff]  }
  0x55   :  { %1172 = vmatprep.subr.bf16.mxu0 %v1637_v25  ;;  %v1742_v25 = vmov 0  }
  0x57   :  { %1067 = vmatpush1.bf16.msra.mxu1 %v1632_v26  ;;  %v1728_v26 = vld [vmem:[%s2280_s1 + $0x440] ss:$8 sps:$4 sm:$0xff]  }
  0x58   :  { %1173 = vmatpush1.bf16.msra.mxu0 %v1635_v27  ;;  %1068 = vmatprep.subr.bf16.mxu1 %v1640_v28  ;;  %v1733_v27 = vld [vmem:[%s2280_s1 + $0x454] ss:$8 sps:$4 sm:$0xff]   ;;  %v1731_v28 = vld [vmem:[%s2280_s1 + $0x450] ss:$8 sps:$4 sm:$0xff]  }
  0x59   :  { %1174 = vmatprep.subr.bf16.mxu0 %v1643_v32  ;;  %v1737_v32 = vld [vmem:[%s2280_s1 + $0x470] ss:$8 sps:$4 sm:$0xff]  }
  0x5b   :  { %1069 = vmatpush1.bf16.msra.mxu1 %v1638_v34  ;;  %v1741_v34 = vld [vmem:[%s2281_s0 + $0x68] ss:$36 sps:$4 sm:$0xff]  }
  0x5c   :  { %1175 = vmatpush1.bf16.msra.mxu0 %v1641_v35  ;;  %1070 = vmatprep.subr.bf16.mxu1 %v1646_v36  ;;  %v181_v35 = vlaneseq }
  0x5d   :  { %1176 = vmatprep.subr.bf16.mxu0 %v1649_v37 }
  0x5e   :  { %v182_v36 = vshrl.u32 %v181_v35, 7 }
  0x5f   :  { %1071 = vmatpush1.bf16.msra.mxu1 %v1644_v38 }
  0x60   :  { %1177 = vmatpush1.bf16.msra.mxu0 %v1647_v39  ;;  %1072 = vmatprep.subr.bf16.mxu1 %v1652_v40  ;;  %v183_v40 = vsub.s32 0, %v182_v36  ;;  %v187_v43 = vsub.s32 1, %v182_v36 }
  0x61   :  { %1178 = vmatprep.subr.bf16.mxu0 %v1655_v42  ;;  %v179_v42 = vld [vmem:[%s2282_s2] sm:$0x3] }
  0x63   :  { %1073 = vmatpush1.bf16.msra.mxu1 %v1650_v44  ;;  %v184_v44 = vrot.slane %v179_v42, %v183_v40 }
  0x64   :  { %1179 = vmatpush1.bf16.msra.mxu0 %v1653_v45  ;;  %1074 = vmatprep.subr.bf16.mxu1 %v1658_v46  ;;  %v188_v45 = vrot.slane %v179_v42, %v187_v43 }
  0x65   :  { %1180 = vmatprep.subr.bf16.mxu0 %v1661_v47 }
  0x67   :  { %1075 = vmatpush1.bf16.msra.mxu1 %v1656_v48 }
  0x68   :  { %1181 = vmatpush1.bf16.msra.mxu0 %v1659_v49  ;;  %1076 = vmatprep.subr.bf16.mxu1 %v1664_v50 }
  0x69   :  { %1182 = vmatprep.subr.bf16.mxu0 %v1667_v51 }
  0x6b   :  { %1077 = vmatpush1.bf16.msra.mxu1 %v1662_v52 }
  0x6c   :  { %1183 = vmatpush1.bf16.msra.mxu0 %v1665_v53  ;;  %1078 = vmatprep.subr.bf16.mxu1 %v1670_v54 }
  0x6d   :  { %1184 = vmatprep.subr.bf16.mxu0 %v1673_v55 }
  0x6f   :  { %1079 = vmatpush1.bf16.msra.mxu1 %v1668_v56 }
  0x70   :  { %1185 = vmatpush1.bf16.msra.mxu0 %v1671_v57  ;;  %1080 = vmatprep.subr.bf16.mxu1 %v1676_v58 }
  0x71   :  { %1186 = vmatprep.subr.bf16.mxu0 %v1679_v59 }
  0x73   :  { %1081 = vmatpush1.bf16.msra.mxu1 %v1674_v60 }
  0x74   :  { %1187 = vmatpush1.bf16.msra.mxu0 %v1677_v61  ;;  %1082 = vmatprep.subr.bf16.mxu1 %v1682_v62 }
  0x75   :  { %1188 = vmatprep.subr.bf16.mxu0 %v1685_v63 }
  0x77   :  { %1083 = vmatpush1.bf16.msra.mxu1 %v1680_v0 }
  0x78   :  { %1189 = vmatpush1.bf16.msra.mxu0 %v1683_v1  ;;  %1084 = vmatprep.subr.bf16.mxu1 %v1693_v2 }
  0x79   :  { %1190 = vmatprep.subr.bf16.mxu0 %v1697_v3 }
  0x7b   :  { %1085 = vmatpush1.bf16.msra.mxu1 %v1691_v4 }
  0x7c   :  { %1191 = vmatpush1.bf16.msra.mxu0 %v1695_v5  ;;  %1086 = vmatprep.subr.bf16.mxu1 %v1700_v6 }
  0x7d   :  { %1192 = vmatprep.subr.bf16.mxu0 %v1703_v7 }
  0x7f   :  { %1087 = vmatpush1.bf16.msra.mxu1 %v1698_v8 }
  0x80   :  { %1193 = vmatpush1.bf16.msra.mxu0 %v1701_v9  ;;  %1443 = vmatprep.subr.bf16.mxu1 %v1712_v10 }
  0x81   :  { %1215 = vmatprep.subr.bf16.mxu0 %v1712_v10 }
  0x82   :  { %1089 = vmatmul.mubr.bf16.vlgmr.msra.gmra.mrb[0].mxu1 %v1704_v11 }
  0x83   :  { %1195 = vmatmul.mubr.bf16.vlgmr.msra.gmra.mrb[0].mxu0 %v1707_v12  ;;  %1451 = vmatpush1.bf16.msra.mxu1 %v1710_v13 }
  0x84   :  { %1216 = vmatpush1.bf16.msra.mxu0 %v1710_v13  ;;  %1444 = vmatprep.subr.bf16.mxu1 %v1715_v14 }
  0x85   :  { %1217 = vmatprep.subr.bf16.mxu0 %v1715_v14  ;;  %1098 = vmatprep.mubr.bf16.mxu1 %v1716_v15 }
  0x86   :  { %1204 = vmatprep.mubr.bf16.mxu0 %v1718_v16 }
  0x87   :  { %1452 = vmatpush1.bf16.msra.mxu1 %v1713_v17 }
  0x88   :  { %1218 = vmatpush1.bf16.msra.mxu0 %v1713_v17  ;;  %1445 = vmatprep.subr.bf16.mxu1 %v1724_v18 }
  0x89   :  { %1219 = vmatprep.subr.bf16.mxu0 %v1724_v18 }
  0x8a   :  { %1099 = vmatmul.mubr.bf16.gmra.mrb[4].mxu1 %v1720_v19 }
  0x8b   :  { %1205 = vmatmul.mubr.bf16.gmra.mrb[4].mxu0 %v1721_v20  ;;  %1453 = vmatpush1.bf16.msra.mxu1 %v1722_v21 }
  0x8c   :  { %1220 = vmatpush1.bf16.msra.mxu0 %v1722_v21  ;;  %1446 = vmatprep.subr.bf16.mxu1 %v1727_v22 }
  0x8d   :  { %1221 = vmatprep.subr.bf16.mxu0 %v1727_v22  ;;  %1247 = vmatprep.mubr.bf16.mxu0 %v1742_v25 }
  0x8e   :  { %1257 = vmatprep.mubr.bf16.mxu1 %v1742_v25 }
  0x8f   :  { %1454 = vmatpush1.bf16.msra.mxu1 %v1725_v23 }
  0x90   :  { %1222 = vmatpush1.bf16.msra.mxu0 %v1725_v23  ;;  %1447 = vmatprep.subr.bf16.mxu1 %v1730_v24 }
  0x91   :  { %1223 = vmatprep.subr.bf16.mxu0 %v1730_v24 }
  0x93   :  { %1455 = vmatpush1.bf16.msra.mxu1 %v1728_v26 }
  0x94   :  { %1224 = vmatpush1.bf16.msra.mxu0 %v1728_v26  ;;  %1448 = vmatprep.subr.bf16.mxu1 %v1733_v27 }
  0x95   :  { %1225 = vmatprep.subr.bf16.mxu0 %v1733_v27 }
  0x97   :  { %1456 = vmatpush1.bf16.msra.mxu1 %v1731_v28 }
  0x98   :  { %1226 = vmatpush1.bf16.msra.mxu0 %v1731_v28  ;;  %1449 = vmatprep.subr.bf16.mxu1 %v1736_v29 }
  0x99   :  { %1227 = vmatprep.subr.bf16.mxu0 %v1736_v29 }
  0x9b   :  { %1457 = vmatpush1.bf16.msra.mxu1 %v1734_v30 }
  0x9c   :  { %1228 = vmatpush1.bf16.msra.mxu0 %v1734_v30  ;;  %1450 = vmatprep.subr.bf16.mxu1 %v1739_v31 }
  0x9d   :  { %1229 = vmatprep.subr.bf16.mxu0 %v1739_v31 }
  0x9f   :  { %1458 = vmatpush1.bf16.msra.mxu1 %v1737_v32 }
  0xa0   :  { %1230 = vmatpush1.bf16.msra.mxu0 %v1737_v32 }
  0xa2   :  { %1258 = vmatmul.mubr.bf16.vlgmr.msra.gmra.mrb[8].mxu1 %v1741_v34 }
  0xa3   :  { %1248 = vmatmul.mubr.bf16.vlgmr.msra.gmra.mrb[0].mxu0 %v1740_v33 }
 0x155   :  { %v1090_v37 = vpop.f32.mrb[0].mxu1 }
 0x156   :  { %v1092_v38 = vpop.f32.mrb[1].mxu1  ;;  %v1459_v62 = vadd.f32 %v1090_v37, %v184_v44 }
 0x157   :  { %v1094_v39 = vpop.f32.mrb[2].mxu1  ;;  %v1461_v63 = vadd.f32 %v1092_v38, %v188_v45 }
 0x158   :  { %v1096_v41 = vpop.f32.mrb[3].mxu1  ;;  %v1463_v2 = vadd.f32 %v1094_v39, %v184_v44 }
 0x159   :  { %v1465_v7 = vadd.f32 %v1096_v41, %v188_v45 }
 0x15d   :  { %v1100_v46 = vpop.f32.mrb[4].mxu1 }
 0x15e   :  { %v1206_v47 = vpop.f32.mrb[4].mxu0  ;;  %v1467_v48 = vadd.f32 %v1100_v46, %v184_v44  ;;  %v1102_v49 = vpop.f32.mrb[5].mxu1 }
 0x15f   :  { %v1208_v50 = vpop.f32.mrb[5].mxu0  ;;  %v1470_v51 = vadd.f32 %v1102_v49, %v188_v45  ;;  %v1104_v52 = vpop.f32.mrb[6].mxu1 }
 0x160   :  { %v1210_v53 = vpop.f32.mrb[6].mxu0  ;;  %v1468_v54 = vadd.f32 %v1467_v48, %v1206_v47  ;;  %v1473_v55 = vadd.f32 %v1104_v52, %v184_v44  ;;  %v1106_v56 = vpop.f32.mrb[7].mxu1 }
 0x161   :  { %v1212_v57 = vpop.f32.mrb[7].mxu0  ;;  %v1471_v58 = vadd.f32 %v1470_v51, %v1208_v50  ;;  %v1476_v59 = vadd.f32 %v1106_v56, %v188_v45 }
 0x162   :  { %v1474_v60 = vadd.f32 %v1473_v55, %v1210_v53 }
 0x163   :  { %v1477_v61 = vadd.f32 %v1476_v59, %v1212_v57 }
 0x175   :  { %v1259_v1 = vpop.f32.mrb[8].mxu1 }
 0x176   :  { %v1249_v0 = vpop.f32.mrb[0].mxu0  ;;  %v1469_v4 = vadd.f32 %v1468_v54, %v1259_v1  ;;  %v1261_v6 = vpop.f32.mrb[9].mxu1 }
 0x177   :  { %v1460_v3 = vadd.f32 %v1459_v62, %v1249_v0  ;;  %v1251_v5 = vpop.f32.mrb[1].mxu0  ;;  %v1472_v9 = vadd.f32 %v1471_v58, %v1261_v6  ;;  %v1263_v11 = vpop.f32.mrb[10].mxu1 }
 0x178   :  { %v1462_v8 = vadd.f32 %v1461_v63, %v1251_v5  ;;  %v1253_v10 = vpop.f32.mrb[2].mxu0  ;;  %1273 = vst [vmem:[%s2283_s3 + $0x20] sm:$0xff] %v1469_v4  ;;  %v1475_v13 = vadd.f32 %v1474_v60, %v1263_v11  ;;  %v1265_v15 = vpop.f32.mrb[11].mxu1 }
 0x179   :  { %1268 = vst [vmem:[%s2283_s3] sm:$0xff] %v1460_v3  ;;  %v1464_v12 = vadd.f32 %v1463_v2, %v1253_v10  ;;  %v1255_v14 = vpop.f32.mrb[3].mxu0  ;;  %1274 = vst.msk [vmem:[%s2283_s3 + $0x28] sm:$0xff] %vm1269_vm0, %v1472_v9  ;;  %v1478_v17 = vadd.f32 %v1477_v61, %v1265_v15 }
 0x17a   :  { %1270 = vst.msk [vmem:[%s2283_s3 + $0x8] sm:$0xff] %vm1269_vm0, %v1462_v8  ;;  %v1466_v16 = vadd.f32 %v1465_v7, %v1255_v14  ;;  %1275 = vst [vmem:[%s2283_s3 + $0x30] sm:$0xff] %v1475_v13 }
 0x17b   :  { %1271 = vst [vmem:[%s2283_s3 + $0x10] sm:$0xff] %v1464_v12  ;;  %1276 = vst.msk [vmem:[%s2283_s3 + $0x38] sm:$0xff] %vm1269_vm0, %v1478_v17 }
 0x17c   :  { %1272 = vst.msk [vmem:[%s2283_s3 + $0x18] sm:$0xff] %vm1269_vm0, %v1466_v16 }

// kernel: forward.20
= control target key start
LH: loop header
LB: loop body
LE: loop exit
PB: predicated region body
PF: predicated region fallthrough
CT: control target
= control target key end

     0   :  { %vm146_vm0 = vcmask 519168   ;;  %s465_s0 = inlined_call_operand.vmem [shape: f32[2,6,6,64], index: 0, kind: input, shape index: {}]   ;;  %s466_s1 = inlined_call_operand.vmem [shape: f32[2,4,4,64], index: 1, kind: output, shape index: {}]  }
   0x1   :  { %v8_v0 = vld [vmem:[%s465_s0] sm:$0xf]  ;;  %v159_v4 = vld [vmem:[%s465_s0 + $0x8] sm:$0xf]  ;;  %v160_v13 = vld [vmem:[%s465_s0 + $0x10] sm:$0xf] }
   0x2   :  { %v16_v1 = vld [vmem:[%s465_s0 + $0x1] sm:$0xf]  ;;  %v9_v6 = vld [vmem:[%s465_s0 + $0x8] sm:$0xf]  ;;  %v10_v15 = vld [vmem:[%s465_s0 + $0x10] sm:$0xf] }
   0x3   :  { %v32_v2 = vld [vmem:[%s465_s0 + $0x2] sm:$0xf]  ;;  %v24_v3 = vmax.f32 %v8_v0, %v16_v1  ;;  %v17_v7 = vld [vmem:[%s465_s0 + $0x9] sm:$0xf]  ;;  %v18_v16 = vld [vmem:[%s465_s0 + $0x11] sm:$0xf] }
   0x4   :  { %v33_v8 = vld [vmem:[%s465_s0 + $0xa] sm:$0xf]  ;;  %v25_v10 = vmax.f32 %v9_v6, %v17_v7  ;;  %v34_v17 = vld [vmem:[%s465_s0 + $0x12] sm:$0xf]  ;;  %v26_v20 = vmax.f32 %v10_v15, %v18_v16  ;;  %v161_v24 = vld [vmem:[%s465_s0 + $0x18] sm:$0xf] }
   0x5   :  { %v40_v5 = vmax.f32 %v24_v3, %v32_v2  ;;  %v167_v9 = vld [vmem:[%s465_s0 + $0x9] sm:$0xf]  ;;  %v168_v19 = vld [vmem:[%s465_s0 + $0x11] sm:$0xf]  ;;  %v11_v27 = vld [vmem:[%s465_s0 + $0x18] sm:$0xf] }
   0x6   :  { %v175_v12 = vld [vmem:[%s465_s0 + $0xa] sm:$0xf]  ;;  %v41_v14 = vmax.f32 %v25_v10, %v33_v8  ;;  %v183_v21 = vld [vmem:[%s465_s0 + $0x10] sm:$0xf]  ;;  %v42_v26 = vmax.f32 %v26_v20, %v34_v17  ;;  %v19_v28 = vld [vmem:[%s465_s0 + $0x19] sm:$0xf] }
   0x7   :  { %v57_v11 = vmax.f32 %v40_v5, %v159_v4  ;;  %v176_v23 = vld [vmem:[%s465_s0 + $0x12] sm:$0xf]  ;;  %v35_v29 = vld [vmem:[%s465_s0 + $0x1a] sm:$0xf]  ;;  %v27_v34 = vmax.f32 %v11_v27, %v19_v28  ;;  %v162_v39 = vld [vmem:[%s465_s0 + $0x20] sm:$0xf] }
   0x8   :  { %v58_v22 = vmax.f32 %v41_v14, %v160_v13  ;;  %v191_v30 = vld [vmem:[%s465_s0 + $0x11] sm:$0xf]  ;;  %v169_v33 = vld [vmem:[%s465_s0 + $0x19] sm:$0xf]  ;;  %v59_v37 = vmax.f32 %v42_v26, %v161_v24  ;;  %v170_v49 = vld [vmem:[%s465_s0 + $0x21] sm:$0xf] }
   0x9   :  { %v73_v18 = vmax.f32 %v57_v11, %v167_v9  ;;  %v199_v31 = vld [vmem:[%s465_s0 + $0x12] sm:$0xf]  ;;  %v184_v36 = vld [vmem:[%s465_s0 + $0x18] sm:$0xf]  ;;  %v43_v41 = vmax.f32 %v27_v34, %v35_v29  ;;  %v185_v52 = vld [vmem:[%s465_s0 + $0x20] sm:$0xf] }
   0xa   :  { %v74_v32 = vmax.f32 %v58_v22, %v168_v19  ;;  %v177_v38 = vld [vmem:[%s465_s0 + $0x1a] sm:$0xf]  ;;  %v12_v42 = vld [vmem:[%s465_s0 + $0x30] sm:$0xf]  ;;  %v75_v48 = vmax.f32 %v59_v37, %v169_v33  ;;  %v178_v54 = vld [vmem:[%s465_s0 + $0x22] sm:$0xf] }
   0xb   :  { %v89_v25 = vmax.f32 %v73_v18, %v175_v12  ;;  %v20_v43 = vld [vmem:[%s465_s0 + $0x31] sm:$0xf]  ;;  %v192_v46 = vld [vmem:[%s465_s0 + $0x19] sm:$0xf]  ;;  %v60_v53 = vmax.f32 %v43_v41, %v162_v39  ;;  %v193_v63 = vld [vmem:[%s465_s0 + $0x21] sm:$0xf] }
   0xc   :  { %v90_v40 = vmax.f32 %v74_v32, %v176_v23  ;;  %v36_v44 = vld [vmem:[%s465_s0 + $0x32] sm:$0xf]  ;;  %v200_v47 = vld [vmem:[%s465_s0 + $0x1a] sm:$0xf]  ;;  %v28_v50 = vmax.f32 %v12_v42, %v20_v43  ;;  %v91_v57 = vmax.f32 %v75_v48, %v177_v38  ;;  %v201_v0 = vld [vmem:[%s465_s0 + $0x22] sm:$0xf] }
   0xd   :  { %v106_v35 = vmax.f32 %v89_v25, %v183_v21  ;;  %v163_v55 = vld [vmem:[%s465_s0 + $0x38] sm:$0xf]  ;;  %v76_v1 = vmax.f32 %v60_v53, %v170_v49  ;;  %v186_v5 = vld [vmem:[%s465_s0 + $0x28] sm:$0xf]  ;;  %v164_v8 = vld [vmem:[%s465_s0 + $0x40] sm:$0xf] }
   0xe   :  { %v107_v51 = vmax.f32 %v90_v40, %v184_v36  ;;  %v44_v58 = vmax.f32 %v28_v50, %v36_v44  ;;  %v13_v59 = vld [vmem:[%s465_s0 + $0x38] sm:$0xf]  ;;  %v108_v4 = vmax.f32 %v91_v57, %v185_v52  ;;  %v14_v12 = vld [vmem:[%s465_s0 + $0x40] sm:$0xf]  ;;  %v194_v16 = vld [vmem:[%s465_s0 + $0x29] sm:$0xf] }
   0xf   :  { %v122_v45 = vmax.f32 %v106_v35, %v191_v30  ;;  %v21_v60 = vld [vmem:[%s465_s0 + $0x39] sm:$0xf]  ;;  %v92_v10 = vmax.f32 %v76_v1, %v178_v54  ;;  %v22_v13 = vld [vmem:[%s465_s0 + $0x41] sm:$0xf]  ;;  %v202_v17 = vld [vmem:[%s465_s0 + $0x2a] sm:$0xf] }
  0x10   :  { %v37_v61 = vld [vmem:[%s465_s0 + $0x3a] sm:$0xf]  ;;  %v123_v62 = vmax.f32 %v107_v51, %v192_v46  ;;  %v29_v3 = vmax.f32 %v13_v59, %v21_v60  ;;  %v61_v6 = vmax.f32 %v44_v58, %v163_v55  ;;  %v38_v14 = vld [vmem:[%s465_s0 + $0x42] sm:$0xf]  ;;  %v124_v15 = vmax.f32 %v108_v4, %v193_v63  ;;  %v165_v25 = vld [vmem:[%s465_s0 + $0x48] sm:$0xf] }
  0x11   :  { %v138_v56 = vmax.f32 %v122_v45, %v199_v31  ;;  %v171_v2 = vld [vmem:[%s465_s0 + $0x39] sm:$0xf]  ;;  %v172_v19 = vld [vmem:[%s465_s0 + $0x41] sm:$0xf]  ;;  %v30_v20 = vmax.f32 %v14_v12, %v22_v13  ;;  %v109_v21 = vmax.f32 %v92_v10, %v186_v5  ;;  %v15_v29 = vld [vmem:[%s465_s0 + $0x48] sm:$0xf] }
  0x12   :  { %v179_v7 = vld [vmem:[%s465_s0 + $0x3a] sm:$0xf]  ;;  %v139_v9 = vmax.f32 %v123_v62, %v200_v47  ;;  %v45_v11 = vmax.f32 %v29_v3, %v37_v61  ;;  %v77_v18 = vmax.f32 %v61_v6, %v171_v2  ;;  %v187_v22 = vld [vmem:[%s465_s0 + $0x40] sm:$0xf]  ;;  %v140_v26 = vmax.f32 %v124_v15, %v201_v0  ;;  %v23_v30 = vld [vmem:[%s465_s0 + $0x49] sm:$0xf] }
  0x13   :  { %147 = vst.msk [vmem:[%s466_s1] sm:$0xf] %vm146_vm0, %v138_v56  ;;  %v180_v24 = vld [vmem:[%s465_s0 + $0x42] sm:$0xf]  ;;  %v46_v28 = vmax.f32 %v30_v20, %v38_v14  ;;  %v39_v31 = vld [vmem:[%s465_s0 + $0x4a] sm:$0xf]  ;;  %v125_v32 = vmax.f32 %v109_v21, %v194_v16  ;;  %v31_v36 = vmax.f32 %v15_v29, %v23_v30 }
  0x14   :  { %148 = vst.msk [vmem:[%s466_s1 + $0x4] sm:$0xf] %vm146_vm0, %v139_v9  ;;  %v62_v23 = vmax.f32 %v45_v11, %v164_v8  ;;  %v93_v27 = vmax.f32 %v77_v18, %v179_v7  ;;  %v195_v33 = vld [vmem:[%s465_s0 + $0x41] sm:$0xf]  ;;  %v173_v35 = vld [vmem:[%s465_s0 + $0x49] sm:$0xf] }
  0x15   :  { %149 = vst.msk [vmem:[%s466_s1 + $0x8] sm:$0xf] %vm146_vm0, %v140_v26  ;;  %v188_v38 = vld [vmem:[%s465_s0 + $0x48] sm:$0xf]  ;;  %v63_v39 = vmax.f32 %v46_v28, %v165_v25  ;;  %v166_v40 = vld [vmem:[%s465_s0 + $0x50] sm:$0xf]  ;;  %v141_v41 = vmax.f32 %v125_v32, %v202_v17  ;;  %v47_v45 = vmax.f32 %v31_v36, %v39_v31 }
  0x16   :  { %v78_v34 = vmax.f32 %v62_v23, %v172_v19  ;;  %v110_v37 = vmax.f32 %v93_v27, %v187_v22  ;;  %v203_v42 = vld [vmem:[%s465_s0 + $0x42] sm:$0xf]  ;;  %v181_v44 = vld [vmem:[%s465_s0 + $0x4a] sm:$0xf]  ;;  %v174_v49 = vld [vmem:[%s465_s0 + $0x51] sm:$0xf] }
  0x17   :  { %v196_v47 = vld [vmem:[%s465_s0 + $0x49] sm:$0xf]  ;;  %v79_v48 = vmax.f32 %v63_v39, %v173_v35  ;;  %150 = vst.msk [vmem:[%s466_s1 + $0xc] sm:$0xf] %vm146_vm0, %v141_v41  ;;  %v189_v51 = vld [vmem:[%s465_s0 + $0x50] sm:$0xf]  ;;  %v64_v52 = vmax.f32 %v47_v45, %v166_v40 }
  0x18   :  { %v94_v43 = vmax.f32 %v78_v34, %v180_v24  ;;  %v126_v46 = vmax.f32 %v110_v37, %v195_v33  ;;  %v204_v54 = vld [vmem:[%s465_s0 + $0x4a] sm:$0xf]  ;;  %v182_v56 = vld [vmem:[%s465_s0 + $0x52] sm:$0xf]  ;;  %v190_v61 = vld [vmem:[%s465_s0 + $0x58] sm:$0xf] }
  0x19   :  { %v95_v55 = vmax.f32 %v79_v48, %v181_v44  ;;  %v197_v58 = vld [vmem:[%s465_s0 + $0x51] sm:$0xf]  ;;  %v80_v59 = vmax.f32 %v64_v52, %v174_v49  ;;  %v198_v2 = vld [vmem:[%s465_s0 + $0x59] sm:$0xf] }
  0x1a   :  { %v111_v50 = vmax.f32 %v94_v43, %v188_v38  ;;  %v142_v53 = vmax.f32 %v126_v46, %v203_v42  ;;  %v205_v63 = vld [vmem:[%s465_s0 + $0x52] sm:$0xf]  ;;  %v206_v5 = vld [vmem:[%s465_s0 + $0x5a] sm:$0xf] }
  0x1b   :  { %v112_v60 = vmax.f32 %v95_v55, %v189_v51  ;;  %v96_v0 = vmax.f32 %v80_v59, %v182_v56 }
  0x1c   :  { %v127_v57 = vmax.f32 %v111_v50, %v196_v47  ;;  %151 = vst.msk [vmem:[%s466_s1 + $0x10] sm:$0xf] %vm146_vm0, %v142_v53 }
  0x1d   :  { %v128_v1 = vmax.f32 %v112_v60, %v197_v58  ;;  %v113_v3 = vmax.f32 %v96_v0, %v190_v61 }
  0x1e   :  { %v143_v62 = vmax.f32 %v127_v57, %v204_v54 }
  0x1f   :  { %v144_v4 = vmax.f32 %v128_v1, %v205_v63  ;;  %v129_v6 = vmax.f32 %v113_v3, %v198_v2 }
  0x20   :  { %152 = vst.msk [vmem:[%s466_s1 + $0x14] sm:$0xf] %vm146_vm0, %v143_v62 }
  0x21   :  { %153 = vst.msk [vmem:[%s466_s1 + $0x18] sm:$0xf] %vm146_vm0, %v144_v4  ;;  %v145_v7 = vmax.f32 %v129_v6, %v206_v5 }
  0x23   :  { %154 = vst.msk [vmem:[%s466_s1 + $0x1c] sm:$0xf] %vm146_vm0, %v145_v7 }

// kernel: forward.21
= control target key start
LH: loop header
LB: loop body
LE: loop exit
PB: predicated region body
PF: predicated region fallthrough
CT: control target
= control target key end

     0   :  { %vm68_vm0 = vcmask 523264   ;;  %s218_s1 = inlined_call_operand.vmem [shape: bf16[64,128], index: 1, kind: input, shape index: {}]   ;;  %s219_s0 = inlined_call_operand.vmem [shape: bf16[32,64], index: 0, kind: input, shape index: {}]   ;;  %s220_s2 = inlined_call_operand.vmem [shape: f32[1,128], index: 2, kind: input, shape index: {}]   ;;  %s221_s3 = inlined_call_operand.vmem [shape: f32[32,128], index: 3, kind: output, shape index: {}]  }
   0x1   :  { %v159_v0 = vld [vmem:[%s218_s1] sm:$0xff]   ;;  %v160_v1 = vld [vmem:[%s218_s1 + $0x8] sm:$0xff]   ;;  %v161_v2 = vld [vmem:[%s218_s1 + $0x10] sm:$0xff]  }
   0x2   :  { %147 = vmatprep.subr.bf16.mxu0 %v159_v0  ;;  %v163_v3 = vld [vmem:[%s219_s0] sm:$0xff]   ;;  %v162_v4 = vld [vmem:[%s218_s1 + $0x18] sm:$0xff]   ;;  %v164_v5 = vld [vmem:[%s219_s0 + $0x8] sm:$0xff]  }
   0x3   :  { %148 = vmatpush3.bf16.msra.mxu0 %v159_v0  ;;  %155 = vmatprep.mubr.msk.bf16.mxu0 %vm68_vm0, %v163_v3  ;;  %v132_v6 = vld [vmem:[%s220_s2] ss:$0 sm:$0xff] }
   0x4   :  { %149 = vmatprep.subr.bf16.mxu0 %v160_v1 }
   0x7   :  { %150 = vmatpush3.bf16.msra.mxu0 %v160_v1 }
   0x8   :  { %151 = vmatprep.subr.bf16.mxu0 %v161_v2 }
   0xb   :  { %152 = vmatpush3.bf16.msra.mxu0 %v161_v2 }
   0xc   :  { %153 = vmatprep.subr.bf16.mxu0 %v162_v4 }
   0xf   :  { %154 = vmatpush3.bf16.msra.mxu0 %v162_v4 }
  0x12   :  { %156 = vmatmul.mubr.msk.bf16.vlgmr.msra.gmra.mrb[0].mxu0 %vm68_vm0, %v164_v5 }
  0xe5   :  { %v157_v7 = vpop.f32.mrb[0].mxu0 }
  0xe6   :  { %v118_v8 = vadd.f32 %v157_v7, %v132_v6  ;;  %v109_v9 = vpop.f32.mrb[1].mxu0 }
  0xe7   :  { %v110_v10 = vadd.f32 %v132_v6, %v109_v9  ;;  %v158_v11 = vpop.f32.mrb[2].mxu0 }
  0xe8   :  { %126 = vst [vmem:[%s221_s3 + $0x10] sm:$0xff] %v118_v8  ;;  %v121_v12 = vadd.f32 %v158_v11, %v132_v6  ;;  %v112_v13 = vpop.f32.mrb[3].mxu0 }
  0xe9   :  { %124 = vst [vmem:[%s221_s3] sm:$0xff] %v110_v10  ;;  %v113_v14 = vadd.f32 %v132_v6, %v112_v13 }
  0xea   :  { %127 = vst [vmem:[%s221_s3 + $0x18] sm:$0xff] %v121_v12 }
  0xeb   :  { %125 = vst [vmem:[%s221_s3 + $0x8] sm:$0xff] %v113_v14 }

// kernel: forward.19
= control target key start
LH: loop header
LB: loop body
LE: loop exit
PB: predicated region body
PF: predicated region fallthrough
CT: control target
= control target key end

     0   :  { %s6075_s1 = inlined_call_operand.vmem [shape: bf16[3200,256], index: 1, kind: input, shape index: {}]   ;;  %s6076_s0 = inlined_call_operand.vmem [shape: bf16[32,3200], index: 0, kind: input, shape index: {}]   ;;  %s6077_s2 = inlined_call_operand.vmem [shape: f32[1,256], index: 2, kind: input, shape index: {}]   ;;  %s6078_s3 = inlined_call_operand.vmem [shape: f32[32,256], index: 3, kind: output, shape index: {}]  }
   0x1   :  { %v4003_v0 = vld [vmem:[%s6075_s1 + $0x4] ss:$8 sps:$4 sm:$0xff]   ;;  %v4007_v2 = vld [vmem:[%s6075_s1] ss:$8 sps:$4 sm:$0xff]   ;;  %v4009_v4 = vld [vmem:[%s6075_s1 + $0x14] ss:$8 sps:$4 sm:$0xff]  }
   0x2   :  { %v4005_v1 = vld [vmem:[%s6075_s1 + $0x604] ss:$8 sps:$4 sm:$0xff]   ;;  %2731 = vmatprep.subr.bf16.mxu1 %v4003_v0  ;;  %v4008_v3 = vld [vmem:[%s6075_s1 + $0x600] ss:$8 sps:$4 sm:$0xff]   ;;  %v4011_v5 = vld [vmem:[%s6075_s1 + $0x614] ss:$8 sps:$4 sm:$0xff]  }
   0x3   :  { %3049 = vmatprep.subr.bf16.mxu0 %v4005_v1  ;;  %2732 = vmatpush1.bf16.msra.mxu1 %v4007_v2  ;;  %v4013_v6 = vld [vmem:[%s6075_s1 + $0x10] ss:$8 sps:$4 sm:$0xff]   ;;  %v4015_v8 = vld [vmem:[%s6075_s1 + $0x24] ss:$8 sps:$4 sm:$0xff]   ;;  %v4019_v10 = vld [vmem:[%s6075_s1 + $0x20] ss:$8 sps:$4 sm:$0xff]  }
   0x4   :  { %3050 = vmatpush1.bf16.msra.mxu0 %v4008_v3  ;;  %2733 = vmatprep.subr.bf16.mxu1 %v4009_v4  ;;  %v4014_v7 = vld [vmem:[%s6075_s1 + $0x610] ss:$8 sps:$4 sm:$0xff]   ;;  %v4017_v9 = vld [vmem:[%s6075_s1 + $0x624] ss:$8 sps:$4 sm:$0xff]   ;;  %v4020_v11 = vld [vmem:[%s6075_s1 + $0x620] ss:$8 sps:$4 sm:$0xff]  }
   0x5   :  { %3051 = vmatprep.subr.bf16.mxu0 %v4011_v5  ;;  %v4021_v12 = vld [vmem:[%s6075_s1 + $0x34] ss:$8 sps:$4 sm:$0xff]   ;;  %v4025_v14 = vld [vmem:[%s6075_s1 + $0x30] ss:$8 sps:$4 sm:$0xff]   ;;  %v4027_v16 = vld [vmem:[%s6075_s1 + $0x44] ss:$8 sps:$4 sm:$0xff]  }
   0x6   :  { %v4023_v13 = vld [vmem:[%s6075_s1 + $0x634] ss:$8 sps:$4 sm:$0xff]   ;;  %v4026_v15 = vld [vmem:[%s6075_s1 + $0x630] ss:$8 sps:$4 sm:$0xff]   ;;  %v4029_v17 = vld [vmem:[%s6075_s1 + $0x644] ss:$8 sps:$4 sm:$0xff]  }
   0x7   :  { %2734 = vmatpush1.bf16.msra.mxu1 %v4013_v6  ;;  %v4031_v18 = vld [vmem:[%s6075_s1 + $0x40] ss:$8 sps:$4 sm:$0xff]   ;;  %v4033_v20 = vld [vmem:[%s6075_s1 + $0x54] ss:$8 sps:$4 sm:$0xff]   ;;  %v4037_v22 = vld [vmem:[%s6075_s1 + $0x50] ss:$8 sps:$4 sm:$0xff]  }
   0x8   :  { %3052 = vmatpush1.bf16.msra.mxu0 %v4014_v7  ;;  %2735 = vmatprep.subr.bf16.mxu1 %v4015_v8  ;;  %v4032_v19 = vld [vmem:[%s6075_s1 + $0x640] ss:$8 sps:$4 sm:$0xff]   ;;  %v4035_v21 = vld [vmem:[%s6075_s1 + $0x654] ss:$8 sps:$4 sm:$0xff]   ;;  %v4038_v23 = vld [vmem:[%s6075_s1 + $0x650] ss:$8 sps:$4 sm:$0xff]  }
   0x9   :  { %3053 = vmatprep.subr.bf16.mxu0 %v4017_v9  ;;  %v4039_v24 = vld [vmem:[%s6075_s1 + $0x64] ss:$8 sps:$4 sm:$0xff]   ;;  %v4043_v26 = vld [vmem:[%s6075_s1 + $0x60] ss:$8 sps:$4 sm:$0xff]   ;;  %v4045_v28 = vld [vmem:[%s6075_s1 + $0x74] ss:$8 sps:$4 sm:$0xff]  }
   0xa   :  { %v4041_v25 = vld [vmem:[%s6075_s1 + $0x664] ss:$8 sps:$4 sm:$0xff]   ;;  %v4044_v27 = vld [vmem:[%s6075_s1 + $0x660] ss:$8 sps:$4 sm:$0xff]   ;;  %v4047_v29 = vld [vmem:[%s6075_s1 + $0x674] ss:$8 sps:$4 sm:$0xff]  }
   0xb   :  { %2736 = vmatpush1.bf16.msra.mxu1 %v4019_v10  ;;  %v4049_v30 = vld [vmem:[%s6075_s1 + $0x70] ss:$8 sps:$4 sm:$0xff]   ;;  %v4051_v32 = vld [vmem:[%s6075_s1 + $0x84] ss:$8 sps:$4 sm:$0xff]   ;;  %v4055_v34 = vld [vmem:[%s6075_s1 + $0x80] ss:$8 sps:$4 sm:$0xff]  }
   0xc   :  { %3054 = vmatpush1.bf16.msra.mxu0 %v4020_v11  ;;  %2737 = vmatprep.subr.bf16.mxu1 %v4021_v12  ;;  %v4050_v31 = vld [vmem:[%s6075_s1 + $0x670] ss:$8 sps:$4 sm:$0xff]   ;;  %v4053_v33 = vld [vmem:[%s6075_s1 + $0x684] ss:$8 sps:$4 sm:$0xff]   ;;  %v4056_v35 = vld [vmem:[%s6075_s1 + $0x680] ss:$8 sps:$4 sm:$0xff]  }
   0xd   :  { %3055 = vmatprep.subr.bf16.mxu0 %v4023_v13  ;;  %v4057_v36 = vld [vmem:[%s6075_s1 + $0x94] ss:$8 sps:$4 sm:$0xff]   ;;  %v4061_v38 = vld [vmem:[%s6075_s1 + $0x90] ss:$8 sps:$4 sm:$0xff]   ;;  %v4063_v40 = vld [vmem:[%s6075_s1 + $0xa4] ss:$8 sps:$4 sm:$0xff]  }
   0xe   :  { %v4059_v37 = vld [vmem:[%s6075_s1 + $0x694] ss:$8 sps:$4 sm:$0xff]   ;;  %v4062_v39 = vld [vmem:[%s6075_s1 + $0x690] ss:$8 sps:$4 sm:$0xff]   ;;  %v4065_v41 = vld [vmem:[%s6075_s1 + $0x6a4] ss:$8 sps:$4 sm:$0xff]  }
   0xf   :  { %2738 = vmatpush1.bf16.msra.mxu1 %v4025_v14  ;;  %v4067_v42 = vld [vmem:[%s6075_s1 + $0xa0] ss:$8 sps:$4 sm:$0xff]   ;;  %v4069_v44 = vld [vmem:[%s6075_s1 + $0xb4] ss:$8 sps:$4 sm:$0xff]   ;;  %v4073_v46 = vld [vmem:[%s6075_s1 + $0xb0] ss:$8 sps:$4 sm:$0xff]  }
  0x10   :  { %3056 = vmatpush1.bf16.msra.mxu0 %v4026_v15  ;;  %2739 = vmatprep.subr.bf16.mxu1 %v4027_v16  ;;  %v4068_v43 = vld [vmem:[%s6075_s1 + $0x6a0] ss:$8 sps:$4 sm:$0xff]   ;;  %v4071_v45 = vld [vmem:[%s6075_s1 + $0x6b4] ss:$8 sps:$4 sm:$0xff]   ;;  %v4074_v47 = vld [vmem:[%s6075_s1 + $0x6b0] ss:$8 sps:$4 sm:$0xff]  }
  0x11   :  { %3057 = vmatprep.subr.bf16.mxu0 %v4029_v17  ;;  %v4101_v48 = vld [vmem:[%s6076_s0 + $0x4] ss:$100 sps:$4 sm:$0xff]   ;;  %v4107_v51 = vld [vmem:[%s6076_s0 + $0x34] ss:$100 sps:$4 sm:$0xff]  }
  0x12   :  { %v4075_v49 = vld [vmem:[%s6075_s1 + $0xc4] ss:$8 sps:$4 sm:$0xff]   ;;  %2763 = vmatprep.mubr.bf16.mxu1 %v4101_v48  ;;  %v4079_v52 = vld [vmem:[%s6075_s1 + $0xc0] ss:$8 sps:$4 sm:$0xff]   ;;  %v4081_v54 = vld [vmem:[%s6075_s1 + $0xd4] ss:$8 sps:$4 sm:$0xff]   ;;  %3081 = vmatprep.mubr.bf16.mxu0 %v4107_v51 }
  0x13   :  { %2740 = vmatpush1.bf16.msra.mxu1 %v4031_v18  ;;  %v4077_v50 = vld [vmem:[%s6075_s1 + $0x6c4] ss:$8 sps:$4 sm:$0xff]   ;;  %v4080_v53 = vld [vmem:[%s6075_s1 + $0x6c0] ss:$8 sps:$4 sm:$0xff]   ;;  %v4083_v55 = vld [vmem:[%s6075_s1 + $0x6d4] ss:$8 sps:$4 sm:$0xff]  }
  0x14   :  { %3058 = vmatpush1.bf16.msra.mxu0 %v4032_v19  ;;  %2741 = vmatprep.subr.bf16.mxu1 %v4033_v20  ;;  %v4085_v56 = vld [vmem:[%s6075_s1 + $0xd0] ss:$8 sps:$4 sm:$0xff]   ;;  %v4087_v58 = vld [vmem:[%s6075_s1 + $0xe4] ss:$8 sps:$4 sm:$0xff]   ;;  %v4091_v60 = vld [vmem:[%s6075_s1 + $0xe0] ss:$8 sps:$4 sm:$0xff]  }
  0x15   :  { %3059 = vmatprep.subr.bf16.mxu0 %v4035_v21  ;;  %v4086_v57 = vld [vmem:[%s6075_s1 + $0x6d0] ss:$8 sps:$4 sm:$0xff]   ;;  %v4089_v59 = vld [vmem:[%s6075_s1 + $0x6e4] ss:$8 sps:$4 sm:$0xff]   ;;  %v4092_v61 = vld [vmem:[%s6075_s1 + $0x6e0] ss:$8 sps:$4 sm:$0xff]  }
  0x16   :  { %v4093_v62 = vld [vmem:[%s6075_s1 + $0xf4] ss:$8 sps:$4 sm:$0xff]   ;;  %v4097_v0 = vld [vmem:[%s6075_s1 + $0xf0] ss:$8 sps:$4 sm:$0xff]   ;;  %v4104_v2 = vld [vmem:[%s6075_s1 + $0x104] ss:$8 sps:$4 sm:$0xff]  }
  0x17   :  { %2742 = vmatpush1.bf16.msra.mxu1 %v4037_v22  ;;  %v4095_v63 = vld [vmem:[%s6075_s1 + $0x6f4] ss:$8 sps:$4 sm:$0xff]   ;;  %v4098_v1 = vld [vmem:[%s6075_s1 + $0x6f0] ss:$8 sps:$4 sm:$0xff]   ;;  %v4110_v3 = vld [vmem:[%s6075_s1 + $0x704] ss:$8 sps:$4 sm:$0xff]  }
  0x18   :  { %3060 = vmatpush1.bf16.msra.mxu0 %v4038_v23  ;;  %2743 = vmatprep.subr.bf16.mxu1 %v4039_v24  ;;  %v4099_v4 = vld [vmem:[%s6076_s0] ss:$100 sps:$4 sm:$0xff]   ;;  %v4105_v6 = vld [vmem:[%s6076_s0 + $0x30] ss:$100 sps:$4 sm:$0xff]  }
  0x19   :  { %3061 = vmatprep.subr.bf16.mxu0 %v4041_v25  ;;  %v4102_v5 = vld [vmem:[%s6075_s1 + $0x100] ss:$8 sps:$4 sm:$0xff]   ;;  %v4113_v8 = vld [vmem:[%s6075_s1 + $0x114] ss:$8 sps:$4 sm:$0xff]   ;;  %v4111_v10 = vld [vmem:[%s6075_s1 + $0x110] ss:$8 sps:$4 sm:$0xff]  }
  0x1a   :  { %v4108_v7 = vld [vmem:[%s6075_s1 + $0x700] ss:$8 sps:$4 sm:$0xff]   ;;  %v4116_v9 = vld [vmem:[%s6075_s1 + $0x714] ss:$8 sps:$4 sm:$0xff]   ;;  %v4114_v11 = vld [vmem:[%s6075_s1 + $0x710] ss:$8 sps:$4 sm:$0xff]  }
  0x1b   :  { %2744 = vmatpush1.bf16.msra.mxu1 %v4043_v26  ;;  %v4119_v12 = vld [vmem:[%s6075_s1 + $0x124] ss:$8 sps:$4 sm:$0xff]   ;;  %v4117_v14 = vld [vmem:[%s6075_s1 + $0x120] ss:$8 sps:$4 sm:$0xff]   ;;  %v4125_v16 = vld [vmem:[%s6075_s1 + $0x134] ss:$8 sps:$4 sm:$0xff]  }
  0x1c   :  { %3062 = vmatpush1.bf16.msra.mxu0 %v4044_v27  ;;  %2745 = vmatprep.subr.bf16.mxu1 %v4045_v28  ;;  %v4122_v13 = vld [vmem:[%s6075_s1 + $0x724] ss:$8 sps:$4 sm:$0xff]   ;;  %v4120_v15 = vld [vmem:[%s6075_s1 + $0x720] ss:$8 sps:$4 sm:$0xff]   ;;  %v4128_v17 = vld [vmem:[%s6075_s1 + $0x734] ss:$8 sps:$4 sm:$0xff]  }
  0x1d   :  { %3063 = vmatprep.subr.bf16.mxu0 %v4047_v29  ;;  %v4123_v18 = vld [vmem:[%s6075_s1 + $0x130] ss:$8 sps:$4 sm:$0xff]   ;;  %v4131_v20 = vld [vmem:[%s6075_s1 + $0x144] ss:$8 sps:$4 sm:$0xff]   ;;  %v4129_v22 = vld [vmem:[%s6075_s1 + $0x140] ss:$8 sps:$4 sm:$0xff]  }
  0x1e   :  { %v4126_v19 = vld [vmem:[%s6075_s1 + $0x730] ss:$8 sps:$4 sm:$0xff]   ;;  %v4134_v21 = vld [vmem:[%s6075_s1 + $0x744] ss:$8 sps:$4 sm:$0xff]   ;;  %v4132_v23 = vld [vmem:[%s6075_s1 + $0x740] ss:$8 sps:$4 sm:$0xff]  }
  0x1f   :  { %2746 = vmatpush1.bf16.msra.mxu1 %v4049_v30  ;;  %v4137_v24 = vld [vmem:[%s6075_s1 + $0x154] ss:$8 sps:$4 sm:$0xff]   ;;  %v4135_v26 = vld [vmem:[%s6075_s1 + $0x150] ss:$8 sps:$4 sm:$0xff]   ;;  %v4143_v29 = vld [vmem:[%s6075_s1 + $0x164] ss:$8 sps:$4 sm:$0xff]  }
  0x20   :  { %3064 = vmatpush1.bf16.msra.mxu0 %v4050_v31  ;;  %2747 = vmatprep.subr.bf16.mxu1 %v4051_v32  ;;  %v4140_v25 = vld [vmem:[%s6075_s1 + $0x754] ss:$8 sps:$4 sm:$0xff]   ;;  %v4138_v27 = vld [vmem:[%s6075_s1 + $0x750] ss:$8 sps:$4 sm:$0xff]   ;;  %v4146_v30 = vld [vmem:[%s6075_s1 + $0x764] ss:$8 sps:$4 sm:$0xff]  }
  0x21   :  { %3065 = vmatprep.subr.bf16.mxu0 %v4053_v33  ;;  %v4189_v28 = vld [vmem:[%s6076_s0 + $0xcc] ss:$100 sps:$4 sm:$0xff]   ;;  %v4194_v31 = vld [vmem:[%s6076_s0 + $0xfc] ss:$100 sps:$4 sm:$0xff]  }
  0x22   :  { %v4141_v32 = vld [vmem:[%s6075_s1 + $0x160] ss:$8 sps:$4 sm:$0xff]   ;;  %v4159_v48 = vld [vmem:[%s6075_s1 + $0x190] ss:$8 sps:$4 sm:$0xff]   ;;  %v4170_v51 = vld [vmem:[%s6075_s1 + $0x7a4] ss:$8 sps:$4 sm:$0xff]  }
  0x23   :  { %2748 = vmatpush1.bf16.msra.mxu1 %v4055_v34  ;;  %v4144_v33 = vld [vmem:[%s6075_s1 + $0x760] ss:$8 sps:$4 sm:$0xff]  }
  0x24   :  { %3066 = vmatpush1.bf16.msra.mxu0 %v4056_v35  ;;  %2749 = vmatprep.subr.bf16.mxu1 %v4057_v36  ;;  %v4199_v34 = vld [vmem:[%s6076_s0 + $0xc8] ss:$100 sps:$4 sm:$0xff]   ;;  %v4200_v35 = vld [vmem:[%s6076_s0 + $0xf8] ss:$100 sps:$4 sm:$0xff]  }
  0x25   :  { %3067 = vmatprep.subr.bf16.mxu0 %v4059_v37  ;;  %v4149_v36 = vld [vmem:[%s6075_s1 + $0x174] ss:$8 sps:$4 sm:$0xff]  }
  0x26   :  { %v4152_v37 = vld [vmem:[%s6075_s1 + $0x774] ss:$8 sps:$4 sm:$0xff]  }
  0x27   :  { %2750 = vmatpush1.bf16.msra.mxu1 %v4061_v38  ;;  %v4147_v38 = vld [vmem:[%s6075_s1 + $0x170] ss:$8 sps:$4 sm:$0xff]  }
  0x28   :  { %3068 = vmatpush1.bf16.msra.mxu0 %v4062_v39  ;;  %2751 = vmatprep.subr.bf16.mxu1 %v4063_v40  ;;  %v4150_v39 = vld [vmem:[%s6075_s1 + $0x770] ss:$8 sps:$4 sm:$0xff]  }
  0x29   :  { %3069 = vmatprep.subr.bf16.mxu0 %v4065_v41  ;;  %v4209_v40 = vld [vmem:[%s6076_s0 + $0xc] ss:$100 sps:$4 sm:$0xff]  }
  0x2a   :  { %v4155_v41 = vld [vmem:[%s6075_s1 + $0x184] ss:$8 sps:$4 sm:$0xff]  }
  0x2b   :  { %2752 = vmatpush1.bf16.msra.mxu1 %v4067_v42  ;;  %v4158_v42 = vld [vmem:[%s6075_s1 + $0x784] ss:$8 sps:$4 sm:$0xff]  }
  0x2c   :  { %3070 = vmatpush1.bf16.msra.mxu0 %v4068_v43  ;;  %2753 = vmatprep.subr.bf16.mxu1 %v4069_v44  ;;  %v4215_v43 = vld [vmem:[%s6076_s0 + $0x3c] ss:$100 sps:$4 sm:$0xff]  }
  0x2d   :  { %3071 = vmatprep.subr.bf16.mxu0 %v4071_v45  ;;  %v4153_v44 = vld [vmem:[%s6075_s1 + $0x180] ss:$8 sps:$4 sm:$0xff]  }
  0x2e   :  { %v4156_v45 = vld [vmem:[%s6075_s1 + $0x780] ss:$8 sps:$4 sm:$0xff]  }
  0x2f   :  { %2754 = vmatpush1.bf16.msra.mxu1 %v4073_v46  ;;  %v4161_v46 = vld [vmem:[%s6075_s1 + $0x194] ss:$8 sps:$4 sm:$0xff]  }
  0x30   :  { %3072 = vmatpush1.bf16.msra.mxu0 %v4074_v47  ;;  %2755 = vmatprep.subr.bf16.mxu1 %v4075_v49  ;;  %v4164_v47 = vld [vmem:[%s6075_s1 + $0x794] ss:$8 sps:$4 sm:$0xff]   ;;  %v4162_v49 = vld [vmem:[%s6075_s1 + $0x790] ss:$8 sps:$4 sm:$0xff]  }
  0x31   :  { %3073 = vmatprep.subr.bf16.mxu0 %v4077_v50  ;;  %v4167_v50 = vld [vmem:[%s6075_s1 + $0x1a4] ss:$8 sps:$4 sm:$0xff]  }
  0x33   :  { %2756 = vmatpush1.bf16.msra.mxu1 %v4079_v52  ;;  %v4165_v52 = vld [vmem:[%s6075_s1 + $0x1a0] ss:$8 sps:$4 sm:$0xff]  }
  0x34   :  { %3074 = vmatpush1.bf16.msra.mxu0 %v4080_v53  ;;  %2757 = vmatprep.subr.bf16.mxu1 %v4081_v54  ;;  %v4168_v53 = vld [vmem:[%s6075_s1 + $0x7a0] ss:$8 sps:$4 sm:$0xff]   ;;  %v4173_v54 = vld [vmem:[%s6075_s1 + $0x1b4] ss:$8 sps:$4 sm:$0xff]  }
  0x35   :  { %3075 = vmatprep.subr.bf16.mxu0 %v4083_v55  ;;  %v4176_v55 = vld [vmem:[%s6075_s1 + $0x7b4] ss:$8 sps:$4 sm:$0xff]  }
  0x37   :  { %2758 = vmatpush1.bf16.msra.mxu1 %v4085_v56  ;;  %v4171_v56 = vld [vmem:[%s6075_s1 + $0x1b0] ss:$8 sps:$4 sm:$0xff]  }
  0x38   :  { %3076 = vmatpush1.bf16.msra.mxu0 %v4086_v57  ;;  %2759 = vmatprep.subr.bf16.mxu1 %v4087_v58  ;;  %v4174_v57 = vld [vmem:[%s6075_s1 + $0x7b0] ss:$8 sps:$4 sm:$0xff]   ;;  %v4179_v58 = vld [vmem:[%s6075_s1 + $0x1c4] ss:$8 sps:$4 sm:$0xff]  }
  0x39   :  { %3077 = vmatprep.subr.bf16.mxu0 %v4089_v59  ;;  %v4182_v59 = vld [vmem:[%s6075_s1 + $0x7c4] ss:$8 sps:$4 sm:$0xff]  }
  0x3b   :  { %2760 = vmatpush1.bf16.msra.mxu1 %v4091_v60  ;;  %v4177_v60 = vld [vmem:[%s6075_s1 + $0x1c0] ss:$8 sps:$4 sm:$0xff]  }
  0x3c   :  { %3078 = vmatpush1.bf16.msra.mxu0 %v4092_v61  ;;  %2761 = vmatprep.subr.bf16.mxu1 %v4093_v62  ;;  %v4180_v61 = vld [vmem:[%s6075_s1 + $0x7c0] ss:$8 sps:$4 sm:$0xff]   ;;  %v4185_v62 = vld [vmem:[%s6075_s1 + $0x1d4] ss:$8 sps:$4 sm:$0xff]  }
  0x3d   :  { %3079 = vmatprep.subr.bf16.mxu0 %v4095_v63  ;;  %v4188_v63 = vld [vmem:[%s6075_s1 + $0x7d4] ss:$8 sps:$4 sm:$0xff]  }
  0x3f   :  { %2762 = vmatpush1.bf16.msra.mxu1 %v4097_v0  ;;  %v4183_v0 = vld [vmem:[%s6075_s1 + $0x1d0] ss:$8 sps:$4 sm:$0xff]  }
  0x40   :  { %3080 = vmatpush1.bf16.msra.mxu0 %v4098_v1  ;;  %2784 = vmatprep.subr.bf16.mxu1 %v4104_v2  ;;  %v4186_v1 = vld [vmem:[%s6075_s1 + $0x7d0] ss:$8 sps:$4 sm:$0xff]   ;;  %v4193_v2 = vld [vmem:[%s6075_s1 + $0x1e4] ss:$8 sps:$4 sm:$0xff]  }
  0x41   :  { %3102 = vmatprep.subr.bf16.mxu0 %v4110_v3  ;;  %v4198_v3 = vld [vmem:[%s6075_s1 + $0x7e4] ss:$8 sps:$4 sm:$0xff]  }
  0x42   :  { %2764 = vmatmul.mubr.bf16.vlgmr.msra.gmra.mrb[0].mxu1 %v4099_v4  ;;  %v4191_v4 = vld [vmem:[%s6075_s1 + $0x1e0] ss:$8 sps:$4 sm:$0xff]  }
  0x43   :  { %3082 = vmatmul.mubr.bf16.vlgmr.msra.gmra.mrb[0].mxu0 %v4105_v6  ;;  %2785 = vmatpush1.bf16.msra.mxu1 %v4102_v5  ;;  %v4196_v5 = vld [vmem:[%s6075_s1 + $0x7e0] ss:$8 sps:$4 sm:$0xff]   ;;  %v4203_v6 = vld [vmem:[%s6075_s1 + $0x1f4] ss:$8 sps:$4 sm:$0xff]  }
  0x44   :  { %3103 = vmatpush1.bf16.msra.mxu0 %v4108_v7  ;;  %2786 = vmatprep.subr.bf16.mxu1 %v4113_v8  ;;  %v4206_v7 = vld [vmem:[%s6075_s1 + $0x7f4] ss:$8 sps:$4 sm:$0xff]   ;;  %v4201_v8 = vld [vmem:[%s6075_s1 + $0x1f0] ss:$8 sps:$4 sm:$0xff]  }
  0x45   :  { %3104 = vmatprep.subr.bf16.mxu0 %v4116_v9  ;;  %2773 = vmatprep.mubr.bf16.mxu1 %v4189_v28  ;;  %v4204_v9 = vld [vmem:[%s6075_s1 + $0x7f0] ss:$8 sps:$4 sm:$0xff]   ;;  %v4233_v28 = vld [vmem:[%s6075_s1 + $0x234] ss:$8 sps:$4 sm:$0xff]  }
  0x46   :  { %3091 = vmatprep.mubr.bf16.mxu0 %v4194_v31  ;;  %v4234_v31 = vld [vmem:[%s6075_s1 + $0x830] ss:$8 sps:$4 sm:$0xff]  }
  0x47   :  { %2787 = vmatpush1.bf16.msra.mxu1 %v4111_v10  ;;  %v4212_v10 = vld [vmem:[%s6075_s1 + $0x204] ss:$8 sps:$4 sm:$0xff]  }
  0x48   :  { %3105 = vmatpush1.bf16.msra.mxu0 %v4114_v11  ;;  %2788 = vmatprep.subr.bf16.mxu1 %v4119_v12  ;;  %v4218_v11 = vld [vmem:[%s6075_s1 + $0x804] ss:$8 sps:$4 sm:$0xff]  }
  0x49   :  { %3106 = vmatprep.subr.bf16.mxu0 %v4122_v13  ;;  %v4207_v12 = vld [vmem:[%s6076_s0 + $0x8] ss:$100 sps:$4 sm:$0xff]  }
  0x4a   :  { %2774 = vmatmul.mubr.bf16.gmra.mrb[4].mxu1 %v4199_v34  ;;  %v4210_v13 = vld [vmem:[%s6075_s1 + $0x200] ss:$8 sps:$4 sm:$0xff]   ;;  %v4242_v34 = vld [vmem:[%s6075_s1 + $0x844] ss:$8 sps:$4 sm:$0xff]  }
  0x4b   :  { %2789 = vmatpush1.bf16.msra.mxu1 %v4117_v14  ;;  %3092 = vmatmul.mubr.bf16.gmra.mrb[4].mxu0 %v4200_v35  ;;  %v4213_v14 = vld [vmem:[%s6076_s0 + $0x38] ss:$100 sps:$4 sm:$0xff]   ;;  %v4323_v35 = vld [vmem:[%s6076_s0 + $0x44] ss:$100 sps:$4 sm:$0xff]  }
  0x4c   :  { %3107 = vmatpush1.bf16.msra.mxu0 %v4120_v15  ;;  %2790 = vmatprep.subr.bf16.mxu1 %v4125_v16  ;;  %v4216_v15 = vld [vmem:[%s6075_s1 + $0x800] ss:$8 sps:$4 sm:$0xff]   ;;  %v4221_v16 = vld [vmem:[%s6075_s1 + $0x214] ss:$8 sps:$4 sm:$0xff]  }
  0x4d   :  { %3108 = vmatprep.subr.bf16.mxu0 %v4128_v17  ;;  %2816 = vmatprep.mubr.bf16.mxu1 %v4209_v40  ;;  %v4224_v17 = vld [vmem:[%s6075_s1 + $0x814] ss:$8 sps:$4 sm:$0xff]   ;;  %v4243_v40 = vld [vmem:[%s6075_s1 + $0x250] ss:$8 sps:$4 sm:$0xff]  }
  0x4e   :  { %3134 = vmatprep.mubr.bf16.mxu0 %v4215_v43  ;;  %v4254_v43 = vld [vmem:[%s6075_s1 + $0x864] ss:$8 sps:$4 sm:$0xff]  }
  0x4f   :  { %2791 = vmatpush1.bf16.msra.mxu1 %v4123_v18  ;;  %v4219_v18 = vld [vmem:[%s6075_s1 + $0x210] ss:$8 sps:$4 sm:$0xff]  }
  0x50   :  { %3109 = vmatpush1.bf16.msra.mxu0 %v4126_v19  ;;  %2792 = vmatprep.subr.bf16.mxu1 %v4131_v20  ;;  %v4222_v19 = vld [vmem:[%s6075_s1 + $0x810] ss:$8 sps:$4 sm:$0xff]  }
  0x51   :  { %3110 = vmatprep.subr.bf16.mxu0 %v4134_v21  ;;  %v4297_v20 = vld [vmem:[%s6076_s0 + $0xd4] ss:$100 sps:$4 sm:$0xff]   ;;  %v4227_v21 = vld [vmem:[%s6075_s1 + $0x224] ss:$8 sps:$4 sm:$0xff]  }
  0x53   :  { %2793 = vmatpush1.bf16.msra.mxu1 %v4129_v22  ;;  %v4230_v22 = vld [vmem:[%s6075_s1 + $0x824] ss:$8 sps:$4 sm:$0xff]  }
  0x54   :  { %3111 = vmatpush1.bf16.msra.mxu0 %v4132_v23  ;;  %2794 = vmatprep.subr.bf16.mxu1 %v4137_v24  ;;  %v4302_v23 = vld [vmem:[%s6076_s0 + $0x104] ss:$100 sps:$4 sm:$0xff]  }
  0x55   :  { %3112 = vmatprep.subr.bf16.mxu0 %v4140_v25  ;;  %v4225_v24 = vld [vmem:[%s6075_s1 + $0x220] ss:$8 sps:$4 sm:$0xff]  }
  0x56   :  { %v4228_v25 = vld [vmem:[%s6075_s1 + $0x820] ss:$8 sps:$4 sm:$0xff]  }
  0x57   :  { %2795 = vmatpush1.bf16.msra.mxu1 %v4135_v26  ;;  %v4307_v26 = vld [vmem:[%s6076_s0 + $0xd0] ss:$100 sps:$4 sm:$0xff]  }
  0x58   :  { %3113 = vmatpush1.bf16.msra.mxu0 %v4138_v27  ;;  %2796 = vmatprep.subr.bf16.mxu1 %v4143_v29  ;;  %v4308_v27 = vld [vmem:[%s6076_s0 + $0x100] ss:$100 sps:$4 sm:$0xff]   ;;  %v4236_v29 = vld [vmem:[%s6075_s1 + $0x834] ss:$8 sps:$4 sm:$0xff]  }
  0x59   :  { %3114 = vmatprep.subr.bf16.mxu0 %v4146_v30  ;;  %v4231_v30 = vld [vmem:[%s6075_s1 + $0x230] ss:$8 sps:$4 sm:$0xff]  }
  0x5b   :  { %2797 = vmatpush1.bf16.msra.mxu1 %v4141_v32  ;;  %v4317_v32 = vld [vmem:[%s6076_s0 + $0x14] ss:$100 sps:$4 sm:$0xff]  }
  0x5c   :  { %3115 = vmatpush1.bf16.msra.mxu0 %v4144_v33  ;;  %2798 = vmatprep.subr.bf16.mxu1 %v4149_v36  ;;  %v4239_v33 = vld [vmem:[%s6075_s1 + $0x244] ss:$8 sps:$4 sm:$0xff]   ;;  %v4237_v36 = vld [vmem:[%s6075_s1 + $0x240] ss:$8 sps:$4 sm:$0xff]  }
  0x5d   :  { %3116 = vmatprep.subr.bf16.mxu0 %v4152_v37  ;;  %v4240_v37 = vld [vmem:[%s6075_s1 + $0x840] ss:$8 sps:$4 sm:$0xff]  }
  0x5f   :  { %2799 = vmatpush1.bf16.msra.mxu1 %v4147_v38  ;;  %v4245_v38 = vld [vmem:[%s6075_s1 + $0x254] ss:$8 sps:$4 sm:$0xff]  }
  0x60   :  { %3117 = vmatpush1.bf16.msra.mxu0 %v4150_v39  ;;  %2800 = vmatprep.subr.bf16.mxu1 %v4155_v41  ;;  %v4248_v39 = vld [vmem:[%s6075_s1 + $0x854] ss:$8 sps:$4 sm:$0xff]   ;;  %v4246_v41 = vld [vmem:[%s6075_s1 + $0x850] ss:$8 sps:$4 sm:$0xff]  }
  0x61   :  { %3118 = vmatprep.subr.bf16.mxu0 %v4158_v42  ;;  %v4251_v42 = vld [vmem:[%s6075_s1 + $0x264] ss:$8 sps:$4 sm:$0xff]  }
  0x63   :  { %2801 = vmatpush1.bf16.msra.mxu1 %v4153_v44  ;;  %v4249_v44 = vld [vmem:[%s6075_s1 + $0x260] ss:$8 sps:$4 sm:$0xff]  }
  0x64   :  { %3119 = vmatpush1.bf16.msra.mxu0 %v4156_v45  ;;  %2802 = vmatprep.subr.bf16.mxu1 %v4161_v46  ;;  %v4252_v45 = vld [vmem:[%s6075_s1 + $0x860] ss:$8 sps:$4 sm:$0xff]   ;;  %v4257_v46 = vld [vmem:[%s6075_s1 + $0x274] ss:$8 sps:$4 sm:$0xff]  }
  0x65   :  { %3120 = vmatprep.subr.bf16.mxu0 %v4164_v47  ;;  %v4260_v47 = vld [vmem:[%s6075_s1 + $0x874] ss:$8 sps:$4 sm:$0xff]  }
  0x67   :  { %2803 = vmatpush1.bf16.msra.mxu1 %v4159_v48  ;;  %v4255_v48 = vld [vmem:[%s6075_s1 + $0x270] ss:$8 sps:$4 sm:$0xff]  }
  0x68   :  { %3121 = vmatpush1.bf16.msra.mxu0 %v4162_v49  ;;  %2804 = vmatprep.subr.bf16.mxu1 %v4167_v50  ;;  %v4258_v49 = vld [vmem:[%s6075_s1 + $0x870] ss:$8 sps:$4 sm:$0xff]   ;;  %v4263_v50 = vld [vmem:[%s6075_s1 + $0x284] ss:$8 sps:$4 sm:$0xff]  }
  0x69   :  { %3122 = vmatprep.subr.bf16.mxu0 %v4170_v51  ;;  %v4266_v51 = vld [vmem:[%s6075_s1 + $0x884] ss:$8 sps:$4 sm:$0xff]  }
  0x6b   :  { %2805 = vmatpush1.bf16.msra.mxu1 %v4165_v52  ;;  %v4261_v52 = vld [vmem:[%s6075_s1 + $0x280] ss:$8 sps:$4 sm:$0xff]  }
  0x6c   :  { %3123 = vmatpush1.bf16.msra.mxu0 %v4168_v53  ;;  %2806 = vmatprep.subr.bf16.mxu1 %v4173_v54  ;;  %v4264_v53 = vld [vmem:[%s6075_s1 + $0x880] ss:$8 sps:$4 sm:$0xff]   ;;  %v4269_v54 = vld [vmem:[%s6075_s1 + $0x294] ss:$8 sps:$4 sm:$0xff]  }
  0x6d   :  { %3124 = vmatprep.subr.bf16.mxu0 %v4176_v55  ;;  %v4272_v55 = vld [vmem:[%s6075_s1 + $0x894] ss:$8 sps:$4 sm:$0xff]  }
  0x6f   :  { %2807 = vmatpush1.bf16.msra.mxu1 %v4171_v56  ;;  %v4267_v56 = vld [vmem:[%s6075_s1 + $0x290] ss:$8 sps:$4 sm:$0xff]  }
  0x70   :  { %3125 = vmatpush1.bf16.msra.mxu0 %v4174_v57  ;;  %2808 = vmatprep.subr.bf16.mxu1 %v4179_v58  ;;  %v4270_v57 = vld [vmem:[%s6075_s1 + $0x890] ss:$8 sps:$4 sm:$0xff]   ;;  %v4275_v58 = vld [vmem:[%s6075_s1 + $0x2a4] ss:$8 sps:$4 sm:$0xff]  }
  0x71   :  { %3126 = vmatprep.subr.bf16.mxu0 %v4182_v59  ;;  %v4278_v59 = vld [vmem:[%s6075_s1 + $0x8a4] ss:$8 sps:$4 sm:$0xff]  }
  0x73   :  { %2809 = vmatpush1.bf16.msra.mxu1 %v4177_v60  ;;  %v4273_v60 = vld [vmem:[%s6075_s1 + $0x2a0] ss:$8 sps:$4 sm:$0xff]  }
  0x74   :  { %3127 = vmatpush1.bf16.msra.mxu0 %v4180_v61  ;;  %2810 = vmatprep.subr.bf16.mxu1 %v4185_v62  ;;  %v4276_v61 = vld [vmem:[%s6075_s1 + $0x8a0] ss:$8 sps:$4 sm:$0xff]   ;;  %v4281_v62 = vld [vmem:[%s6075_s1 + $0x2b4] ss:$8 sps:$4 sm:$0xff]  }
  0x75   :  { %3128 = vmatprep.subr.bf16.mxu0 %v4188_v63  ;;  %v4284_v63 = vld [vmem:[%s6075_s1 + $0x8b4] ss:$8 sps:$4 sm:$0xff]  }
  0x77   :  { %2811 = vmatpush1.bf16.msra.mxu1 %v4183_v0  ;;  %v4279_v0 = vld [vmem:[%s6075_s1 + $0x2b0] ss:$8 sps:$4 sm:$0xff]  }
  0x78   :  { %3129 = vmatpush1.bf16.msra.mxu0 %v4186_v1  ;;  %2812 = vmatprep.subr.bf16.mxu1 %v4193_v2  ;;  %v4282_v1 = vld [vmem:[%s6075_s1 + $0x8b0] ss:$8 sps:$4 sm:$0xff]   ;;  %v4287_v2 = vld [vmem:[%s6075_s1 + $0x2c4] ss:$8 sps:$4 sm:$0xff]  }
  0x79   :  { %3130 = vmatprep.subr.bf16.mxu0 %v4198_v3  ;;  %v4290_v3 = vld [vmem:[%s6075_s1 + $0x8c4] ss:$8 sps:$4 sm:$0xff]  }
  0x7b   :  { %2813 = vmatpush1.bf16.msra.mxu1 %v4191_v4  ;;  %v4285_v4 = vld [vmem:[%s6075_s1 + $0x2c0] ss:$8 sps:$4 sm:$0xff]  }
  0x7c   :  { %3131 = vmatpush1.bf16.msra.mxu0 %v4196_v5  ;;  %2814 = vmatprep.subr.bf16.mxu1 %v4203_v6  ;;  %v4288_v5 = vld [vmem:[%s6075_s1 + $0x8c0] ss:$8 sps:$4 sm:$0xff]   ;;  %v4293_v6 = vld [vmem:[%s6075_s1 + $0x2d4] ss:$8 sps:$4 sm:$0xff]  }
  0x7d   :  { %3132 = vmatprep.subr.bf16.mxu0 %v4206_v7  ;;  %v4296_v7 = vld [vmem:[%s6075_s1 + $0x8d4] ss:$8 sps:$4 sm:$0xff]  }
  0x7f   :  { %2815 = vmatpush1.bf16.msra.mxu1 %v4201_v8  ;;  %v4291_v8 = vld [vmem:[%s6075_s1 + $0x2d0] ss:$8 sps:$4 sm:$0xff]  }
  0x80   :  { %3133 = vmatpush1.bf16.msra.mxu0 %v4204_v9  ;;  %2837 = vmatprep.subr.bf16.mxu1 %v4212_v10  ;;  %v4294_v9 = vld [vmem:[%s6075_s1 + $0x8d0] ss:$8 sps:$4 sm:$0xff]   ;;  %v4301_v10 = vld [vmem:[%s6075_s1 + $0x2e4] ss:$8 sps:$4 sm:$0xff]  }
  0x81   :  { %3155 = vmatprep.subr.bf16.mxu0 %v4218_v11  ;;  %v4306_v11 = vld [vmem:[%s6075_s1 + $0x8e4] ss:$8 sps:$4 sm:$0xff]  }
  0x82   :  { %2817 = vmatmul.mubr.bf16.vlgmr.msra.gmra.mrb[0].mxu1 %v4207_v12  ;;  %v4299_v12 = vld [vmem:[%s6075_s1 + $0x2e0] ss:$8 sps:$4 sm:$0xff]  }
  0x83   :  { %3135 = vmatmul.mubr.bf16.vlgmr.msra.gmra.mrb[0].mxu0 %v4213_v14  ;;  %2838 = vmatpush1.bf16.msra.mxu1 %v4210_v13  ;;  %v4304_v13 = vld [vmem:[%s6075_s1 + $0x8e0] ss:$8 sps:$4 sm:$0xff]   ;;  %v4311_v14 = vld [vmem:[%s6075_s1 + $0x2f4] ss:$8 sps:$4 sm:$0xff]  }
  0x84   :  { %3156 = vmatpush1.bf16.msra.mxu0 %v4216_v15  ;;  %2839 = vmatprep.subr.bf16.mxu1 %v4221_v16  ;;  %v4314_v15 = vld [vmem:[%s6075_s1 + $0x8f4] ss:$8 sps:$4 sm:$0xff]   ;;  %v4309_v16 = vld [vmem:[%s6075_s1 + $0x2f0] ss:$8 sps:$4 sm:$0xff]  }
  0x85   :  { %3157 = vmatprep.subr.bf16.mxu0 %v4224_v17  ;;  %2826 = vmatprep.mubr.bf16.mxu1 %v4297_v20  ;;  %v4312_v17 = vld [vmem:[%s6075_s1 + $0x8f0] ss:$8 sps:$4 sm:$0xff]  }
  0x86   :  { %3144 = vmatprep.mubr.bf16.mxu0 %v4302_v23  ;;  %v4315_v20 = vld [vmem:[%s6076_s0 + $0x10] ss:$100 sps:$4 sm:$0xff]   ;;  %v4324_v23 = vld [vmem:[%s6075_s1 + $0x900] ss:$8 sps:$4 sm:$0xff]  }
  0x87   :  { %2840 = vmatpush1.bf16.msra.mxu1 %v4219_v18  ;;  %v4320_v18 = vld [vmem:[%s6075_s1 + $0x304] ss:$8 sps:$4 sm:$0xff]  }
  0x88   :  { %3158 = vmatpush1.bf16.msra.mxu0 %v4222_v19  ;;  %2841 = vmatprep.subr.bf16.mxu1 %v4227_v21  ;;  %v4326_v19 = vld [vmem:[%s6075_s1 + $0x904] ss:$8 sps:$4 sm:$0xff]   ;;  %v4318_v21 = vld [vmem:[%s6075_s1 + $0x300] ss:$8 sps:$4 sm:$0xff]  }
  0x89   :  { %3159 = vmatprep.subr.bf16.mxu0 %v4230_v22  ;;  %v4321_v22 = vld [vmem:[%s6076_s0 + $0x40] ss:$100 sps:$4 sm:$0xff]  }
  0x8a   :  { %2827 = vmatmul.mubr.bf16.gmra.mrb[4].mxu1 %v4307_v26  ;;  %v4405_v26 = vld [vmem:[%s6076_s0 + $0xdc] ss:$100 sps:$4 sm:$0xff]  }
  0x8b   :  { %3145 = vmatmul.mubr.bf16.gmra.mrb[4].mxu0 %v4308_v27  ;;  %2842 = vmatpush1.bf16.msra.mxu1 %v4225_v24  ;;  %v4329_v24 = vld [vmem:[%s6075_s1 + $0x314] ss:$8 sps:$4 sm:$0xff]   ;;  %v4410_v27 = vld [vmem:[%s6076_s0 + $0x10c] ss:$100 sps:$4 sm:$0xff]  }
  0x8c   :  { %3160 = vmatpush1.bf16.msra.mxu0 %v4228_v25  ;;  %2843 = vmatprep.subr.bf16.mxu1 %v4233_v28  ;;  %v4332_v25 = vld [vmem:[%s6075_s1 + $0x914] ss:$8 sps:$4 sm:$0xff]   ;;  %v4327_v28 = vld [vmem:[%s6075_s1 + $0x310] ss:$8 sps:$4 sm:$0xff]  }
  0x8d   :  { %3161 = vmatprep.subr.bf16.mxu0 %v4236_v29  ;;  %2869 = vmatprep.mubr.bf16.mxu1 %v4317_v32  ;;  %v4330_v29 = vld [vmem:[%s6075_s1 + $0x910] ss:$8 sps:$4 sm:$0xff]   ;;  %v4333_v32 = vld [vmem:[%s6075_s1 + $0x320] ss:$8 sps:$4 sm:$0xff]  }
  0x8e   :  { %3187 = vmatprep.mubr.bf16.mxu0 %v4323_v35  ;;  %v4416_v35 = vld [vmem:[%s6076_s0 + $0x108] ss:$100 sps:$4 sm:$0xff]  }
  0x8f   :  { %2844 = vmatpush1.bf16.msra.mxu1 %v4231_v30  ;;  %v4335_v30 = vld [vmem:[%s6075_s1 + $0x324] ss:$8 sps:$4 sm:$0xff]  }
  0x90   :  { %3162 = vmatpush1.bf16.msra.mxu0 %v4234_v31  ;;  %2845 = vmatprep.subr.bf16.mxu1 %v4239_v33  ;;  %v4338_v31 = vld [vmem:[%s6075_s1 + $0x924] ss:$8 sps:$4 sm:$0xff]   ;;  %v4336_v33 = vld [vmem:[%s6075_s1 + $0x920] ss:$8 sps:$4 sm:$0xff]  }
  0x91   :  { %3163 = vmatprep.subr.bf16.mxu0 %v4242_v34  ;;  %v4415_v34 = vld [vmem:[%s6076_s0 + $0xd8] ss:$100 sps:$4 sm:$0xff]  }
  0x93   :  { %2846 = vmatpush1.bf16.msra.mxu1 %v4237_v36  ;;  %v4341_v36 = vld [vmem:[%s6075_s1 + $0x334] ss:$8 sps:$4 sm:$0xff]  }
  0x94   :  { %3164 = vmatpush1.bf16.msra.mxu0 %v4240_v37  ;;  %2847 = vmatprep.subr.bf16.mxu1 %v4245_v38  ;;  %v4344_v37 = vld [vmem:[%s6075_s1 + $0x934] ss:$8 sps:$4 sm:$0xff]  }
  0x95   :  { %3165 = vmatprep.subr.bf16.mxu0 %v4248_v39  ;;  %v4425_v38 = vld [vmem:[%s6076_s0 + $0x1c] ss:$100 sps:$4 sm:$0xff]   ;;  %v4431_v39 = vld [vmem:[%s6076_s0 + $0x4c] ss:$100 sps:$4 sm:$0xff]  }
  0x97   :  { %2848 = vmatpush1.bf16.msra.mxu1 %v4243_v40  ;;  %v4339_v40 = vld [vmem:[%s6075_s1 + $0x330] ss:$8 sps:$4 sm:$0xff]  }
  0x98   :  { %3166 = vmatpush1.bf16.msra.mxu0 %v4246_v41  ;;  %2849 = vmatprep.subr.bf16.mxu1 %v4251_v42  ;;  %v4342_v41 = vld [vmem:[%s6075_s1 + $0x930] ss:$8 sps:$4 sm:$0xff]   ;;  %v4347_v42 = vld [vmem:[%s6075_s1 + $0x344] ss:$8 sps:$4 sm:$0xff]  }
  0x99   :  { %3167 = vmatprep.subr.bf16.mxu0 %v4254_v43  ;;  %v4350_v43 = vld [vmem:[%s6075_s1 + $0x944] ss:$8 sps:$4 sm:$0xff]  }
  0x9b   :  { %2850 = vmatpush1.bf16.msra.mxu1 %v4249_v44  ;;  %v4345_v44 = vld [vmem:[%s6075_s1 + $0x340] ss:$8 sps:$4 sm:$0xff]  }
  0x9c   :  { %3168 = vmatpush1.bf16.msra.mxu0 %v4252_v45  ;;  %2851 = vmatprep.subr.bf16.mxu1 %v4257_v46  ;;  %v4348_v45 = vld [vmem:[%s6075_s1 + $0x940] ss:$8 sps:$4 sm:$0xff]   ;;  %v4353_v46 = vld [vmem:[%s6075_s1 + $0x354] ss:$8 sps:$4 sm:$0xff]  }
  0x9d   :  { %3169 = vmatprep.subr.bf16.mxu0 %v4260_v47  ;;  %v4356_v47 = vld [vmem:[%s6075_s1 + $0x954] ss:$8 sps:$4 sm:$0xff]  }
  0x9f   :  { %2852 = vmatpush1.bf16.msra.mxu1 %v4255_v48  ;;  %v4351_v48 = vld [vmem:[%s6075_s1 + $0x350] ss:$8 sps:$4 sm:$0xff]  }
  0xa0   :  { %3170 = vmatpush1.bf16.msra.mxu0 %v4258_v49  ;;  %2853 = vmatprep.subr.bf16.mxu1 %v4263_v50  ;;  %v4354_v49 = vld [vmem:[%s6075_s1 + $0x950] ss:$8 sps:$4 sm:$0xff]   ;;  %v4359_v50 = vld [vmem:[%s6075_s1 + $0x364] ss:$8 sps:$4 sm:$0xff]  }
  0xa1   :  { %3171 = vmatprep.subr.bf16.mxu0 %v4266_v51  ;;  %v4362_v51 = vld [vmem:[%s6075_s1 + $0x964] ss:$8 sps:$4 sm:$0xff]  }
  0xa3   :  { %2854 = vmatpush1.bf16.msra.mxu1 %v4261_v52  ;;  %v4357_v52 = vld [vmem:[%s6075_s1 + $0x360] ss:$8 sps:$4 sm:$0xff]  }
  0xa4   :  { %3172 = vmatpush1.bf16.msra.mxu0 %v4264_v53  ;;  %2855 = vmatprep.subr.bf16.mxu1 %v4269_v54  ;;  %v4360_v53 = vld [vmem:[%s6075_s1 + $0x960] ss:$8 sps:$4 sm:$0xff]   ;;  %v4365_v54 = vld [vmem:[%s6075_s1 + $0x374] ss:$8 sps:$4 sm:$0xff]  }
  0xa5   :  { %3173 = vmatprep.subr.bf16.mxu0 %v4272_v55  ;;  %v4368_v55 = vld [vmem:[%s6075_s1 + $0x974] ss:$8 sps:$4 sm:$0xff]  }
  0xa7   :  { %2856 = vmatpush1.bf16.msra.mxu1 %v4267_v56  ;;  %v4363_v56 = vld [vmem:[%s6075_s1 + $0x370] ss:$8 sps:$4 sm:$0xff]  }
  0xa8   :  { %3174 = vmatpush1.bf16.msra.mxu0 %v4270_v57  ;;  %2857 = vmatprep.subr.bf16.mxu1 %v4275_v58  ;;  %v4366_v57 = vld [vmem:[%s6075_s1 + $0x970] ss:$8 sps:$4 sm:$0xff]   ;;  %v4371_v58 = vld [vmem:[%s6075_s1 + $0x384] ss:$8 sps:$4 sm:$0xff]  }
  0xa9   :  { %3175 = vmatprep.subr.bf16.mxu0 %v4278_v59  ;;  %v4374_v59 = vld [vmem:[%s6075_s1 + $0x984] ss:$8 sps:$4 sm:$0xff]  }
  0xab   :  { %2858 = vmatpush1.bf16.msra.mxu1 %v4273_v60  ;;  %v4369_v60 = vld [vmem:[%s6075_s1 + $0x380] ss:$8 sps:$4 sm:$0xff]  }
  0xac   :  { %3176 = vmatpush1.bf16.msra.mxu0 %v4276_v61  ;;  %2859 = vmatprep.subr.bf16.mxu1 %v4281_v62  ;;  %v4372_v61 = vld [vmem:[%s6075_s1 + $0x980] ss:$8 sps:$4 sm:$0xff]   ;;  %v4377_v62 = vld [vmem:[%s6075_s1 + $0x394] ss:$8 sps:$4 sm:$0xff]  }
  0xad   :  { %3177 = vmatprep.subr.bf16.mxu0 %v4284_v63  ;;  %v4380_v63 = vld [vmem:[%s6075_s1 + $0x994] ss:$8 sps:$4 sm:$0xff]  }
  0xaf   :  { %2860 = vmatpush1.bf16.msra.mxu1 %v4279_v0  ;;  %v4375_v0 = vld [vmem:[%s6075_s1 + $0x390] ss:$8 sps:$4 sm:$0xff]  }
  0xb0   :  { %3178 = vmatpush1.bf16.msra.mxu0 %v4282_v1  ;;  %2861 = vmatprep.subr.bf16.mxu1 %v4287_v2  ;;  %v4378_v1 = vld [vmem:[%s6075_s1 + $0x990] ss:$8 sps:$4 sm:$0xff]   ;;  %v4383_v2 = vld [vmem:[%s6075_s1 + $0x3a4] ss:$8 sps:$4 sm:$0xff]  }
  0xb1   :  { %3179 = vmatprep.subr.bf16.mxu0 %v4290_v3  ;;  %v4386_v3 = vld [vmem:[%s6075_s1 + $0x9a4] ss:$8 sps:$4 sm:$0xff]  }
  0xb3   :  { %2862 = vmatpush1.bf16.msra.mxu1 %v4285_v4  ;;  %v4381_v4 = vld [vmem:[%s6075_s1 + $0x3a0] ss:$8 sps:$4 sm:$0xff]  }
  0xb4   :  { %3180 = vmatpush1.bf16.msra.mxu0 %v4288_v5  ;;  %2863 = vmatprep.subr.bf16.mxu1 %v4293_v6  ;;  %v4384_v5 = vld [vmem:[%s6075_s1 + $0x9a0] ss:$8 sps:$4 sm:$0xff]   ;;  %v4389_v6 = vld [vmem:[%s6075_s1 + $0x3b4] ss:$8 sps:$4 sm:$0xff]  }
  0xb5   :  { %3181 = vmatprep.subr.bf16.mxu0 %v4296_v7  ;;  %v4392_v7 = vld [vmem:[%s6075_s1 + $0x9b4] ss:$8 sps:$4 sm:$0xff]  }
  0xb7   :  { %2864 = vmatpush1.bf16.msra.mxu1 %v4291_v8  ;;  %v4387_v8 = vld [vmem:[%s6075_s1 + $0x3b0] ss:$8 sps:$4 sm:$0xff]  }
  0xb8   :  { %3182 = vmatpush1.bf16.msra.mxu0 %v4294_v9  ;;  %2865 = vmatprep.subr.bf16.mxu1 %v4301_v10  ;;  %v4390_v9 = vld [vmem:[%s6075_s1 + $0x9b0] ss:$8 sps:$4 sm:$0xff]   ;;  %v4395_v10 = vld [vmem:[%s6075_s1 + $0x3c4] ss:$8 sps:$4 sm:$0xff]  }
  0xb9   :  { %3183 = vmatprep.subr.bf16.mxu0 %v4306_v11  ;;  %v4398_v11 = vld [vmem:[%s6075_s1 + $0x9c4] ss:$8 sps:$4 sm:$0xff]  }
  0xbb   :  { %2866 = vmatpush1.bf16.msra.mxu1 %v4299_v12  ;;  %v4393_v12 = vld [vmem:[%s6075_s1 + $0x3c0] ss:$8 sps:$4 sm:$0xff]  }
  0xbc   :  { %3184 = vmatpush1.bf16.msra.mxu0 %v4304_v13  ;;  %2867 = vmatprep.subr.bf16.mxu1 %v4311_v14  ;;  %v4396_v13 = vld [vmem:[%s6075_s1 + $0x9c0] ss:$8 sps:$4 sm:$0xff]   ;;  %v4401_v14 = vld [vmem:[%s6075_s1 + $0x3d4] ss:$8 sps:$4 sm:$0xff]  }
  0xbd   :  { %3185 = vmatprep.subr.bf16.mxu0 %v4314_v15  ;;  %v4404_v15 = vld [vmem:[%s6075_s1 + $0x9d4] ss:$8 sps:$4 sm:$0xff]  }
  0xbf   :  { %2868 = vmatpush1.bf16.msra.mxu1 %v4309_v16  ;;  %v4399_v16 = vld [vmem:[%s6075_s1 + $0x3d0] ss:$8 sps:$4 sm:$0xff]  }
  0xc0   :  { %3186 = vmatpush1.bf16.msra.mxu0 %v4312_v17  ;;  %2890 = vmatprep.subr.bf16.mxu1 %v4320_v18  ;;  %v4402_v17 = vld [vmem:[%s6075_s1 + $0x9d0] ss:$8 sps:$4 sm:$0xff]   ;;  %v4409_v18 = vld [vmem:[%s6075_s1 + $0x3e4] ss:$8 sps:$4 sm:$0xff]  }
  0xc1   :  { %3208 = vmatprep.subr.bf16.mxu0 %v4326_v19  ;;  %v4414_v19 = vld [vmem:[%s6075_s1 + $0x9e4] ss:$8 sps:$4 sm:$0xff]  }
  0xc2   :  { %2870 = vmatmul.mubr.bf16.vlgmr.msra.gmra.mrb[0].mxu1 %v4315_v20  ;;  %v4407_v20 = vld [vmem:[%s6075_s1 + $0x3e0] ss:$8 sps:$4 sm:$0xff]  }
  0xc3   :  { %3188 = vmatmul.mubr.bf16.vlgmr.msra.gmra.mrb[0].mxu0 %v4321_v22  ;;  %2891 = vmatpush1.bf16.msra.mxu1 %v4318_v21  ;;  %v4412_v21 = vld [vmem:[%s6075_s1 + $0x9e0] ss:$8 sps:$4 sm:$0xff]   ;;  %v4419_v22 = vld [vmem:[%s6075_s1 + $0x3f4] ss:$8 sps:$4 sm:$0xff]  }
  0xc4   :  { %3209 = vmatpush1.bf16.msra.mxu0 %v4324_v23  ;;  %2892 = vmatprep.subr.bf16.mxu1 %v4329_v24  ;;  %v4422_v23 = vld [vmem:[%s6075_s1 + $0x9f4] ss:$8 sps:$4 sm:$0xff]   ;;  %v4417_v24 = vld [vmem:[%s6075_s1 + $0x3f0] ss:$8 sps:$4 sm:$0xff]  }
  0xc5   :  { %3210 = vmatprep.subr.bf16.mxu0 %v4332_v25  ;;  %2879 = vmatprep.mubr.bf16.mxu1 %v4405_v26  ;;  %v4420_v25 = vld [vmem:[%s6075_s1 + $0x9f0] ss:$8 sps:$4 sm:$0xff]   ;;  %v4428_v26 = vld [vmem:[%s6075_s1 + $0x404] ss:$8 sps:$4 sm:$0xff]  }
  0xc6   :  { %3197 = vmatprep.mubr.bf16.mxu0 %v4410_v27  ;;  %v4434_v27 = vld [vmem:[%s6075_s1 + $0xa04] ss:$8 sps:$4 sm:$0xff]  }
  0xc7   :  { %2893 = vmatpush1.bf16.msra.mxu1 %v4327_v28  ;;  %v4423_v28 = vld [vmem:[%s6076_s0 + $0x18] ss:$100 sps:$4 sm:$0xff]  }
  0xc8   :  { %3211 = vmatpush1.bf16.msra.mxu0 %v4330_v29  ;;  %2894 = vmatprep.subr.bf16.mxu1 %v4335_v30  ;;  %v4426_v29 = vld [vmem:[%s6075_s1 + $0x400] ss:$8 sps:$4 sm:$0xff]  }
  0xc9   :  { %3212 = vmatprep.subr.bf16.mxu0 %v4338_v31  ;;  %v4429_v30 = vld [vmem:[%s6076_s0 + $0x48] ss:$100 sps:$4 sm:$0xff]  }
  0xca   :  { %2880 = vmatmul.mubr.bf16.gmra.mrb[4].mxu1 %v4415_v34  ;;  %v4432_v31 = vld [vmem:[%s6075_s1 + $0xa00] ss:$8 sps:$4 sm:$0xff]  }
  0xcb   :  { %3198 = vmatmul.mubr.bf16.gmra.mrb[4].mxu0 %v4416_v35  ;;  %2895 = vmatpush1.bf16.msra.mxu1 %v4333_v32  ;;  %v4437_v32 = vld [vmem:[%s6075_s1 + $0x414] ss:$8 sps:$4 sm:$0xff]   ;;  %v4513_v34 = vld [vmem:[%s6076_s0 + $0xe4] ss:$100 sps:$4 sm:$0xff]  }
  0xcc   :  { %3213 = vmatpush1.bf16.msra.mxu0 %v4336_v33  ;;  %2896 = vmatprep.subr.bf16.mxu1 %v4341_v36  ;;  %v4440_v33 = vld [vmem:[%s6075_s1 + $0xa14] ss:$8 sps:$4 sm:$0xff]   ;;  %v4435_v36 = vld [vmem:[%s6075_s1 + $0x410] ss:$8 sps:$4 sm:$0xff]  }
  0xcd   :  { %3214 = vmatprep.subr.bf16.mxu0 %v4344_v37  ;;  %2922 = vmatprep.mubr.bf16.mxu1 %v4425_v38  ;;  %v4518_v35 = vld [vmem:[%s6076_s0 + $0x114] ss:$100 sps:$4 sm:$0xff]   ;;  %v4443_v38 = vld [vmem:[%s6075_s1 + $0x424] ss:$8 sps:$4 sm:$0xff]  }
  0xce   :  { %3240 = vmatprep.mubr.bf16.mxu0 %v4431_v39  ;;  %v4438_v37 = vld [vmem:[%s6075_s1 + $0xa10] ss:$8 sps:$4 sm:$0xff]   ;;  %v4446_v39 = vld [vmem:[%s6075_s1 + $0xa24] ss:$8 sps:$4 sm:$0xff]  }
  0xcf   :  { %2897 = vmatpush1.bf16.msra.mxu1 %v4339_v40  ;;  %v4441_v40 = vld [vmem:[%s6075_s1 + $0x420] ss:$8 sps:$4 sm:$0xff]  }
  0xd0   :  { %3215 = vmatpush1.bf16.msra.mxu0 %v4342_v41  ;;  %2898 = vmatprep.subr.bf16.mxu1 %v4347_v42  ;;  %v4444_v41 = vld [vmem:[%s6075_s1 + $0xa20] ss:$8 sps:$4 sm:$0xff]  }
  0xd1   :  { %3216 = vmatprep.subr.bf16.mxu0 %v4350_v43  ;;  %v4523_v42 = vld [vmem:[%s6076_s0 + $0xe0] ss:$100 sps:$4 sm:$0xff]   ;;  %v4524_v43 = vld [vmem:[%s6076_s0 + $0x110] ss:$100 sps:$4 sm:$0xff]  }
  0xd3   :  { %2899 = vmatpush1.bf16.msra.mxu1 %v4345_v44  ;;  %v4449_v44 = vld [vmem:[%s6075_s1 + $0x434] ss:$8 sps:$4 sm:$0xff]  }
  0xd4   :  { %3217 = vmatpush1.bf16.msra.mxu0 %v4348_v45  ;;  %2900 = vmatprep.subr.bf16.mxu1 %v4353_v46  ;;  %v4452_v45 = vld [vmem:[%s6075_s1 + $0xa34] ss:$8 sps:$4 sm:$0xff]   ;;  %v4533_v46 = vld [vmem:[%s6076_s0 + $0x24] ss:$100 sps:$4 sm:$0xff]  }
  0xd5   :  { %3218 = vmatprep.subr.bf16.mxu0 %v4356_v47  ;;  %v4539_v47 = vld [vmem:[%s6076_s0 + $0x54] ss:$100 sps:$4 sm:$0xff]  }
  0xd7   :  { %2901 = vmatpush1.bf16.msra.mxu1 %v4351_v48  ;;  %v4447_v48 = vld [vmem:[%s6075_s1 + $0x430] ss:$8 sps:$4 sm:$0xff]  }
  0xd8   :  { %3219 = vmatpush1.bf16.msra.mxu0 %v4354_v49  ;;  %2902 = vmatprep.subr.bf16.mxu1 %v4359_v50  ;;  %v4450_v49 = vld [vmem:[%s6075_s1 + $0xa30] ss:$8 sps:$4 sm:$0xff]   ;;  %v4455_v50 = vld [vmem:[%s6075_s1 + $0x444] ss:$8 sps:$4 sm:$0xff]  }
  0xd9   :  { %3220 = vmatprep.subr.bf16.mxu0 %v4362_v51  ;;  %v4458_v51 = vld [vmem:[%s6075_s1 + $0xa44] ss:$8 sps:$4 sm:$0xff]  }
  0xdb   :  { %2903 = vmatpush1.bf16.msra.mxu1 %v4357_v52  ;;  %v4453_v52 = vld [vmem:[%s6075_s1 + $0x440] ss:$8 sps:$4 sm:$0xff]  }
  0xdc   :  { %3221 = vmatpush1.bf16.msra.mxu0 %v4360_v53  ;;  %2904 = vmatprep.subr.bf16.mxu1 %v4365_v54  ;;  %v4456_v53 = vld [vmem:[%s6075_s1 + $0xa40] ss:$8 sps:$4 sm:$0xff]   ;;  %v4461_v54 = vld [vmem:[%s6075_s1 + $0x454] ss:$8 sps:$4 sm:$0xff]  }
  0xdd   :  { %3222 = vmatprep.subr.bf16.mxu0 %v4368_v55  ;;  %v4464_v55 = vld [vmem:[%s6075_s1 + $0xa54] ss:$8 sps:$4 sm:$0xff]  }
  0xdf   :  { %2905 = vmatpush1.bf16.msra.mxu1 %v4363_v56  ;;  %v4459_v56 = vld [vmem:[%s6075_s1 + $0x450] ss:$8 sps:$4 sm:$0xff]  }
  0xe0   :  { %3223 = vmatpush1.bf16.msra.mxu0 %v4366_v57  ;;  %2906 = vmatprep.subr.bf16.mxu1 %v4371_v58  ;;  %v4462_v57 = vld [vmem:[%s6075_s1 + $0xa50] ss:$8 sps:$4 sm:$0xff]   ;;  %v4467_v58 = vld [vmem:[%s6075_s1 + $0x464] ss:$8 sps:$4 sm:$0xff]  }
  0xe1   :  { %3224 = vmatprep.subr.bf16.mxu0 %v4374_v59  ;;  %v4470_v59 = vld [vmem:[%s6075_s1 + $0xa64] ss:$8 sps:$4 sm:$0xff]  }
  0xe3   :  { %2907 = vmatpush1.bf16.msra.mxu1 %v4369_v60  ;;  %v4465_v60 = vld [vmem:[%s6075_s1 + $0x460] ss:$8 sps:$4 sm:$0xff]  }
  0xe4   :  { %3225 = vmatpush1.bf16.msra.mxu0 %v4372_v61  ;;  %2908 = vmatprep.subr.bf16.mxu1 %v4377_v62  ;;  %v4468_v61 = vld [vmem:[%s6075_s1 + $0xa60] ss:$8 sps:$4 sm:$0xff]   ;;  %v4473_v62 = vld [vmem:[%s6075_s1 + $0x474] ss:$8 sps:$4 sm:$0xff]  }
  0xe5   :  { %3226 = vmatprep.subr.bf16.mxu0 %v4380_v63  ;;  %v4476_v63 = vld [vmem:[%s6075_s1 + $0xa74] ss:$8 sps:$4 sm:$0xff]  }
  0xe7   :  { %2909 = vmatpush1.bf16.msra.mxu1 %v4375_v0  ;;  %v4471_v0 = vld [vmem:[%s6075_s1 + $0x470] ss:$8 sps:$4 sm:$0xff]  }
  0xe8   :  { %3227 = vmatpush1.bf16.msra.mxu0 %v4378_v1  ;;  %2910 = vmatprep.subr.bf16.mxu1 %v4383_v2  ;;  %v4474_v1 = vld [vmem:[%s6075_s1 + $0xa70] ss:$8 sps:$4 sm:$0xff]   ;;  %v4479_v2 = vld [vmem:[%s6075_s1 + $0x484] ss:$8 sps:$4 sm:$0xff]  }
  0xe9   :  { %3228 = vmatprep.subr.bf16.mxu0 %v4386_v3  ;;  %v4482_v3 = vld [vmem:[%s6075_s1 + $0xa84] ss:$8 sps:$4 sm:$0xff]  }
  0xeb   :  { %2911 = vmatpush1.bf16.msra.mxu1 %v4381_v4  ;;  %v4477_v4 = vld [vmem:[%s6075_s1 + $0x480] ss:$8 sps:$4 sm:$0xff]  }
  0xec   :  { %3229 = vmatpush1.bf16.msra.mxu0 %v4384_v5  ;;  %2912 = vmatprep.subr.bf16.mxu1 %v4389_v6  ;;  %v4480_v5 = vld [vmem:[%s6075_s1 + $0xa80] ss:$8 sps:$4 sm:$0xff]   ;;  %v4485_v6 = vld [vmem:[%s6075_s1 + $0x494] ss:$8 sps:$4 sm:$0xff]  }
  0xed   :  { %3230 = vmatprep.subr.bf16.mxu0 %v4392_v7  ;;  %v4488_v7 = vld [vmem:[%s6075_s1 + $0xa94] ss:$8 sps:$4 sm:$0xff]  }
  0xef   :  { %2913 = vmatpush1.bf16.msra.mxu1 %v4387_v8  ;;  %v4483_v8 = vld [vmem:[%s6075_s1 + $0x490] ss:$8 sps:$4 sm:$0xff]  }
  0xf0   :  { %3231 = vmatpush1.bf16.msra.mxu0 %v4390_v9  ;;  %2914 = vmatprep.subr.bf16.mxu1 %v4395_v10  ;;  %v4486_v9 = vld [vmem:[%s6075_s1 + $0xa90] ss:$8 sps:$4 sm:$0xff]   ;;  %v4491_v10 = vld [vmem:[%s6075_s1 + $0x4a4] ss:$8 sps:$4 sm:$0xff]  }
  0xf1   :  { %3232 = vmatprep.subr.bf16.mxu0 %v4398_v11  ;;  %v4494_v11 = vld [vmem:[%s6075_s1 + $0xaa4] ss:$8 sps:$4 sm:$0xff]  }
  0xf3   :  { %2915 = vmatpush1.bf16.msra.mxu1 %v4393_v12  ;;  %v4489_v12 = vld [vmem:[%s6075_s1 + $0x4a0] ss:$8 sps:$4 sm:$0xff]  }
  0xf4   :  { %3233 = vmatpush1.bf16.msra.mxu0 %v4396_v13  ;;  %2916 = vmatprep.subr.bf16.mxu1 %v4401_v14  ;;  %v4492_v13 = vld [vmem:[%s6075_s1 + $0xaa0] ss:$8 sps:$4 sm:$0xff]   ;;  %v4497_v14 = vld [vmem:[%s6075_s1 + $0x4b4] ss:$8 sps:$4 sm:$0xff]  }
  0xf5   :  { %3234 = vmatprep.subr.bf16.mxu0 %v4404_v15  ;;  %v4500_v15 = vld [vmem:[%s6075_s1 + $0xab4] ss:$8 sps:$4 sm:$0xff]  }
  0xf7   :  { %2917 = vmatpush1.bf16.msra.mxu1 %v4399_v16  ;;  %v4495_v16 = vld [vmem:[%s6075_s1 + $0x4b0] ss:$8 sps:$4 sm:$0xff]  }
  0xf8   :  { %3235 = vmatpush1.bf16.msra.mxu0 %v4402_v17  ;;  %2918 = vmatprep.subr.bf16.mxu1 %v4409_v18  ;;  %v4498_v17 = vld [vmem:[%s6075_s1 + $0xab0] ss:$8 sps:$4 sm:$0xff]   ;;  %v4503_v18 = vld [vmem:[%s6075_s1 + $0x4c4] ss:$8 sps:$4 sm:$0xff]  }
  0xf9   :  { %3236 = vmatprep.subr.bf16.mxu0 %v4414_v19  ;;  %v4506_v19 = vld [vmem:[%s6075_s1 + $0xac4] ss:$8 sps:$4 sm:$0xff]  }
  0xfb   :  { %2919 = vmatpush1.bf16.msra.mxu1 %v4407_v20  ;;  %v4501_v20 = vld [vmem:[%s6075_s1 + $0x4c0] ss:$8 sps:$4 sm:$0xff]  }
  0xfc   :  { %3237 = vmatpush1.bf16.msra.mxu0 %v4412_v21  ;;  %2920 = vmatprep.subr.bf16.mxu1 %v4419_v22  ;;  %v4504_v21 = vld [vmem:[%s6075_s1 + $0xac0] ss:$8 sps:$4 sm:$0xff]   ;;  %v4509_v22 = vld [vmem:[%s6075_s1 + $0x4d4] ss:$8 sps:$4 sm:$0xff]  }
  0xfd   :  { %3238 = vmatprep.subr.bf16.mxu0 %v4422_v23  ;;  %v4512_v23 = vld [vmem:[%s6075_s1 + $0xad4] ss:$8 sps:$4 sm:$0xff]  }
  0xff   :  { %2921 = vmatpush1.bf16.msra.mxu1 %v4417_v24  ;;  %v4507_v24 = vld [vmem:[%s6075_s1 + $0x4d0] ss:$8 sps:$4 sm:$0xff]  }
 0x100   :  { %3239 = vmatpush1.bf16.msra.mxu0 %v4420_v25  ;;  %2943 = vmatprep.subr.bf16.mxu1 %v4428_v26  ;;  %v4510_v25 = vld [vmem:[%s6075_s1 + $0xad0] ss:$8 sps:$4 sm:$0xff]   ;;  %v4517_v26 = vld [vmem:[%s6075_s1 + $0x4e4] ss:$8 sps:$4 sm:$0xff]  }
 0x101   :  { %3261 = vmatprep.subr.bf16.mxu0 %v4434_v27  ;;  %v4522_v27 = vld [vmem:[%s6075_s1 + $0xae4] ss:$8 sps:$4 sm:$0xff]  }
 0x102   :  { %2923 = vmatmul.mubr.bf16.vlgmr.msra.gmra.mrb[0].mxu1 %v4423_v28  ;;  %v4515_v28 = vld [vmem:[%s6075_s1 + $0x4e0] ss:$8 sps:$4 sm:$0xff]  }
 0x103   :  { %3241 = vmatmul.mubr.bf16.vlgmr.msra.gmra.mrb[0].mxu0 %v4429_v30  ;;  %2944 = vmatpush1.bf16.msra.mxu1 %v4426_v29  ;;  %v4520_v29 = vld [vmem:[%s6075_s1 + $0xae0] ss:$8 sps:$4 sm:$0xff]   ;;  %v4527_v30 = vld [vmem:[%s6075_s1 + $0x4f4] ss:$8 sps:$4 sm:$0xff]  }
 0x104   :  { %3262 = vmatpush1.bf16.msra.mxu0 %v4432_v31  ;;  %2945 = vmatprep.subr.bf16.mxu1 %v4437_v32  ;;  %v4530_v31 = vld [vmem:[%s6075_s1 + $0xaf4] ss:$8 sps:$4 sm:$0xff]   ;;  %v4525_v32 = vld [vmem:[%s6075_s1 + $0x4f0] ss:$8 sps:$4 sm:$0xff]  }
 0x105   :  { %3263 = vmatprep.subr.bf16.mxu0 %v4440_v33  ;;  %2932 = vmatprep.mubr.bf16.mxu1 %v4513_v34  ;;  %v4528_v33 = vld [vmem:[%s6075_s1 + $0xaf0] ss:$8 sps:$4 sm:$0xff]   ;;  %v4536_v34 = vld [vmem:[%s6075_s1 + $0x504] ss:$8 sps:$4 sm:$0xff]  }
 0x106   :  { %3250 = vmatprep.mubr.bf16.mxu0 %v4518_v35  ;;  %v4542_v35 = vld [vmem:[%s6075_s1 + $0xb04] ss:$8 sps:$4 sm:$0xff]  }
 0x107   :  { %2946 = vmatpush1.bf16.msra.mxu1 %v4435_v36  ;;  %v4531_v36 = vld [vmem:[%s6076_s0 + $0x20] ss:$100 sps:$4 sm:$0xff]  }
 0x108   :  { %3264 = vmatpush1.bf16.msra.mxu0 %v4438_v37  ;;  %2947 = vmatprep.subr.bf16.mxu1 %v4443_v38  ;;  %v4537_v37 = vld [vmem:[%s6076_s0 + $0x50] ss:$100 sps:$4 sm:$0xff]   ;;  %v4534_v38 = vld [vmem:[%s6075_s1 + $0x500] ss:$8 sps:$4 sm:$0xff]  }
 0x109   :  { %3265 = vmatprep.subr.bf16.mxu0 %v4446_v39  ;;  %v4540_v39 = vld [vmem:[%s6075_s1 + $0xb00] ss:$8 sps:$4 sm:$0xff]  }
 0x10a   :  { %2933 = vmatmul.mubr.bf16.gmra.mrb[4].mxu1 %v4523_v42  ;;  %v4621_v42 = vld [vmem:[%s6076_s0 + $0xec] ss:$100 sps:$4 sm:$0xff]  }
 0x10b   :  { %3251 = vmatmul.mubr.bf16.gmra.mrb[4].mxu0 %v4524_v43  ;;  %2948 = vmatpush1.bf16.msra.mxu1 %v4441_v40  ;;  %v4545_v40 = vld [vmem:[%s6075_s1 + $0x514] ss:$8 sps:$4 sm:$0xff]  }
 0x10c   :  { %3266 = vmatpush1.bf16.msra.mxu0 %v4444_v41  ;;  %2949 = vmatprep.subr.bf16.mxu1 %v4449_v44  ;;  %v4548_v41 = vld [vmem:[%s6075_s1 + $0xb14] ss:$8 sps:$4 sm:$0xff]   ;;  %v4543_v44 = vld [vmem:[%s6075_s1 + $0x510] ss:$8 sps:$4 sm:$0xff]  }
 0x10d   :  { %3267 = vmatprep.subr.bf16.mxu0 %v4452_v45  ;;  %2975 = vmatprep.mubr.bf16.mxu1 %v4533_v46  ;;  %v4623_v43 = vld [vmem:[%s6076_s0 + $0x11c] ss:$100 sps:$4 sm:$0xff]   ;;  %v4546_v45 = vld [vmem:[%s6075_s1 + $0xb10] ss:$8 sps:$4 sm:$0xff]   ;;  %v4551_v46 = vld [vmem:[%s6075_s1 + $0x524] ss:$8 sps:$4 sm:$0xff]  }
 0x10e   :  { %3293 = vmatprep.mubr.bf16.mxu0 %v4539_v47  ;;  %v4554_v47 = vld [vmem:[%s6075_s1 + $0xb24] ss:$8 sps:$4 sm:$0xff]  }
 0x10f   :  { %2950 = vmatpush1.bf16.msra.mxu1 %v4447_v48  ;;  %v4625_v48 = vld [vmem:[%s6076_s0 + $0xe8] ss:$100 sps:$4 sm:$0xff]  }
 0x110   :  { %3268 = vmatpush1.bf16.msra.mxu0 %v4450_v49  ;;  %2951 = vmatprep.subr.bf16.mxu1 %v4455_v50  ;;  %v4629_v49 = vld [vmem:[%s6076_s0 + $0x118] ss:$100 sps:$4 sm:$0xff]   ;;  %v4549_v50 = vld [vmem:[%s6075_s1 + $0x520] ss:$8 sps:$4 sm:$0xff]  }
 0x111   :  { %3269 = vmatprep.subr.bf16.mxu0 %v4458_v51  ;;  %v4552_v51 = vld [vmem:[%s6075_s1 + $0xb20] ss:$8 sps:$4 sm:$0xff]  }
 0x113   :  { %2952 = vmatpush1.bf16.msra.mxu1 %v4453_v52  ;;  %v4557_v52 = vld [vmem:[%s6075_s1 + $0x534] ss:$8 sps:$4 sm:$0xff]  }
 0x114   :  { %3270 = vmatpush1.bf16.msra.mxu0 %v4456_v53  ;;  %2953 = vmatprep.subr.bf16.mxu1 %v4461_v54  ;;  %v4560_v53 = vld [vmem:[%s6075_s1 + $0xb34] ss:$8 sps:$4 sm:$0xff]   ;;  %v4641_v54 = vld [vmem:[%s6076_s0 + $0x2c] ss:$100 sps:$4 sm:$0xff]  }
 0x115   :  { %3271 = vmatprep.subr.bf16.mxu0 %v4464_v55  ;;  %v4644_v55 = vld [vmem:[%s6076_s0 + $0x5c] ss:$100 sps:$4 sm:$0xff]  }
 0x117   :  { %2954 = vmatpush1.bf16.msra.mxu1 %v4459_v56  ;;  %v4555_v56 = vld [vmem:[%s6075_s1 + $0x530] ss:$8 sps:$4 sm:$0xff]  }
 0x118   :  { %3272 = vmatpush1.bf16.msra.mxu0 %v4462_v57  ;;  %2955 = vmatprep.subr.bf16.mxu1 %v4467_v58  ;;  %v4558_v57 = vld [vmem:[%s6075_s1 + $0xb30] ss:$8 sps:$4 sm:$0xff]   ;;  %v4563_v58 = vld [vmem:[%s6075_s1 + $0x544] ss:$8 sps:$4 sm:$0xff]  }
 0x119   :  { %3273 = vmatprep.subr.bf16.mxu0 %v4470_v59  ;;  %v4566_v59 = vld [vmem:[%s6075_s1 + $0xb44] ss:$8 sps:$4 sm:$0xff]  }
 0x11b   :  { %2956 = vmatpush1.bf16.msra.mxu1 %v4465_v60  ;;  %v4561_v60 = vld [vmem:[%s6075_s1 + $0x540] ss:$8 sps:$4 sm:$0xff]  }
 0x11c   :  { %3274 = vmatpush1.bf16.msra.mxu0 %v4468_v61  ;;  %2957 = vmatprep.subr.bf16.mxu1 %v4473_v62  ;;  %v4564_v61 = vld [vmem:[%s6075_s1 + $0xb40] ss:$8 sps:$4 sm:$0xff]   ;;  %v4569_v62 = vld [vmem:[%s6075_s1 + $0x554] ss:$8 sps:$4 sm:$0xff]  }
 0x11d   :  { %3275 = vmatprep.subr.bf16.mxu0 %v4476_v63  ;;  %v4572_v63 = vld [vmem:[%s6075_s1 + $0xb54] ss:$8 sps:$4 sm:$0xff]  }
 0x11f   :  { %2958 = vmatpush1.bf16.msra.mxu1 %v4471_v0  ;;  %v4567_v0 = vld [vmem:[%s6075_s1 + $0x550] ss:$8 sps:$4 sm:$0xff]  }
 0x120   :  { %3276 = vmatpush1.bf16.msra.mxu0 %v4474_v1  ;;  %2959 = vmatprep.subr.bf16.mxu1 %v4479_v2  ;;  %v4570_v1 = vld [vmem:[%s6075_s1 + $0xb50] ss:$8 sps:$4 sm:$0xff]   ;;  %v4575_v2 = vld [vmem:[%s6075_s1 + $0x564] ss:$8 sps:$4 sm:$0xff]  }
 0x121   :  { %3277 = vmatprep.subr.bf16.mxu0 %v4482_v3  ;;  %v4578_v3 = vld [vmem:[%s6075_s1 + $0xb64] ss:$8 sps:$4 sm:$0xff]  }
 0x123   :  { %2960 = vmatpush1.bf16.msra.mxu1 %v4477_v4  ;;  %v4573_v4 = vld [vmem:[%s6075_s1 + $0x560] ss:$8 sps:$4 sm:$0xff]  }
 0x124   :  { %3278 = vmatpush1.bf16.msra.mxu0 %v4480_v5  ;;  %2961 = vmatprep.subr.bf16.mxu1 %v4485_v6  ;;  %v4576_v5 = vld [vmem:[%s6075_s1 + $0xb60] ss:$8 sps:$4 sm:$0xff]   ;;  %v4581_v6 = vld [vmem:[%s6075_s1 + $0x574] ss:$8 sps:$4 sm:$0xff]  }
 0x125   :  { %3279 = vmatprep.subr.bf16.mxu0 %v4488_v7  ;;  %v4584_v7 = vld [vmem:[%s6075_s1 + $0xb74] ss:$8 sps:$4 sm:$0xff]  }
 0x127   :  { %2962 = vmatpush1.bf16.msra.mxu1 %v4483_v8  ;;  %v4579_v8 = vld [vmem:[%s6075_s1 + $0x570] ss:$8 sps:$4 sm:$0xff]  }
 0x128   :  { %3280 = vmatpush1.bf16.msra.mxu0 %v4486_v9  ;;  %2963 = vmatprep.subr.bf16.mxu1 %v4491_v10  ;;  %v4582_v9 = vld [vmem:[%s6075_s1 + $0xb70] ss:$8 sps:$4 sm:$0xff]   ;;  %v4587_v10 = vld [vmem:[%s6075_s1 + $0x584] ss:$8 sps:$4 sm:$0xff]  }
 0x129   :  { %3281 = vmatprep.subr.bf16.mxu0 %v4494_v11  ;;  %v4590_v11 = vld [vmem:[%s6075_s1 + $0xb84] ss:$8 sps:$4 sm:$0xff]  }
 0x12b   :  { %2964 = vmatpush1.bf16.msra.mxu1 %v4489_v12  ;;  %v4585_v12 = vld [vmem:[%s6075_s1 + $0x580] ss:$8 sps:$4 sm:$0xff]  }
 0x12c   :  { %3282 = vmatpush1.bf16.msra.mxu0 %v4492_v13  ;;  %2965 = vmatprep.subr.bf16.mxu1 %v4497_v14  ;;  %v4588_v13 = vld [vmem:[%s6075_s1 + $0xb80] ss:$8 sps:$4 sm:$0xff]   ;;  %v4593_v14 = vld [vmem:[%s6075_s1 + $0x594] ss:$8 sps:$4 sm:$0xff]  }
 0x12d   :  { %3283 = vmatprep.subr.bf16.mxu0 %v4500_v15  ;;  %v4596_v15 = vld [vmem:[%s6075_s1 + $0xb94] ss:$8 sps:$4 sm:$0xff]  }
 0x12f   :  { %2966 = vmatpush1.bf16.msra.mxu1 %v4495_v16  ;;  %v4591_v16 = vld [vmem:[%s6075_s1 + $0x590] ss:$8 sps:$4 sm:$0xff]  }
 0x130   :  { %3284 = vmatpush1.bf16.msra.mxu0 %v4498_v17  ;;  %2967 = vmatprep.subr.bf16.mxu1 %v4503_v18  ;;  %v4594_v17 = vld [vmem:[%s6075_s1 + $0xb90] ss:$8 sps:$4 sm:$0xff]   ;;  %v4599_v18 = vld [vmem:[%s6075_s1 + $0x5a4] ss:$8 sps:$4 sm:$0xff]  }
 0x131   :  { %3285 = vmatprep.subr.bf16.mxu0 %v4506_v19  ;;  %v4602_v19 = vld [vmem:[%s6075_s1 + $0xba4] ss:$8 sps:$4 sm:$0xff]  }
 0x133   :  { %2968 = vmatpush1.bf16.msra.mxu1 %v4501_v20  ;;  %v4597_v20 = vld [vmem:[%s6075_s1 + $0x5a0] ss:$8 sps:$4 sm:$0xff]  }
 0x134   :  { %3286 = vmatpush1.bf16.msra.mxu0 %v4504_v21  ;;  %2969 = vmatprep.subr.bf16.mxu1 %v4509_v22  ;;  %v4600_v21 = vld [vmem:[%s6075_s1 + $0xba0] ss:$8 sps:$4 sm:$0xff]   ;;  %v4605_v22 = vld [vmem:[%s6075_s1 + $0x5b4] ss:$8 sps:$4 sm:$0xff]  }
 0x135   :  { %3287 = vmatprep.subr.bf16.mxu0 %v4512_v23  ;;  %v4608_v23 = vld [vmem:[%s6075_s1 + $0xbb4] ss:$8 sps:$4 sm:$0xff]  }
 0x137   :  { %2970 = vmatpush1.bf16.msra.mxu1 %v4507_v24  ;;  %v4603_v24 = vld [vmem:[%s6075_s1 + $0x5b0] ss:$8 sps:$4 sm:$0xff]  }
 0x138   :  { %3288 = vmatpush1.bf16.msra.mxu0 %v4510_v25  ;;  %2971 = vmatprep.subr.bf16.mxu1 %v4517_v26  ;;  %v4606_v25 = vld [vmem:[%s6075_s1 + $0xbb0] ss:$8 sps:$4 sm:$0xff]   ;;  %v4611_v26 = vld [vmem:[%s6075_s1 + $0x5c4] ss:$8 sps:$4 sm:$0xff]  }
 0x139   :  { %3289 = vmatprep.subr.bf16.mxu0 %v4522_v27  ;;  %v4614_v27 = vld [vmem:[%s6075_s1 + $0xbc4] ss:$8 sps:$4 sm:$0xff]  }
 0x13b   :  { %2972 = vmatpush1.bf16.msra.mxu1 %v4515_v28  ;;  %v4609_v28 = vld [vmem:[%s6075_s1 + $0x5c0] ss:$8 sps:$4 sm:$0xff]  }
 0x13c   :  { %3290 = vmatpush1.bf16.msra.mxu0 %v4520_v29  ;;  %2973 = vmatprep.subr.bf16.mxu1 %v4527_v30  ;;  %v4612_v29 = vld [vmem:[%s6075_s1 + $0xbc0] ss:$8 sps:$4 sm:$0xff]   ;;  %v4617_v30 = vld [vmem:[%s6075_s1 + $0x5d4] ss:$8 sps:$4 sm:$0xff]  }
 0x13d   :  { %3291 = vmatprep.subr.bf16.mxu0 %v4530_v31  ;;  %v4620_v31 = vld [vmem:[%s6075_s1 + $0xbd4] ss:$8 sps:$4 sm:$0xff]  }
 0x13f   :  { %2974 = vmatpush1.bf16.msra.mxu1 %v4525_v32  ;;  %v4615_v32 = vld [vmem:[%s6075_s1 + $0x5d0] ss:$8 sps:$4 sm:$0xff]  }
 0x140   :  { %3292 = vmatpush1.bf16.msra.mxu0 %v4528_v33  ;;  %2996 = vmatprep.subr.bf16.mxu1 %v4536_v34  ;;  %v4618_v33 = vld [vmem:[%s6075_s1 + $0xbd0] ss:$8 sps:$4 sm:$0xff]   ;;  %v4628_v34 = vld [vmem:[%s6075_s1 + $0x5e4] ss:$8 sps:$4 sm:$0xff]  }
 0x141   :  { %3314 = vmatprep.subr.bf16.mxu0 %v4542_v35  ;;  %v4632_v35 = vld [vmem:[%s6075_s1 + $0xbe4] ss:$8 sps:$4 sm:$0xff]  }
 0x142   :  { %2976 = vmatmul.mubr.bf16.vlgmr.msra.gmra.mrb[0].mxu1 %v4531_v36  ;;  %v4626_v36 = vld [vmem:[%s6075_s1 + $0x5e0] ss:$8 sps:$4 sm:$0xff]  }
 0x143   :  { %3294 = vmatmul.mubr.bf16.vlgmr.msra.gmra.mrb[0].mxu0 %v4537_v37  ;;  %2997 = vmatpush1.bf16.msra.mxu1 %v4534_v38  ;;  %v4630_v37 = vld [vmem:[%s6075_s1 + $0xbe0] ss:$8 sps:$4 sm:$0xff]   ;;  %v4635_v38 = vld [vmem:[%s6075_s1 + $0x5f4] ss:$8 sps:$4 sm:$0xff]  }
 0x144   :  { %3315 = vmatpush1.bf16.msra.mxu0 %v4540_v39  ;;  %2998 = vmatprep.subr.bf16.mxu1 %v4545_v40  ;;  %v4638_v39 = vld [vmem:[%s6075_s1 + $0xbf4] ss:$8 sps:$4 sm:$0xff]   ;;  %v4633_v40 = vld [vmem:[%s6075_s1 + $0x5f0] ss:$8 sps:$4 sm:$0xff]  }
 0x145   :  { %3316 = vmatprep.subr.bf16.mxu0 %v4548_v41  ;;  %2985 = vmatprep.mubr.bf16.mxu1 %v4621_v42  ;;  %v4636_v41 = vld [vmem:[%s6075_s1 + $0xbf0] ss:$8 sps:$4 sm:$0xff]   ;;  %v4647_v42 = vld [vmem:[%s6075_s1 + $0xc04] ss:$8 sps:$4 sm:$0xff]  }
 0x146   :  { %3303 = vmatprep.mubr.bf16.mxu0 %v4623_v43  ;;  %v4639_v43 = vld [vmem:[%s6076_s0 + $0x28] ss:$100 sps:$4 sm:$0xff]  }
 0x147   :  { %2999 = vmatpush1.bf16.msra.mxu1 %v4543_v44  ;;  %v4642_v44 = vld [vmem:[%s6076_s0 + $0x58] ss:$100 sps:$4 sm:$0xff]  }
 0x148   :  { %3317 = vmatpush1.bf16.msra.mxu0 %v4546_v45  ;;  %3000 = vmatprep.subr.bf16.mxu1 %v4551_v46  ;;  %v4645_v45 = vld [vmem:[%s6075_s1 + $0xc00] ss:$8 sps:$4 sm:$0xff]   ;;  %v4650_v46 = vld [vmem:[%s6075_s1 + $0xc14] ss:$8 sps:$4 sm:$0xff]  }
 0x149   :  { %3318 = vmatprep.subr.bf16.mxu0 %v4554_v47  ;;  %v4651_v47 = vld [vmem:[%s6076_s0 + $0xf4] ss:$100 sps:$4 sm:$0xff]  }
 0x14a   :  { %2986 = vmatmul.mubr.bf16.gmra.mrb[4].mxu1 %v4625_v48  ;;  %v4653_v48 = vld [vmem:[%s6076_s0 + $0x124] ss:$100 sps:$4 sm:$0xff]  }
 0x14b   :  { %3304 = vmatmul.mubr.bf16.gmra.mrb[4].mxu0 %v4629_v49  ;;  %3001 = vmatpush1.bf16.msra.mxu1 %v4549_v50  ;;  %v4648_v49 = vld [vmem:[%s6075_s1 + $0xc10] ss:$8 sps:$4 sm:$0xff]   ;;  %v4659_v50 = vld [vmem:[%s6075_s1 + $0xc24] ss:$8 sps:$4 sm:$0xff]  }
 0x14c   :  { %3319 = vmatpush1.bf16.msra.mxu0 %v4552_v51  ;;  %3002 = vmatprep.subr.bf16.mxu1 %v4557_v52  ;;  %v4655_v51 = vld [vmem:[%s6076_s0 + $0xf0] ss:$100 sps:$4 sm:$0xff]   ;;  %v4656_v52 = vld [vmem:[%s6076_s0 + $0x120] ss:$100 sps:$4 sm:$0xff]  }
 0x14d   :  { %3320 = vmatprep.subr.bf16.mxu0 %v4560_v53  ;;  %3028 = vmatprep.mubr.bf16.mxu1 %v4641_v54  ;;  %v4657_v53 = vld [vmem:[%s6075_s1 + $0xc20] ss:$8 sps:$4 sm:$0xff]   ;;  %v4662_v54 = vld [vmem:[%s6075_s1 + $0xc34] ss:$8 sps:$4 sm:$0xff]  }
 0x14e   :  { %3346 = vmatprep.mubr.bf16.mxu0 %v4644_v55  ;;  %v4660_v55 = vld [vmem:[%s6075_s1 + $0xc30] ss:$8 sps:$4 sm:$0xff]  }
 0x14f   :  { %3003 = vmatpush1.bf16.msra.mxu1 %v4555_v56  ;;  %v4665_v56 = vld [vmem:[%s6075_s1 + $0xc44] ss:$8 sps:$4 sm:$0xff]  }
 0x150   :  { %3321 = vmatpush1.bf16.msra.mxu0 %v4558_v57  ;;  %3004 = vmatprep.subr.bf16.mxu1 %v4563_v58  ;;  %v4677_v57 = vmov 0   ;;  %v4663_v58 = vld [vmem:[%s6075_s1 + $0xc40] ss:$8 sps:$4 sm:$0xff]  }
 0x151   :  { %3322 = vmatprep.subr.bf16.mxu0 %v4566_v59  ;;  %v4668_v59 = vld [vmem:[%s6075_s1 + $0xc54] ss:$8 sps:$4 sm:$0xff]  }
 0x153   :  { %3005 = vmatpush1.bf16.msra.mxu1 %v4561_v60  ;;  %v4666_v60 = vld [vmem:[%s6075_s1 + $0xc50] ss:$8 sps:$4 sm:$0xff]  }
 0x154   :  { %3323 = vmatpush1.bf16.msra.mxu0 %v4564_v61  ;;  %3006 = vmatprep.subr.bf16.mxu1 %v4569_v62  ;;  %v4671_v61 = vld [vmem:[%s6075_s1 + $0xc64] ss:$8 sps:$4 sm:$0xff]   ;;  %v4669_v62 = vld [vmem:[%s6075_s1 + $0xc60] ss:$8 sps:$4 sm:$0xff]  }
 0x155   :  { %3324 = vmatprep.subr.bf16.mxu0 %v4572_v63  ;;  %v4674_v63 = vld [vmem:[%s6075_s1 + $0xc74] ss:$8 sps:$4 sm:$0xff]  }
 0x157   :  { %3007 = vmatpush1.bf16.msra.mxu1 %v4567_v0  ;;  %v4672_v0 = vld [vmem:[%s6075_s1 + $0xc70] ss:$8 sps:$4 sm:$0xff]  }
 0x158   :  { %3325 = vmatpush1.bf16.msra.mxu0 %v4570_v1  ;;  %3008 = vmatprep.subr.bf16.mxu1 %v4575_v2  ;;  %v4675_v1 = vld [vmem:[%s6076_s0 + $0x60] ss:$100 sps:$4 sm:$0xff]   ;;  %v4676_v2 = vld [vmem:[%s6076_s0 + $0x128] ss:$100 sps:$4 sm:$0xff]  }
 0x159   :  { %3326 = vmatprep.subr.bf16.mxu0 %v4578_v3  ;;  %v469_v3 = vlaneseq }
 0x15b   :  { %3009 = vmatpush1.bf16.msra.mxu1 %v4573_v4  ;;  %v470_v4 = vshrl.u32 %v469_v3, 7 }
 0x15c   :  { %3327 = vmatpush1.bf16.msra.mxu0 %v4576_v5  ;;  %3010 = vmatprep.subr.bf16.mxu1 %v4581_v6 }
 0x15d   :  { %3328 = vmatprep.subr.bf16.mxu0 %v4584_v7 }
 0x15f   :  { %3011 = vmatpush1.bf16.msra.mxu1 %v4579_v8  ;;  %v471_v8 = vsub.s32 0, %v470_v4 }
 0x160   :  { %3329 = vmatpush1.bf16.msra.mxu0 %v4582_v9  ;;  %3012 = vmatprep.subr.bf16.mxu1 %v4587_v10  ;;  %v467_v10 = vld [vmem:[%s6077_s2] sm:$0x3] }
 0x161   :  { %3330 = vmatprep.subr.bf16.mxu0 %v4590_v11  ;;  %v475_v11 = vsub.s32 1, %v470_v4 }
 0x163   :  { %3013 = vmatpush1.bf16.msra.mxu1 %v4585_v12  ;;  %v472_v12 = vrot.slane %v467_v10, %v471_v8 }
 0x164   :  { %3331 = vmatpush1.bf16.msra.mxu0 %v4588_v13  ;;  %3014 = vmatprep.subr.bf16.mxu1 %v4593_v14  ;;  %v476_v13 = vrot.slane %v467_v10, %v475_v11 }
 0x165   :  { %3332 = vmatprep.subr.bf16.mxu0 %v4596_v15 }
 0x167   :  { %3015 = vmatpush1.bf16.msra.mxu1 %v4591_v16 }
 0x168   :  { %3333 = vmatpush1.bf16.msra.mxu0 %v4594_v17  ;;  %3016 = vmatprep.subr.bf16.mxu1 %v4599_v18 }
 0x169   :  { %3334 = vmatprep.subr.bf16.mxu0 %v4602_v19 }
 0x16b   :  { %3017 = vmatpush1.bf16.msra.mxu1 %v4597_v20 }
 0x16c   :  { %3335 = vmatpush1.bf16.msra.mxu0 %v4600_v21  ;;  %3018 = vmatprep.subr.bf16.mxu1 %v4605_v22 }
 0x16d   :  { %3336 = vmatprep.subr.bf16.mxu0 %v4608_v23 }
 0x16f   :  { %3019 = vmatpush1.bf16.msra.mxu1 %v4603_v24 }
 0x170   :  { %3337 = vmatpush1.bf16.msra.mxu0 %v4606_v25  ;;  %3020 = vmatprep.subr.bf16.mxu1 %v4611_v26 }
 0x171   :  { %3338 = vmatprep.subr.bf16.mxu0 %v4614_v27 }
 0x173   :  { %3021 = vmatpush1.bf16.msra.mxu1 %v4609_v28 }
 0x174   :  { %3339 = vmatpush1.bf16.msra.mxu0 %v4612_v29  ;;  %3022 = vmatprep.subr.bf16.mxu1 %v4617_v30 }
 0x175   :  { %3340 = vmatprep.subr.bf16.mxu0 %v4620_v31 }
 0x177   :  { %3023 = vmatpush1.bf16.msra.mxu1 %v4615_v32 }
 0x178   :  { %3341 = vmatpush1.bf16.msra.mxu0 %v4618_v33  ;;  %3024 = vmatprep.subr.bf16.mxu1 %v4628_v34 }
 0x179   :  { %3342 = vmatprep.subr.bf16.mxu0 %v4632_v35 }
 0x17b   :  { %3025 = vmatpush1.bf16.msra.mxu1 %v4626_v36 }
 0x17c   :  { %3343 = vmatpush1.bf16.msra.mxu0 %v4630_v37  ;;  %3026 = vmatprep.subr.bf16.mxu1 %v4635_v38 }
 0x17d   :  { %3344 = vmatprep.subr.bf16.mxu0 %v4638_v39 }
 0x17f   :  { %3027 = vmatpush1.bf16.msra.mxu1 %v4633_v40 }
 0x180   :  { %3345 = vmatpush1.bf16.msra.mxu0 %v4636_v41  ;;  %3882 = vmatprep.subr.bf16.mxu1 %v4647_v42 }
 0x181   :  { %3367 = vmatprep.subr.bf16.mxu0 %v4647_v42 }
 0x182   :  { %3029 = vmatmul.mubr.bf16.vlgmr.msra.gmra.mrb[0].mxu1 %v4639_v43 }
 0x183   :  { %3347 = vmatmul.mubr.bf16.vlgmr.msra.gmra.mrb[0].mxu0 %v4642_v44  ;;  %3890 = vmatpush1.bf16.msra.mxu1 %v4645_v45 }
 0x184   :  { %3368 = vmatpush1.bf16.msra.mxu0 %v4645_v45  ;;  %3883 = vmatprep.subr.bf16.mxu1 %v4650_v46 }
 0x185   :  { %3369 = vmatprep.subr.bf16.mxu0 %v4650_v46  ;;  %3038 = vmatprep.mubr.bf16.mxu1 %v4651_v47 }
 0x186   :  { %3356 = vmatprep.mubr.bf16.mxu0 %v4653_v48 }
 0x187   :  { %3891 = vmatpush1.bf16.msra.mxu1 %v4648_v49 }
 0x188   :  { %3370 = vmatpush1.bf16.msra.mxu0 %v4648_v49  ;;  %3884 = vmatprep.subr.bf16.mxu1 %v4659_v50 }
 0x189   :  { %3371 = vmatprep.subr.bf16.mxu0 %v4659_v50 }
 0x18a   :  { %3039 = vmatmul.mubr.bf16.gmra.mrb[4].mxu1 %v4655_v51 }
 0x18b   :  { %3357 = vmatmul.mubr.bf16.gmra.mrb[4].mxu0 %v4656_v52  ;;  %3892 = vmatpush1.bf16.msra.mxu1 %v4657_v53 }
 0x18c   :  { %3372 = vmatpush1.bf16.msra.mxu0 %v4657_v53  ;;  %3885 = vmatprep.subr.bf16.mxu1 %v4662_v54 }
 0x18d   :  { %3373 = vmatprep.subr.bf16.mxu0 %v4662_v54  ;;  %3399 = vmatprep.mubr.bf16.mxu0 %v4677_v57 }
 0x18e   :  { %3409 = vmatprep.mubr.bf16.mxu1 %v4677_v57 }
 0x18f   :  { %3893 = vmatpush1.bf16.msra.mxu1 %v4660_v55 }
 0x190   :  { %3374 = vmatpush1.bf16.msra.mxu0 %v4660_v55  ;;  %3886 = vmatprep.subr.bf16.mxu1 %v4665_v56 }
 0x191   :  { %3375 = vmatprep.subr.bf16.mxu0 %v4665_v56 }
 0x193   :  { %3894 = vmatpush1.bf16.msra.mxu1 %v4663_v58 }
 0x194   :  { %3376 = vmatpush1.bf16.msra.mxu0 %v4663_v58  ;;  %3887 = vmatprep.subr.bf16.mxu1 %v4668_v59 }
 0x195   :  { %3377 = vmatprep.subr.bf16.mxu0 %v4668_v59 }
 0x197   :  { %3895 = vmatpush1.bf16.msra.mxu1 %v4666_v60 }
 0x198   :  { %3378 = vmatpush1.bf16.msra.mxu0 %v4666_v60  ;;  %3888 = vmatprep.subr.bf16.mxu1 %v4671_v61 }
 0x199   :  { %3379 = vmatprep.subr.bf16.mxu0 %v4671_v61 }
 0x19b   :  { %3896 = vmatpush1.bf16.msra.mxu1 %v4669_v62 }
 0x19c   :  { %3380 = vmatpush1.bf16.msra.mxu0 %v4669_v62  ;;  %3889 = vmatprep.subr.bf16.mxu1 %v4674_v63 }
 0x19d   :  { %3381 = vmatprep.subr.bf16.mxu0 %v4674_v63 }
 0x19f   :  { %3897 = vmatpush1.bf16.msra.mxu1 %v4672_v0 }
 0x1a0   :  { %3382 = vmatpush1.bf16.msra.mxu0 %v4672_v0 }
 0x1a2   :  { %3410 = vmatmul.mubr.bf16.vlgmr.msra.gmra.mrb[8].mxu1 %v4676_v2 }
 0x1a3   :  { %3400 = vmatmul.mubr.bf16.vlgmr.msra.gmra.mrb[0].mxu0 %v4675_v1 }
 0x255   :  { %v3030_v5 = vpop.f32.mrb[0].mxu1 }
 0x256   :  { %v3032_v6 = vpop.f32.mrb[1].mxu1  ;;  %v3898_v30 = vadd.f32 %v3030_v5, %v472_v12 }
 0x257   :  { %v3034_v7 = vpop.f32.mrb[2].mxu1  ;;  %v3900_v31 = vadd.f32 %v3032_v6, %v476_v13 }
 0x258   :  { %v3036_v9 = vpop.f32.mrb[3].mxu1  ;;  %v3902_v34 = vadd.f32 %v3034_v7, %v472_v12 }
 0x259   :  { %v3904_v39 = vadd.f32 %v3036_v9, %v476_v13 }
 0x25d   :  { %v3040_v14 = vpop.f32.mrb[4].mxu1 }
 0x25e   :  { %v3358_v15 = vpop.f32.mrb[4].mxu0  ;;  %v3906_v16 = vadd.f32 %v3040_v14, %v472_v12  ;;  %v3042_v17 = vpop.f32.mrb[5].mxu1 }
 0x25f   :  { %v3360_v18 = vpop.f32.mrb[5].mxu0  ;;  %v3909_v19 = vadd.f32 %v3042_v17, %v476_v13  ;;  %v3044_v20 = vpop.f32.mrb[6].mxu1 }
 0x260   :  { %v3362_v21 = vpop.f32.mrb[6].mxu0  ;;  %v3907_v22 = vadd.f32 %v3906_v16, %v3358_v15  ;;  %v3912_v23 = vadd.f32 %v3044_v20, %v472_v12  ;;  %v3046_v24 = vpop.f32.mrb[7].mxu1 }
 0x261   :  { %v3364_v25 = vpop.f32.mrb[7].mxu0  ;;  %v3910_v26 = vadd.f32 %v3909_v19, %v3360_v18  ;;  %v3915_v27 = vadd.f32 %v3046_v24, %v476_v13 }
 0x262   :  { %v3913_v28 = vadd.f32 %v3912_v23, %v3362_v21 }
 0x263   :  { %v3916_v29 = vadd.f32 %v3915_v27, %v3364_v25 }
 0x275   :  { %v3411_v33 = vpop.f32.mrb[8].mxu1 }
 0x276   :  { %v3401_v32 = vpop.f32.mrb[0].mxu0  ;;  %v3908_v36 = vadd.f32 %v3907_v22, %v3411_v33  ;;  %v3413_v38 = vpop.f32.mrb[9].mxu1 }
 0x277   :  { %v3899_v35 = vadd.f32 %v3898_v30, %v3401_v32  ;;  %v3403_v37 = vpop.f32.mrb[1].mxu0  ;;  %v3911_v41 = vadd.f32 %v3910_v26, %v3413_v38  ;;  %v3415_v43 = vpop.f32.mrb[10].mxu1 }
 0x278   :  { %v3901_v40 = vadd.f32 %v3900_v31, %v3403_v37  ;;  %v3405_v42 = vpop.f32.mrb[2].mxu0  ;;  %3424 = vst [vmem:[%s6078_s3 + $0x20] sm:$0xff] %v3908_v36  ;;  %v3914_v45 = vadd.f32 %v3913_v28, %v3415_v43  ;;  %v3417_v47 = vpop.f32.mrb[11].mxu1 }
 0x279   :  { %3420 = vst [vmem:[%s6078_s3] sm:$0xff] %v3899_v35  ;;  %v3903_v44 = vadd.f32 %v3902_v34, %v3405_v42  ;;  %v3407_v46 = vpop.f32.mrb[3].mxu0  ;;  %3425 = vst [vmem:[%s6078_s3 + $0x28] sm:$0xff] %v3911_v41  ;;  %v3917_v49 = vadd.f32 %v3916_v29, %v3417_v47 }
 0x27a   :  { %3421 = vst [vmem:[%s6078_s3 + $0x8] sm:$0xff] %v3901_v40  ;;  %v3905_v48 = vadd.f32 %v3904_v39, %v3407_v46  ;;  %3426 = vst [vmem:[%s6078_s3 + $0x30] sm:$0xff] %v3914_v45 }
 0x27b   :  { %3422 = vst [vmem:[%s6078_s3 + $0x10] sm:$0xff] %v3903_v44  ;;  %3427 = vst [vmem:[%s6078_s3 + $0x38] sm:$0xff] %v3917_v49 }
 0x27c   :  { %3423 = vst [vmem:[%s6078_s3 + $0x18] sm:$0xff] %v3905_v48 }

// kernel: forward.23
= control target key start
LH: loop header
LB: loop body
LE: loop exit
PB: predicated region body
PF: predicated region fallthrough
CT: control target
= control target key end

     0   :  { %v157_v28 = vlaneseq  ;;  %v1029_v36 = vmov 1966171168   ;;  %s1277_s0 = inlined_call_operand.vmem [shape: bf16[2,1024], index: 0, kind: input, shape index: {}]   ;;  %s1278_s1 = inlined_call_operand.vmem [shape: bf16[1024,10], index: 1, kind: input, shape index: {}]   ;;  %s1279_s2 = inlined_call_operand.vmem [shape: f32[1,10], index: 2, kind: input, shape index: {}]   ;;  %s1280_s3 = inlined_call_operand.hbm [shape: f32[2,10], index: 3, kind: output, shape index: {}]  }
   0x1   :  { %v936_v0 = vld [vmem:[%s1278_s1 + $0x40] sm:$0xff]   ;;  %v940_v4 = vld [vmem:[%s1278_s1 + $0x48] sm:$0xff]   ;;  %v944_v8 = vld [vmem:[%s1278_s1 + $0x50] sm:$0xff]   ;;  %v155_v37 = vunpack.c.l.s4 %v1029_v36 }
   0x2   :  { %v937_v1 = vld [vmem:[%s1278_s1 + $0xc0] sm:$0xff]   ;;  %846 = vmatprep.subr.bf16.mxu0 %v936_v0  ;;  %v941_v5 = vld [vmem:[%s1278_s1 + $0xc8] sm:$0xff]   ;;  %v945_v9 = vld [vmem:[%s1278_s1 + $0xd0] sm:$0xff]   ;;  %v158_v33 = vshrl.u32 %v157_v28, 7 }
   0x3   :  { %v938_v2 = vld [vmem:[%s1278_s1] sm:$0xff]   ;;  %868 = vmatprep.subr.bf16.mxu1 %v937_v1  ;;  %v942_v6 = vld [vmem:[%s1278_s1 + $0x8] sm:$0xff]   ;;  %v946_v10 = vld [vmem:[%s1278_s1 + $0x10] sm:$0xff]   ;;  %v156_v40 = vunpack.c.0.s8 %v155_v37 }
   0x4   :  { %v939_v3 = vld [vmem:[%s1278_s1 + $0x80] sm:$0xff]   ;;  %847 = vmatpush3.bf16.msra.mxu0 %v938_v2  ;;  %v943_v7 = vld [vmem:[%s1278_s1 + $0x88] sm:$0xff]   ;;  %v947_v11 = vld [vmem:[%s1278_s1 + $0x90] sm:$0xff]  }
   0x5   :  { %869 = vmatpush3.bf16.msra.mxu1 %v939_v3  ;;  %848 = vmatprep.subr.bf16.mxu0 %v940_v4  ;;  %v948_v12 = vld [vmem:[%s1278_s1 + $0x58] sm:$0xff]   ;;  %v952_v16 = vld [vmem:[%s1278_s1 + $0x60] sm:$0xff]   ;;  %v956_v20 = vld [vmem:[%s1278_s1 + $0x68] sm:$0xff]   ;;  %v1156_v41 = vsub.s32 %v156_v40, %v158_v33 }
   0x6   :  { %870 = vmatprep.subr.bf16.mxu1 %v941_v5  ;;  %v949_v13 = vld [vmem:[%s1278_s1 + $0xd8] sm:$0xff]   ;;  %v953_v17 = vld [vmem:[%s1278_s1 + $0xe0] sm:$0xff]   ;;  %v957_v21 = vld [vmem:[%s1278_s1 + $0xe8] sm:$0xff]  }
   0x7   :  { %v950_v14 = vld [vmem:[%s1278_s1 + $0x18] sm:$0xff]   ;;  %v954_v18 = vld [vmem:[%s1278_s1 + $0x20] sm:$0xff]   ;;  %v958_v22 = vld [vmem:[%s1278_s1 + $0x28] sm:$0xff]  }
   0x8   :  { %849 = vmatpush3.bf16.msra.mxu0 %v942_v6  ;;  %v951_v15 = vld [vmem:[%s1278_s1 + $0x98] sm:$0xff]   ;;  %v955_v19 = vld [vmem:[%s1278_s1 + $0xa0] sm:$0xff]   ;;  %v959_v23 = vld [vmem:[%s1278_s1 + $0xa8] sm:$0xff]  }
   0x9   :  { %871 = vmatpush3.bf16.msra.mxu1 %v943_v7  ;;  %850 = vmatprep.subr.bf16.mxu0 %v944_v8  ;;  %v960_v24 = vld [vmem:[%s1278_s1 + $0x70] sm:$0xff]   ;;  %v964_v29 = vld [vmem:[%s1278_s1 + $0x78] sm:$0xff]   ;;  %v16_v34 = vld [vmem:[%s1277_s0] sm:$0xff] }
   0xa   :  { %872 = vmatprep.subr.bf16.mxu1 %v945_v9  ;;  %v961_v25 = vld [vmem:[%s1278_s1 + $0xf0] sm:$0xff]   ;;  %v965_v30 = vld [vmem:[%s1278_s1 + $0xf8] sm:$0xff]   ;;  %v969_v35 = vld [vmem:[%s1278_s1 + $0x140] sm:$0xff]   ;;  %v153_v39 = vcombine.high %v16_v34, %v16_v34  ;;  %v160_v42 = vrot.slane %v16_v34, %v1156_v41 }
   0xb   :  { %v962_v26 = vld [vmem:[%s1278_s1 + $0x30] sm:$0xff]   ;;  %v966_v31 = vld [vmem:[%s1278_s1 + $0x38] sm:$0xff]   ;;  %v970_v38 = vld [vmem:[%s1278_s1 + $0x1c0] sm:$0xff]  }
   0xc   :  { %851 = vmatpush3.bf16.msra.mxu0 %v946_v10  ;;  %v963_v27 = vld [vmem:[%s1278_s1 + $0xb0] sm:$0xff]   ;;  %v967_v32 = vld [vmem:[%s1278_s1 + $0xb8] sm:$0xff]   ;;  %v1160_v43 = vrot.slane %v153_v39, %v1156_v41  ;;  %v168_v44 = vcombine.high %v160_v42, %v160_v42  ;;  %v176_v45 = vrot.slane %v160_v42, %v1156_v41  ;;  %v971_v48 = vld [vmem:[%s1278_s1 + $0x100] sm:$0xff]  }
   0xd   :  { %873 = vmatpush3.bf16.msra.mxu1 %v947_v11  ;;  %852 = vmatprep.subr.bf16.mxu0 %v948_v12  ;;  %v973_v51 = vld [vmem:[%s1278_s1 + $0x148] sm:$0xff]   ;;  %v972_v53 = vld [vmem:[%s1278_s1 + $0x180] sm:$0xff]   ;;  %v977_v57 = vld [vmem:[%s1278_s1 + $0x150] sm:$0xff]  }
   0xe   :  { %874 = vmatprep.subr.bf16.mxu1 %v949_v13  ;;  %v169_v46 = vcombine.high %v1160_v43, %v1160_v43  ;;  %v190_v47 = vrot.slane %v168_v44, %v1156_v41  ;;  %v198_v50 = vcombine.high %v176_v45, %v176_v45  ;;  %v974_v54 = vld [vmem:[%s1278_s1 + $0x1c8] sm:$0xff]   ;;  %v978_v59 = vld [vmem:[%s1278_s1 + $0x1d0] sm:$0xff]   ;;  %v981_v61 = vld [vmem:[%s1278_s1 + $0x158] sm:$0xff]  }
   0xf   :  { %v975_v56 = vld [vmem:[%s1278_s1 + $0x108] sm:$0xff]   ;;  %v979_v60 = vld [vmem:[%s1278_s1 + $0x110] sm:$0xff]   ;;  %v982_v63 = vld [vmem:[%s1278_s1 + $0x1d8] sm:$0xff]  }
  0x10   :  { %853 = vmatpush3.bf16.msra.mxu0 %v950_v14  ;;  %v197_v49 = vrot.slane %v169_v46, %v1156_v41  ;;  %626 = vmatprep.mubr.bf16.mxu0 %v190_v47  ;;  %v200_v52 = vcombine.high %v190_v47, %v190_v47  ;;  %v976_v58 = vld [vmem:[%s1278_s1 + $0x188] sm:$0xff]   ;;  %v980_v62 = vld [vmem:[%s1278_s1 + $0x190] sm:$0xff]   ;;  %v983_v0 = vld [vmem:[%s1278_s1 + $0x118] sm:$0xff]  }
  0x11   :  { %875 = vmatpush3.bf16.msra.mxu1 %v951_v15  ;;  %854 = vmatprep.subr.bf16.mxu0 %v952_v16  ;;  %v985_v1 = vld [vmem:[%s1278_s1 + $0x160] sm:$0xff]   ;;  %v984_v2 = vld [vmem:[%s1278_s1 + $0x198] sm:$0xff]   ;;  %v989_v5 = vld [vmem:[%s1278_s1 + $0x168] sm:$0xff]  }
  0x12   :  { %876 = vmatprep.subr.bf16.mxu1 %v953_v17  ;;  %v201_v55 = vcombine.high %v197_v49, %v197_v49  ;;  %666 = vmatprep.mubr.bf16.mxu1 %v200_v52  ;;  %v986_v3 = vld [vmem:[%s1278_s1 + $0x1e0] sm:$0xff]   ;;  %v990_v7 = vld [vmem:[%s1278_s1 + $0x1e8] sm:$0xff]   ;;  %v993_v9 = vld [vmem:[%s1278_s1 + $0x170] sm:$0xff]  }
  0x13   :  { %v987_v4 = vld [vmem:[%s1278_s1 + $0x120] sm:$0xff]   ;;  %v991_v8 = vld [vmem:[%s1278_s1 + $0x128] sm:$0xff]  }
  0x14   :  { %855 = vmatpush3.bf16.msra.mxu0 %v954_v18  ;;  %v988_v6 = vld [vmem:[%s1278_s1 + $0x1a0] sm:$0xff]  }
  0x15   :  { %877 = vmatpush3.bf16.msra.mxu1 %v955_v19  ;;  %856 = vmatprep.subr.bf16.mxu0 %v956_v20 }
  0x16   :  { %878 = vmatprep.subr.bf16.mxu1 %v957_v21 }
  0x18   :  { %857 = vmatpush3.bf16.msra.mxu0 %v958_v22 }
  0x19   :  { %879 = vmatpush3.bf16.msra.mxu1 %v959_v23  ;;  %858 = vmatprep.subr.bf16.mxu0 %v960_v24 }
  0x1a   :  { %880 = vmatprep.subr.bf16.mxu1 %v961_v25 }
  0x1c   :  { %859 = vmatpush3.bf16.msra.mxu0 %v962_v26 }
  0x1d   :  { %881 = vmatpush3.bf16.msra.mxu1 %v963_v27  ;;  %860 = vmatprep.subr.bf16.mxu0 %v964_v29 }
  0x1e   :  { %882 = vmatprep.subr.bf16.mxu1 %v965_v30 }
  0x20   :  { %861 = vmatpush3.bf16.msra.mxu0 %v966_v31 }
  0x21   :  { %883 = vmatpush3.bf16.msra.mxu1 %v967_v32  ;;  %890 = vmatprep.subr.bf16.mxu0 %v969_v35 }
  0x22   :  { %912 = vmatprep.subr.bf16.mxu1 %v970_v38 }
  0x23   :  { %627 = vmatmul.mubr.bf16.vlgmr.msra.gmra.mrb[0].mxu0 %v176_v45 }
  0x24   :  { %891 = vmatpush3.bf16.msra.mxu0 %v971_v48  ;;  %667 = vmatmul.mubr.bf16.vlgmr.msra.gmra.mrb[0].mxu1 %v198_v50 }
  0x25   :  { %892 = vmatprep.subr.bf16.mxu0 %v973_v51  ;;  %913 = vmatpush3.bf16.msra.mxu1 %v972_v53 }
  0x26   :  { %706 = vmatprep.mubr.bf16.mxu0 %v197_v49  ;;  %914 = vmatprep.subr.bf16.mxu1 %v974_v54 }
  0x27   :  { %746 = vmatprep.mubr.bf16.mxu1 %v201_v55 }
  0x28   :  { %893 = vmatpush3.bf16.msra.mxu0 %v975_v56 }
  0x29   :  { %894 = vmatprep.subr.bf16.mxu0 %v977_v57  ;;  %915 = vmatpush3.bf16.msra.mxu1 %v976_v58 }
  0x2a   :  { %916 = vmatprep.subr.bf16.mxu1 %v978_v59 }
  0x2c   :  { %895 = vmatpush3.bf16.msra.mxu0 %v979_v60 }
  0x2d   :  { %896 = vmatprep.subr.bf16.mxu0 %v981_v61  ;;  %917 = vmatpush3.bf16.msra.mxu1 %v980_v62 }
  0x2e   :  { %918 = vmatprep.subr.bf16.mxu1 %v982_v63 }
  0x30   :  { %897 = vmatpush3.bf16.msra.mxu0 %v983_v0 }
  0x31   :  { %898 = vmatprep.subr.bf16.mxu0 %v985_v1  ;;  %919 = vmatpush3.bf16.msra.mxu1 %v984_v2 }
  0x32   :  { %920 = vmatprep.subr.bf16.mxu1 %v986_v3 }
  0x34   :  { %899 = vmatpush3.bf16.msra.mxu0 %v987_v4 }
  0x35   :  { %900 = vmatprep.subr.bf16.mxu0 %v989_v5 }
  0x36   :  { %8 = vsyncpa [#allocation3], 0  ;;  %921 = vmatpush3.bf16.msra.mxu1 %v988_v6  ;;  %v992_v10 = vld [vmem:[%s1278_s1 + $0x1a8] sm:$0xff]   ;;  %v994_v11 = vld [vmem:[%s1278_s1 + $0x1f0] sm:$0xff]   ;;  %v183_v17 = vrot.slane %v1160_v43, %v1156_v41  ;;  %vm754_vm0 = vcmask 74752  }
  0x37   :  { %922 = vmatprep.subr.bf16.mxu1 %v990_v7  ;;  %v995_v12 = vld [vmem:[%s1278_s1 + $0x130] sm:$0xff]   ;;  %v997_v13 = vld [vmem:[%s1278_s1 + $0x178] sm:$0xff]   ;;  %v781_v21 = vld [vmem:[%s1279_s2] ss:$0 sm:$0xff] }
  0x38   :  { %901 = vmatpush3.bf16.msra.mxu0 %v991_v8  ;;  %v996_v14 = vld [vmem:[%s1278_s1 + $0x1b0] sm:$0xff]   ;;  %v998_v15 = vld [vmem:[%s1278_s1 + $0x1f8] sm:$0xff]   ;;  %v199_v19 = vcombine.high %v183_v17, %v183_v17 }
  0x39   :  { %902 = vmatprep.subr.bf16.mxu0 %v993_v9  ;;  %v999_v16 = vld [vmem:[%s1278_s1 + $0x138] sm:$0xff]  }
  0x3a   :  { %923 = vmatpush3.bf16.msra.mxu1 %v992_v10  ;;  %v1000_v18 = vld [vmem:[%s1278_s1 + $0x1b8] sm:$0xff]   ;;  %s1030_s1 = smov [#allocation2]  }
  0x3b   :  { %924 = vmatprep.subr.bf16.mxu1 %v994_v11  ;;  %s773_s2 = sshll.u32 %s1030_s1, 4  ;;  %s774_s2 = int_to_ptr.vmem [resolvable:$true] %s773_s2 }
  0x3c   :  { %903 = vmatpush3.bf16.msra.mxu0 %v995_v12  ;;  %s1005_s6 = scalar_lea.vmem %s774_s2, 32  ;;  %p1010_p1 = scmp.lt.s32.totalorder %s774_s2, %s774_s2 }
  0x3d   :  { %904 = vmatprep.subr.bf16.mxu0 %v997_v13  ;;  %p1006_p0 = scmp.ne.s32.totalorder %s774_s2, %s1005_s6  ;;  %p1011_p2 = scmp.lt.s32.totalorder %s1005_s6, %s1005_s6 }
  0x3e   :  { %925 = vmatpush3.bf16.msra.mxu1 %v996_v14 }
  0x3f   :  { %926 = vmatprep.subr.bf16.mxu1 %v998_v15  ;;  %p1012_p3 = por %p1011_p2, %p1010_p1 }
  0x40   :  { %905 = vmatpush3.bf16.msra.mxu0 %v999_v16 }
  0x41   :  { %p1013_p4 = pnand %p1012_p3, %p1006_p0 }
  0x42   :  { %927 = vmatpush3.bf16.msra.mxu1 %v1000_v18 }
  0x43   :  { %707 = vmatmul.mubr.bf16.vlgmr.msra.gmra.mrb[4].mxu0 %v183_v17 }
  0x45   :  { %747 = vmatmul.mubr.bf16.vlgmr.msra.gmra.mrb[4].mxu1 %v199_v19 }
  0xf6   :  { %v862_v20 = vpop.f32.mrb[0].mxu0 }
  0xf7   :  { %v863_v22 = vpop.f32.mrb[1].mxu0  ;;  %v884_v23 = vpop.f32.mrb[0].mxu1 }
  0xf8   :  { %v864_v24 = vadd.f32 %v863_v22, %v862_v20  ;;  %v865_v25 = vpop.f32.mrb[2].mxu0  ;;  %v885_v26 = vpop.f32.mrb[1].mxu1 }
  0xf9   :  { %v866_v27 = vpop.f32.mrb[3].mxu0  ;;  %v886_v29 = vadd.f32 %v885_v26, %v884_v23  ;;  %v887_v30 = vpop.f32.mrb[2].mxu1 }
  0xfa   :  { %v629_v28 = vadd.f32 %v864_v24, %v781_v21  ;;  %v888_v31 = vpop.f32.mrb[3].mxu1 }
  0xfc   :  { %v669_v32 = vadd.f32 %v886_v29, %v629_v28 }
 0x116   :  { %v906_v33 = vpop.f32.mrb[4].mxu0 }
 0x117   :  { %v907_v34 = vpop.f32.mrb[5].mxu0 }
 0x118   :  { %v928_v35 = vpop.f32.mrb[4].mxu1  ;;  %v908_v36 = vadd.f32 %v907_v34, %v906_v33  ;;  %v909_v37 = vpop.f32.mrb[6].mxu0 }
 0x119   :  { %v929_v38 = vpop.f32.mrb[5].mxu1  ;;  %v910_v39 = vpop.f32.mrb[7].mxu0 }
 0x11a   :  { %v709_v40 = vadd.f32 %v908_v36, %v669_v32  ;;  %v930_v41 = vadd.f32 %v929_v38, %v928_v35  ;;  %v931_v42 = vpop.f32.mrb[6].mxu1 }
 0x11b   :  { %v932_v43 = vpop.f32.mrb[7].mxu1 }
 0x11c   :  { %v749_v44 = vadd.f32 %v930_v41, %v709_v40 }
 0x11e   :  { %v755_v45 = vsel %vm754_vm0, %v749_v44, -inf }
 0x11f   :  { %756 = vmax.xlane.f32.xlu0 %v755_v45 }
 0x1ac   :  { %v757_v46 = vpop.xlane.xlu0 %756 }
 0x1ad   :  { %v758_v47 = vsub.f32 %v749_v44, %v757_v46 }
 0x1af   :  { %v759_v48 = vmul.f32 1.442695, %v758_v47 }
 0x1b1   :  { %1001 = vpow2.f32 %v759_v48 }
 0x1bb   :  { %v1002_v49 = vpop.eup %1001 }
 0x1bc   :  { %v761_v50 = vsel %vm754_vm0, %v1002_v49, 0.0 }
 0x1bd   :  { %762 = vadd.xlane.f32.xlu0 %v761_v50 }
 0x24a   :  { %v763_v51 = vpop.xlane.xlu0 %762 }
 0x24b   :  { %1003 = vrcp.f32 %v763_v51 }
 0x255   :  { %v1004_v52 = vpop.eup %1003 }
 0x256   :  { %v765_v53 = vmul.f32 %v1004_v52, %v1002_v49 }
 0x258   :  { %766 = vst.msk [vmem:[#allocation2] sm:$0x3] %vm754_vm0, %v765_v53 }
 0x259   :  { %1016 = shalt.err (!%p1013_p4)
}
 0x25a   :  { %s1017_s9 = scalar_lea.hbm %s1280_s3, 32 }
 0x25b   :  { %p1018_p5 = scmp.ne.s32.totalorder %s1280_s3, %s1017_s9  ;;  %p1021_p6 = scmp.lt.u32.totalorder %s1017_s9, %s1280_s3 }
 0x25d   :  { %p1023_p7 = pnand %p1021_p6, %p1018_p5 }
 0x25f   :  { %1026 = shalt.err (!%p1023_p7)
}
 0x260   :  { %776 = dma.vmem_to_hbm [thread:$0]  %s774_s2, 32, %s1280_s3, [#allocation3]  }
 0x261   :  { %1027 = dma.done.wait [#allocation3], 32  }
 0x262   :  { %1028 = vsyncadd [#allocation3], 4294967264 }
 0x263   :  { %780 = vsyncpa [#allocation3], 1 }

// kernel: forward.22
= control target key start
LH: loop header
LB: loop body
LE: loop exit
PB: predicated region body
PF: predicated region fallthrough
CT: control target
= control target key end

     0   :  { %8 = vsyncpa [#allocation3], 0  ;;  %s7588_s0 = inlined_call_operand.vmem [shape: bf16[2,11264], index: 0, kind: input, shape index: {}]   ;;  %s7589_s1 = inlined_call_operand.hbm [shape: bf16[11264,1024], index: 1, kind: input, shape index: {}]   ;;  %s7590_s2 = inlined_call_operand.vmem [shape: f32[1,1024], index: 2, kind: input, shape index: {}]   ;;  %s7591_s3 = inlined_call_operand.vmem [shape: f32[2,1024], index: 3, kind: output, shape index: {}]  }
   0x1   :  { %10 = vsyncpa [#allocation3 + $0x1], 0  ;;  %s6629_s12 = smov 0   ;;  %s6631_s13 = smov 0  }
   0x2   :  { %s6633_s14 = smov 0   ;;  %s6635_s15 = smov 0  }
   0x3 LB: > { %s6648_s16 = sadd.s32 4294967295, %s6600_s15   ;;  %s6651_s17 = sadd.s32 1, %s6600_s15   ;;  %s6600_s15 = sphi %s6635_s15, %s7598_s15   ;;  %s6596_s14 = sphi %s6633_s14, %s7597_s14   ;;  %s6592_s13 = sphi %s6631_s13, %s7596_s13   ;;  %s6588_s12 = sphi %s6629_s12, %s7595_s12  }
   0x4   : > { %s46_s18 = ssub.s32 %s6600_s15, %s6651_s17  ;;  %s49_s19 = sadd.s32 1, %s6596_s14 }
   0x5   : > { %p47_p0 = scmp.eq.s32.totalorder %s46_s18, 0  ;;  %p56_p1 = scmp.ne.s32.totalorder %s6596_s14, %s6592_s13 }
   0x6   : > { %p57_p2 = scmp.eq.s32.totalorder %s6600_s15, 0  ;;  %p62_p3 = scmp.ne.s32.totalorder %s6592_s13, %s6588_s12 }
   0x7   : > { %s6661_s20 = scalar_select %p47_p0, %s6596_s14, %s49_s19  }
   0x8   : > { %p58_p4 = por %p57_p2, %p56_p1  ;;  %p63_p5 = scmp.eq.s32.totalorder %s6648_s16, 0 }
   0x9   : > { %p6496_p6 = scmp.lt.s32.totalorder %s6600_s15, 8  ;;  %s139_s22 = sand.u32 1, %s6596_s14  }
   0xa   : > { %p6665_p7 = por %p63_p5, %p62_p3  ;;  %s6488_s23 = smul.u32 5632, %s139_s22 }
   0xb   : > { %s6407_s24 = smul.u32 90112, %s6600_s15  ;;  %p6671_p8 = pnand %p6496_p6, %p58_p4 }
   0xc   : > { %s143_s29 = scalar_lea.vmem [#allocation2], %s6488_s23  ;;  %s6683_s4 = scalar_lea.sflag [#allocation3], %s139_s22 }
   0xd   : > { %s6678_s28 = scalar_lea.hbm %s7589_s1, %s6407_s24  ;;  %s151_s30 = sshll.u32 %s143_s29, 4  ;;  %s6680_s30 = int_to_ptr.vmem [resolvable:$true] %s151_s30 }
   0xe   : > { %s6536_s5 = scalar_lea.hbm %s6678_s28, 90112  ;;  %p6538_p11 = pneg %p6671_p8 }
   0xf   : > { %p6537_p10 = scmp.ne.s32.totalorder %s6678_s28, %s6536_s5  ;;  %s6541_s8 = scalar_lea.hbm %s7589_s1, 720896 }
  0x10   : > { %p6542_p0 = scmp.lt.u32.totalorder %s6678_s28, %s7589_s1  ;;  %p6543_p1 = scmp.lt.u32.totalorder %s6541_s8, %s6536_s5 }
  0x11   : > { %p6539_p12 = pnand %p6538_p11, %p6537_p10  ;;  %p6545_p3 = scmp.lt.u32.totalorder %s6536_s5, %s6678_s28 }
  0x12   : > { %p6544_p2 = por %p6543_p1, %p6542_p0 }
  0x13   : > { %p6540_p13 = pneg %p6539_p12 }
  0x14   : > { %p6546_p4 = por %p6545_p3, %p6544_p2 }
  0x16   : > { %p6547_p5 = pnand %p6546_p4, %p6540_p13 }
  0x18   : > { %6550 = shalt.err (!%p6547_p5)
}
  0x19   : > { %s6551_s11 = scalar_lea.vmem %s6680_s30, 90112  ;;  %s6602_s12 = smov [#allocation2]  }
  0x1a   : > { %p6552_p6 = scmp.ne.s32.totalorder %s6680_s30, %s6551_s11  ;;  %s6556_s18 = sshll.u32 %s6602_s12, 4  ;;  %s6557_s18 = int_to_ptr.vmem [resolvable:$false] %s6556_s18 }
  0x1b   : > { %s6558_s19 = scalar_lea.vmem %s6557_s18, 180224  ;;  %p6559_p9 = scmp.lt.s32.totalorder %s6680_s30, %s6557_s18 }
  0x1c   : > { %p6554_p10 = pnand %p6552_p6, %p6538_p11  ;;  %p6560_p0 = scmp.lt.s32.totalorder %s6558_s19, %s6551_s11 }
  0x1e   : > { %p6555_p12 = pneg %p6554_p10  ;;  %p6561_p1 = por %p6560_p0, %p6559_p9 }
  0x20   : > { %p6562_p2 = pnand %p6561_p1, %p6555_p12 }
  0x22   : > { %6565 = shalt.err (!%p6562_p2)
}
  0x23   : > { %s6603_s22 = smov 512   ;;  %s6604_s23 = smov 32  }
  0x24   : > { %6495 = dma.hbm_to_vmem [thread:$0]  (!%p6671_p8), %s6678_s28, 90112, %s6680_s30, %s6683_s4, %s6603_s22, %s6603_s22, %s6604_s23  }
  0x25   : > { %p159_p11 = scmp.lt.s32.totalorder %s6600_s15, 9  ;;  %p7594_p13 = scmp.ge.s32.totalorder %s6600_s15, 1 }
  0x27   : > { %p160_p3 = pnand %p7594_p13, %p159_p11 }
  0x28   : > { %s165_s24 = sand.u32 (!%p160_p3), 1, %s6592_s13  }
  0x29   : > { %163 = sbr.rel (%p160_p3) target bundleno = 998 (0x3e6), region = 32  ;;  %s166_s27 = scalar_lea.sflag (!%p160_p3), [#allocation3], %s165_s24 }
  0x2a   : > { %s6489_s26 = smul.u32 (!%p160_p3), 5632, %s165_s24 }
  0x2c   : > { %s6715_s29 = scalar_lea.vmem (!%p160_p3), [#allocation2], %s6489_s26 }
  0x30   : > { %6583 = dma.done.wait (%p6665_p7), %s166_s27, 90112  }
  0x31   : > { %6585 = vsyncadd (%p6665_p7), %s166_s27, 4294877184  ;;  %s191_s5 = smul.u32 11, %s6648_s16  ;;  %p5697_p8 = scmp.ne.s32.totalorder %s6648_s16, 0 }
  0x32   : > { %v204_v0 = vlaneseq (!%p5697_p8)  ;;  %v6605_v1 = vmov (!%p5697_p8), 1983009808   ;;  %v202_v4 = vld [vmem:[%s7590_s2] sm:$0xff] (!%p5697_p8) }
  0x33   : > { %p192_p9 = scmp.lt.s32.totalorder %s191_s5, 87  ;;  %201 = sbr.rel (%p5697_p8) target bundleno = 68 (0x44), region = 40  ;;  %v263_v2 = vunpack.c.l.s4 (!%p5697_p8), %v6605_v1 }
  0x34   : > { %v205_v3 = vshrl.u32 (!%p5697_p8), %v204_v0, 7 }
  0x35   : > { %s7600_s5 = smov (!%p192_p9, %s191_s5), 87  ;;  %v264_v5 = vunpack.c.0.s8 (!%p5697_p8), %v263_v2 }
  0x36   : > { %s6725_s28 = scalar_lea.vmem %s7588_s0, %s7600_s5  ;;  %v206_v6 = vsub.s32 (!%p5697_p8), 0, %v205_v3  ;;  %v210_v7 = vsub.s32 (!%p5697_p8), 1, %v205_v3  ;;  %v214_v8 = vsub.s32 (!%p5697_p8), 2, %v205_v3  ;;  %v218_v9 = vsub.s32 (!%p5697_p8), 3, %v205_v3 }
  0x37   : > { %v267_v10 = vsub.s32 (!%p5697_p8), %v264_v5, %v205_v3  ;;  %v222_v11 = vsub.s32 (!%p5697_p8), 4, %v205_v3  ;;  %v226_v12 = vsub.s32 (!%p5697_p8), 5, %v205_v3  ;;  %v230_v13 = vsub.s32 (!%p5697_p8), 6, %v205_v3 }
  0x38   : > { %v207_v14 = vrot.slane (!%p5697_p8), %v202_v4, %v206_v6  ;;  %v211_v15 = vrot.slane (!%p5697_p8), %v202_v4, %v210_v7  ;;  %v215_v16 = vrot.slane (!%p5697_p8), %v202_v4, %v214_v8  ;;  %v219_v17 = vrot.slane (!%p5697_p8), %v202_v4, %v218_v9 }
  0x39   : > { %v223_v18 = vrot.slane (!%p5697_p8), %v202_v4, %v222_v11  ;;  %v227_v19 = vrot.slane (!%p5697_p8), %v202_v4, %v226_v12  ;;  %v231_v20 = vrot.slane (!%p5697_p8), %v202_v4, %v230_v13  ;;  %v234_v21 = vsub.s32 (!%p5697_p8), 7, %v205_v3 }
  0x3a   : > { %v260_v22 = vcombine.low %v207_v14, %v211_v15  ;;  %v261_v23 = vcombine.low %v215_v16, %v219_v17 }
  0x3b   : > { %v235_v24 = vrot.slane %v202_v4, %v234_v21  ;;  %v277_v25 = vcombine.low %v223_v18, %v227_v19 }
  0x3c   : > { %v268_v26 = vrot.slane %v260_v22, %v267_v10  ;;  %v275_v27 = vrot.slane %v261_v23, %v267_v10 }
  0x3d   : > { %v278_v28 = vcombine.low %v231_v20, %v235_v24  ;;  %v285_v29 = vrot.slane %v277_v25, %v267_v10 }
  0x3e   : > { %v276_v30 = vcombine.low %v268_v26, %v275_v27 }
  0x3f   : > { %v292_v31 = vrot.slane %v278_v28, %v267_v10 }
  0x40   : > { %296 = vst [vmem:[%s7591_s3] sm:$0xff] %v276_v30 }
  0x41   : > { %v293_v32 = vcombine.low %v285_v29, %v292_v31 }
  0x43   : > { %297 = vst [vmem:[%s7591_s3 + $0x8] sm:$0xff] %v293_v32 }
  0x44 PF: > { %v302_v33 = vld [vmem:[%s6715_s29] sm:$0xff]  ;;  %v303_v35 = vld [vmem:[%s6715_s29 + $0x8] sm:$0xff]  ;;  %v6606_v1 = vmov 1966171168   ;;  %v1012_v3 = vlaneseq }
  0x45   : > { %v306_v34 = vld [vmem:[%s6715_s29 + $0x20] sm:$0xff]  ;;  %v307_v37 = vld [vmem:[%s6715_s29 + $0x28] sm:$0xff]  ;;  %v1010_v2 = vunpack.c.l.s4 %v6606_v1 }
  0x46   : > { %v5700_v36 = vcombine.high %v302_v33, %v306_v34  ;;  %v5699_v38 = vcombine.low %v302_v33, %v306_v34  ;;  %v310_v39 = vld [vmem:[%s6715_s29 + $0x40] sm:$0xff]  ;;  %v5702_v41 = vcombine.high %v303_v35, %v307_v37  ;;  %v5701_v42 = vcombine.low %v303_v35, %v307_v37  ;;  %v311_v44 = vld [vmem:[%s6715_s29 + $0x48] sm:$0xff] }
  0x47   : > { %v314_v40 = vld [vmem:[%s6715_s29 + $0x60] sm:$0xff]  ;;  %v315_v45 = vld [vmem:[%s6715_s29 + $0x68] sm:$0xff]  ;;  %v1011_v12 = vunpack.c.0.s8 %v1010_v2  ;;  %v6759_v13 = vshrl.u32 %v1012_v3, 7 }
  0x48   : > { %v5708_v43 = vcombine.high %v310_v39, %v314_v40  ;;  %v318_v46 = vld [vmem:[%s6715_s29 + $0x80] sm:$0xff]  ;;  %4611 = vmatprep.subr.bf16.mxu0 %v5700_v36  ;;  %v5710_v47 = vcombine.high %v311_v44, %v315_v45  ;;  %v319_v49 = vld [vmem:[%s6715_s29 + $0x88] sm:$0xff]  ;;  %4857 = vmatprep.subr.bf16.mxu1 %v5702_v41  ;;  %v5707_v51 = vcombine.low %v310_v39, %v314_v40 }
  0x49   : > { %v322_v48 = vld [vmem:[%s6715_s29 + $0xa0] sm:$0xff]  ;;  %v323_v50 = vld [vmem:[%s6715_s29 + $0xa8] sm:$0xff]  ;;  %4612 = vmatpush1.bf16.msra.mxu0 %v5699_v38  ;;  %4858 = vmatpush1.bf16.msra.mxu1 %v5701_v42  ;;  %v5709_v52 = vcombine.low %v311_v44, %v315_v45  ;;  %v6766_v22 = vsub.s32 %v1011_v12, %v6759_v13 }
  0x4a   : > { %4613 = vmatprep.subr.bf16.mxu0 %v5708_v43  ;;  %v5716_v53 = vcombine.high %v318_v46, %v322_v48  ;;  %4859 = vmatprep.subr.bf16.mxu1 %v5710_v47  ;;  %v5718_v54 = vcombine.high %v319_v49, %v323_v50  ;;  %v326_v55 = vld [vmem:[%s6715_s29 + $0xc0] sm:$0xff]  ;;  %v327_v57 = vld [vmem:[%s6715_s29 + $0xc8] sm:$0xff]  ;;  %v5715_v59 = vcombine.low %v318_v46, %v322_v48 }
  0x4b   : > { %v330_v56 = vld [vmem:[%s6715_s29 + $0xe0] sm:$0xff]  ;;  %v331_v58 = vld [vmem:[%s6715_s29 + $0xe8] sm:$0xff]  ;;  %v5717_v60 = vcombine.low %v319_v49, %v323_v50 }
  0x4c   : > { %v5724_v61 = vcombine.high %v326_v55, %v330_v56  ;;  %v5726_v62 = vcombine.high %v327_v57, %v331_v58  ;;  %v334_v63 = vld [vmem:[%s6715_s29 + $0x100] sm:$0xff]  ;;  %v335_v4 = vld [vmem:[%s6715_s29 + $0x108] sm:$0xff]  ;;  %v5723_v6 = vcombine.low %v326_v55, %v330_v56  ;;  %v5725_v7 = vcombine.low %v327_v57, %v331_v58 }
  0x4d   : > { %4614 = vmatpush1.bf16.msra.mxu0 %v5707_v51  ;;  %4860 = vmatpush1.bf16.msra.mxu1 %v5709_v52  ;;  %v338_v0 = vld [vmem:[%s6715_s29 + $0x120] sm:$0xff]  ;;  %v339_v5 = vld [vmem:[%s6715_s29 + $0x128] sm:$0xff] }
  0x4e   : > { %4615 = vmatprep.subr.bf16.mxu0 %v5716_v53  ;;  %4861 = vmatprep.subr.bf16.mxu1 %v5718_v54  ;;  %v5732_v8 = vcombine.high %v334_v63, %v338_v0  ;;  %v5734_v9 = vcombine.high %v335_v4, %v339_v5  ;;  %v342_v10 = vld [vmem:[%s6715_s29 + $0x140] sm:$0xff]  ;;  %v343_v14 = vld [vmem:[%s6715_s29 + $0x148] sm:$0xff]  ;;  %v5731_v16 = vcombine.low %v334_v63, %v338_v0 }
  0x4f   : > { %v346_v11 = vld [vmem:[%s6715_s29 + $0x160] sm:$0xff]  ;;  %v347_v15 = vld [vmem:[%s6715_s29 + $0x168] sm:$0xff]  ;;  %v5733_v17 = vcombine.low %v335_v4, %v339_v5 }
  0x50   : > { %v5740_v18 = vcombine.high %v342_v10, %v346_v11  ;;  %v5742_v19 = vcombine.high %v343_v14, %v347_v15  ;;  %v350_v20 = vld [vmem:[%s6715_s29 + $0x180] sm:$0xff]  ;;  %v351_v23 = vld [vmem:[%s6715_s29 + $0x188] sm:$0xff]  ;;  %v5739_v25 = vcombine.low %v342_v10, %v346_v11  ;;  %v5741_v26 = vcombine.low %v343_v14, %v347_v15 }
  0x51   : > { %4616 = vmatpush1.bf16.msra.mxu0 %v5715_v59  ;;  %4862 = vmatpush1.bf16.msra.mxu1 %v5717_v60  ;;  %v354_v21 = vld [vmem:[%s6715_s29 + $0x1a0] sm:$0xff]  ;;  %v355_v24 = vld [vmem:[%s6715_s29 + $0x1a8] sm:$0xff] }
  0x52   : > { %4617 = vmatprep.subr.bf16.mxu0 %v5724_v61  ;;  %4863 = vmatprep.subr.bf16.mxu1 %v5726_v62  ;;  %v5748_v27 = vcombine.high %v350_v20, %v354_v21  ;;  %v6771_v28 = vld [vmem:[%s6725_s28] sm:$0xff]  ;;  %v5750_v29 = vcombine.high %v351_v23, %v355_v24  ;;  %v359_v33 = vld [vmem:[%s6715_s29 + $0x1c8] sm:$0xff]  ;;  %v5747_v35 = vcombine.low %v350_v20, %v354_v21 }
  0x53   : > { %v358_v30 = vld [vmem:[%s6715_s29 + $0x1c0] sm:$0xff]  ;;  %v6777_v32 = vrot.slane %v6771_v28, %v6766_v22  ;;  %v363_v34 = vld [vmem:[%s6715_s29 + $0x1e8] sm:$0xff]  ;;  %v5749_v37 = vcombine.low %v351_v23, %v355_v24 }
  0x54   : > { %v362_v31 = vld [vmem:[%s6715_s29 + $0x1e0] sm:$0xff]  ;;  %v5758_v39 = vcombine.high %v359_v33, %v363_v34  ;;  %v367_v43 = vld [vmem:[%s6715_s29 + $0x208] sm:$0xff]  ;;  %v5757_v46 = vcombine.low %v359_v33, %v363_v34 }
  0x55   : > { %4618 = vmatpush1.bf16.msra.mxu0 %v5723_v6  ;;  %4864 = vmatpush1.bf16.msra.mxu1 %v5725_v7  ;;  %v1023_v36 = vcombine.high %v6777_v32, %v6777_v32  ;;  %v5756_v38 = vcombine.high %v358_v30, %v362_v31  ;;  %v366_v40 = vld [vmem:[%s6715_s29 + $0x200] sm:$0xff]  ;;  %v371_v44 = vld [vmem:[%s6715_s29 + $0x228] sm:$0xff]  ;;  %v5755_v45 = vcombine.low %v358_v30, %v362_v31 }
  0x56   : > { %4619 = vmatprep.subr.bf16.mxu0 %v5732_v8  ;;  %4865 = vmatprep.subr.bf16.mxu1 %v5734_v9  ;;  %v370_v41 = vld [vmem:[%s6715_s29 + $0x220] sm:$0xff]  ;;  %v5766_v48 = vcombine.high %v367_v43, %v371_v44  ;;  %v375_v51 = vld [vmem:[%s6715_s29 + $0x248] sm:$0xff]  ;;  %v5765_v54 = vcombine.low %v367_v43, %v371_v44 }
  0x57   : > { %v6786_v42 = vrot.slane %v1023_v36, %v6766_v22  ;;  %v5764_v47 = vcombine.high %v366_v40, %v370_v41  ;;  %v374_v49 = vld [vmem:[%s6715_s29 + $0x240] sm:$0xff]  ;;  %v379_v52 = vld [vmem:[%s6715_s29 + $0x268] sm:$0xff]  ;;  %v5763_v53 = vcombine.low %v366_v40, %v370_v41 }
  0x58   : > { %v378_v50 = vld [vmem:[%s6715_s29 + $0x260] sm:$0xff]  ;;  %v5774_v56 = vcombine.high %v375_v51, %v379_v52  ;;  %v383_v59 = vld [vmem:[%s6715_s29 + $0x288] sm:$0xff]  ;;  %v5773_v62 = vcombine.low %v375_v51, %v379_v52 }
  0x59   : > { %4620 = vmatpush1.bf16.msra.mxu0 %v5731_v16  ;;  %4866 = vmatpush1.bf16.msra.mxu1 %v5733_v17  ;;  %v5772_v55 = vcombine.high %v374_v49, %v378_v50  ;;  %v382_v57 = vld [vmem:[%s6715_s29 + $0x280] sm:$0xff]  ;;  %v387_v60 = vld [vmem:[%s6715_s29 + $0x2a8] sm:$0xff]  ;;  %v5771_v61 = vcombine.low %v374_v49, %v378_v50 }
  0x5a   : > { %4621 = vmatprep.subr.bf16.mxu0 %v5740_v18  ;;  %4867 = vmatprep.subr.bf16.mxu1 %v5742_v19  ;;  %v386_v58 = vld [vmem:[%s6715_s29 + $0x2a0] sm:$0xff]  ;;  %v5782_v0 = vcombine.high %v383_v59, %v387_v60  ;;  %v391_v3 = vld [vmem:[%s6715_s29 + $0x2c8] sm:$0xff]  ;;  %v5781_v6 = vcombine.low %v383_v59, %v387_v60 }
  0x5b   : > { %4643 = vmatprep.mubr.bf16.mxu0 %v6786_v42  ;;  %4889 = vmatprep.mubr.bf16.mxu1 %v6786_v42  ;;  %v5780_v63 = vcombine.high %v382_v57, %v386_v58  ;;  %v390_v1 = vld [vmem:[%s6715_s29 + $0x2c0] sm:$0xff]  ;;  %v395_v4 = vld [vmem:[%s6715_s29 + $0x2e8] sm:$0xff]  ;;  %v5779_v5 = vcombine.low %v382_v57, %v386_v58 }
  0x5c   : > { %v394_v2 = vld [vmem:[%s6715_s29 + $0x2e0] sm:$0xff]  ;;  %v5790_v8 = vcombine.high %v391_v3, %v395_v4  ;;  %v399_v11 = vld [vmem:[%s6715_s29 + $0x308] sm:$0xff]  ;;  %v5789_v15 = vcombine.low %v391_v3, %v395_v4 }
  0x5d   : > { %4622 = vmatpush1.bf16.msra.mxu0 %v5739_v25  ;;  %4868 = vmatpush1.bf16.msra.mxu1 %v5741_v26  ;;  %v5788_v7 = vcombine.high %v390_v1, %v394_v2  ;;  %v398_v9 = vld [vmem:[%s6715_s29 + $0x300] sm:$0xff]  ;;  %v403_v12 = vld [vmem:[%s6715_s29 + $0x328] sm:$0xff]  ;;  %v5787_v14 = vcombine.low %v390_v1, %v394_v2  ;;  %v6836_v1 = vcombine.high %v6786_v42, %v6786_v42 }
  0x5e   : > { %4623 = vmatprep.subr.bf16.mxu0 %v5748_v27  ;;  %4869 = vmatprep.subr.bf16.mxu1 %v5750_v29  ;;  %v402_v10 = vld [vmem:[%s6715_s29 + $0x320] sm:$0xff]  ;;  %v5798_v17 = vcombine.high %v399_v11, %v403_v12  ;;  %v407_v20 = vld [vmem:[%s6715_s29 + $0x348] sm:$0xff]  ;;  %v5797_v24 = vcombine.low %v399_v11, %v403_v12 }
  0x5f   : > { %v5796_v16 = vcombine.high %v398_v9, %v402_v10  ;;  %v406_v18 = vld [vmem:[%s6715_s29 + $0x340] sm:$0xff]  ;;  %v411_v21 = vld [vmem:[%s6715_s29 + $0x368] sm:$0xff]  ;;  %v5795_v23 = vcombine.low %v398_v9, %v402_v10 }
  0x60   : > { %v410_v19 = vld [vmem:[%s6715_s29 + $0x360] sm:$0xff]  ;;  %v5806_v26 = vcombine.high %v407_v20, %v411_v21  ;;  %v415_v30 = vld [vmem:[%s6715_s29 + $0x388] sm:$0xff]  ;;  %v5805_v34 = vcombine.low %v407_v20, %v411_v21 }
  0x61   : > { %4624 = vmatpush1.bf16.msra.mxu0 %v5747_v35  ;;  %4870 = vmatpush1.bf16.msra.mxu1 %v5749_v37  ;;  %v5804_v25 = vcombine.high %v406_v18, %v410_v19  ;;  %v414_v27 = vld [vmem:[%s6715_s29 + $0x380] sm:$0xff]  ;;  %v419_v31 = vld [vmem:[%s6715_s29 + $0x3a8] sm:$0xff]  ;;  %v5803_v33 = vcombine.low %v406_v18, %v410_v19 }
  0x62   : > { %4625 = vmatprep.subr.bf16.mxu0 %v5756_v38  ;;  %4871 = vmatprep.subr.bf16.mxu1 %v5758_v39  ;;  %v418_v29 = vld [vmem:[%s6715_s29 + $0x3a0] sm:$0xff]  ;;  %v5814_v36 = vcombine.high %v415_v30, %v419_v31  ;;  %v423_v39 = vld [vmem:[%s6715_s29 + $0x3c8] sm:$0xff]  ;;  %v5813_v43 = vcombine.low %v415_v30, %v419_v31 }
  0x63   : > { %v5812_v35 = vcombine.high %v414_v27, %v418_v29  ;;  %v422_v37 = vld [vmem:[%s6715_s29 + $0x3c0] sm:$0xff]  ;;  %v427_v40 = vld [vmem:[%s6715_s29 + $0x3e8] sm:$0xff]  ;;  %v5811_v41 = vcombine.low %v414_v27, %v418_v29 }
  0x64   : > { %v426_v38 = vld [vmem:[%s6715_s29 + $0x3e0] sm:$0xff]  ;;  %v435_v49 = vld [vmem:[%s6715_s29 + $0x428] sm:$0xff]  ;;  %v5821_v51 = vcombine.low %v423_v39, %v427_v40 }
  0x65   : > { %4626 = vmatpush1.bf16.msra.mxu0 %v5755_v45  ;;  %4872 = vmatpush1.bf16.msra.mxu1 %v5757_v46  ;;  %v5820_v44 = vcombine.high %v422_v37, %v426_v38  ;;  %v5822_v45 = vcombine.high %v423_v39, %v427_v40  ;;  %v430_v46 = vld [vmem:[%s6715_s29 + $0x400] sm:$0xff]  ;;  %v5819_v50 = vcombine.low %v422_v37, %v426_v38  ;;  %v439_v57 = vld [vmem:[%s6715_s29 + $0x448] sm:$0xff] }
  0x66   : > { %4627 = vmatprep.subr.bf16.mxu0 %v5764_v47  ;;  %4873 = vmatprep.subr.bf16.mxu1 %v5766_v48  ;;  %v434_v47 = vld [vmem:[%s6715_s29 + $0x420] sm:$0xff]  ;;  %v431_v48 = vld [vmem:[%s6715_s29 + $0x408] sm:$0xff] }
  0x67   : > { %v5828_v52 = vcombine.high %v430_v46, %v434_v47  ;;  %v443_v58 = vld [vmem:[%s6715_s29 + $0x468] sm:$0xff]  ;;  %v5827_v59 = vcombine.low %v430_v46, %v434_v47  ;;  %v5829_v60 = vcombine.low %v431_v48, %v435_v49 }
  0x68   : > { %v451_v2 = vld [vmem:[%s6715_s29 + $0x4a8] sm:$0xff]  ;;  %v5837_v4 = vcombine.low %v439_v57, %v443_v58 }
  0x69   : > { %4628 = vmatpush1.bf16.msra.mxu0 %v5763_v53  ;;  %4874 = vmatpush1.bf16.msra.mxu1 %v5765_v54  ;;  %v5830_v53 = vcombine.high %v431_v48, %v435_v49  ;;  %v438_v54 = vld [vmem:[%s6715_s29 + $0x440] sm:$0xff]  ;;  %v455_v9 = vld [vmem:[%s6715_s29 + $0x4c8] sm:$0xff] }
  0x6a   : > { %4629 = vmatprep.subr.bf16.mxu0 %v5772_v55  ;;  %4875 = vmatprep.subr.bf16.mxu1 %v5774_v56  ;;  %v442_v55 = vld [vmem:[%s6715_s29 + $0x460] sm:$0xff]  ;;  %v6828_v56 = vrot.slane %v6777_v32, %v6766_v22  ;;  %v447_v32 = vld [vmem:[%s6715_s29 + $0x488] sm:$0xff] }
  0x6b   : > { %v5835_v3 = vcombine.low %v438_v54, %v442_v55  ;;  %v459_v10 = vld [vmem:[%s6715_s29 + $0x4e8] sm:$0xff]  ;;  %v5845_v12 = vcombine.low %v447_v32, %v451_v2 }
  0x6c   : > { %v463_v18 = vld [vmem:[%s6715_s29 + $0x508] sm:$0xff]  ;;  %v5853_v21 = vcombine.low %v455_v9, %v459_v10 }
  0x6d   : > { %4630 = vmatpush1.bf16.msra.mxu0 %v5771_v61  ;;  %4876 = vmatpush1.bf16.msra.mxu1 %v5773_v62  ;;  %v5836_v61 = vcombine.high %v438_v54, %v442_v55  ;;  %v5838_v62 = vcombine.high %v439_v57, %v443_v58  ;;  %v467_v19 = vld [vmem:[%s6715_s29 + $0x528] sm:$0xff] }
  0x6e   : > { %4631 = vmatprep.subr.bf16.mxu0 %v5780_v63  ;;  %4877 = vmatprep.subr.bf16.mxu1 %v5782_v0  ;;  %v446_v63 = vld [vmem:[%s6715_s29 + $0x480] sm:$0xff]  ;;  %v471_v27 = vld [vmem:[%s6715_s29 + $0x548] sm:$0xff]  ;;  %v5861_v31 = vcombine.low %v463_v18, %v467_v19 }
  0x6f   : > { %v450_v0 = vld [vmem:[%s6715_s29 + $0x4a0] sm:$0xff]  ;;  %v475_v29 = vld [vmem:[%s6715_s29 + $0x568] sm:$0xff] }
  0x70   : > { %v5843_v11 = vcombine.low %v446_v63, %v450_v0  ;;  %v479_v37 = vld [vmem:[%s6715_s29 + $0x588] sm:$0xff]  ;;  %v5869_v40 = vcombine.low %v471_v27, %v475_v29 }
  0x71   : > { %4632 = vmatpush1.bf16.msra.mxu0 %v5779_v5  ;;  %4878 = vmatpush1.bf16.msra.mxu1 %v5781_v6  ;;  %v5844_v5 = vcombine.high %v446_v63, %v450_v0  ;;  %v5846_v6 = vcombine.high %v447_v32, %v451_v2  ;;  %v483_v38 = vld [vmem:[%s6715_s29 + $0x5a8] sm:$0xff] }
  0x72   : > { %4633 = vmatprep.subr.bf16.mxu0 %v5788_v7  ;;  %4879 = vmatprep.subr.bf16.mxu1 %v5790_v8  ;;  %v454_v7 = vld [vmem:[%s6715_s29 + $0x4c0] sm:$0xff]  ;;  %v487_v46 = vld [vmem:[%s6715_s29 + $0x5c8] sm:$0xff]  ;;  %v5877_v49 = vcombine.low %v479_v37, %v483_v38 }
  0x73   : > { %v458_v8 = vld [vmem:[%s6715_s29 + $0x4e0] sm:$0xff]  ;;  %v491_v47 = vld [vmem:[%s6715_s29 + $0x5e8] sm:$0xff] }
  0x74   : > { %v5851_v20 = vcombine.low %v454_v7, %v458_v8  ;;  %v495_v54 = vld [vmem:[%s6715_s29 + $0x608] sm:$0xff]  ;;  %v5885_v58 = vcombine.low %v487_v46, %v491_v47 }
  0x75   : > { %4634 = vmatpush1.bf16.msra.mxu0 %v5787_v14  ;;  %4880 = vmatpush1.bf16.msra.mxu1 %v5789_v15  ;;  %v5852_v14 = vcombine.high %v454_v7, %v458_v8  ;;  %v5854_v15 = vcombine.high %v455_v9, %v459_v10  ;;  %v499_v55 = vld [vmem:[%s6715_s29 + $0x628] sm:$0xff] }
  0x76   : > { %4635 = vmatprep.subr.bf16.mxu0 %v5796_v16  ;;  %4881 = vmatprep.subr.bf16.mxu1 %v5798_v17  ;;  %v462_v16 = vld [vmem:[%s6715_s29 + $0x500] sm:$0xff]  ;;  %v503_v63 = vld [vmem:[%s6715_s29 + $0x648] sm:$0xff]  ;;  %v5893_v2 = vcombine.low %v495_v54, %v499_v55 }
  0x77   : > { %v466_v17 = vld [vmem:[%s6715_s29 + $0x520] sm:$0xff]  ;;  %v507_v0 = vld [vmem:[%s6715_s29 + $0x668] sm:$0xff] }
  0x78   : > { %v5859_v30 = vcombine.low %v462_v16, %v466_v17  ;;  %v511_v7 = vld [vmem:[%s6715_s29 + $0x688] sm:$0xff]  ;;  %v5901_v10 = vcombine.low %v503_v63, %v507_v0 }
  0x79   : > { %4636 = vmatpush1.bf16.msra.mxu0 %v5795_v23  ;;  %4882 = vmatpush1.bf16.msra.mxu1 %v5797_v24  ;;  %v5860_v23 = vcombine.high %v462_v16, %v466_v17  ;;  %v5862_v24 = vcombine.high %v463_v18, %v467_v19  ;;  %v515_v8 = vld [vmem:[%s6715_s29 + $0x6a8] sm:$0xff] }
  0x7a   : > { %4637 = vmatprep.subr.bf16.mxu0 %v5804_v25  ;;  %4883 = vmatprep.subr.bf16.mxu1 %v5806_v26  ;;  %v470_v25 = vld [vmem:[%s6715_s29 + $0x540] sm:$0xff]  ;;  %v519_v16 = vld [vmem:[%s6715_s29 + $0x6c8] sm:$0xff]  ;;  %v5909_v19 = vcombine.low %v511_v7, %v515_v8 }
  0x7b   : > { %v474_v26 = vld [vmem:[%s6715_s29 + $0x560] sm:$0xff]  ;;  %v523_v17 = vld [vmem:[%s6715_s29 + $0x6e8] sm:$0xff] }
  0x7c   : > { %v5867_v39 = vcombine.low %v470_v25, %v474_v26 }
  0x7d   : > { %4638 = vmatpush1.bf16.msra.mxu0 %v5803_v33  ;;  %4884 = vmatpush1.bf16.msra.mxu1 %v5805_v34  ;;  %v5868_v33 = vcombine.high %v470_v25, %v474_v26  ;;  %v5870_v34 = vcombine.high %v471_v27, %v475_v29  ;;  %v527_v25 = vld [vmem:[%s6715_s29 + $0x708] sm:$0xff]  ;;  %v5917_v29 = vcombine.low %v519_v16, %v523_v17 }
  0x7e   : > { %4639 = vmatprep.subr.bf16.mxu0 %v5812_v35  ;;  %4885 = vmatprep.subr.bf16.mxu1 %v5814_v36  ;;  %v478_v35 = vld [vmem:[%s6715_s29 + $0x580] sm:$0xff]  ;;  %v531_v26 = vld [vmem:[%s6715_s29 + $0x728] sm:$0xff] }
  0x7f   : > { %v482_v36 = vld [vmem:[%s6715_s29 + $0x5a0] sm:$0xff] }
  0x80   : > { %v5875_v48 = vcombine.low %v478_v35, %v482_v36 }
  0x81   : > { %4640 = vmatpush1.bf16.msra.mxu0 %v5811_v41  ;;  %4886 = vmatpush1.bf16.msra.mxu1 %v5813_v43  ;;  %v5876_v41 = vcombine.high %v478_v35, %v482_v36  ;;  %v5878_v43 = vcombine.high %v479_v37, %v483_v38  ;;  %v535_v35 = vld [vmem:[%s6715_s29 + $0x748] sm:$0xff]  ;;  %v5925_v38 = vcombine.low %v527_v25, %v531_v26 }
  0x82   : > { %4641 = vmatprep.subr.bf16.mxu0 %v5820_v44  ;;  %4887 = vmatprep.subr.bf16.mxu1 %v5822_v45  ;;  %v486_v44 = vld [vmem:[%s6715_s29 + $0x5c0] sm:$0xff]  ;;  %v539_v36 = vld [vmem:[%s6715_s29 + $0x768] sm:$0xff] }
  0x83   : > { %v490_v45 = vld [vmem:[%s6715_s29 + $0x5e0] sm:$0xff] }
  0x84   : > { %v5883_v57 = vcombine.low %v486_v44, %v490_v45 }
  0x85   : > { %4642 = vmatpush1.bf16.msra.mxu0 %v5819_v50  ;;  %4888 = vmatpush1.bf16.msra.mxu1 %v5821_v51  ;;  %v5884_v50 = vcombine.high %v486_v44, %v490_v45  ;;  %v5886_v51 = vcombine.high %v487_v46, %v491_v47  ;;  %v543_v44 = vld [vmem:[%s6715_s29 + $0x788] sm:$0xff]  ;;  %v5933_v47 = vcombine.low %v535_v35, %v539_v36 }
  0x86   : > { %4652 = vmatprep.subr.bf16.mxu0 %v5828_v52  ;;  %4898 = vmatprep.subr.bf16.mxu1 %v5830_v53  ;;  %v494_v52 = vld [vmem:[%s6715_s29 + $0x600] sm:$0xff]  ;;  %v547_v45 = vld [vmem:[%s6715_s29 + $0x7a8] sm:$0xff] }
  0x87   : > { %v498_v53 = vld [vmem:[%s6715_s29 + $0x620] sm:$0xff] }
  0x88   : > { %4644 = vmatmul.mubr.bf16.vlgmr.msra.gmra.mrb[0].mxu0 %v6828_v56  ;;  %4890 = vmatmul.mubr.bf16.vlgmr.msra.gmra.mrb[0].mxu1 %v6828_v56  ;;  %v5891_v32 = vcombine.low %v494_v52, %v498_v53 }
  0x89   : > { %4653 = vmatpush1.bf16.msra.mxu0 %v5827_v59  ;;  %4899 = vmatpush1.bf16.msra.mxu1 %v5829_v60  ;;  %v5892_v59 = vcombine.high %v494_v52, %v498_v53  ;;  %v5894_v60 = vcombine.high %v495_v54, %v499_v55  ;;  %v1008_v52 = vcombine.high %v6771_v28, %v6771_v28  ;;  %v551_v53 = vld [vmem:[%s6715_s29 + $0x7c8] sm:$0xff] }
  0x8a   : > { %4654 = vmatprep.subr.bf16.mxu0 %v5836_v61  ;;  %4900 = vmatprep.subr.bf16.mxu1 %v5838_v62  ;;  %v502_v61 = vld [vmem:[%s6715_s29 + $0x640] sm:$0xff]  ;;  %v555_v54 = vld [vmem:[%s6715_s29 + $0x7e8] sm:$0xff] }
  0x8b   : > { %4684 = vmatprep.mubr.bf16.mxu0 %v6836_v1  ;;  %4930 = vmatprep.mubr.bf16.mxu1 %v6836_v1  ;;  %v506_v62 = vld [vmem:[%s6715_s29 + $0x660] sm:$0xff]  ;;  %v559_v28 = vld [vmem:[%s6715_s29 + $0x808] sm:$0xff] }
  0x8c   : > { %v5899_v9 = vcombine.low %v502_v61, %v506_v62 }
  0x8d   : > { %4655 = vmatpush1.bf16.msra.mxu0 %v5835_v3  ;;  %4901 = vmatpush1.bf16.msra.mxu1 %v5837_v4  ;;  %v5900_v3 = vcombine.high %v502_v61, %v506_v62  ;;  %v5902_v4 = vcombine.high %v503_v63, %v507_v0  ;;  %v562_v61 = vld [vmem:[%s6715_s29 + $0x820] sm:$0xff]  ;;  %v6901_v62 = vrot.slane %v1008_v52, %v6766_v22  ;;  %v563_v63 = vld [vmem:[%s6715_s29 + $0x828] sm:$0xff] }
  0x8e   : > { %4656 = vmatprep.subr.bf16.mxu0 %v5844_v5  ;;  %4902 = vmatprep.subr.bf16.mxu1 %v5846_v6  ;;  %v510_v5 = vld [vmem:[%s6715_s29 + $0x680] sm:$0xff] }
  0x8f   : > { %v514_v6 = vld [vmem:[%s6715_s29 + $0x6a0] sm:$0xff] }
  0x90   : > { %v5907_v18 = vcombine.low %v510_v5, %v514_v6  ;;  %v606_v52 = vld [vmem:[%s6715_s29 + $0x980] sm:$0xff] }
  0x91   : > { %4657 = vmatpush1.bf16.msra.mxu0 %v5843_v11  ;;  %4903 = vmatpush1.bf16.msra.mxu1 %v5845_v12  ;;  %v5908_v11 = vcombine.high %v510_v5, %v514_v6  ;;  %v5910_v12 = vcombine.high %v511_v7, %v515_v8  ;;  %v570_v5 = vld [vmem:[%s6715_s29 + $0x860] sm:$0xff]  ;;  %v1024_v6 = vcombine.high %v6901_v62, %v6901_v62  ;;  %v567_v8 = vld [vmem:[%s6715_s29 + $0x848] sm:$0xff] }
  0x92   : > { %4658 = vmatprep.subr.bf16.mxu0 %v5852_v14  ;;  %4904 = vmatprep.subr.bf16.mxu1 %v5854_v15  ;;  %v518_v14 = vld [vmem:[%s6715_s29 + $0x6c0] sm:$0xff]  ;;  %v6911_v7 = vcombine.high %v6828_v56, %v6828_v56 }
  0x93   : > { %v522_v15 = vld [vmem:[%s6715_s29 + $0x6e0] sm:$0xff] }
  0x94   : > { %v5915_v27 = vcombine.low %v518_v14, %v522_v15 }
  0x95   : > { %4659 = vmatpush1.bf16.msra.mxu0 %v5851_v20  ;;  %4905 = vmatpush1.bf16.msra.mxu1 %v5853_v21  ;;  %v5916_v20 = vcombine.high %v518_v14, %v522_v15  ;;  %v5918_v21 = vcombine.high %v519_v16, %v523_v17  ;;  %v574_v15 = vld [vmem:[%s6715_s29 + $0x880] sm:$0xff]  ;;  %v6918_v17 = vrot.slane %v1024_v6, %v6766_v22 }
  0x96   : > { %4660 = vmatprep.subr.bf16.mxu0 %v5860_v23  ;;  %4906 = vmatprep.subr.bf16.mxu1 %v5862_v24  ;;  %v526_v23 = vld [vmem:[%s6715_s29 + $0x700] sm:$0xff] }
  0x97   : > { %v530_v24 = vld [vmem:[%s6715_s29 + $0x720] sm:$0xff] }
  0x98   : > { %v5923_v37 = vcombine.low %v526_v23, %v530_v24  ;;  %v578_v16 = vld [vmem:[%s6715_s29 + $0x8a0] sm:$0xff] }
  0x99   : > { %4661 = vmatpush1.bf16.msra.mxu0 %v5859_v30  ;;  %4907 = vmatpush1.bf16.msra.mxu1 %v5861_v31  ;;  %v5924_v30 = vcombine.high %v526_v23, %v530_v24  ;;  %v5926_v31 = vcombine.high %v527_v25, %v531_v26  ;;  %v5972_v23 = vcombine.high %v574_v15, %v578_v16  ;;  %v582_v25 = vld [vmem:[%s6715_s29 + $0x8c0] sm:$0xff] }
  0x9a   : > { %4662 = vmatprep.subr.bf16.mxu0 %v5868_v33  ;;  %4908 = vmatprep.subr.bf16.mxu1 %v5870_v34  ;;  %v534_v33 = vld [vmem:[%s6715_s29 + $0x740] sm:$0xff] }
  0x9b   : > { %v538_v34 = vld [vmem:[%s6715_s29 + $0x760] sm:$0xff] }
  0x9c   : > { %v5931_v46 = vcombine.low %v534_v33, %v538_v34  ;;  %v586_v26 = vld [vmem:[%s6715_s29 + $0x8e0] sm:$0xff] }
  0x9d   : > { %4663 = vmatpush1.bf16.msra.mxu0 %v5867_v39  ;;  %4909 = vmatpush1.bf16.msra.mxu1 %v5869_v40  ;;  %v5932_v39 = vcombine.high %v534_v33, %v538_v34  ;;  %v5934_v40 = vcombine.high %v535_v35, %v539_v36  ;;  %v5980_v33 = vcombine.high %v582_v25, %v586_v26  ;;  %v590_v35 = vld [vmem:[%s6715_s29 + $0x900] sm:$0xff] }
  0x9e   : > { %4664 = vmatprep.subr.bf16.mxu0 %v5876_v41  ;;  %4910 = vmatprep.subr.bf16.mxu1 %v5878_v43  ;;  %v542_v41 = vld [vmem:[%s6715_s29 + $0x780] sm:$0xff] }
  0x9f   : > { %v546_v43 = vld [vmem:[%s6715_s29 + $0x7a0] sm:$0xff] }
  0xa0   : > { %v5939_v55 = vcombine.low %v542_v41, %v546_v43  ;;  %v594_v36 = vld [vmem:[%s6715_s29 + $0x920] sm:$0xff] }
  0xa1   : > { %4665 = vmatpush1.bf16.msra.mxu0 %v5875_v48  ;;  %4911 = vmatpush1.bf16.msra.mxu1 %v5877_v49  ;;  %v5940_v48 = vcombine.high %v542_v41, %v546_v43  ;;  %v5942_v49 = vcombine.high %v543_v44, %v547_v45  ;;  %v5988_v41 = vcombine.high %v590_v35, %v594_v36  ;;  %v626_v6 = vld [vmem:[%s6715_s29 + $0xa20] sm:$0xff] }
  0xa2   : > { %4666 = vmatprep.subr.bf16.mxu0 %v5884_v50  ;;  %4912 = vmatprep.subr.bf16.mxu1 %v5886_v51  ;;  %v550_v50 = vld [vmem:[%s6715_s29 + $0x7c0] sm:$0xff] }
  0xa3   : > { %v554_v51 = vld [vmem:[%s6715_s29 + $0x7e0] sm:$0xff] }
  0xa4   : > { %v5947_v0 = vcombine.low %v550_v50, %v554_v51 }
  0xa5   : > { %4667 = vmatpush1.bf16.msra.mxu0 %v5883_v57  ;;  %4913 = vmatpush1.bf16.msra.mxu1 %v5885_v58  ;;  %v5941_v57 = vcombine.low %v543_v44, %v547_v45  ;;  %v5948_v58 = vcombine.high %v550_v50, %v554_v51  ;;  %v598_v44 = vld [vmem:[%s6715_s29 + $0x940] sm:$0xff] }
  0xa6   : > { %4668 = vmatprep.subr.bf16.mxu0 %v5892_v59  ;;  %4914 = vmatprep.subr.bf16.mxu1 %v5894_v60  ;;  %v5950_v59 = vcombine.high %v551_v53, %v555_v54  ;;  %v558_v60 = vld [vmem:[%s6715_s29 + $0x800] sm:$0xff] }
  0xa7   : > { %v602_v45 = vld [vmem:[%s6715_s29 + $0x960] sm:$0xff] }
  0xa8   : > { %v5996_v50 = vcombine.high %v598_v44, %v602_v45 }
  0xa9   : > { %4669 = vmatpush1.bf16.msra.mxu0 %v5891_v32  ;;  %4915 = vmatpush1.bf16.msra.mxu1 %v5893_v2  ;;  %v5949_v32 = vcombine.low %v551_v53, %v555_v54  ;;  %v5956_v2 = vcombine.high %v558_v60, %v562_v61  ;;  %v610_v53 = vld [vmem:[%s6715_s29 + $0x9a0] sm:$0xff]  ;;  %v607_v54 = vld [vmem:[%s6715_s29 + $0x988] sm:$0xff] }
  0xaa   : > { %4670 = vmatprep.subr.bf16.mxu0 %v5900_v3  ;;  %4916 = vmatprep.subr.bf16.mxu1 %v5902_v4  ;;  %v5958_v3 = vcombine.high %v559_v28, %v563_v63  ;;  %v566_v4 = vld [vmem:[%s6715_s29 + $0x840] sm:$0xff] }
  0xad   : > { %4671 = vmatpush1.bf16.msra.mxu0 %v5899_v9  ;;  %4917 = vmatpush1.bf16.msra.mxu1 %v5901_v10  ;;  %v571_v9 = vld [vmem:[%s6715_s29 + $0x868] sm:$0xff]  ;;  %v5955_v10 = vcombine.low %v558_v60, %v562_v61  ;;  %v614_v61 = vld [vmem:[%s6715_s29 + $0x9c0] sm:$0xff] }
  0xae   : > { %4672 = vmatprep.subr.bf16.mxu0 %v5908_v11  ;;  %4918 = vmatprep.subr.bf16.mxu1 %v5910_v12  ;;  %v5957_v11 = vcombine.low %v559_v28, %v563_v63  ;;  %v5964_v12 = vcombine.high %v566_v4, %v570_v5  ;;  %v5966_v14 = vcombine.high %v567_v8, %v571_v9  ;;  %v618_v28 = vld [vmem:[%s6715_s29 + $0x9e0] sm:$0xff]  ;;  %v615_v63 = vld [vmem:[%s6715_s29 + $0x9c8] sm:$0xff] }
  0xb1   : > { %4673 = vmatpush1.bf16.msra.mxu0 %v5907_v18  ;;  %4919 = vmatpush1.bf16.msra.mxu1 %v5909_v19  ;;  %v575_v18 = vld [vmem:[%s6715_s29 + $0x888] sm:$0xff] }
  0xb2   : > { %4674 = vmatprep.subr.bf16.mxu0 %v5916_v20  ;;  %4920 = vmatprep.subr.bf16.mxu1 %v5918_v21  ;;  %v579_v19 = vld [vmem:[%s6715_s29 + $0x8a8] sm:$0xff]  ;;  %v5963_v20 = vcombine.low %v566_v4, %v570_v5  ;;  %v5965_v21 = vcombine.low %v567_v8, %v571_v9  ;;  %v622_v5 = vld [vmem:[%s6715_s29 + $0xa00] sm:$0xff] }
  0xb3   : > { %v5974_v24 = vcombine.high %v575_v18, %v579_v19  ;;  %v623_v8 = vld [vmem:[%s6715_s29 + $0xa08] sm:$0xff] }
  0xb4   : > { %v627_v9 = vld [vmem:[%s6715_s29 + $0xa28] sm:$0xff] }
  0xb5   : > { %4675 = vmatpush1.bf16.msra.mxu0 %v5915_v27  ;;  %4921 = vmatpush1.bf16.msra.mxu1 %v5917_v29  ;;  %v583_v27 = vld [vmem:[%s6715_s29 + $0x8c8] sm:$0xff] }
  0xb6   : > { %4676 = vmatprep.subr.bf16.mxu0 %v5924_v30  ;;  %4922 = vmatprep.subr.bf16.mxu1 %v5926_v31  ;;  %v587_v29 = vld [vmem:[%s6715_s29 + $0x8e8] sm:$0xff]  ;;  %v5971_v30 = vcombine.low %v574_v15, %v578_v16  ;;  %v5973_v31 = vcombine.low %v575_v18, %v579_v19  ;;  %v630_v15 = vld [vmem:[%s6715_s29 + $0xa40] sm:$0xff] }
  0xb7   : > { %v5982_v34 = vcombine.high %v583_v27, %v587_v29  ;;  %v634_v16 = vld [vmem:[%s6715_s29 + $0xa60] sm:$0xff]  ;;  %v631_v18 = vld [vmem:[%s6715_s29 + $0xa48] sm:$0xff] }
  0xb8   : > { %v635_v19 = vld [vmem:[%s6715_s29 + $0xa68] sm:$0xff] }
  0xb9   : > { %4677 = vmatpush1.bf16.msra.mxu0 %v5923_v37  ;;  %4923 = vmatpush1.bf16.msra.mxu1 %v5925_v38  ;;  %v591_v37 = vld [vmem:[%s6715_s29 + $0x908] sm:$0xff] }
  0xba   : > { %4678 = vmatprep.subr.bf16.mxu0 %v5932_v39  ;;  %4924 = vmatprep.subr.bf16.mxu1 %v5934_v40  ;;  %v595_v38 = vld [vmem:[%s6715_s29 + $0x928] sm:$0xff]  ;;  %v5979_v39 = vcombine.low %v582_v25, %v586_v26  ;;  %v5981_v40 = vcombine.low %v583_v27, %v587_v29  ;;  %v638_v25 = vld [vmem:[%s6715_s29 + $0xa80] sm:$0xff] }
  0xbb   : > { %v5990_v43 = vcombine.high %v591_v37, %v595_v38  ;;  %v642_v26 = vld [vmem:[%s6715_s29 + $0xaa0] sm:$0xff]  ;;  %v639_v27 = vld [vmem:[%s6715_s29 + $0xa88] sm:$0xff] }
  0xbc   : > { %v643_v29 = vld [vmem:[%s6715_s29 + $0xaa8] sm:$0xff] }
  0xbd   : > { %4679 = vmatpush1.bf16.msra.mxu0 %v5931_v46  ;;  %4925 = vmatpush1.bf16.msra.mxu1 %v5933_v47  ;;  %v599_v46 = vld [vmem:[%s6715_s29 + $0x948] sm:$0xff] }
  0xbe   : > { %4680 = vmatprep.subr.bf16.mxu0 %v5940_v48  ;;  %4926 = vmatprep.subr.bf16.mxu1 %v5942_v49  ;;  %v603_v47 = vld [vmem:[%s6715_s29 + $0x968] sm:$0xff]  ;;  %v5987_v48 = vcombine.low %v590_v35, %v594_v36  ;;  %v5989_v49 = vcombine.low %v591_v37, %v595_v38  ;;  %v646_v35 = vld [vmem:[%s6715_s29 + $0xac0] sm:$0xff] }
  0xbf   : > { %v5998_v51 = vcombine.high %v599_v46, %v603_v47  ;;  %v650_v36 = vld [vmem:[%s6715_s29 + $0xae0] sm:$0xff]  ;;  %v647_v37 = vld [vmem:[%s6715_s29 + $0xac8] sm:$0xff] }
  0xc0   : > { %v651_v38 = vld [vmem:[%s6715_s29 + $0xae8] sm:$0xff] }
  0xc1   : > { %4681 = vmatpush1.bf16.msra.mxu0 %v5939_v55  ;;  %4927 = vmatpush1.bf16.msra.mxu1 %v5941_v57  ;;  %v611_v55 = vld [vmem:[%s6715_s29 + $0x9a8] sm:$0xff]  ;;  %v5995_v57 = vcombine.low %v598_v44, %v602_v45  ;;  %v654_v44 = vld [vmem:[%s6715_s29 + $0xb00] sm:$0xff] }
  0xc2   : > { %4682 = vmatprep.subr.bf16.mxu0 %v5948_v58  ;;  %4928 = vmatprep.subr.bf16.mxu1 %v5950_v59  ;;  %v5997_v58 = vcombine.low %v599_v46, %v603_v47  ;;  %v6004_v59 = vcombine.high %v606_v52, %v610_v53  ;;  %v6006_v60 = vcombine.high %v607_v54, %v611_v55  ;;  %v658_v45 = vld [vmem:[%s6715_s29 + $0xb20] sm:$0xff]  ;;  %v655_v46 = vld [vmem:[%s6715_s29 + $0xb08] sm:$0xff] }
  0xc3   : > { %v659_v47 = vld [vmem:[%s6715_s29 + $0xb28] sm:$0xff] }
  0xc5   : > { %4683 = vmatpush1.bf16.msra.mxu0 %v5947_v0  ;;  %4929 = vmatpush1.bf16.msra.mxu1 %v5949_v32  ;;  %v619_v0 = vld [vmem:[%s6715_s29 + $0x9e8] sm:$0xff]  ;;  %v6003_v32 = vcombine.low %v606_v52, %v610_v53  ;;  %v662_v52 = vld [vmem:[%s6715_s29 + $0xb40] sm:$0xff] }
  0xc6   : > { %4693 = vmatprep.subr.bf16.mxu0 %v5956_v2  ;;  %4939 = vmatprep.subr.bf16.mxu1 %v5958_v3  ;;  %v6005_v2 = vcombine.low %v607_v54, %v611_v55  ;;  %v6012_v3 = vcombine.high %v614_v61, %v618_v28  ;;  %v6014_v4 = vcombine.high %v615_v63, %v619_v0  ;;  %v666_v53 = vld [vmem:[%s6715_s29 + $0xb60] sm:$0xff]  ;;  %v663_v54 = vld [vmem:[%s6715_s29 + $0xb48] sm:$0xff] }
  0xc7   : > { %v667_v55 = vld [vmem:[%s6715_s29 + $0xb68] sm:$0xff] }
  0xc8   : > { %4685 = vmatmul.mubr.bf16.vlgmr.msra.gmra.mrb[0].mxu0 %v6911_v7  ;;  %4931 = vmatmul.mubr.bf16.vlgmr.msra.gmra.mrb[0].mxu1 %v6911_v7 }
  0xc9   : > { %4694 = vmatpush1.bf16.msra.mxu0 %v5955_v10  ;;  %4940 = vmatpush1.bf16.msra.mxu1 %v5957_v11  ;;  %v6011_v10 = vcombine.low %v614_v61, %v618_v28  ;;  %v6013_v11 = vcombine.low %v615_v63, %v619_v0  ;;  %v670_v61 = vld [vmem:[%s6715_s29 + $0xb80] sm:$0xff]  ;;  %v671_v63 = vld [vmem:[%s6715_s29 + $0xb88] sm:$0xff] }
  0xca   : > { %4695 = vmatprep.subr.bf16.mxu0 %v5964_v12  ;;  %4941 = vmatprep.subr.bf16.mxu1 %v5966_v14  ;;  %v6020_v12 = vcombine.high %v622_v5, %v626_v6  ;;  %v6022_v14 = vcombine.high %v623_v8, %v627_v9  ;;  %v674_v28 = vld [vmem:[%s6715_s29 + $0xba0] sm:$0xff]  ;;  %v675_v0 = vld [vmem:[%s6715_s29 + $0xba8] sm:$0xff] }
  0xcb   : > { %4725 = vmatprep.mubr.bf16.mxu0 %v6918_v17  ;;  %4971 = vmatprep.mubr.bf16.mxu1 %v6918_v17 }
  0xcd   : > { %4696 = vmatpush1.bf16.msra.mxu0 %v5963_v20  ;;  %4942 = vmatpush1.bf16.msra.mxu1 %v5965_v21  ;;  %v6019_v20 = vcombine.low %v622_v5, %v626_v6  ;;  %v6021_v21 = vcombine.low %v623_v8, %v627_v9  ;;  %v678_v5 = vld [vmem:[%s6715_s29 + $0xbc0] sm:$0xff]  ;;  %v679_v8 = vld [vmem:[%s6715_s29 + $0xbc8] sm:$0xff] }
  0xce   : > { %4697 = vmatprep.subr.bf16.mxu0 %v5972_v23  ;;  %4943 = vmatprep.subr.bf16.mxu1 %v5974_v24  ;;  %v6028_v23 = vcombine.high %v630_v15, %v634_v16  ;;  %v6030_v24 = vcombine.high %v631_v18, %v635_v19  ;;  %v682_v6 = vld [vmem:[%s6715_s29 + $0xbe0] sm:$0xff]  ;;  %v683_v9 = vld [vmem:[%s6715_s29 + $0xbe8] sm:$0xff] }
  0xd1   : > { %4698 = vmatpush1.bf16.msra.mxu0 %v5971_v30  ;;  %4944 = vmatpush1.bf16.msra.mxu1 %v5973_v31  ;;  %v6027_v30 = vcombine.low %v630_v15, %v634_v16  ;;  %v6029_v31 = vcombine.low %v631_v18, %v635_v19  ;;  %v686_v15 = vld [vmem:[%s6715_s29 + $0xc00] sm:$0xff]  ;;  %v687_v18 = vld [vmem:[%s6715_s29 + $0xc08] sm:$0xff] }
  0xd2   : > { %4699 = vmatprep.subr.bf16.mxu0 %v5980_v33  ;;  %4945 = vmatprep.subr.bf16.mxu1 %v5982_v34  ;;  %v6036_v33 = vcombine.high %v638_v25, %v642_v26  ;;  %v6038_v34 = vcombine.high %v639_v27, %v643_v29  ;;  %v690_v16 = vld [vmem:[%s6715_s29 + $0xc20] sm:$0xff]  ;;  %v691_v19 = vld [vmem:[%s6715_s29 + $0xc28] sm:$0xff] }
  0xd5   : > { %4700 = vmatpush1.bf16.msra.mxu0 %v5979_v39  ;;  %4946 = vmatpush1.bf16.msra.mxu1 %v5981_v40  ;;  %v6035_v39 = vcombine.low %v638_v25, %v642_v26  ;;  %v6037_v40 = vcombine.low %v639_v27, %v643_v29  ;;  %v694_v25 = vld [vmem:[%s6715_s29 + $0xc40] sm:$0xff]  ;;  %v6986_v27 = vrot.slane %v6901_v62, %v6766_v22  ;;  %v695_v29 = vld [vmem:[%s6715_s29 + $0xc48] sm:$0xff] }
  0xd6   : > { %4701 = vmatprep.subr.bf16.mxu0 %v5988_v41  ;;  %4947 = vmatprep.subr.bf16.mxu1 %v5990_v43  ;;  %v6044_v41 = vcombine.high %v646_v35, %v650_v36  ;;  %v6046_v43 = vcombine.high %v647_v37, %v651_v38  ;;  %v698_v26 = vld [vmem:[%s6715_s29 + $0xc60] sm:$0xff]  ;;  %v703_v62 = vld [vmem:[%s6715_s29 + $0xc88] sm:$0xff] }
  0xd9   : > { %4702 = vmatpush1.bf16.msra.mxu0 %v5987_v48  ;;  %4948 = vmatpush1.bf16.msra.mxu1 %v5989_v49  ;;  %v6043_v48 = vcombine.low %v646_v35, %v650_v36  ;;  %v6045_v49 = vcombine.low %v647_v37, %v651_v38  ;;  %v702_v36 = vld [vmem:[%s6715_s29 + $0xc80] sm:$0xff]  ;;  %v6994_v38 = vcombine.high %v6918_v17, %v6918_v17 }
  0xda   : > { %4703 = vmatprep.subr.bf16.mxu0 %v5996_v50  ;;  %4949 = vmatprep.subr.bf16.mxu1 %v5998_v51  ;;  %v6052_v50 = vcombine.high %v654_v44, %v658_v45  ;;  %v6054_v51 = vcombine.high %v655_v46, %v659_v47  ;;  %v706_v37 = vld [vmem:[%s6715_s29 + $0xca0] sm:$0xff] }
  0xdd   : > { %4704 = vmatpush1.bf16.msra.mxu0 %v5995_v57  ;;  %4950 = vmatpush1.bf16.msra.mxu1 %v5997_v58  ;;  %v6051_v57 = vcombine.low %v654_v44, %v658_v45  ;;  %v6053_v58 = vcombine.low %v655_v46, %v659_v47  ;;  %v710_v45 = vld [vmem:[%s6715_s29 + $0xcc0] sm:$0xff]  ;;  %v711_v47 = vld [vmem:[%s6715_s29 + $0xcc8] sm:$0xff] }
  0xde   : > { %4705 = vmatprep.subr.bf16.mxu0 %v6004_v59  ;;  %4951 = vmatprep.subr.bf16.mxu1 %v6006_v60  ;;  %v6060_v59 = vcombine.high %v662_v52, %v666_v53  ;;  %v6062_v60 = vcombine.high %v663_v54, %v667_v55  ;;  %v714_v46 = vld [vmem:[%s6715_s29 + $0xce0] sm:$0xff] }
  0xe1   : > { %4706 = vmatpush1.bf16.msra.mxu0 %v6003_v32  ;;  %4952 = vmatpush1.bf16.msra.mxu1 %v6005_v2  ;;  %v6059_v32 = vcombine.low %v662_v52, %v666_v53  ;;  %v6061_v2 = vcombine.low %v663_v54, %v667_v55  ;;  %v718_v53 = vld [vmem:[%s6715_s29 + $0xd00] sm:$0xff]  ;;  %v719_v55 = vld [vmem:[%s6715_s29 + $0xd08] sm:$0xff] }
  0xe2   : > { %4707 = vmatprep.subr.bf16.mxu0 %v6012_v3  ;;  %4953 = vmatprep.subr.bf16.mxu1 %v6014_v4  ;;  %v6068_v3 = vcombine.high %v670_v61, %v674_v28  ;;  %v6070_v4 = vcombine.high %v671_v63, %v675_v0  ;;  %v722_v54 = vld [vmem:[%s6715_s29 + $0xd20] sm:$0xff] }
  0xe5   : > { %4708 = vmatpush1.bf16.msra.mxu0 %v6011_v10  ;;  %4954 = vmatpush1.bf16.msra.mxu1 %v6013_v11  ;;  %v6067_v10 = vcombine.low %v670_v61, %v674_v28  ;;  %v6069_v11 = vcombine.low %v671_v63, %v675_v0  ;;  %v726_v28 = vld [vmem:[%s6715_s29 + $0xd40] sm:$0xff]  ;;  %v727_v0 = vld [vmem:[%s6715_s29 + $0xd48] sm:$0xff] }
  0xe6   : > { %4709 = vmatprep.subr.bf16.mxu0 %v6020_v12  ;;  %4955 = vmatprep.subr.bf16.mxu1 %v6022_v14  ;;  %v6076_v12 = vcombine.high %v678_v5, %v682_v6  ;;  %v6078_v14 = vcombine.high %v679_v8, %v683_v9  ;;  %v730_v63 = vld [vmem:[%s6715_s29 + $0xd60] sm:$0xff] }
  0xe9   : > { %4710 = vmatpush1.bf16.msra.mxu0 %v6019_v20  ;;  %4956 = vmatpush1.bf16.msra.mxu1 %v6021_v21  ;;  %v6075_v20 = vcombine.low %v678_v5, %v682_v6  ;;  %v6077_v21 = vcombine.low %v679_v8, %v683_v9  ;;  %v734_v6 = vld [vmem:[%s6715_s29 + $0xd80] sm:$0xff]  ;;  %v735_v9 = vld [vmem:[%s6715_s29 + $0xd88] sm:$0xff] }
  0xea   : > { %4711 = vmatprep.subr.bf16.mxu0 %v6028_v23  ;;  %4957 = vmatprep.subr.bf16.mxu1 %v6030_v24  ;;  %v6084_v23 = vcombine.high %v686_v15, %v690_v16  ;;  %v6086_v24 = vcombine.high %v687_v18, %v691_v19  ;;  %v738_v8 = vld [vmem:[%s6715_s29 + $0xda0] sm:$0xff] }
  0xed   : > { %4712 = vmatpush1.bf16.msra.mxu0 %v6027_v30  ;;  %4958 = vmatpush1.bf16.msra.mxu1 %v6029_v31  ;;  %v699_v30 = vld [vmem:[%s6715_s29 + $0xc68] sm:$0xff]  ;;  %v6083_v31 = vcombine.low %v686_v15, %v690_v16  ;;  %v742_v16 = vld [vmem:[%s6715_s29 + $0xdc0] sm:$0xff] }
  0xee   : > { %4713 = vmatprep.subr.bf16.mxu0 %v6036_v33  ;;  %4959 = vmatprep.subr.bf16.mxu1 %v6038_v34  ;;  %v6085_v33 = vcombine.low %v687_v18, %v691_v19  ;;  %v6092_v34 = vcombine.high %v694_v25, %v698_v26  ;;  %v6094_v35 = vcombine.high %v695_v29, %v699_v30  ;;  %v746_v18 = vld [vmem:[%s6715_s29 + $0xde0] sm:$0xff]  ;;  %v743_v19 = vld [vmem:[%s6715_s29 + $0xdc8] sm:$0xff] }
  0xf1   : > { %4714 = vmatpush1.bf16.msra.mxu0 %v6035_v39  ;;  %4960 = vmatpush1.bf16.msra.mxu1 %v6037_v40  ;;  %v707_v39 = vld [vmem:[%s6715_s29 + $0xca8] sm:$0xff]  ;;  %v6091_v40 = vcombine.low %v694_v25, %v698_v26  ;;  %v750_v26 = vld [vmem:[%s6715_s29 + $0xe00] sm:$0xff] }
  0xf2   : > { %4715 = vmatprep.subr.bf16.mxu0 %v6044_v41  ;;  %4961 = vmatprep.subr.bf16.mxu1 %v6046_v43  ;;  %v6093_v41 = vcombine.low %v695_v29, %v699_v30  ;;  %v6100_v43 = vcombine.high %v702_v36, %v706_v37  ;;  %v6102_v44 = vcombine.high %v703_v62, %v707_v39  ;;  %v754_v29 = vld [vmem:[%s6715_s29 + $0xe20] sm:$0xff]  ;;  %v751_v30 = vld [vmem:[%s6715_s29 + $0xe08] sm:$0xff] }
  0xf5   : > { %4716 = vmatpush1.bf16.msra.mxu0 %v6043_v48  ;;  %4962 = vmatpush1.bf16.msra.mxu1 %v6045_v49  ;;  %v715_v48 = vld [vmem:[%s6715_s29 + $0xce8] sm:$0xff]  ;;  %v6099_v49 = vcombine.low %v702_v36, %v706_v37  ;;  %v758_v37 = vld [vmem:[%s6715_s29 + $0xe40] sm:$0xff] }
  0xf6   : > { %4717 = vmatprep.subr.bf16.mxu0 %v6052_v50  ;;  %4963 = vmatprep.subr.bf16.mxu1 %v6054_v51  ;;  %v6101_v50 = vcombine.low %v703_v62, %v707_v39  ;;  %v6108_v51 = vcombine.high %v710_v45, %v714_v46  ;;  %v6110_v52 = vcombine.high %v711_v47, %v715_v48  ;;  %v762_v62 = vld [vmem:[%s6715_s29 + $0xe60] sm:$0xff]  ;;  %v759_v39 = vld [vmem:[%s6715_s29 + $0xe48] sm:$0xff] }
  0xf9   : > { %4718 = vmatpush1.bf16.msra.mxu0 %v6051_v57  ;;  %4964 = vmatpush1.bf16.msra.mxu1 %v6053_v58  ;;  %v723_v57 = vld [vmem:[%s6715_s29 + $0xd28] sm:$0xff]  ;;  %v6107_v58 = vcombine.low %v710_v45, %v714_v46  ;;  %v766_v46 = vld [vmem:[%s6715_s29 + $0xe80] sm:$0xff] }
  0xfa   : > { %4719 = vmatprep.subr.bf16.mxu0 %v6060_v59  ;;  %4965 = vmatprep.subr.bf16.mxu1 %v6062_v60  ;;  %v6109_v59 = vcombine.low %v711_v47, %v715_v48  ;;  %v6116_v60 = vcombine.high %v718_v53, %v722_v54  ;;  %v6118_v61 = vcombine.high %v719_v55, %v723_v57  ;;  %v770_v47 = vld [vmem:[%s6715_s29 + $0xea0] sm:$0xff]  ;;  %v767_v48 = vld [vmem:[%s6715_s29 + $0xe88] sm:$0xff] }
  0xfd   : > { %4720 = vmatpush1.bf16.msra.mxu0 %v6059_v32  ;;  %4966 = vmatpush1.bf16.msra.mxu1 %v6061_v2  ;;  %v731_v32 = vld [vmem:[%s6715_s29 + $0xd68] sm:$0xff]  ;;  %v6115_v2 = vcombine.low %v718_v53, %v722_v54  ;;  %v774_v54 = vld [vmem:[%s6715_s29 + $0xec0] sm:$0xff] }
  0xfe   : > { %4721 = vmatprep.subr.bf16.mxu0 %v6068_v3  ;;  %4967 = vmatprep.subr.bf16.mxu1 %v6070_v4  ;;  %v6117_v3 = vcombine.low %v719_v55, %v723_v57  ;;  %v6124_v4 = vcombine.high %v726_v28, %v730_v63  ;;  %v6126_v5 = vcombine.high %v727_v0, %v731_v32  ;;  %v778_v55 = vld [vmem:[%s6715_s29 + $0xee0] sm:$0xff]  ;;  %v775_v57 = vld [vmem:[%s6715_s29 + $0xec8] sm:$0xff] }
 0x101   : > { %4722 = vmatpush1.bf16.msra.mxu0 %v6067_v10  ;;  %4968 = vmatpush1.bf16.msra.mxu1 %v6069_v11  ;;  %v739_v10 = vld [vmem:[%s6715_s29 + $0xda8] sm:$0xff]  ;;  %v6123_v11 = vcombine.low %v726_v28, %v730_v63  ;;  %v782_v63 = vld [vmem:[%s6715_s29 + $0xf00] sm:$0xff] }
 0x102   : > { %4723 = vmatprep.subr.bf16.mxu0 %v6076_v12  ;;  %4969 = vmatprep.subr.bf16.mxu1 %v6078_v14  ;;  %v6125_v12 = vcombine.low %v727_v0, %v731_v32  ;;  %v6132_v14 = vcombine.high %v734_v6, %v738_v8  ;;  %v6134_v15 = vcombine.high %v735_v9, %v739_v10  ;;  %v786_v0 = vld [vmem:[%s6715_s29 + $0xf20] sm:$0xff]  ;;  %v783_v32 = vld [vmem:[%s6715_s29 + $0xf08] sm:$0xff] }
 0x105   : > { %4724 = vmatpush1.bf16.msra.mxu0 %v6075_v20  ;;  %4970 = vmatpush1.bf16.msra.mxu1 %v6077_v21  ;;  %v747_v20 = vld [vmem:[%s6715_s29 + $0xde8] sm:$0xff]  ;;  %v6131_v21 = vcombine.low %v734_v6, %v738_v8  ;;  %v790_v8 = vld [vmem:[%s6715_s29 + $0xf40] sm:$0xff] }
 0x106   : > { %4734 = vmatprep.subr.bf16.mxu0 %v6084_v23  ;;  %4980 = vmatprep.subr.bf16.mxu1 %v6086_v24  ;;  %v6133_v23 = vcombine.low %v735_v9, %v739_v10  ;;  %v6140_v24 = vcombine.high %v742_v16, %v746_v18  ;;  %v6142_v25 = vcombine.high %v743_v19, %v747_v20  ;;  %v794_v9 = vld [vmem:[%s6715_s29 + $0xf60] sm:$0xff]  ;;  %v791_v10 = vld [vmem:[%s6715_s29 + $0xf48] sm:$0xff] }
 0x108   : > { %4726 = vmatmul.mubr.bf16.vlgmr.msra.gmra.mrb[0].mxu0 %v6986_v27  ;;  %4972 = vmatmul.mubr.bf16.vlgmr.msra.gmra.mrb[0].mxu1 %v6986_v27 }
 0x109   : > { %4735 = vmatpush1.bf16.msra.mxu0 %v6083_v31  ;;  %4981 = vmatpush1.bf16.msra.mxu1 %v6085_v33  ;;  %v755_v31 = vld [vmem:[%s6715_s29 + $0xe28] sm:$0xff]  ;;  %v6139_v33 = vcombine.low %v742_v16, %v746_v18  ;;  %v798_v18 = vld [vmem:[%s6715_s29 + $0xf80] sm:$0xff] }
 0x10a   : > { %4736 = vmatprep.subr.bf16.mxu0 %v6092_v34  ;;  %4982 = vmatprep.subr.bf16.mxu1 %v6094_v35  ;;  %v6141_v34 = vcombine.low %v743_v19, %v747_v20  ;;  %v6148_v35 = vcombine.high %v750_v26, %v754_v29  ;;  %v6150_v36 = vcombine.high %v751_v30, %v755_v31  ;;  %v802_v19 = vld [vmem:[%s6715_s29 + $0xfa0] sm:$0xff]  ;;  %v799_v20 = vld [vmem:[%s6715_s29 + $0xf88] sm:$0xff] }
 0x10b   : > { %4766 = vmatprep.mubr.bf16.mxu0 %v6994_v38  ;;  %5012 = vmatprep.mubr.bf16.mxu1 %v6994_v38 }
 0x10d   : > { %4737 = vmatpush1.bf16.msra.mxu0 %v6091_v40  ;;  %4983 = vmatpush1.bf16.msra.mxu1 %v6093_v41  ;;  %v763_v40 = vld [vmem:[%s6715_s29 + $0xe68] sm:$0xff]  ;;  %v6147_v41 = vcombine.low %v750_v26, %v754_v29  ;;  %v806_v29 = vld [vmem:[%s6715_s29 + $0xfc0] sm:$0xff] }
 0x10e   : > { %4738 = vmatprep.subr.bf16.mxu0 %v6100_v43  ;;  %4984 = vmatprep.subr.bf16.mxu1 %v6102_v44  ;;  %v6149_v43 = vcombine.low %v751_v30, %v755_v31  ;;  %v6156_v44 = vcombine.high %v758_v37, %v762_v62  ;;  %v6158_v45 = vcombine.high %v759_v39, %v763_v40  ;;  %v810_v30 = vld [vmem:[%s6715_s29 + $0xfe0] sm:$0xff]  ;;  %v807_v31 = vld [vmem:[%s6715_s29 + $0xfc8] sm:$0xff] }
 0x111   : > { %4739 = vmatpush1.bf16.msra.mxu0 %v6099_v49  ;;  %4985 = vmatpush1.bf16.msra.mxu1 %v6101_v50  ;;  %v771_v49 = vld [vmem:[%s6715_s29 + $0xea8] sm:$0xff]  ;;  %v6155_v50 = vcombine.low %v758_v37, %v762_v62  ;;  %v814_v62 = vld [vmem:[%s6715_s29 + $0x1000] sm:$0xff] }
 0x112   : > { %4740 = vmatprep.subr.bf16.mxu0 %v6108_v51  ;;  %4986 = vmatprep.subr.bf16.mxu1 %v6110_v52  ;;  %v6157_v51 = vcombine.low %v759_v39, %v763_v40  ;;  %v6164_v52 = vcombine.high %v766_v46, %v770_v47  ;;  %v6166_v53 = vcombine.high %v767_v48, %v771_v49  ;;  %v818_v39 = vld [vmem:[%s6715_s29 + $0x1020] sm:$0xff]  ;;  %v815_v40 = vld [vmem:[%s6715_s29 + $0x1008] sm:$0xff] }
 0x115   : > { %4741 = vmatpush1.bf16.msra.mxu0 %v6107_v58  ;;  %4987 = vmatpush1.bf16.msra.mxu1 %v6109_v59  ;;  %v779_v58 = vld [vmem:[%s6715_s29 + $0xee8] sm:$0xff]  ;;  %v6163_v59 = vcombine.low %v766_v46, %v770_v47  ;;  %v6212_v46 = vcombine.high %v814_v62, %v818_v39 }
 0x116   : > { %4742 = vmatprep.subr.bf16.mxu0 %v6116_v60  ;;  %4988 = vmatprep.subr.bf16.mxu1 %v6118_v61  ;;  %v6165_v60 = vcombine.low %v767_v48, %v771_v49  ;;  %v6172_v61 = vcombine.high %v774_v54, %v778_v55  ;;  %v6174_v28 = vcombine.high %v775_v57, %v779_v58  ;;  %v822_v48 = vld [vmem:[%s6715_s29 + $0x1040] sm:$0xff] }
 0x117   : > { %v826_v49 = vld [vmem:[%s6715_s29 + $0x1060] sm:$0xff] }
 0x119   : > { %4743 = vmatpush1.bf16.msra.mxu0 %v6115_v2  ;;  %4989 = vmatpush1.bf16.msra.mxu1 %v6117_v3  ;;  %v787_v2 = vld [vmem:[%s6715_s29 + $0xf28] sm:$0xff]  ;;  %v6171_v3 = vcombine.low %v774_v54, %v778_v55  ;;  %v6211_v54 = vcombine.low %v814_v62, %v818_v39 }
 0x11a   : > { %4744 = vmatprep.subr.bf16.mxu0 %v6124_v4  ;;  %4990 = vmatprep.subr.bf16.mxu1 %v6126_v5  ;;  %v6173_v4 = vcombine.low %v775_v57, %v779_v58  ;;  %v6180_v5 = vcombine.high %v782_v63, %v786_v0  ;;  %v6182_v6 = vcombine.high %v783_v32, %v787_v2  ;;  %v867_v62 = vld [vmem:[%s6715_s29 + $0x11a8] sm:$0xff] }
 0x11b   : > { %v6220_v57 = vcombine.high %v822_v48, %v826_v49 }
 0x11d   : > { %4745 = vmatpush1.bf16.msra.mxu0 %v6123_v11  ;;  %4991 = vmatpush1.bf16.msra.mxu1 %v6125_v12  ;;  %v795_v11 = vld [vmem:[%s6715_s29 + $0xf68] sm:$0xff]  ;;  %v6179_v12 = vcombine.low %v782_v63, %v786_v0  ;;  %v6219_v0 = vcombine.low %v822_v48, %v826_v49 }
 0x11e   : > { %4746 = vmatprep.subr.bf16.mxu0 %v6132_v14  ;;  %4992 = vmatprep.subr.bf16.mxu1 %v6134_v15  ;;  %v6181_v14 = vcombine.low %v783_v32, %v787_v2  ;;  %v6188_v15 = vcombine.high %v790_v8, %v794_v9  ;;  %v6190_v16 = vcombine.high %v791_v10, %v795_v11  ;;  %v835_v63 = vld [vmem:[%s6715_s29 + $0x10a8] sm:$0xff] }
 0x11f   : > { %v875_v48 = vld [vmem:[%s6715_s29 + $0x11e8] sm:$0xff] }
 0x121   : > { %4747 = vmatpush1.bf16.msra.mxu0 %v6131_v21  ;;  %4993 = vmatpush1.bf16.msra.mxu1 %v6133_v23  ;;  %v803_v21 = vld [vmem:[%s6715_s29 + $0xfa8] sm:$0xff]  ;;  %v6187_v23 = vcombine.low %v790_v8, %v794_v9 }
 0x122   : > { %4748 = vmatprep.subr.bf16.mxu0 %v6140_v24  ;;  %4994 = vmatprep.subr.bf16.mxu1 %v6142_v25  ;;  %v6189_v24 = vcombine.low %v791_v10, %v795_v11  ;;  %v6196_v25 = vcombine.high %v798_v18, %v802_v19  ;;  %v6198_v26 = vcombine.high %v799_v20, %v803_v21  ;;  %v843_v8 = vld [vmem:[%s6715_s29 + $0x10e8] sm:$0xff] }
 0x125   : > { %4749 = vmatpush1.bf16.msra.mxu0 %v6139_v33  ;;  %4995 = vmatpush1.bf16.msra.mxu1 %v6141_v34  ;;  %v811_v33 = vld [vmem:[%s6715_s29 + $0xfe8] sm:$0xff]  ;;  %v6195_v34 = vcombine.low %v798_v18, %v802_v19 }
 0x126   : > { %4750 = vmatprep.subr.bf16.mxu0 %v6148_v35  ;;  %4996 = vmatprep.subr.bf16.mxu1 %v6150_v36  ;;  %v6197_v35 = vcombine.low %v799_v20, %v803_v21  ;;  %v6204_v36 = vcombine.high %v806_v29, %v810_v30  ;;  %v6206_v37 = vcombine.high %v807_v31, %v811_v33  ;;  %v851_v18 = vld [vmem:[%s6715_s29 + $0x1128] sm:$0xff] }
 0x129   : > { %4751 = vmatpush1.bf16.msra.mxu0 %v6147_v41  ;;  %4997 = vmatpush1.bf16.msra.mxu1 %v6149_v43  ;;  %v819_v41 = vld [vmem:[%s6715_s29 + $0x1028] sm:$0xff] }
 0x12a   : > { %4752 = vmatprep.subr.bf16.mxu0 %v6156_v44  ;;  %4998 = vmatprep.subr.bf16.mxu1 %v6158_v45  ;;  %v7059_v43 = vld.sshfl [vmem:[%s6725_s28 + $0x8] sm:$0x13 pattern:$0x75316420]  ;;  %v6203_v44 = vcombine.low %v806_v29, %v810_v30  ;;  %v6205_v45 = vcombine.low %v807_v31, %v811_v33  ;;  %v6214_v47 = vcombine.high %v815_v40, %v819_v41 }
 0x12b   : > { %v6213_v55 = vcombine.low %v815_v40, %v819_v41  ;;  %v859_v29 = vld [vmem:[%s6715_s29 + $0x1168] sm:$0xff] }
 0x12d   : > { %4753 = vmatpush1.bf16.msra.mxu0 %v6155_v50  ;;  %4999 = vmatpush1.bf16.msra.mxu1 %v6157_v51  ;;  %v1064_v50 = vcombine.high %v7059_v43, %v7059_v43  ;;  %v7067_v51 = vcombine.high %v6986_v27, %v6986_v27 }
 0x12e   : > { %4754 = vmatprep.subr.bf16.mxu0 %v6164_v52  ;;  %5000 = vmatprep.subr.bf16.mxu1 %v6166_v53  ;;  %v823_v52 = vld [vmem:[%s6715_s29 + $0x1048] sm:$0xff] }
 0x12f   : > { %v827_v53 = vld [vmem:[%s6715_s29 + $0x1068] sm:$0xff] }
 0x130   : > { %v6222_v58 = vcombine.high %v823_v52, %v827_v53  ;;  %v6221_v32 = vcombine.low %v823_v52, %v827_v53 }
 0x131   : > { %4755 = vmatpush1.bf16.msra.mxu0 %v6163_v59  ;;  %5001 = vmatpush1.bf16.msra.mxu1 %v6165_v60  ;;  %v830_v59 = vld [vmem:[%s6715_s29 + $0x1080] sm:$0xff] }
 0x132   : > { %4756 = vmatprep.subr.bf16.mxu0 %v6172_v61  ;;  %5002 = vmatprep.subr.bf16.mxu1 %v6174_v28  ;;  %v834_v60 = vld [vmem:[%s6715_s29 + $0x10a0] sm:$0xff]  ;;  %v7074_v61 = vrot.slane %v1064_v50, %v6766_v22  ;;  %v831_v28 = vld [vmem:[%s6715_s29 + $0x1088] sm:$0xff] }
 0x133   : > { %v6228_v2 = vcombine.high %v830_v59, %v834_v60  ;;  %v6227_v9 = vcombine.low %v830_v59, %v834_v60  ;;  %v6229_v10 = vcombine.low %v831_v28, %v835_v63 }
 0x135   : > { %4757 = vmatpush1.bf16.msra.mxu0 %v6171_v3  ;;  %5003 = vmatpush1.bf16.msra.mxu1 %v6173_v4  ;;  %v6230_v3 = vcombine.high %v831_v28, %v835_v63  ;;  %v838_v4 = vld [vmem:[%s6715_s29 + $0x10c0] sm:$0xff] }
 0x136   : > { %4758 = vmatprep.subr.bf16.mxu0 %v6180_v5  ;;  %5004 = vmatprep.subr.bf16.mxu1 %v6182_v6  ;;  %v842_v5 = vld [vmem:[%s6715_s29 + $0x10e0] sm:$0xff]  ;;  %v839_v6 = vld [vmem:[%s6715_s29 + $0x10c8] sm:$0xff] }
 0x137   : > { %v6236_v11 = vcombine.high %v838_v4, %v842_v5  ;;  %v6235_v19 = vcombine.low %v838_v4, %v842_v5  ;;  %v6237_v20 = vcombine.low %v839_v6, %v843_v8 }
 0x139   : > { %4759 = vmatpush1.bf16.msra.mxu0 %v6179_v12  ;;  %5005 = vmatpush1.bf16.msra.mxu1 %v6181_v14  ;;  %v6238_v12 = vcombine.high %v839_v6, %v843_v8  ;;  %v846_v14 = vld [vmem:[%s6715_s29 + $0x1100] sm:$0xff] }
 0x13a   : > { %4760 = vmatprep.subr.bf16.mxu0 %v6188_v15  ;;  %5006 = vmatprep.subr.bf16.mxu1 %v6190_v16  ;;  %v850_v15 = vld [vmem:[%s6715_s29 + $0x1120] sm:$0xff]  ;;  %v847_v16 = vld [vmem:[%s6715_s29 + $0x1108] sm:$0xff] }
 0x13b   : > { %v6244_v21 = vcombine.high %v846_v14, %v850_v15  ;;  %v6243_v30 = vcombine.low %v846_v14, %v850_v15  ;;  %v6245_v31 = vcombine.low %v847_v16, %v851_v18 }
 0x13d   : > { %4761 = vmatpush1.bf16.msra.mxu0 %v6187_v23  ;;  %5007 = vmatpush1.bf16.msra.mxu1 %v6189_v24  ;;  %v6246_v23 = vcombine.high %v847_v16, %v851_v18  ;;  %v854_v24 = vld [vmem:[%s6715_s29 + $0x1140] sm:$0xff] }
 0x13e   : > { %4762 = vmatprep.subr.bf16.mxu0 %v6196_v25  ;;  %5008 = vmatprep.subr.bf16.mxu1 %v6198_v26  ;;  %v858_v25 = vld [vmem:[%s6715_s29 + $0x1160] sm:$0xff]  ;;  %v855_v26 = vld [vmem:[%s6715_s29 + $0x1148] sm:$0xff] }
 0x13f   : > { %v6252_v33 = vcombine.high %v854_v24, %v858_v25  ;;  %v6251_v39 = vcombine.low %v854_v24, %v858_v25  ;;  %v6253_v40 = vcombine.low %v855_v26, %v859_v29 }
 0x141   : > { %4763 = vmatpush1.bf16.msra.mxu0 %v6195_v34  ;;  %5009 = vmatpush1.bf16.msra.mxu1 %v6197_v35  ;;  %v6254_v34 = vcombine.high %v855_v26, %v859_v29  ;;  %v862_v35 = vld [vmem:[%s6715_s29 + $0x1180] sm:$0xff] }
 0x142   : > { %4764 = vmatprep.subr.bf16.mxu0 %v6204_v36  ;;  %5010 = vmatprep.subr.bf16.mxu1 %v6206_v37  ;;  %v866_v36 = vld [vmem:[%s6715_s29 + $0x11a0] sm:$0xff]  ;;  %v863_v37 = vld [vmem:[%s6715_s29 + $0x1188] sm:$0xff] }
 0x143   : > { %v6260_v41 = vcombine.high %v862_v35, %v866_v36  ;;  %v6259_v49 = vcombine.low %v862_v35, %v866_v36  ;;  %v6261_v50 = vcombine.low %v863_v37, %v867_v62 }
 0x145   : > { %4765 = vmatpush1.bf16.msra.mxu0 %v6203_v44  ;;  %5011 = vmatpush1.bf16.msra.mxu1 %v6205_v45  ;;  %v6262_v44 = vcombine.high %v863_v37, %v867_v62  ;;  %v870_v45 = vld [vmem:[%s6715_s29 + $0x11c0] sm:$0xff] }
 0x146   : > { %4775 = vmatprep.subr.bf16.mxu0 %v6212_v46  ;;  %5021 = vmatprep.subr.bf16.mxu1 %v6214_v47  ;;  %v874_v46 = vld [vmem:[%s6715_s29 + $0x11e0] sm:$0xff]  ;;  %v871_v47 = vld [vmem:[%s6715_s29 + $0x11c8] sm:$0xff] }
 0x147   : > { %v6268_v52 = vcombine.high %v870_v45, %v874_v46  ;;  %v6270_v53 = vcombine.high %v871_v47, %v875_v48  ;;  %v6267_v59 = vcombine.low %v870_v45, %v874_v46  ;;  %v6269_v60 = vcombine.low %v871_v47, %v875_v48 }
 0x148   : > { %4767 = vmatmul.mubr.bf16.vlgmr.msra.gmra.mrb[0].mxu0 %v7067_v51  ;;  %5013 = vmatmul.mubr.bf16.vlgmr.msra.gmra.mrb[0].mxu1 %v7067_v51 }
 0x149   : > { %4776 = vmatpush1.bf16.msra.mxu0 %v6211_v54  ;;  %5022 = vmatpush1.bf16.msra.mxu1 %v6213_v55  ;;  %v878_v54 = vld [vmem:[%s6715_s29 + $0x1200] sm:$0xff] }
 0x14a   : > { %4777 = vmatprep.subr.bf16.mxu0 %v6220_v57  ;;  %5023 = vmatprep.subr.bf16.mxu1 %v6222_v58  ;;  %v882_v55 = vld [vmem:[%s6715_s29 + $0x1220] sm:$0xff]  ;;  %v879_v57 = vld [vmem:[%s6715_s29 + $0x1208] sm:$0xff] }
 0x14b   : > { %4807 = vmatprep.mubr.bf16.mxu0 %v7074_v61  ;;  %5053 = vmatprep.mubr.bf16.mxu1 %v7074_v61  ;;  %v883_v58 = vld [vmem:[%s6715_s29 + $0x1228] sm:$0xff]  ;;  %v6276_v28 = vcombine.high %v878_v54, %v882_v55  ;;  %v6275_v4 = vcombine.low %v878_v54, %v882_v55 }
 0x14c   : > { %v6278_v63 = vcombine.high %v879_v57, %v883_v58  ;;  %v6277_v5 = vcombine.low %v879_v57, %v883_v58 }
 0x14d   : > { %4778 = vmatpush1.bf16.msra.mxu0 %v6219_v0  ;;  %5024 = vmatpush1.bf16.msra.mxu1 %v6221_v32  ;;  %v886_v0 = vld [vmem:[%s6715_s29 + $0x1240] sm:$0xff] }
 0x14e   : > { %4779 = vmatprep.subr.bf16.mxu0 %v6228_v2  ;;  %5025 = vmatprep.subr.bf16.mxu1 %v6230_v3  ;;  %v890_v32 = vld [vmem:[%s6715_s29 + $0x1260] sm:$0xff]  ;;  %v887_v2 = vld [vmem:[%s6715_s29 + $0x1248] sm:$0xff] }
 0x14f   : > { %v891_v3 = vld [vmem:[%s6715_s29 + $0x1268] sm:$0xff]  ;;  %v6284_v6 = vcombine.high %v886_v0, %v890_v32  ;;  %v6283_v14 = vcombine.low %v886_v0, %v890_v32 }
 0x150   : > { %v6286_v8 = vcombine.high %v887_v2, %v891_v3  ;;  %v6285_v15 = vcombine.low %v887_v2, %v891_v3 }
 0x151   : > { %4780 = vmatpush1.bf16.msra.mxu0 %v6227_v9  ;;  %5026 = vmatpush1.bf16.msra.mxu1 %v6229_v10  ;;  %v894_v9 = vld [vmem:[%s6715_s29 + $0x1280] sm:$0xff] }
 0x152   : > { %4781 = vmatprep.subr.bf16.mxu0 %v6236_v11  ;;  %5027 = vmatprep.subr.bf16.mxu1 %v6238_v12  ;;  %v898_v10 = vld [vmem:[%s6715_s29 + $0x12a0] sm:$0xff]  ;;  %v895_v11 = vld [vmem:[%s6715_s29 + $0x1288] sm:$0xff] }
 0x153   : > { %v899_v12 = vld [vmem:[%s6715_s29 + $0x12a8] sm:$0xff]  ;;  %v6292_v16 = vcombine.high %v894_v9, %v898_v10  ;;  %v6291_v24 = vcombine.low %v894_v9, %v898_v10 }
 0x154   : > { %v6294_v18 = vcombine.high %v895_v11, %v899_v12  ;;  %v6293_v25 = vcombine.low %v895_v11, %v899_v12 }
 0x155   : > { %4782 = vmatpush1.bf16.msra.mxu0 %v6235_v19  ;;  %5028 = vmatpush1.bf16.msra.mxu1 %v6237_v20  ;;  %v902_v19 = vld [vmem:[%s6715_s29 + $0x12c0] sm:$0xff] }
 0x156   : > { %4783 = vmatprep.subr.bf16.mxu0 %v6244_v21  ;;  %5029 = vmatprep.subr.bf16.mxu1 %v6246_v23  ;;  %v906_v20 = vld [vmem:[%s6715_s29 + $0x12e0] sm:$0xff]  ;;  %v903_v21 = vld [vmem:[%s6715_s29 + $0x12c8] sm:$0xff] }
 0x157   : > { %v907_v23 = vld [vmem:[%s6715_s29 + $0x12e8] sm:$0xff]  ;;  %v6300_v26 = vcombine.high %v902_v19, %v906_v20  ;;  %v6299_v35 = vcombine.low %v902_v19, %v906_v20 }
 0x158   : > { %v6302_v29 = vcombine.high %v903_v21, %v907_v23  ;;  %v6301_v36 = vcombine.low %v903_v21, %v907_v23  ;;  %v955_v19 = vld [vmem:[%s6715_s29 + $0x1468] sm:$0xff] }
 0x159   : > { %4784 = vmatpush1.bf16.msra.mxu0 %v6243_v30  ;;  %5030 = vmatpush1.bf16.msra.mxu1 %v6245_v31  ;;  %v910_v30 = vld [vmem:[%s6715_s29 + $0x1300] sm:$0xff] }
 0x15a   : > { %4785 = vmatprep.subr.bf16.mxu0 %v6252_v33  ;;  %5031 = vmatprep.subr.bf16.mxu1 %v6254_v34  ;;  %v914_v31 = vld [vmem:[%s6715_s29 + $0x1320] sm:$0xff]  ;;  %v911_v33 = vld [vmem:[%s6715_s29 + $0x1308] sm:$0xff] }
 0x15b   : > { %v915_v34 = vld [vmem:[%s6715_s29 + $0x1328] sm:$0xff]  ;;  %v6308_v37 = vcombine.high %v910_v30, %v914_v31  ;;  %v6307_v45 = vcombine.low %v910_v30, %v914_v31 }
 0x15c   : > { %v6310_v62 = vcombine.high %v911_v33, %v915_v34  ;;  %v6309_v46 = vcombine.low %v911_v33, %v915_v34  ;;  %v966_v34 = vld [vmem:[%s6715_s29 + $0x14c0] sm:$0xff] }
 0x15d   : > { %4786 = vmatpush1.bf16.msra.mxu0 %v6251_v39  ;;  %5032 = vmatpush1.bf16.msra.mxu1 %v6253_v40  ;;  %v918_v39 = vld [vmem:[%s6715_s29 + $0x1340] sm:$0xff] }
 0x15e   : > { %4787 = vmatprep.subr.bf16.mxu0 %v6260_v41  ;;  %5033 = vmatprep.subr.bf16.mxu1 %v6262_v44  ;;  %v922_v40 = vld [vmem:[%s6715_s29 + $0x1360] sm:$0xff]  ;;  %v919_v41 = vld [vmem:[%s6715_s29 + $0x1348] sm:$0xff] }
 0x15f   : > { %v923_v44 = vld [vmem:[%s6715_s29 + $0x1368] sm:$0xff]  ;;  %v6316_v47 = vcombine.high %v918_v39, %v922_v40  ;;  %v6315_v54 = vcombine.low %v918_v39, %v922_v40 }
 0x160   : > { %v6318_v48 = vcombine.high %v919_v41, %v923_v44  ;;  %v6317_v55 = vcombine.low %v919_v41, %v923_v44 }
 0x161   : > { %4788 = vmatpush1.bf16.msra.mxu0 %v6259_v49  ;;  %5034 = vmatpush1.bf16.msra.mxu1 %v6261_v50  ;;  %v926_v49 = vld [vmem:[%s6715_s29 + $0x1380] sm:$0xff] }
 0x162   : > { %4789 = vmatprep.subr.bf16.mxu0 %v6268_v52  ;;  %5035 = vmatprep.subr.bf16.mxu1 %v6270_v53  ;;  %v930_v50 = vld [vmem:[%s6715_s29 + $0x13a0] sm:$0xff]  ;;  %v927_v52 = vld [vmem:[%s6715_s29 + $0x1388] sm:$0xff] }
 0x163   : > { %v931_v53 = vld [vmem:[%s6715_s29 + $0x13a8] sm:$0xff]  ;;  %v6324_v57 = vcombine.high %v926_v49, %v930_v50  ;;  %v6323_v0 = vcombine.low %v926_v49, %v930_v50 }
 0x164   : > { %v6326_v58 = vcombine.high %v927_v52, %v931_v53  ;;  %v6325_v32 = vcombine.low %v927_v52, %v931_v53 }
 0x165   : > { %4790 = vmatpush1.bf16.msra.mxu0 %v6267_v59  ;;  %5036 = vmatpush1.bf16.msra.mxu1 %v6269_v60  ;;  %v934_v59 = vld [vmem:[%s6715_s29 + $0x13c0] sm:$0xff] }
 0x166   : > { %4791 = vmatprep.subr.bf16.mxu0 %v6276_v28  ;;  %5037 = vmatprep.subr.bf16.mxu1 %v6278_v63  ;;  %v938_v60 = vld [vmem:[%s6715_s29 + $0x13e0] sm:$0xff]  ;;  %v935_v28 = vld [vmem:[%s6715_s29 + $0x13c8] sm:$0xff] }
 0x167   : > { %v939_v63 = vld [vmem:[%s6715_s29 + $0x13e8] sm:$0xff]  ;;  %v6332_v2 = vcombine.high %v934_v59, %v938_v60  ;;  %v6331_v9 = vcombine.low %v934_v59, %v938_v60 }
 0x168   : > { %v6334_v3 = vcombine.high %v935_v28, %v939_v63  ;;  %v6333_v10 = vcombine.low %v935_v28, %v939_v63 }
 0x169   : > { %4792 = vmatpush1.bf16.msra.mxu0 %v6275_v4  ;;  %5038 = vmatpush1.bf16.msra.mxu1 %v6277_v5  ;;  %v942_v4 = vld [vmem:[%s6715_s29 + $0x1400] sm:$0xff] }
 0x16a   : > { %4793 = vmatprep.subr.bf16.mxu0 %v6284_v6  ;;  %5039 = vmatprep.subr.bf16.mxu1 %v6286_v8  ;;  %v946_v5 = vld [vmem:[%s6715_s29 + $0x1420] sm:$0xff]  ;;  %v943_v6 = vld [vmem:[%s6715_s29 + $0x1408] sm:$0xff] }
 0x16b   : > { %v947_v8 = vld [vmem:[%s6715_s29 + $0x1428] sm:$0xff]  ;;  %v6340_v11 = vcombine.high %v942_v4, %v946_v5  ;;  %v6339_v20 = vcombine.low %v942_v4, %v946_v5 }
 0x16c   : > { %v6342_v12 = vcombine.high %v943_v6, %v947_v8  ;;  %v6341_v21 = vcombine.low %v943_v6, %v947_v8 }
 0x16d   : > { %4794 = vmatpush1.bf16.msra.mxu0 %v6283_v14  ;;  %5040 = vmatpush1.bf16.msra.mxu1 %v6285_v15  ;;  %v950_v14 = vld [vmem:[%s6715_s29 + $0x1440] sm:$0xff] }
 0x16e   : > { %4795 = vmatprep.subr.bf16.mxu0 %v6292_v16  ;;  %5041 = vmatprep.subr.bf16.mxu1 %v6294_v18  ;;  %v954_v15 = vld [vmem:[%s6715_s29 + $0x1460] sm:$0xff]  ;;  %v7142_v16 = vrot.slane %v7059_v43, %v6766_v22  ;;  %v951_v18 = vld [vmem:[%s6715_s29 + $0x1448] sm:$0xff] }
 0x16f   : > { %v6348_v23 = vcombine.high %v950_v14, %v954_v15  ;;  %v963_v22 = vld [vmem:[%s6715_s29 + $0x14a8] sm:$0xff]  ;;  %v6347_v43 = vcombine.low %v950_v14, %v954_v15  ;;  %v6349_v30 = vcombine.low %v951_v18, %v955_v19 }
 0x171   : > { %4796 = vmatpush1.bf16.msra.mxu0 %v6291_v24  ;;  %5042 = vmatpush1.bf16.msra.mxu1 %v6293_v25  ;;  %v6350_v24 = vcombine.high %v951_v18, %v955_v19  ;;  %v958_v25 = vld [vmem:[%s6715_s29 + $0x1480] sm:$0xff] }
 0x172   : > { %4797 = vmatprep.subr.bf16.mxu0 %v6300_v26  ;;  %5043 = vmatprep.subr.bf16.mxu1 %v6302_v29  ;;  %v962_v26 = vld [vmem:[%s6715_s29 + $0x14a0] sm:$0xff]  ;;  %v959_v29 = vld [vmem:[%s6715_s29 + $0x1488] sm:$0xff] }
 0x173   : > { %v6356_v31 = vcombine.high %v958_v25, %v962_v26  ;;  %v6358_v33 = vcombine.high %v959_v29, %v963_v22  ;;  %v6355_v39 = vcombine.low %v958_v25, %v962_v26  ;;  %v6357_v40 = vcombine.low %v959_v29, %v963_v22 }
 0x175   : > { %4798 = vmatpush1.bf16.msra.mxu0 %v6299_v35  ;;  %5044 = vmatpush1.bf16.msra.mxu1 %v6301_v36  ;;  %v970_v35 = vld [vmem:[%s6715_s29 + $0x14e0] sm:$0xff]  ;;  %v6607_v36 = vmov 0  }
 0x176   : > { %4799 = vmatprep.subr.bf16.mxu0 %v6308_v37  ;;  %5045 = vmatprep.subr.bf16.mxu1 %v6310_v62  ;;  %v967_v37 = vld [vmem:[%s6715_s29 + $0x14c8] sm:$0xff]  ;;  %v6364_v41 = vcombine.high %v966_v34, %v970_v35  ;;  %v6363_v49 = vcombine.low %v966_v34, %v970_v35  ;;  %v317_v34 = vld [vmem:[%s6715_s29 + $0x78] sm:$0xff] }
 0x177   : > { %v971_v62 = vld [vmem:[%s6715_s29 + $0x14e8] sm:$0xff] }
 0x178   : > { %v6366_v44 = vcombine.high %v967_v37, %v971_v62  ;;  %v6365_v50 = vcombine.low %v967_v37, %v971_v62 }
 0x179   : > { %4800 = vmatpush1.bf16.msra.mxu0 %v6307_v45  ;;  %5046 = vmatpush1.bf16.msra.mxu1 %v6309_v46  ;;  %v974_v45 = vld [vmem:[%s6715_s29 + $0x1500] sm:$0xff] }
 0x17a   : > { %4801 = vmatprep.subr.bf16.mxu0 %v6316_v47  ;;  %5047 = vmatprep.subr.bf16.mxu1 %v6318_v48  ;;  %v978_v46 = vld [vmem:[%s6715_s29 + $0x1520] sm:$0xff]  ;;  %v975_v47 = vld [vmem:[%s6715_s29 + $0x1508] sm:$0xff] }
 0x17b   : > { %v979_v48 = vld [vmem:[%s6715_s29 + $0x1528] sm:$0xff]  ;;  %v6372_v52 = vcombine.high %v974_v45, %v978_v46  ;;  %v6371_v59 = vcombine.low %v974_v45, %v978_v46  ;;  %v325_v45 = vld [vmem:[%s6715_s29 + $0xb8] sm:$0xff] }
 0x17c   : > { %v6374_v53 = vcombine.high %v975_v47, %v979_v48  ;;  %v6373_v60 = vcombine.low %v975_v47, %v979_v48 }
 0x17d   : > { %4802 = vmatpush1.bf16.msra.mxu0 %v6315_v54  ;;  %5048 = vmatpush1.bf16.msra.mxu1 %v6317_v55  ;;  %v982_v54 = vld [vmem:[%s6715_s29 + $0x1540] sm:$0xff] }
 0x17e   : > { %4803 = vmatprep.subr.bf16.mxu0 %v6324_v57  ;;  %5049 = vmatprep.subr.bf16.mxu1 %v6326_v58  ;;  %v986_v55 = vld [vmem:[%s6715_s29 + $0x1560] sm:$0xff]  ;;  %v983_v57 = vld [vmem:[%s6715_s29 + $0x1548] sm:$0xff] }
 0x17f   : > { %v987_v58 = vld [vmem:[%s6715_s29 + $0x1568] sm:$0xff]  ;;  %v6380_v28 = vcombine.high %v982_v54, %v986_v55  ;;  %v6379_v4 = vcombine.low %v982_v54, %v986_v55  ;;  %v333_v54 = vld [vmem:[%s6715_s29 + $0xf8] sm:$0xff] }
 0x180   : > { %v6382_v63 = vcombine.high %v983_v57, %v987_v58  ;;  %v6381_v5 = vcombine.low %v983_v57, %v987_v58 }
 0x181   : > { %4804 = vmatpush1.bf16.msra.mxu0 %v6323_v0  ;;  %5050 = vmatpush1.bf16.msra.mxu1 %v6325_v32  ;;  %v990_v0 = vld [vmem:[%s6715_s29 + $0x1580] sm:$0xff] }
 0x182   : > { %4805 = vmatprep.subr.bf16.mxu0 %v6332_v2  ;;  %5051 = vmatprep.subr.bf16.mxu1 %v6334_v3  ;;  %v994_v32 = vld [vmem:[%s6715_s29 + $0x15a0] sm:$0xff]  ;;  %v991_v2 = vld [vmem:[%s6715_s29 + $0x1588] sm:$0xff] }
 0x183   : > { %v995_v3 = vld [vmem:[%s6715_s29 + $0x15a8] sm:$0xff]  ;;  %v6388_v6 = vcombine.high %v990_v0, %v994_v32  ;;  %v6387_v14 = vcombine.low %v990_v0, %v994_v32  ;;  %v341_v0 = vld [vmem:[%s6715_s29 + $0x138] sm:$0xff] }
 0x184   : > { %v6390_v8 = vcombine.high %v991_v2, %v995_v3  ;;  %v6389_v15 = vcombine.low %v991_v2, %v995_v3 }
 0x185   : > { %4806 = vmatpush1.bf16.msra.mxu0 %v6331_v9  ;;  %5052 = vmatpush1.bf16.msra.mxu1 %v6333_v10  ;;  %v998_v9 = vld [vmem:[%s6715_s29 + $0x15c0] sm:$0xff] }
 0x186   : > { %4816 = vmatprep.subr.bf16.mxu0 %v6340_v11  ;;  %5062 = vmatprep.subr.bf16.mxu1 %v6342_v12  ;;  %v1002_v10 = vld [vmem:[%s6715_s29 + $0x15e0] sm:$0xff]  ;;  %v999_v11 = vld [vmem:[%s6715_s29 + $0x15c8] sm:$0xff] }
 0x187   : > { %v1003_v12 = vld [vmem:[%s6715_s29 + $0x15e8] sm:$0xff]  ;;  %v6396_v18 = vcombine.high %v998_v9, %v1002_v10  ;;  %v6395_v25 = vcombine.low %v998_v9, %v1002_v10 }
 0x188   : > { %4808 = vmatmul.mubr.bf16.vlgmr.msra.gmra.mrb[0].mxu0 %v7142_v16  ;;  %5054 = vmatmul.mubr.bf16.vlgmr.msra.gmra.mrb[0].mxu1 %v7142_v16  ;;  %v6398_v19 = vcombine.high %v999_v11, %v1003_v12  ;;  %v6397_v26 = vcombine.low %v999_v11, %v1003_v12 }
 0x189   : > { %4817 = vmatpush1.bf16.msra.mxu0 %v6339_v20  ;;  %5063 = vmatpush1.bf16.msra.mxu1 %v6341_v21  ;;  %v304_v20 = vld [vmem:[%s6715_s29 + $0x10] sm:$0xff] }
 0x18a   : > { %4818 = vmatprep.subr.bf16.mxu0 %v6348_v23  ;;  %5064 = vmatprep.subr.bf16.mxu1 %v6350_v24  ;;  %v308_v21 = vld [vmem:[%s6715_s29 + $0x30] sm:$0xff]  ;;  %v305_v23 = vld [vmem:[%s6715_s29 + $0x18] sm:$0xff] }
 0x18b   : > { %4848 = vmatprep.mubr.bf16.mxu0 %v6607_v36  ;;  %5094 = vmatprep.mubr.bf16.mxu1 %v6607_v36  ;;  %v309_v24 = vld [vmem:[%s6715_s29 + $0x38] sm:$0xff]  ;;  %v5704_v29 = vcombine.high %v304_v20, %v308_v21  ;;  %v5703_v35 = vcombine.low %v304_v20, %v308_v21 }
 0x18c   : > { %v5706_v22 = vcombine.high %v305_v23, %v309_v24  ;;  %v5705_v37 = vcombine.low %v305_v23, %v309_v24 }
 0x18d   : > { %4819 = vmatpush1.bf16.msra.mxu0 %v6347_v43  ;;  %5065 = vmatpush1.bf16.msra.mxu1 %v6349_v30  ;;  %v312_v43 = vld [vmem:[%s6715_s29 + $0x50] sm:$0xff] }
 0x18e   : > { %4820 = vmatprep.subr.bf16.mxu0 %v6356_v31  ;;  %5066 = vmatprep.subr.bf16.mxu1 %v6358_v33  ;;  %v316_v30 = vld [vmem:[%s6715_s29 + $0x70] sm:$0xff]  ;;  %v7182_v31 = vcombine.high %v7142_v16, %v7142_v16  ;;  %v313_v33 = vld [vmem:[%s6715_s29 + $0x58] sm:$0xff] }
 0x18f   : > { %v5712_v62 = vcombine.high %v312_v43, %v316_v30  ;;  %v5711_v46 = vcombine.low %v312_v43, %v316_v30  ;;  %v5713_v47 = vcombine.low %v313_v33, %v317_v34 }
 0x191   : > { %4821 = vmatpush1.bf16.msra.mxu0 %v6355_v39  ;;  %5067 = vmatpush1.bf16.msra.mxu1 %v6357_v40  ;;  %v5714_v39 = vcombine.high %v313_v33, %v317_v34  ;;  %v320_v40 = vld [vmem:[%s6715_s29 + $0x90] sm:$0xff] }
 0x192   : > { %4822 = vmatprep.subr.bf16.mxu0 %v6364_v41  ;;  %5068 = vmatprep.subr.bf16.mxu1 %v6366_v44  ;;  %v324_v41 = vld [vmem:[%s6715_s29 + $0xb0] sm:$0xff]  ;;  %v321_v44 = vld [vmem:[%s6715_s29 + $0x98] sm:$0xff] }
 0x193   : > { %v5720_v48 = vcombine.high %v320_v40, %v324_v41  ;;  %v5719_v55 = vcombine.low %v320_v40, %v324_v41  ;;  %v5721_v57 = vcombine.low %v321_v44, %v325_v45 }
 0x195   : > { %4823 = vmatpush1.bf16.msra.mxu0 %v6363_v49  ;;  %5069 = vmatpush1.bf16.msra.mxu1 %v6365_v50  ;;  %v5722_v49 = vcombine.high %v321_v44, %v325_v45  ;;  %v328_v50 = vld [vmem:[%s6715_s29 + $0xd0] sm:$0xff] }
 0x196   : > { %4824 = vmatprep.subr.bf16.mxu0 %v6372_v52  ;;  %5070 = vmatprep.subr.bf16.mxu1 %v6374_v53  ;;  %v332_v52 = vld [vmem:[%s6715_s29 + $0xf0] sm:$0xff]  ;;  %v329_v53 = vld [vmem:[%s6715_s29 + $0xd8] sm:$0xff] }
 0x197   : > { %v5728_v58 = vcombine.high %v328_v50, %v332_v52  ;;  %v5727_v32 = vcombine.low %v328_v50, %v332_v52 }
 0x199   : > { %4825 = vmatpush1.bf16.msra.mxu0 %v6371_v59  ;;  %5071 = vmatpush1.bf16.msra.mxu1 %v6373_v60  ;;  %v5730_v59 = vcombine.high %v329_v53, %v333_v54  ;;  %v336_v60 = vld [vmem:[%s6715_s29 + $0x110] sm:$0xff] }
 0x19a   : > { %4826 = vmatprep.subr.bf16.mxu0 %v6380_v28  ;;  %5072 = vmatprep.subr.bf16.mxu1 %v6382_v63  ;;  %v340_v28 = vld [vmem:[%s6715_s29 + $0x130] sm:$0xff]  ;;  %v337_v63 = vld [vmem:[%s6715_s29 + $0x118] sm:$0xff] }
 0x19b   : > { %v5736_v2 = vcombine.high %v336_v60, %v340_v28  ;;  %v5738_v3 = vcombine.high %v337_v63, %v341_v0  ;;  %v5735_v9 = vcombine.low %v336_v60, %v340_v28  ;;  %v5737_v10 = vcombine.low %v337_v63, %v341_v0 }
 0x19d   : > { %4827 = vmatpush1.bf16.msra.mxu0 %v6379_v4  ;;  %5073 = vmatpush1.bf16.msra.mxu1 %v6381_v5  ;;  %v344_v4 = vld [vmem:[%s6715_s29 + $0x150] sm:$0xff] }
 0x19e   : > { %4828 = vmatprep.subr.bf16.mxu0 %v6388_v6  ;;  %5074 = vmatprep.subr.bf16.mxu1 %v6390_v8  ;;  %v348_v5 = vld [vmem:[%s6715_s29 + $0x170] sm:$0xff]  ;;  %v345_v6 = vld [vmem:[%s6715_s29 + $0x158] sm:$0xff] }
 0x19f   : > { %v349_v8 = vld [vmem:[%s6715_s29 + $0x178] sm:$0xff]  ;;  %v5744_v11 = vcombine.high %v344_v4, %v348_v5  ;;  %v5743_v20 = vcombine.low %v344_v4, %v348_v5 }
 0x1a0   : > { %v5746_v12 = vcombine.high %v345_v6, %v349_v8  ;;  %v5745_v21 = vcombine.low %v345_v6, %v349_v8 }
 0x1a1   : > { %4829 = vmatpush1.bf16.msra.mxu0 %v6387_v14  ;;  %5075 = vmatpush1.bf16.msra.mxu1 %v6389_v15  ;;  %v352_v14 = vld [vmem:[%s6715_s29 + $0x190] sm:$0xff] }
 0x1a2   : > { %4830 = vmatprep.subr.bf16.mxu0 %v6396_v18  ;;  %5076 = vmatprep.subr.bf16.mxu1 %v6398_v19  ;;  %v356_v15 = vld [vmem:[%s6715_s29 + $0x1b0] sm:$0xff]  ;;  %v353_v18 = vld [vmem:[%s6715_s29 + $0x198] sm:$0xff] }
 0x1a3   : > { %v357_v19 = vld [vmem:[%s6715_s29 + $0x1b8] sm:$0xff]  ;;  %v5752_v23 = vcombine.high %v352_v14, %v356_v15  ;;  %v5751_v43 = vcombine.low %v352_v14, %v356_v15 }
 0x1a4   : > { %v5754_v24 = vcombine.high %v353_v18, %v357_v19  ;;  %v5753_v30 = vcombine.low %v353_v18, %v357_v19 }
 0x1a5   : > { %4831 = vmatpush1.bf16.msra.mxu0 %v6395_v25  ;;  %5077 = vmatpush1.bf16.msra.mxu1 %v6397_v26  ;;  %v360_v25 = vld [vmem:[%s6715_s29 + $0x1d0] sm:$0xff] }
 0x1a6   : > { %5103 = vmatprep.subr.bf16.mxu0 %v5704_v29  ;;  %5349 = vmatprep.subr.bf16.mxu1 %v5706_v22  ;;  %v364_v26 = vld [vmem:[%s6715_s29 + $0x1f0] sm:$0xff]  ;;  %v361_v29 = vld [vmem:[%s6715_s29 + $0x1d8] sm:$0xff] }
 0x1a7   : > { %v365_v22 = vld [vmem:[%s6715_s29 + $0x1f8] sm:$0xff]  ;;  %v5760_v33 = vcombine.high %v360_v25, %v364_v26  ;;  %v5759_v40 = vcombine.low %v360_v25, %v364_v26 }
 0x1a8   : > { %4849 = vmatmul.mubr.bf16.vlgmr.msra.gmra.mrb[0].mxu0 %v7182_v31  ;;  %5095 = vmatmul.mubr.bf16.vlgmr.msra.gmra.mrb[0].mxu1 %v7182_v31  ;;  %v5762_v34 = vcombine.high %v361_v29, %v365_v22  ;;  %v5761_v41 = vcombine.low %v361_v29, %v365_v22 }
 0x1a9   : > { %5104 = vmatpush1.bf16.msra.mxu0 %v5703_v35  ;;  %5350 = vmatpush1.bf16.msra.mxu1 %v5705_v37  ;;  %v368_v35 = vld [vmem:[%s6715_s29 + $0x210] sm:$0xff] }
 0x1aa   : > { %5105 = vmatprep.subr.bf16.mxu0 %v5712_v62  ;;  %5351 = vmatprep.subr.bf16.mxu1 %v5714_v39  ;;  %v372_v37 = vld [vmem:[%s6715_s29 + $0x230] sm:$0xff]  ;;  %v369_v62 = vld [vmem:[%s6715_s29 + $0x218] sm:$0xff] }
 0x1ab   : > { %5135 = vmatprep.mubr.bf16.mxu0 %v6786_v42  ;;  %5381 = vmatprep.mubr.bf16.mxu1 %v6786_v42  ;;  %v5729_v42 = vcombine.low %v329_v53, %v333_v54  ;;  %v373_v39 = vld [vmem:[%s6715_s29 + $0x238] sm:$0xff]  ;;  %v5768_v44 = vcombine.high %v368_v35, %v372_v37  ;;  %v5767_v50 = vcombine.low %v368_v35, %v372_v37 }
 0x1ac   : > { %v5770_v45 = vcombine.high %v369_v62, %v373_v39  ;;  %v5769_v52 = vcombine.low %v369_v62, %v373_v39 }
 0x1ad   : > { %5106 = vmatpush1.bf16.msra.mxu0 %v5711_v46  ;;  %5352 = vmatpush1.bf16.msra.mxu1 %v5713_v47  ;;  %v376_v46 = vld [vmem:[%s6715_s29 + $0x250] sm:$0xff] }
 0x1ae   : > { %5107 = vmatprep.subr.bf16.mxu0 %v5720_v48  ;;  %5353 = vmatprep.subr.bf16.mxu1 %v5722_v49  ;;  %v380_v47 = vld [vmem:[%s6715_s29 + $0x270] sm:$0xff]  ;;  %v377_v48 = vld [vmem:[%s6715_s29 + $0x258] sm:$0xff] }
 0x1af   : > { %v381_v49 = vld [vmem:[%s6715_s29 + $0x278] sm:$0xff]  ;;  %v5776_v53 = vcombine.high %v376_v46, %v380_v47  ;;  %v5775_v60 = vcombine.low %v376_v46, %v380_v47 }
 0x1b0   : > { %v5778_v54 = vcombine.high %v377_v48, %v381_v49  ;;  %v5777_v28 = vcombine.low %v377_v48, %v381_v49 }
 0x1b1   : > { %5108 = vmatpush1.bf16.msra.mxu0 %v5719_v55  ;;  %5354 = vmatpush1.bf16.msra.mxu1 %v5721_v57  ;;  %v384_v55 = vld [vmem:[%s6715_s29 + $0x290] sm:$0xff] }
 0x1b2   : > { %5109 = vmatprep.subr.bf16.mxu0 %v5728_v58  ;;  %5355 = vmatprep.subr.bf16.mxu1 %v5730_v59  ;;  %v388_v57 = vld [vmem:[%s6715_s29 + $0x2b0] sm:$0xff]  ;;  %v385_v58 = vld [vmem:[%s6715_s29 + $0x298] sm:$0xff] }
 0x1b3   : > { %v389_v59 = vld [vmem:[%s6715_s29 + $0x2b8] sm:$0xff]  ;;  %v5784_v63 = vcombine.high %v384_v55, %v388_v57  ;;  %v5783_v4 = vcombine.low %v384_v55, %v388_v57 }
 0x1b4   : > { %v5786_v0 = vcombine.high %v385_v58, %v389_v59  ;;  %v5785_v5 = vcombine.low %v385_v58, %v389_v59 }
 0x1b5   : > { %5110 = vmatpush1.bf16.msra.mxu0 %v5727_v32  ;;  %5356 = vmatpush1.bf16.msra.mxu1 %v5729_v42  ;;  %v392_v32 = vld [vmem:[%s6715_s29 + $0x2d0] sm:$0xff] }
 0x1b6   : > { %5111 = vmatprep.subr.bf16.mxu0 %v5736_v2  ;;  %5357 = vmatprep.subr.bf16.mxu1 %v5738_v3  ;;  %v396_v42 = vld [vmem:[%s6715_s29 + $0x2f0] sm:$0xff]  ;;  %v393_v2 = vld [vmem:[%s6715_s29 + $0x2d8] sm:$0xff] }
 0x1b7   : > { %v397_v3 = vld [vmem:[%s6715_s29 + $0x2f8] sm:$0xff]  ;;  %v5792_v6 = vcombine.high %v392_v32, %v396_v42  ;;  %v5791_v14 = vcombine.low %v392_v32, %v396_v42 }
 0x1b8   : > { %v5794_v8 = vcombine.high %v393_v2, %v397_v3  ;;  %v5793_v15 = vcombine.low %v393_v2, %v397_v3 }
 0x1b9   : > { %5112 = vmatpush1.bf16.msra.mxu0 %v5735_v9  ;;  %5358 = vmatpush1.bf16.msra.mxu1 %v5737_v10  ;;  %v400_v9 = vld [vmem:[%s6715_s29 + $0x310] sm:$0xff] }
 0x1ba   : > { %5113 = vmatprep.subr.bf16.mxu0 %v5744_v11  ;;  %5359 = vmatprep.subr.bf16.mxu1 %v5746_v12  ;;  %v404_v10 = vld [vmem:[%s6715_s29 + $0x330] sm:$0xff]  ;;  %v401_v11 = vld [vmem:[%s6715_s29 + $0x318] sm:$0xff] }
 0x1bb   : > { %v405_v12 = vld [vmem:[%s6715_s29 + $0x338] sm:$0xff]  ;;  %v5800_v18 = vcombine.high %v400_v9, %v404_v10  ;;  %v5799_v25 = vcombine.low %v400_v9, %v404_v10 }
 0x1bc   : > { %v5802_v19 = vcombine.high %v401_v11, %v405_v12  ;;  %v5801_v26 = vcombine.low %v401_v11, %v405_v12 }
 0x1bd   : > { %5114 = vmatpush1.bf16.msra.mxu0 %v5743_v20  ;;  %5360 = vmatpush1.bf16.msra.mxu1 %v5745_v21  ;;  %v408_v20 = vld [vmem:[%s6715_s29 + $0x350] sm:$0xff] }
 0x1be   : > { %5115 = vmatprep.subr.bf16.mxu0 %v5752_v23  ;;  %5361 = vmatprep.subr.bf16.mxu1 %v5754_v24  ;;  %v412_v21 = vld [vmem:[%s6715_s29 + $0x370] sm:$0xff]  ;;  %v409_v23 = vld [vmem:[%s6715_s29 + $0x358] sm:$0xff] }
 0x1bf   : > { %v413_v24 = vld [vmem:[%s6715_s29 + $0x378] sm:$0xff]  ;;  %v5808_v29 = vcombine.high %v408_v20, %v412_v21  ;;  %v5807_v35 = vcombine.low %v408_v20, %v412_v21 }
 0x1c0   : > { %v5810_v22 = vcombine.high %v409_v23, %v413_v24  ;;  %v5809_v37 = vcombine.low %v409_v23, %v413_v24  ;;  %v464_v24 = vld [vmem:[%s6715_s29 + $0x510] sm:$0xff] }
 0x1c1   : > { %5116 = vmatpush1.bf16.msra.mxu0 %v5751_v43  ;;  %5362 = vmatpush1.bf16.msra.mxu1 %v5753_v30  ;;  %v416_v43 = vld [vmem:[%s6715_s29 + $0x390] sm:$0xff] }
 0x1c2   : > { %5117 = vmatprep.subr.bf16.mxu0 %v5760_v33  ;;  %5363 = vmatprep.subr.bf16.mxu1 %v5762_v34  ;;  %v420_v30 = vld [vmem:[%s6715_s29 + $0x3b0] sm:$0xff]  ;;  %v417_v33 = vld [vmem:[%s6715_s29 + $0x398] sm:$0xff] }
 0x1c3   : > { %v421_v34 = vld [vmem:[%s6715_s29 + $0x3b8] sm:$0xff]  ;;  %v5816_v62 = vcombine.high %v416_v43, %v420_v30  ;;  %v5815_v46 = vcombine.low %v416_v43, %v420_v30 }
 0x1c4   : > { %v5818_v39 = vcombine.high %v417_v33, %v421_v34  ;;  %v5817_v47 = vcombine.low %v417_v33, %v421_v34  ;;  %v472_v33 = vld [vmem:[%s6715_s29 + $0x550] sm:$0xff] }
 0x1c5   : > { %5118 = vmatpush1.bf16.msra.mxu0 %v5759_v40  ;;  %5364 = vmatpush1.bf16.msra.mxu1 %v5761_v41  ;;  %v424_v40 = vld [vmem:[%s6715_s29 + $0x3d0] sm:$0xff] }
 0x1c6   : > { %5119 = vmatprep.subr.bf16.mxu0 %v5768_v44  ;;  %5365 = vmatprep.subr.bf16.mxu1 %v5770_v45  ;;  %v428_v41 = vld [vmem:[%s6715_s29 + $0x3f0] sm:$0xff]  ;;  %v425_v44 = vld [vmem:[%s6715_s29 + $0x3d8] sm:$0xff] }
 0x1c7   : > { %v429_v45 = vld [vmem:[%s6715_s29 + $0x3f8] sm:$0xff]  ;;  %v5824_v48 = vcombine.high %v424_v40, %v428_v41  ;;  %v5823_v55 = vcombine.low %v424_v40, %v428_v41  ;;  %v476_v34 = vld [vmem:[%s6715_s29 + $0x570] sm:$0xff] }
 0x1c8   : > { %v5826_v49 = vcombine.high %v425_v44, %v429_v45  ;;  %v5825_v57 = vcombine.low %v425_v44, %v429_v45  ;;  %v5872_v40 = vcombine.high %v472_v33, %v476_v34  ;;  %v480_v44 = vld [vmem:[%s6715_s29 + $0x590] sm:$0xff] }
 0x1c9   : > { %5120 = vmatpush1.bf16.msra.mxu0 %v5767_v50  ;;  %5366 = vmatpush1.bf16.msra.mxu1 %v5769_v52  ;;  %v432_v50 = vld [vmem:[%s6715_s29 + $0x410] sm:$0xff] }
 0x1ca   : > { %5121 = vmatprep.subr.bf16.mxu0 %v5776_v53  ;;  %5367 = vmatprep.subr.bf16.mxu1 %v5778_v54  ;;  %v436_v52 = vld [vmem:[%s6715_s29 + $0x430] sm:$0xff]  ;;  %v433_v53 = vld [vmem:[%s6715_s29 + $0x418] sm:$0xff] }
 0x1cb   : > { %v437_v54 = vld [vmem:[%s6715_s29 + $0x438] sm:$0xff]  ;;  %v5832_v58 = vcombine.high %v432_v50, %v436_v52  ;;  %v5831_v32 = vcombine.low %v432_v50, %v436_v52  ;;  %v484_v45 = vld [vmem:[%s6715_s29 + $0x5b0] sm:$0xff] }
 0x1cc   : > { %v5834_v59 = vcombine.high %v433_v53, %v437_v54  ;;  %v5833_v42 = vcombine.low %v433_v53, %v437_v54  ;;  %v5880_v50 = vcombine.high %v480_v44, %v484_v45  ;;  %v488_v53 = vld [vmem:[%s6715_s29 + $0x5d0] sm:$0xff] }
 0x1cd   : > { %5122 = vmatpush1.bf16.msra.mxu0 %v5775_v60  ;;  %5368 = vmatpush1.bf16.msra.mxu1 %v5777_v28  ;;  %v440_v60 = vld [vmem:[%s6715_s29 + $0x450] sm:$0xff] }
 0x1ce   : > { %5123 = vmatprep.subr.bf16.mxu0 %v5784_v63  ;;  %5369 = vmatprep.subr.bf16.mxu1 %v5786_v0  ;;  %v444_v28 = vld [vmem:[%s6715_s29 + $0x470] sm:$0xff]  ;;  %v441_v63 = vld [vmem:[%s6715_s29 + $0x458] sm:$0xff] }
 0x1cf   : > { %v445_v0 = vld [vmem:[%s6715_s29 + $0x478] sm:$0xff]  ;;  %v5840_v2 = vcombine.high %v440_v60, %v444_v28  ;;  %v5839_v9 = vcombine.low %v440_v60, %v444_v28  ;;  %v492_v54 = vld [vmem:[%s6715_s29 + $0x5f0] sm:$0xff] }
 0x1d0   : > { %v5842_v3 = vcombine.high %v441_v63, %v445_v0  ;;  %v5841_v10 = vcombine.low %v441_v63, %v445_v0  ;;  %v5888_v60 = vcombine.high %v488_v53, %v492_v54  ;;  %v496_v63 = vld [vmem:[%s6715_s29 + $0x610] sm:$0xff] }
 0x1d1   : > { %5124 = vmatpush1.bf16.msra.mxu0 %v5783_v4  ;;  %5370 = vmatpush1.bf16.msra.mxu1 %v5785_v5  ;;  %v448_v4 = vld [vmem:[%s6715_s29 + $0x490] sm:$0xff] }
 0x1d2   : > { %5125 = vmatprep.subr.bf16.mxu0 %v5792_v6  ;;  %5371 = vmatprep.subr.bf16.mxu1 %v5794_v8  ;;  %v452_v5 = vld [vmem:[%s6715_s29 + $0x4b0] sm:$0xff]  ;;  %v449_v6 = vld [vmem:[%s6715_s29 + $0x498] sm:$0xff] }
 0x1d3   : > { %v453_v8 = vld [vmem:[%s6715_s29 + $0x4b8] sm:$0xff]  ;;  %v5848_v11 = vcombine.high %v448_v4, %v452_v5  ;;  %v500_v0 = vld [vmem:[%s6715_s29 + $0x630] sm:$0xff] }
 0x1d4   : > { %v5850_v12 = vcombine.high %v449_v6, %v453_v8  ;;  %v5849_v20 = vcombine.low %v449_v6, %v453_v8  ;;  %v504_v6 = vld [vmem:[%s6715_s29 + $0x650] sm:$0xff] }
 0x1d5   : > { %5126 = vmatpush1.bf16.msra.mxu0 %v5791_v14  ;;  %5372 = vmatpush1.bf16.msra.mxu1 %v5793_v15  ;;  %v456_v14 = vld [vmem:[%s6715_s29 + $0x4d0] sm:$0xff] }
 0x1d6   : > { %5127 = vmatprep.subr.bf16.mxu0 %v5800_v18  ;;  %5373 = vmatprep.subr.bf16.mxu1 %v5802_v19  ;;  %v460_v15 = vld [vmem:[%s6715_s29 + $0x4f0] sm:$0xff]  ;;  %v457_v18 = vld [vmem:[%s6715_s29 + $0x4d8] sm:$0xff] }
 0x1d7   : > { %v461_v19 = vld [vmem:[%s6715_s29 + $0x4f8] sm:$0xff]  ;;  %v5856_v21 = vcombine.high %v456_v14, %v460_v15  ;;  %v508_v8 = vld [vmem:[%s6715_s29 + $0x670] sm:$0xff] }
 0x1d8   : > { %v5858_v23 = vcombine.high %v457_v18, %v461_v19 }
 0x1d9   : > { %5128 = vmatpush1.bf16.msra.mxu0 %v5799_v25  ;;  %5374 = vmatpush1.bf16.msra.mxu1 %v5801_v26  ;;  %v468_v25 = vld [vmem:[%s6715_s29 + $0x530] sm:$0xff]  ;;  %v465_v26 = vld [vmem:[%s6715_s29 + $0x518] sm:$0xff] }
 0x1da   : > { %5129 = vmatprep.subr.bf16.mxu0 %v5808_v29  ;;  %5375 = vmatprep.subr.bf16.mxu1 %v5810_v22  ;;  %v469_v29 = vld [vmem:[%s6715_s29 + $0x538] sm:$0xff]  ;;  %v5855_v22 = vcombine.low %v456_v14, %v460_v15  ;;  %v5864_v43 = vcombine.high %v464_v24, %v468_v25  ;;  %v5904_v14 = vcombine.high %v504_v6, %v508_v8 }
 0x1db   : > { %v5866_v30 = vcombine.high %v465_v26, %v469_v29 }
 0x1dd   : > { %5130 = vmatpush1.bf16.msra.mxu0 %v5807_v35  ;;  %5376 = vmatpush1.bf16.msra.mxu1 %v5809_v37  ;;  %v473_v35 = vld [vmem:[%s6715_s29 + $0x558] sm:$0xff] }
 0x1de   : > { %5131 = vmatprep.subr.bf16.mxu0 %v5816_v62  ;;  %5377 = vmatprep.subr.bf16.mxu1 %v5818_v39  ;;  %v477_v37 = vld [vmem:[%s6715_s29 + $0x578] sm:$0xff]  ;;  %v5863_v62 = vcombine.low %v464_v24, %v468_v25  ;;  %v5865_v39 = vcombine.low %v465_v26, %v469_v29  ;;  %v520_v26 = vld [vmem:[%s6715_s29 + $0x6d0] sm:$0xff] }
 0x1df   : > { %v5874_v41 = vcombine.high %v473_v35, %v477_v37  ;;  %v524_v29 = vld [vmem:[%s6715_s29 + $0x6f0] sm:$0xff] }
 0x1e1   : > { %5132 = vmatpush1.bf16.msra.mxu0 %v5815_v46  ;;  %5378 = vmatpush1.bf16.msra.mxu1 %v5817_v47  ;;  %v481_v46 = vld [vmem:[%s6715_s29 + $0x598] sm:$0xff] }
 0x1e2   : > { %5133 = vmatprep.subr.bf16.mxu0 %v5824_v48  ;;  %5379 = vmatprep.subr.bf16.mxu1 %v5826_v49  ;;  %v485_v47 = vld [vmem:[%s6715_s29 + $0x5b8] sm:$0xff]  ;;  %v5871_v48 = vcombine.low %v472_v33, %v476_v34  ;;  %v5873_v49 = vcombine.low %v473_v35, %v477_v37  ;;  %v5920_v33 = vcombine.high %v520_v26, %v524_v29  ;;  %v528_v35 = vld [vmem:[%s6715_s29 + $0x710] sm:$0xff] }
 0x1e3   : > { %v5882_v52 = vcombine.high %v481_v46, %v485_v47  ;;  %v532_v37 = vld [vmem:[%s6715_s29 + $0x730] sm:$0xff] }
 0x1e5   : > { %5134 = vmatpush1.bf16.msra.mxu0 %v5823_v55  ;;  %5380 = vmatpush1.bf16.msra.mxu1 %v5825_v57  ;;  %v489_v55 = vld [vmem:[%s6715_s29 + $0x5d8] sm:$0xff] }
 0x1e6   : > { %5144 = vmatprep.subr.bf16.mxu0 %v5832_v58  ;;  %5390 = vmatprep.subr.bf16.mxu1 %v5834_v59  ;;  %v493_v57 = vld [vmem:[%s6715_s29 + $0x5f8] sm:$0xff]  ;;  %v5879_v58 = vcombine.low %v480_v44, %v484_v45  ;;  %v5881_v59 = vcombine.low %v481_v46, %v485_v47  ;;  %v5928_v44 = vcombine.high %v528_v35, %v532_v37  ;;  %v536_v46 = vld [vmem:[%s6715_s29 + $0x750] sm:$0xff] }
 0x1e7   : > { %v5890_v28 = vcombine.high %v489_v55, %v493_v57  ;;  %v540_v47 = vld [vmem:[%s6715_s29 + $0x770] sm:$0xff] }
 0x1e8   : > { %5136 = vmatmul.mubr.bf16.vlgmr.msra.gmra.mrb[4].mxu0 %v6828_v56  ;;  %5382 = vmatmul.mubr.bf16.vlgmr.msra.gmra.mrb[4].mxu1 %v6828_v56  ;;  %v5847_v56 = vcombine.low %v448_v4, %v452_v5  ;;  %v5896_v4 = vcombine.high %v496_v63, %v500_v0 }
 0x1e9   : > { %5145 = vmatpush1.bf16.msra.mxu0 %v5831_v32  ;;  %5391 = vmatpush1.bf16.msra.mxu1 %v5833_v42  ;;  %v497_v32 = vld [vmem:[%s6715_s29 + $0x618] sm:$0xff] }
 0x1ea   : > { %5146 = vmatprep.subr.bf16.mxu0 %v5840_v2  ;;  %5392 = vmatprep.subr.bf16.mxu1 %v5842_v3  ;;  %v501_v42 = vld [vmem:[%s6715_s29 + $0x638] sm:$0xff]  ;;  %v5887_v2 = vcombine.low %v488_v53, %v492_v54  ;;  %v5889_v3 = vcombine.low %v489_v55, %v493_v57  ;;  %v5936_v53 = vcombine.high %v536_v46, %v540_v47  ;;  %v544_v55 = vld [vmem:[%s6715_s29 + $0x790] sm:$0xff] }
 0x1eb   : > { %5176 = vmatprep.mubr.bf16.mxu0 %v6836_v1  ;;  %5422 = vmatprep.mubr.bf16.mxu1 %v6836_v1  ;;  %v5857_v1 = vcombine.low %v457_v18, %v461_v19  ;;  %v5898_v5 = vcombine.high %v497_v32, %v501_v42  ;;  %v512_v18 = vld [vmem:[%s6715_s29 + $0x690] sm:$0xff] }
 0x1ec   : > { %v516_v19 = vld [vmem:[%s6715_s29 + $0x6b0] sm:$0xff] }
 0x1ed   : > { %5147 = vmatpush1.bf16.msra.mxu0 %v5839_v9  ;;  %5393 = vmatpush1.bf16.msra.mxu1 %v5841_v10  ;;  %v505_v9 = vld [vmem:[%s6715_s29 + $0x658] sm:$0xff]  ;;  %v5912_v24 = vcombine.high %v512_v18, %v516_v19  ;;  %v548_v57 = vld [vmem:[%s6715_s29 + $0x7b0] sm:$0xff] }
 0x1ee   : > { %5148 = vmatprep.subr.bf16.mxu0 %v5848_v11  ;;  %5394 = vmatprep.subr.bf16.mxu1 %v5850_v12  ;;  %v509_v10 = vld [vmem:[%s6715_s29 + $0x678] sm:$0xff]  ;;  %v5895_v11 = vcombine.low %v496_v63, %v500_v0  ;;  %v5897_v12 = vcombine.low %v497_v32, %v501_v42  ;;  %v5944_v63 = vcombine.high %v544_v55, %v548_v57  ;;  %v552_v32 = vld [vmem:[%s6715_s29 + $0x7d0] sm:$0xff] }
 0x1ef   : > { %v5906_v15 = vcombine.high %v505_v9, %v509_v10  ;;  %v556_v42 = vld [vmem:[%s6715_s29 + $0x7f0] sm:$0xff] }
 0x1f1   : > { %5149 = vmatpush1.bf16.msra.mxu0 %v5847_v56  ;;  %5395 = vmatpush1.bf16.msra.mxu1 %v5849_v20  ;;  %v513_v56 = vld [vmem:[%s6715_s29 + $0x698] sm:$0xff] }
 0x1f2   : > { %5150 = vmatprep.subr.bf16.mxu0 %v5856_v21  ;;  %5396 = vmatprep.subr.bf16.mxu1 %v5858_v23  ;;  %v517_v20 = vld [vmem:[%s6715_s29 + $0x6b8] sm:$0xff]  ;;  %v5903_v21 = vcombine.low %v504_v6, %v508_v8  ;;  %v5905_v23 = vcombine.low %v505_v9, %v509_v10  ;;  %v5952_v6 = vcombine.high %v552_v32, %v556_v42  ;;  %v560_v9 = vld [vmem:[%s6715_s29 + $0x810] sm:$0xff] }
 0x1f3   : > { %v5914_v25 = vcombine.high %v513_v56, %v517_v20  ;;  %v564_v10 = vld [vmem:[%s6715_s29 + $0x830] sm:$0xff] }
 0x1f5   : > { %5151 = vmatpush1.bf16.msra.mxu0 %v5855_v22  ;;  %5397 = vmatpush1.bf16.msra.mxu1 %v5857_v1  ;;  %v521_v22 = vld [vmem:[%s6715_s29 + $0x6d8] sm:$0xff] }
 0x1f6   : > { %5152 = vmatprep.subr.bf16.mxu0 %v5864_v43  ;;  %5398 = vmatprep.subr.bf16.mxu1 %v5866_v30  ;;  %v525_v1 = vld [vmem:[%s6715_s29 + $0x6f8] sm:$0xff]  ;;  %v5911_v43 = vcombine.low %v512_v18, %v516_v19  ;;  %v5913_v30 = vcombine.low %v513_v56, %v517_v20  ;;  %v5960_v18 = vcombine.high %v560_v9, %v564_v10  ;;  %v568_v56 = vld [vmem:[%s6715_s29 + $0x850] sm:$0xff] }
 0x1f7   : > { %v5922_v34 = vcombine.high %v521_v22, %v525_v1  ;;  %v572_v20 = vld [vmem:[%s6715_s29 + $0x870] sm:$0xff] }
 0x1f9   : > { %5153 = vmatpush1.bf16.msra.mxu0 %v5863_v62  ;;  %5399 = vmatpush1.bf16.msra.mxu1 %v5865_v39  ;;  %v529_v62 = vld [vmem:[%s6715_s29 + $0x718] sm:$0xff] }
 0x1fa   : > { %5154 = vmatprep.subr.bf16.mxu0 %v5872_v40  ;;  %5400 = vmatprep.subr.bf16.mxu1 %v5874_v41  ;;  %v533_v39 = vld [vmem:[%s6715_s29 + $0x738] sm:$0xff]  ;;  %v5919_v40 = vcombine.low %v520_v26, %v524_v29  ;;  %v5921_v41 = vcombine.low %v521_v22, %v525_v1  ;;  %v5968_v26 = vcombine.high %v568_v56, %v572_v20  ;;  %v576_v22 = vld [vmem:[%s6715_s29 + $0x890] sm:$0xff] }
 0x1fb   : > { %v5930_v45 = vcombine.high %v529_v62, %v533_v39  ;;  %v580_v1 = vld [vmem:[%s6715_s29 + $0x8b0] sm:$0xff] }
 0x1fd   : > { %5155 = vmatpush1.bf16.msra.mxu0 %v5871_v48  ;;  %5401 = vmatpush1.bf16.msra.mxu1 %v5873_v49  ;;  %v537_v48 = vld [vmem:[%s6715_s29 + $0x758] sm:$0xff] }
 0x1fe   : > { %5156 = vmatprep.subr.bf16.mxu0 %v5880_v50  ;;  %5402 = vmatprep.subr.bf16.mxu1 %v5882_v52  ;;  %v541_v49 = vld [vmem:[%s6715_s29 + $0x778] sm:$0xff]  ;;  %v5927_v50 = vcombine.low %v528_v35, %v532_v37  ;;  %v5929_v52 = vcombine.low %v529_v62, %v533_v39  ;;  %v5976_v35 = vcombine.high %v576_v22, %v580_v1  ;;  %v584_v62 = vld [vmem:[%s6715_s29 + $0x8d0] sm:$0xff] }
 0x1ff   : > { %v5938_v54 = vcombine.high %v537_v48, %v541_v49  ;;  %v588_v39 = vld [vmem:[%s6715_s29 + $0x8f0] sm:$0xff] }
 0x201   : > { %5157 = vmatpush1.bf16.msra.mxu0 %v5879_v58  ;;  %5403 = vmatpush1.bf16.msra.mxu1 %v5881_v59  ;;  %v545_v58 = vld [vmem:[%s6715_s29 + $0x798] sm:$0xff] }
 0x202   : > { %5158 = vmatprep.subr.bf16.mxu0 %v5888_v60  ;;  %5404 = vmatprep.subr.bf16.mxu1 %v5890_v28  ;;  %v549_v59 = vld [vmem:[%s6715_s29 + $0x7b8] sm:$0xff]  ;;  %v5935_v60 = vcombine.low %v536_v46, %v540_v47  ;;  %v5937_v28 = vcombine.low %v537_v48, %v541_v49  ;;  %v592_v47 = vld [vmem:[%s6715_s29 + $0x910] sm:$0xff] }
 0x203   : > { %v5946_v0 = vcombine.high %v545_v58, %v549_v59  ;;  %v596_v48 = vld [vmem:[%s6715_s29 + $0x930] sm:$0xff]  ;;  %v593_v49 = vld [vmem:[%s6715_s29 + $0x918] sm:$0xff] }
 0x205   : > { %5159 = vmatpush1.bf16.msra.mxu0 %v5887_v2  ;;  %5405 = vmatpush1.bf16.msra.mxu1 %v5889_v3  ;;  %v553_v2 = vld [vmem:[%s6715_s29 + $0x7d8] sm:$0xff] }
 0x206   : > { %5160 = vmatprep.subr.bf16.mxu0 %v5896_v4  ;;  %5406 = vmatprep.subr.bf16.mxu1 %v5898_v5  ;;  %v557_v3 = vld [vmem:[%s6715_s29 + $0x7f8] sm:$0xff]  ;;  %v5943_v4 = vcombine.low %v544_v55, %v548_v57  ;;  %v5945_v5 = vcombine.low %v545_v58, %v549_v59  ;;  %v600_v55 = vld [vmem:[%s6715_s29 + $0x950] sm:$0xff] }
 0x207   : > { %v5954_v8 = vcombine.high %v553_v2, %v557_v3  ;;  %v604_v57 = vld [vmem:[%s6715_s29 + $0x970] sm:$0xff]  ;;  %v601_v58 = vld [vmem:[%s6715_s29 + $0x958] sm:$0xff] }
 0x208   : > { %v605_v59 = vld [vmem:[%s6715_s29 + $0x978] sm:$0xff] }
 0x209   : > { %5161 = vmatpush1.bf16.msra.mxu0 %v5895_v11  ;;  %5407 = vmatpush1.bf16.msra.mxu1 %v5897_v12  ;;  %v561_v11 = vld [vmem:[%s6715_s29 + $0x818] sm:$0xff] }
 0x20a   : > { %5162 = vmatprep.subr.bf16.mxu0 %v5904_v14  ;;  %5408 = vmatprep.subr.bf16.mxu1 %v5906_v15  ;;  %v565_v12 = vld [vmem:[%s6715_s29 + $0x838] sm:$0xff]  ;;  %v5951_v14 = vcombine.low %v552_v32, %v556_v42  ;;  %v5953_v15 = vcombine.low %v553_v2, %v557_v3  ;;  %v608_v32 = vld [vmem:[%s6715_s29 + $0x990] sm:$0xff] }
 0x20b   : > { %v5962_v19 = vcombine.high %v561_v11, %v565_v12  ;;  %v612_v42 = vld [vmem:[%s6715_s29 + $0x9b0] sm:$0xff]  ;;  %v609_v2 = vld [vmem:[%s6715_s29 + $0x998] sm:$0xff] }
 0x20c   : > { %v613_v3 = vld [vmem:[%s6715_s29 + $0x9b8] sm:$0xff] }
 0x20d   : > { %5163 = vmatpush1.bf16.msra.mxu0 %v5903_v21  ;;  %5409 = vmatpush1.bf16.msra.mxu1 %v5905_v23  ;;  %v569_v21 = vld [vmem:[%s6715_s29 + $0x858] sm:$0xff] }
 0x20e   : > { %5164 = vmatprep.subr.bf16.mxu0 %v5912_v24  ;;  %5410 = vmatprep.subr.bf16.mxu1 %v5914_v25  ;;  %v573_v23 = vld [vmem:[%s6715_s29 + $0x878] sm:$0xff]  ;;  %v5959_v24 = vcombine.low %v560_v9, %v564_v10  ;;  %v5961_v25 = vcombine.low %v561_v11, %v565_v12  ;;  %v616_v9 = vld [vmem:[%s6715_s29 + $0x9d0] sm:$0xff] }
 0x20f   : > { %v5970_v29 = vcombine.high %v569_v21, %v573_v23  ;;  %v620_v10 = vld [vmem:[%s6715_s29 + $0x9f0] sm:$0xff]  ;;  %v617_v11 = vld [vmem:[%s6715_s29 + $0x9d8] sm:$0xff] }
 0x210   : > { %v621_v12 = vld [vmem:[%s6715_s29 + $0x9f8] sm:$0xff] }
 0x211   : > { %5165 = vmatpush1.bf16.msra.mxu0 %v5911_v43  ;;  %5411 = vmatpush1.bf16.msra.mxu1 %v5913_v30  ;;  %v577_v43 = vld [vmem:[%s6715_s29 + $0x898] sm:$0xff] }
 0x212   : > { %5166 = vmatprep.subr.bf16.mxu0 %v5920_v33  ;;  %5412 = vmatprep.subr.bf16.mxu1 %v5922_v34  ;;  %v581_v30 = vld [vmem:[%s6715_s29 + $0x8b8] sm:$0xff]  ;;  %v5967_v33 = vcombine.low %v568_v56, %v572_v20  ;;  %v5969_v34 = vcombine.low %v569_v21, %v573_v23  ;;  %v624_v56 = vld [vmem:[%s6715_s29 + $0xa10] sm:$0xff] }
 0x213   : > { %v5978_v37 = vcombine.high %v577_v43, %v581_v30  ;;  %v628_v20 = vld [vmem:[%s6715_s29 + $0xa30] sm:$0xff]  ;;  %v625_v21 = vld [vmem:[%s6715_s29 + $0xa18] sm:$0xff] }
 0x214   : > { %v629_v23 = vld [vmem:[%s6715_s29 + $0xa38] sm:$0xff] }
 0x215   : > { %5167 = vmatpush1.bf16.msra.mxu0 %v5919_v40  ;;  %5413 = vmatpush1.bf16.msra.mxu1 %v5921_v41  ;;  %v585_v40 = vld [vmem:[%s6715_s29 + $0x8d8] sm:$0xff] }
 0x216   : > { %5168 = vmatprep.subr.bf16.mxu0 %v5928_v44  ;;  %5414 = vmatprep.subr.bf16.mxu1 %v5930_v45  ;;  %v589_v41 = vld [vmem:[%s6715_s29 + $0x8f8] sm:$0xff]  ;;  %v5977_v44 = vcombine.low %v577_v43, %v581_v30  ;;  %v5984_v45 = vcombine.high %v584_v62, %v588_v39 }
 0x217   : > { %v5986_v46 = vcombine.high %v585_v40, %v589_v41  ;;  %v633_v43 = vld [vmem:[%s6715_s29 + $0xa58] sm:$0xff] }
 0x218   : > { %v637_v30 = vld [vmem:[%s6715_s29 + $0xa78] sm:$0xff] }
 0x219   : > { %5169 = vmatpush1.bf16.msra.mxu0 %v5927_v50  ;;  %5415 = vmatpush1.bf16.msra.mxu1 %v5929_v52  ;;  %v597_v50 = vld [vmem:[%s6715_s29 + $0x938] sm:$0xff]  ;;  %v5983_v52 = vcombine.low %v584_v62, %v588_v39  ;;  %v640_v62 = vld [vmem:[%s6715_s29 + $0xa90] sm:$0xff] }
 0x21a   : > { %5170 = vmatprep.subr.bf16.mxu0 %v5936_v53  ;;  %5416 = vmatprep.subr.bf16.mxu1 %v5938_v54  ;;  %v5992_v53 = vcombine.high %v592_v47, %v596_v48  ;;  %v5994_v54 = vcombine.high %v593_v49, %v597_v50  ;;  %v644_v39 = vld [vmem:[%s6715_s29 + $0xab0] sm:$0xff] }
 0x21d   : > { %5171 = vmatpush1.bf16.msra.mxu0 %v5935_v60  ;;  %5417 = vmatpush1.bf16.msra.mxu1 %v5937_v28  ;;  %v5991_v60 = vcombine.low %v592_v47, %v596_v48  ;;  %v5993_v28 = vcombine.low %v593_v49, %v597_v50  ;;  %v648_v47 = vld [vmem:[%s6715_s29 + $0xad0] sm:$0xff]  ;;  %v649_v49 = vld [vmem:[%s6715_s29 + $0xad8] sm:$0xff] }
 0x21e   : > { %5172 = vmatprep.subr.bf16.mxu0 %v5944_v63  ;;  %5418 = vmatprep.subr.bf16.mxu1 %v5946_v0  ;;  %v6000_v63 = vcombine.high %v600_v55, %v604_v57  ;;  %v6002_v0 = vcombine.high %v601_v58, %v605_v59  ;;  %v652_v48 = vld [vmem:[%s6715_s29 + $0xaf0] sm:$0xff]  ;;  %v653_v50 = vld [vmem:[%s6715_s29 + $0xaf8] sm:$0xff] }
 0x221   : > { %5173 = vmatpush1.bf16.msra.mxu0 %v5943_v4  ;;  %5419 = vmatpush1.bf16.msra.mxu1 %v5945_v5  ;;  %v5999_v4 = vcombine.low %v600_v55, %v604_v57  ;;  %v6001_v5 = vcombine.low %v601_v58, %v605_v59  ;;  %v656_v55 = vld [vmem:[%s6715_s29 + $0xb10] sm:$0xff]  ;;  %v657_v58 = vld [vmem:[%s6715_s29 + $0xb18] sm:$0xff] }
 0x222   : > { %5174 = vmatprep.subr.bf16.mxu0 %v5952_v6  ;;  %5420 = vmatprep.subr.bf16.mxu1 %v5954_v8  ;;  %v6008_v6 = vcombine.high %v608_v32, %v612_v42  ;;  %v6010_v8 = vcombine.high %v609_v2, %v613_v3  ;;  %v660_v57 = vld [vmem:[%s6715_s29 + $0xb30] sm:$0xff]  ;;  %v661_v59 = vld [vmem:[%s6715_s29 + $0xb38] sm:$0xff] }
 0x225   : > { %5175 = vmatpush1.bf16.msra.mxu0 %v5951_v14  ;;  %5421 = vmatpush1.bf16.msra.mxu1 %v5953_v15  ;;  %v6007_v14 = vcombine.low %v608_v32, %v612_v42  ;;  %v6009_v15 = vcombine.low %v609_v2, %v613_v3  ;;  %v664_v32 = vld [vmem:[%s6715_s29 + $0xb50] sm:$0xff]  ;;  %v665_v2 = vld [vmem:[%s6715_s29 + $0xb58] sm:$0xff] }
 0x226   : > { %5185 = vmatprep.subr.bf16.mxu0 %v5960_v18  ;;  %5431 = vmatprep.subr.bf16.mxu1 %v5962_v19  ;;  %v6016_v18 = vcombine.high %v616_v9, %v620_v10  ;;  %v6018_v19 = vcombine.high %v617_v11, %v621_v12  ;;  %v668_v42 = vld [vmem:[%s6715_s29 + $0xb70] sm:$0xff]  ;;  %v669_v3 = vld [vmem:[%s6715_s29 + $0xb78] sm:$0xff] }
 0x228   : > { %5177 = vmatmul.mubr.bf16.vlgmr.msra.gmra.mrb[4].mxu0 %v6911_v7  ;;  %5423 = vmatmul.mubr.bf16.vlgmr.msra.gmra.mrb[4].mxu1 %v6911_v7  ;;  %v5975_v7 = vcombine.low %v576_v22, %v580_v1  ;;  %v632_v22 = vld [vmem:[%s6715_s29 + $0xa50] sm:$0xff] }
 0x229   : > { %5186 = vmatpush1.bf16.msra.mxu0 %v5959_v24  ;;  %5432 = vmatpush1.bf16.msra.mxu1 %v5961_v25  ;;  %v6015_v24 = vcombine.low %v616_v9, %v620_v10  ;;  %v6017_v25 = vcombine.low %v617_v11, %v621_v12  ;;  %v636_v1 = vld [vmem:[%s6715_s29 + $0xa70] sm:$0xff]  ;;  %v673_v11 = vld [vmem:[%s6715_s29 + $0xb98] sm:$0xff] }
 0x22a   : > { %5187 = vmatprep.subr.bf16.mxu0 %v5968_v26  ;;  %5433 = vmatprep.subr.bf16.mxu1 %v5970_v29  ;;  %v6024_v26 = vcombine.high %v624_v56, %v628_v20  ;;  %v6026_v29 = vcombine.high %v625_v21, %v629_v23  ;;  %v672_v9 = vld [vmem:[%s6715_s29 + $0xb90] sm:$0xff]  ;;  %v677_v12 = vld [vmem:[%s6715_s29 + $0xbb8] sm:$0xff] }
 0x22b   : > { %5217 = vmatprep.mubr.bf16.mxu0 %v6918_v17  ;;  %5463 = vmatprep.mubr.bf16.mxu1 %v6918_v17  ;;  %v5985_v17 = vcombine.low %v585_v40, %v589_v41  ;;  %v641_v40 = vld [vmem:[%s6715_s29 + $0xa98] sm:$0xff]  ;;  %v676_v10 = vld [vmem:[%s6715_s29 + $0xbb0] sm:$0xff] }
 0x22c   : > { %v645_v41 = vld [vmem:[%s6715_s29 + $0xab8] sm:$0xff] }
 0x22d   : > { %5188 = vmatpush1.bf16.msra.mxu0 %v5967_v33  ;;  %5434 = vmatpush1.bf16.msra.mxu1 %v5969_v34  ;;  %v6023_v33 = vcombine.low %v624_v56, %v628_v20  ;;  %v6025_v34 = vcombine.low %v625_v21, %v629_v23  ;;  %v680_v56 = vld [vmem:[%s6715_s29 + $0xbd0] sm:$0xff]  ;;  %v681_v21 = vld [vmem:[%s6715_s29 + $0xbd8] sm:$0xff] }
 0x22e   : > { %5189 = vmatprep.subr.bf16.mxu0 %v5976_v35  ;;  %5435 = vmatprep.subr.bf16.mxu1 %v5978_v37  ;;  %v6032_v35 = vcombine.high %v632_v22, %v636_v1  ;;  %v6034_v37 = vcombine.high %v633_v43, %v637_v30  ;;  %v684_v20 = vld [vmem:[%s6715_s29 + $0xbf0] sm:$0xff]  ;;  %v685_v23 = vld [vmem:[%s6715_s29 + $0xbf8] sm:$0xff] }
 0x231   : > { %5190 = vmatpush1.bf16.msra.mxu0 %v5975_v7  ;;  %5436 = vmatpush1.bf16.msra.mxu1 %v5977_v44  ;;  %v6031_v7 = vcombine.low %v632_v22, %v636_v1  ;;  %v6033_v44 = vcombine.low %v633_v43, %v637_v30  ;;  %v688_v22 = vld [vmem:[%s6715_s29 + $0xc10] sm:$0xff]  ;;  %v689_v43 = vld [vmem:[%s6715_s29 + $0xc18] sm:$0xff] }
 0x232   : > { %5191 = vmatprep.subr.bf16.mxu0 %v5984_v45  ;;  %5437 = vmatprep.subr.bf16.mxu1 %v5986_v46  ;;  %v6040_v45 = vcombine.high %v640_v62, %v644_v39  ;;  %v6042_v46 = vcombine.high %v641_v40, %v645_v41  ;;  %v692_v1 = vld [vmem:[%s6715_s29 + $0xc30] sm:$0xff]  ;;  %v693_v30 = vld [vmem:[%s6715_s29 + $0xc38] sm:$0xff] }
 0x235   : > { %5192 = vmatpush1.bf16.msra.mxu0 %v5983_v52  ;;  %5438 = vmatpush1.bf16.msra.mxu1 %v5985_v17  ;;  %v6039_v52 = vcombine.low %v640_v62, %v644_v39  ;;  %v6041_v17 = vcombine.low %v641_v40, %v645_v41  ;;  %v696_v62 = vld [vmem:[%s6715_s29 + $0xc50] sm:$0xff]  ;;  %v697_v40 = vld [vmem:[%s6715_s29 + $0xc58] sm:$0xff] }
 0x236   : > { %5193 = vmatprep.subr.bf16.mxu0 %v5992_v53  ;;  %5439 = vmatprep.subr.bf16.mxu1 %v5994_v54  ;;  %v6048_v53 = vcombine.high %v648_v47, %v652_v48  ;;  %v6050_v54 = vcombine.high %v649_v49, %v653_v50  ;;  %v700_v39 = vld [vmem:[%s6715_s29 + $0xc70] sm:$0xff]  ;;  %v701_v41 = vld [vmem:[%s6715_s29 + $0xc78] sm:$0xff] }
 0x239   : > { %5194 = vmatpush1.bf16.msra.mxu0 %v5991_v60  ;;  %5440 = vmatpush1.bf16.msra.mxu1 %v5993_v28  ;;  %v6047_v60 = vcombine.low %v648_v47, %v652_v48  ;;  %v6049_v28 = vcombine.low %v649_v49, %v653_v50  ;;  %v704_v47 = vld [vmem:[%s6715_s29 + $0xc90] sm:$0xff]  ;;  %v705_v49 = vld [vmem:[%s6715_s29 + $0xc98] sm:$0xff] }
 0x23a   : > { %5195 = vmatprep.subr.bf16.mxu0 %v6000_v63  ;;  %5441 = vmatprep.subr.bf16.mxu1 %v6002_v0  ;;  %v6056_v63 = vcombine.high %v656_v55, %v660_v57  ;;  %v6058_v0 = vcombine.high %v657_v58, %v661_v59  ;;  %v708_v48 = vld [vmem:[%s6715_s29 + $0xcb0] sm:$0xff]  ;;  %v709_v50 = vld [vmem:[%s6715_s29 + $0xcb8] sm:$0xff] }
 0x23d   : > { %5196 = vmatpush1.bf16.msra.mxu0 %v5999_v4  ;;  %5442 = vmatpush1.bf16.msra.mxu1 %v6001_v5  ;;  %v6055_v4 = vcombine.low %v656_v55, %v660_v57  ;;  %v6057_v5 = vcombine.low %v657_v58, %v661_v59  ;;  %v712_v55 = vld [vmem:[%s6715_s29 + $0xcd0] sm:$0xff]  ;;  %v713_v58 = vld [vmem:[%s6715_s29 + $0xcd8] sm:$0xff] }
 0x23e   : > { %5197 = vmatprep.subr.bf16.mxu0 %v6008_v6  ;;  %5443 = vmatprep.subr.bf16.mxu1 %v6010_v8  ;;  %v6064_v6 = vcombine.high %v664_v32, %v668_v42  ;;  %v6066_v8 = vcombine.high %v665_v2, %v669_v3  ;;  %v716_v57 = vld [vmem:[%s6715_s29 + $0xcf0] sm:$0xff]  ;;  %v717_v59 = vld [vmem:[%s6715_s29 + $0xcf8] sm:$0xff] }
 0x241   : > { %5198 = vmatpush1.bf16.msra.mxu0 %v6007_v14  ;;  %5444 = vmatpush1.bf16.msra.mxu1 %v6009_v15  ;;  %v6063_v14 = vcombine.low %v664_v32, %v668_v42  ;;  %v6065_v15 = vcombine.low %v665_v2, %v669_v3  ;;  %v724_v32 = vld [vmem:[%s6715_s29 + $0xd30] sm:$0xff]  ;;  %v721_v42 = vld [vmem:[%s6715_s29 + $0xd18] sm:$0xff]  ;;  %v6111_v3 = vcombine.low %v712_v55, %v716_v57 }
 0x242   : > { %5199 = vmatprep.subr.bf16.mxu0 %v6016_v18  ;;  %5445 = vmatprep.subr.bf16.mxu1 %v6018_v19  ;;  %v6072_v18 = vcombine.high %v672_v9, %v676_v10  ;;  %v6074_v19 = vcombine.high %v673_v11, %v677_v12  ;;  %v725_v2 = vld [vmem:[%s6715_s29 + $0xd38] sm:$0xff] }
 0x245   : > { %5200 = vmatpush1.bf16.msra.mxu0 %v6015_v24  ;;  %5446 = vmatpush1.bf16.msra.mxu1 %v6017_v25  ;;  %v6071_v24 = vcombine.low %v672_v9, %v676_v10  ;;  %v6073_v25 = vcombine.low %v673_v11, %v677_v12  ;;  %v728_v9 = vld [vmem:[%s6715_s29 + $0xd50] sm:$0xff]  ;;  %v729_v11 = vld [vmem:[%s6715_s29 + $0xd58] sm:$0xff] }
 0x246   : > { %5201 = vmatprep.subr.bf16.mxu0 %v6024_v26  ;;  %5447 = vmatprep.subr.bf16.mxu1 %v6026_v29  ;;  %v6080_v26 = vcombine.high %v680_v56, %v684_v20  ;;  %v6082_v29 = vcombine.high %v681_v21, %v685_v23  ;;  %v732_v10 = vld [vmem:[%s6715_s29 + $0xd70] sm:$0xff]  ;;  %v733_v12 = vld [vmem:[%s6715_s29 + $0xd78] sm:$0xff] }
 0x249   : > { %5202 = vmatpush1.bf16.msra.mxu0 %v6023_v33  ;;  %5448 = vmatpush1.bf16.msra.mxu1 %v6025_v34  ;;  %v6079_v33 = vcombine.low %v680_v56, %v684_v20  ;;  %v6081_v34 = vcombine.low %v681_v21, %v685_v23  ;;  %v6130_v56 = vcombine.high %v729_v11, %v733_v12  ;;  %v736_v20 = vld [vmem:[%s6715_s29 + $0xd90] sm:$0xff]  ;;  %v737_v23 = vld [vmem:[%s6715_s29 + $0xd98] sm:$0xff] }
 0x24a   : > { %5203 = vmatprep.subr.bf16.mxu0 %v6032_v35  ;;  %5449 = vmatprep.subr.bf16.mxu1 %v6034_v37  ;;  %v6088_v35 = vcombine.high %v688_v22, %v692_v1  ;;  %v6090_v37 = vcombine.high %v689_v43, %v693_v30  ;;  %v740_v21 = vld [vmem:[%s6715_s29 + $0xdb0] sm:$0xff] }
 0x24d   : > { %5204 = vmatpush1.bf16.msra.mxu0 %v6031_v7  ;;  %5450 = vmatpush1.bf16.msra.mxu1 %v6033_v44  ;;  %v6087_v7 = vcombine.low %v688_v22, %v692_v1  ;;  %v6089_v44 = vcombine.low %v689_v43, %v693_v30  ;;  %v744_v30 = vld [vmem:[%s6715_s29 + $0xdd0] sm:$0xff] }
 0x24e   : > { %5205 = vmatprep.subr.bf16.mxu0 %v6040_v45  ;;  %5451 = vmatprep.subr.bf16.mxu1 %v6042_v46  ;;  %v6096_v45 = vcombine.high %v696_v62, %v700_v39  ;;  %v6098_v46 = vcombine.high %v697_v40, %v701_v41 }
 0x251   : > { %5206 = vmatpush1.bf16.msra.mxu0 %v6039_v52  ;;  %5452 = vmatpush1.bf16.msra.mxu1 %v6041_v17  ;;  %v6095_v52 = vcombine.low %v696_v62, %v700_v39  ;;  %v6097_v17 = vcombine.low %v697_v40, %v701_v41  ;;  %v749_v62 = vld [vmem:[%s6715_s29 + $0xdf8] sm:$0xff] }
 0x252   : > { %5207 = vmatprep.subr.bf16.mxu0 %v6048_v53  ;;  %5453 = vmatprep.subr.bf16.mxu1 %v6050_v54  ;;  %v6104_v53 = vcombine.high %v704_v47, %v708_v48  ;;  %v6106_v54 = vcombine.high %v705_v49, %v709_v50 }
 0x255   : > { %5208 = vmatpush1.bf16.msra.mxu0 %v6047_v60  ;;  %5454 = vmatpush1.bf16.msra.mxu1 %v6049_v28  ;;  %v6105_v60 = vcombine.low %v705_v49, %v709_v50  ;;  %v6112_v28 = vcombine.high %v712_v55, %v716_v57  ;;  %v757_v55 = vld [vmem:[%s6715_s29 + $0xe38] sm:$0xff]  ;;  %v298_v57 = vld [vmem:[%s7591_s3] sm:$0xff] }
 0x256   : > { %5209 = vmatprep.subr.bf16.mxu0 %v6056_v63  ;;  %5455 = vmatprep.subr.bf16.mxu1 %v6058_v0  ;;  %v6114_v63 = vcombine.high %v713_v58, %v717_v59  ;;  %v720_v0 = vld [vmem:[%s6715_s29 + $0xd10] sm:$0xff] }
 0x259   : > { %5210 = vmatpush1.bf16.msra.mxu0 %v6055_v4  ;;  %5456 = vmatpush1.bf16.msra.mxu1 %v6057_v5  ;;  %v6120_v4 = vcombine.high %v720_v0, %v724_v32  ;;  %v6122_v5 = vcombine.high %v721_v42, %v725_v2 }
 0x25a   : > { %5211 = vmatprep.subr.bf16.mxu0 %v6064_v6  ;;  %5457 = vmatprep.subr.bf16.mxu1 %v6066_v8  ;;  %v6608_v6 = vmov 1983009808  }
 0x25b   : > { %v5606_v8 = vunpack.c.l.s4 %v6608_v6  ;;  %v768_v6 = vld [vmem:[%s6715_s29 + $0xe90] sm:$0xff] }
 0x25d   : > { %5212 = vmatpush1.bf16.msra.mxu0 %v6063_v14  ;;  %5458 = vmatpush1.bf16.msra.mxu1 %v6065_v15  ;;  %v6119_v14 = vcombine.low %v720_v0, %v724_v32  ;;  %v6121_v15 = vcombine.low %v721_v42, %v725_v2  ;;  %v764_v0 = vld [vmem:[%s6715_s29 + $0xe70] sm:$0xff]  ;;  %v761_v42 = vld [vmem:[%s6715_s29 + $0xe58] sm:$0xff] }
 0x25e   : > { %5213 = vmatprep.subr.bf16.mxu0 %v6072_v18  ;;  %5459 = vmatprep.subr.bf16.mxu1 %v6074_v19  ;;  %v6128_v18 = vcombine.high %v728_v9, %v732_v10  ;;  %v5607_v19 = vunpack.c.0.s8 %v5606_v8  ;;  %v765_v2 = vld [vmem:[%s6715_s29 + $0xe78] sm:$0xff]  ;;  %v772_v8 = vld [vmem:[%s6715_s29 + $0xeb0] sm:$0xff] }
 0x260   : > { %v7415_v1 = vsub.s32 %v5607_v19, %v6759_v13  ;;  %v780_v19 = vld [vmem:[%s6715_s29 + $0xef0] sm:$0xff] }
 0x261   : > { %5214 = vmatpush1.bf16.msra.mxu0 %v6071_v24  ;;  %5460 = vmatpush1.bf16.msra.mxu1 %v6073_v25  ;;  %v741_v24 = vld [vmem:[%s6715_s29 + $0xdb8] sm:$0xff]  ;;  %v6127_v25 = vcombine.low %v728_v9, %v732_v10 }
 0x262   : > { %5215 = vmatprep.subr.bf16.mxu0 %v6080_v26  ;;  %5461 = vmatprep.subr.bf16.mxu1 %v6082_v29  ;;  %v6129_v26 = vcombine.low %v729_v11, %v733_v12  ;;  %v6136_v29 = vcombine.high %v736_v20, %v740_v21  ;;  %v6138_v43 = vcombine.high %v737_v23, %v741_v24  ;;  %v769_v9 = vld [vmem:[%s6715_s29 + $0xe98] sm:$0xff] }
 0x263   : > { %v773_v10 = vld [vmem:[%s6715_s29 + $0xeb8] sm:$0xff]  ;;  %v6161_v12 = vcombine.low %v761_v42, %v765_v2 }
 0x265   : > { %5216 = vmatpush1.bf16.msra.mxu0 %v6079_v33  ;;  %5462 = vmatpush1.bf16.msra.mxu1 %v6081_v34  ;;  %v748_v33 = vld [vmem:[%s6715_s29 + $0xdf0] sm:$0xff] }
 0x266   : > { %5226 = vmatprep.subr.bf16.mxu0 %v6088_v35  ;;  %5472 = vmatprep.subr.bf16.mxu1 %v6090_v37  ;;  %v745_v37 = vld [vmem:[%s6715_s29 + $0xdd8] sm:$0xff] }
 0x267   : > { %v6146_v50 = vcombine.high %v745_v37, %v749_v62 }
 0x268   : > { %5218 = vmatmul.mubr.bf16.vlgmr.msra.gmra.mrb[4].mxu0 %v6986_v27  ;;  %5464 = vmatmul.mubr.bf16.vlgmr.msra.gmra.mrb[4].mxu1 %v6986_v27  ;;  %v6103_v27 = vcombine.low %v704_v47, %v708_v48  ;;  %v6144_v47 = vcombine.high %v744_v30, %v748_v33 }
 0x269   : > { %5227 = vmatpush1.bf16.msra.mxu0 %v6087_v7  ;;  %5473 = vmatpush1.bf16.msra.mxu1 %v6089_v44  ;;  %v6135_v7 = vcombine.low %v736_v20, %v740_v21  ;;  %v781_v20 = vld [vmem:[%s6715_s29 + $0xef8] sm:$0xff]  ;;  %v6167_v21 = vcombine.low %v768_v6, %v772_v8 }
 0x26a   : > { %5228 = vmatprep.subr.bf16.mxu0 %v6096_v45  ;;  %5474 = vmatprep.subr.bf16.mxu1 %v6098_v46  ;;  %v6137_v46 = vcombine.low %v737_v23, %v741_v24  ;;  %v6169_v23 = vcombine.low %v769_v9, %v773_v10 }
 0x26b   : > { %5258 = vmatprep.mubr.bf16.mxu0 %v6994_v38  ;;  %5504 = vmatprep.mubr.bf16.mxu1 %v6994_v38  ;;  %v6113_v38 = vcombine.low %v713_v58, %v717_v59  ;;  %v6143_v58 = vcombine.low %v744_v30, %v748_v33 }
 0x26d   : > { %5229 = vmatpush1.bf16.msra.mxu0 %v6095_v52  ;;  %5475 = vmatpush1.bf16.msra.mxu1 %v6097_v17  ;;  %v752_v52 = vld [vmem:[%s6715_s29 + $0xe10] sm:$0xff] }
 0x26e   : > { %5230 = vmatprep.subr.bf16.mxu0 %v6104_v53  ;;  %5476 = vmatprep.subr.bf16.mxu1 %v6106_v54  ;;  %v756_v17 = vld [vmem:[%s6715_s29 + $0xe30] sm:$0xff]  ;;  %v753_v54 = vld [vmem:[%s6715_s29 + $0xe18] sm:$0xff] }
 0x271   : > { %5231 = vmatpush1.bf16.msra.mxu0 %v6103_v27  ;;  %5477 = vmatpush1.bf16.msra.mxu1 %v6105_v60  ;;  %v6145_v27 = vcombine.low %v745_v37, %v749_v62  ;;  %v6152_v60 = vcombine.high %v752_v52, %v756_v17  ;;  %v792_v37 = vld [vmem:[%s6715_s29 + $0xf50] sm:$0xff] }
 0x272   : > { %5232 = vmatprep.subr.bf16.mxu0 %v6112_v28  ;;  %5478 = vmatprep.subr.bf16.mxu1 %v6114_v63  ;;  %v6154_v28 = vcombine.high %v753_v54, %v757_v55  ;;  %v760_v63 = vld [vmem:[%s6715_s29 + $0xe50] sm:$0xff] }
 0x273   : > { %v6159_v11 = vcombine.low %v760_v63, %v764_v0  ;;  %v796_v62 = vld [vmem:[%s6715_s29 + $0xf70] sm:$0xff] }
 0x275   : > { %5233 = vmatpush1.bf16.msra.mxu0 %v6111_v3  ;;  %5479 = vmatpush1.bf16.msra.mxu1 %v6113_v38  ;;  %v6151_v3 = vcombine.low %v752_v52, %v756_v17  ;;  %v6153_v38 = vcombine.low %v753_v54, %v757_v55  ;;  %v812_v54 = vld [vmem:[%s6715_s29 + $0xff0] sm:$0xff]  ;;  %v809_v55 = vld [vmem:[%s6715_s29 + $0xfd8] sm:$0xff] }
 0x276   : > { %5234 = vmatprep.subr.bf16.mxu0 %v6120_v4  ;;  %5480 = vmatprep.subr.bf16.mxu1 %v6122_v5  ;;  %v6160_v4 = vcombine.high %v760_v63, %v764_v0  ;;  %v6162_v5 = vcombine.high %v761_v42, %v765_v2  ;;  %v820_v63 = vld [vmem:[%s6715_s29 + $0x1030] sm:$0xff]  ;;  %v817_v0 = vld [vmem:[%s6715_s29 + $0x1018] sm:$0xff] }
 0x279   : > { %5235 = vmatpush1.bf16.msra.mxu0 %v6119_v14  ;;  %5481 = vmatpush1.bf16.msra.mxu1 %v6121_v15  ;;  %v6168_v14 = vcombine.high %v768_v6, %v772_v8  ;;  %v6170_v15 = vcombine.high %v769_v9, %v773_v10  ;;  %v825_v6 = vld [vmem:[%s6715_s29 + $0x1058] sm:$0xff] }
 0x27a   : > { %5236 = vmatprep.subr.bf16.mxu0 %v6128_v18  ;;  %5482 = vmatprep.subr.bf16.mxu1 %v6130_v56  ;;  %v776_v18 = vld [vmem:[%s6715_s29 + $0xed0] sm:$0xff]  ;;  %v777_v56 = vld [vmem:[%s6715_s29 + $0xed8] sm:$0xff] }
 0x27b   : > { %v4850_v22 = vpop.f32.mrb[0].mxu0  ;;  %v5096_v34 = vpop.f32.mrb[0].mxu1  ;;  %v6176_v24 = vcombine.high %v776_v18, %v780_v19  ;;  %v6175_v30 = vcombine.low %v776_v18, %v780_v19  ;;  %v6177_v33 = vcombine.low %v777_v56, %v781_v20  ;;  %v829_v8 = vld [vmem:[%s6715_s29 + $0x1078] sm:$0xff] }
 0x27c   : > { %v4852_v35 = vpop.f32.mrb[1].mxu0  ;;  %v5098_v40 = vpop.f32.mrb[1].mxu1  ;;  %v833_v18 = vld [vmem:[%s6715_s29 + $0x1098] sm:$0xff] }
 0x27d   : > { %v5603_v39 = vcombine.low %v4850_v22, %v4852_v35  ;;  %v4854_v41 = vpop.f32.mrb[2].mxu0  ;;  %5237 = vmatpush1.bf16.msra.mxu0 %v6127_v25  ;;  %v5604_v44 = vcombine.low %v5096_v34, %v5098_v40  ;;  %v5100_v13 = vpop.f32.mrb[2].mxu1  ;;  %5483 = vmatpush1.bf16.msra.mxu1 %v6129_v26  ;;  %v6178_v25 = vcombine.high %v777_v56, %v781_v20  ;;  %v784_v26 = vld [vmem:[%s6715_s29 + $0xf10] sm:$0xff]  ;;  %v785_v22 = vld [vmem:[%s6715_s29 + $0xf18] sm:$0xff] }
 0x27e   : > { %v4855_v45 = vpop.f32.mrb[3].mxu0  ;;  %5238 = vmatprep.subr.bf16.mxu0 %v6136_v29  ;;  %v5101_v49 = vpop.f32.mrb[3].mxu1  ;;  %5484 = vmatprep.subr.bf16.mxu1 %v6138_v43  ;;  %v788_v29 = vld [vmem:[%s6715_s29 + $0xf30] sm:$0xff]  ;;  %v789_v43 = vld [vmem:[%s6715_s29 + $0xf38] sm:$0xff]  ;;  %v6225_v20 = vcombine.low %v825_v6, %v829_v8 }
 0x27f   : > { %v5611_v48 = vrot.slane %v5603_v39, %v7415_v1  ;;  %v5618_v53 = vrot.slane %v5604_v44, %v7415_v1  ;;  %v6184_v34 = vcombine.high %v784_v26, %v788_v29  ;;  %v6186_v35 = vcombine.high %v785_v22, %v789_v43  ;;  %v793_v39 = vld [vmem:[%s6715_s29 + $0xf58] sm:$0xff]  ;;  %v800_v45 = vld [vmem:[%s6715_s29 + $0xf90] sm:$0xff] }
 0x280   : > { %v797_v40 = vld [vmem:[%s6715_s29 + $0xf78] sm:$0xff]  ;;  %v6183_v41 = vcombine.low %v784_v26, %v788_v29  ;;  %v6192_v44 = vcombine.high %v792_v37, %v796_v62  ;;  %v6191_v49 = vcombine.low %v792_v37, %v796_v62 }
 0x281   : > { %5239 = vmatpush1.bf16.msra.mxu0 %v6135_v7  ;;  %v5619_v59 = vcombine.low %v5611_v48, %v5618_v53  ;;  %5485 = vmatpush1.bf16.msra.mxu1 %v6137_v46  ;;  %v6185_v7 = vcombine.low %v785_v22, %v789_v43  ;;  %v6194_v13 = vcombine.high %v793_v39, %v797_v40  ;;  %v804_v46 = vld [vmem:[%s6715_s29 + $0xfb0] sm:$0xff]  ;;  %v805_v48 = vld [vmem:[%s6715_s29 + $0xfb8] sm:$0xff] }
 0x282   : > { %5240 = vmatprep.subr.bf16.mxu0 %v6144_v47  ;;  %5486 = vmatprep.subr.bf16.mxu1 %v6146_v50  ;;  %v801_v47 = vld [vmem:[%s6715_s29 + $0xf98] sm:$0xff]  ;;  %v6193_v50 = vcombine.low %v793_v39, %v797_v40  ;;  %v6200_v52 = vcombine.high %v800_v45, %v804_v46  ;;  %v808_v53 = vld [vmem:[%s6715_s29 + $0xfd0] sm:$0xff] }
 0x283   : > { %v5639_v32 = vadd.f32 %v5619_v59, %v298_v57  ;;  %v6202_v17 = vcombine.high %v801_v47, %v805_v48  ;;  %v813_v57 = vld [vmem:[%s6715_s29 + $0xff8] sm:$0xff]  ;;  %v6201_v59 = vcombine.low %v801_v47, %v805_v48  ;;  %v6207_v42 = vcombine.low %v808_v53, %v812_v54 }
 0x284   : > { %v6209_v2 = vcombine.low %v809_v55, %v813_v57  ;;  %v837_v19 = vld [vmem:[%s6715_s29 + $0x10b8] sm:$0xff] }
 0x285   : > { %5241 = vmatpush1.bf16.msra.mxu0 %v6143_v58  ;;  %5641 = vst [vmem:[%s7591_s3] sm:$0xff] %v5639_v32  ;;  %5487 = vmatpush1.bf16.msra.mxu1 %v6145_v27  ;;  %v6199_v58 = vcombine.low %v800_v45, %v804_v46  ;;  %v6208_v27 = vcombine.high %v808_v53, %v812_v54  ;;  %v821_v32 = vld [vmem:[%s6715_s29 + $0x1038] sm:$0xff] }
 0x286   : > { %5242 = vmatprep.subr.bf16.mxu0 %v6152_v60  ;;  %5488 = vmatprep.subr.bf16.mxu1 %v6154_v28  ;;  %v6210_v60 = vcombine.high %v809_v55, %v813_v57  ;;  %v816_v28 = vld [vmem:[%s6715_s29 + $0x1010] sm:$0xff]  ;;  %v6217_v10 = vcombine.low %v817_v0, %v821_v32  ;;  %v841_v26 = vld [vmem:[%s6715_s29 + $0x10d8] sm:$0xff]  ;;  %v6233_v22 = vcombine.low %v833_v18, %v837_v19 }
 0x287   : > { %v6215_v9 = vcombine.low %v816_v28, %v820_v63  ;;  %v845_v29 = vld [vmem:[%s6715_s29 + $0x10f8] sm:$0xff] }
 0x288   : > { %v853_v37 = vld [vmem:[%s6715_s29 + $0x1138] sm:$0xff] }
 0x289   : > { %5243 = vmatpush1.bf16.msra.mxu0 %v6151_v3  ;;  %5489 = vmatpush1.bf16.msra.mxu1 %v6153_v38  ;;  %v6216_v3 = vcombine.high %v816_v28, %v820_v63  ;;  %v6218_v38 = vcombine.high %v817_v0, %v821_v32 }
 0x28a   : > { %5244 = vmatprep.subr.bf16.mxu0 %v6160_v4  ;;  %5490 = vmatprep.subr.bf16.mxu1 %v6162_v5  ;;  %v824_v4 = vld [vmem:[%s6715_s29 + $0x1050] sm:$0xff] }
 0x28b   : > { %v828_v5 = vld [vmem:[%s6715_s29 + $0x1070] sm:$0xff] }
 0x28c   : > { %v6223_v56 = vcombine.low %v824_v4, %v828_v5 }
 0x28d   : > { %5245 = vmatpush1.bf16.msra.mxu0 %v6159_v11  ;;  %5491 = vmatpush1.bf16.msra.mxu1 %v6161_v12  ;;  %v6224_v11 = vcombine.high %v824_v4, %v828_v5  ;;  %v6226_v12 = vcombine.high %v825_v6, %v829_v8 }
 0x28e   : > { %5246 = vmatprep.subr.bf16.mxu0 %v6168_v14  ;;  %5492 = vmatprep.subr.bf16.mxu1 %v6170_v15  ;;  %v832_v14 = vld [vmem:[%s6715_s29 + $0x1090] sm:$0xff] }
 0x28f   : > { %v836_v15 = vld [vmem:[%s6715_s29 + $0x10b0] sm:$0xff] }
 0x291   : > { %5247 = vmatpush1.bf16.msra.mxu0 %v6167_v21  ;;  %5493 = vmatpush1.bf16.msra.mxu1 %v6169_v23  ;;  %v6232_v21 = vcombine.high %v832_v14, %v836_v15  ;;  %v6234_v23 = vcombine.high %v833_v18, %v837_v19 }
 0x292   : > { %5248 = vmatprep.subr.bf16.mxu0 %v6176_v24  ;;  %5494 = vmatprep.subr.bf16.mxu1 %v6178_v25  ;;  %v840_v24 = vld [vmem:[%s6715_s29 + $0x10d0] sm:$0xff] }
 0x293   : > { %v844_v25 = vld [vmem:[%s6715_s29 + $0x10f0] sm:$0xff] }
 0x294   : > { %v6240_v43 = vcombine.high %v840_v24, %v844_v25  ;;  %v6239_v62 = vcombine.low %v840_v24, %v844_v25 }
 0x295   : > { %5249 = vmatpush1.bf16.msra.mxu0 %v6175_v30  ;;  %5495 = vmatpush1.bf16.msra.mxu1 %v6177_v33  ;;  %v6242_v30 = vcombine.high %v841_v26, %v845_v29  ;;  %v848_v33 = vld [vmem:[%s6715_s29 + $0x1110] sm:$0xff] }
 0x296   : > { %5250 = vmatprep.subr.bf16.mxu0 %v6184_v34  ;;  %5496 = vmatprep.subr.bf16.mxu1 %v6186_v35  ;;  %v852_v34 = vld [vmem:[%s6715_s29 + $0x1130] sm:$0xff]  ;;  %v849_v35 = vld [vmem:[%s6715_s29 + $0x1118] sm:$0xff] }
 0x297   : > { %v6248_v39 = vcombine.high %v848_v33, %v852_v34  ;;  %v6250_v40 = vcombine.high %v849_v35, %v853_v37  ;;  %v6247_v45 = vcombine.low %v848_v33, %v852_v34  ;;  %v6249_v46 = vcombine.low %v849_v35, %v853_v37 }
 0x299   : > { %5251 = vmatpush1.bf16.msra.mxu0 %v6183_v41  ;;  %5497 = vmatpush1.bf16.msra.mxu1 %v6185_v7  ;;  %v856_v41 = vld [vmem:[%s6715_s29 + $0x1150] sm:$0xff] }
 0x29a   : > { %5252 = vmatprep.subr.bf16.mxu0 %v6192_v44  ;;  %5498 = vmatprep.subr.bf16.mxu1 %v6194_v13  ;;  %v860_v7 = vld [vmem:[%s6715_s29 + $0x1170] sm:$0xff]  ;;  %v857_v44 = vld [vmem:[%s6715_s29 + $0x1158] sm:$0xff] }
 0x29b   : > { %v861_v13 = vld [vmem:[%s6715_s29 + $0x1178] sm:$0xff]  ;;  %v6256_v47 = vcombine.high %v856_v41, %v860_v7  ;;  %v6255_v53 = vcombine.low %v856_v41, %v860_v7 }
 0x29c   : > { %v6258_v48 = vcombine.high %v857_v44, %v861_v13  ;;  %v6257_v54 = vcombine.low %v857_v44, %v861_v13 }
 0x29d   : > { %5253 = vmatpush1.bf16.msra.mxu0 %v6191_v49  ;;  %5499 = vmatpush1.bf16.msra.mxu1 %v6193_v50  ;;  %v864_v49 = vld [vmem:[%s6715_s29 + $0x1190] sm:$0xff] }
 0x29e   : > { %5254 = vmatprep.subr.bf16.mxu0 %v6200_v52  ;;  %5500 = vmatprep.subr.bf16.mxu1 %v6202_v17  ;;  %v868_v50 = vld [vmem:[%s6715_s29 + $0x11b0] sm:$0xff]  ;;  %v865_v52 = vld [vmem:[%s6715_s29 + $0x1198] sm:$0xff] }
 0x29f   : > { %v869_v17 = vld [vmem:[%s6715_s29 + $0x11b8] sm:$0xff]  ;;  %v6264_v55 = vcombine.high %v864_v49, %v868_v50  ;;  %v6263_v28 = vcombine.low %v864_v49, %v868_v50 }
 0x2a0   : > { %v6266_v57 = vcombine.high %v865_v52, %v869_v17  ;;  %v6265_v63 = vcombine.low %v865_v52, %v869_v17 }
 0x2a1   : > { %5255 = vmatpush1.bf16.msra.mxu0 %v6199_v58  ;;  %5501 = vmatpush1.bf16.msra.mxu1 %v6201_v59  ;;  %v872_v58 = vld [vmem:[%s6715_s29 + $0x11d0] sm:$0xff] }
 0x2a2   : > { %5256 = vmatprep.subr.bf16.mxu0 %v6208_v27  ;;  %5502 = vmatprep.subr.bf16.mxu1 %v6210_v60  ;;  %v876_v59 = vld [vmem:[%s6715_s29 + $0x11f0] sm:$0xff]  ;;  %v873_v27 = vld [vmem:[%s6715_s29 + $0x11d8] sm:$0xff] }
 0x2a3   : > { %v877_v60 = vld [vmem:[%s6715_s29 + $0x11f8] sm:$0xff]  ;;  %v6272_v0 = vcombine.high %v872_v58, %v876_v59  ;;  %v6271_v4 = vcombine.low %v872_v58, %v876_v59 }
 0x2a4   : > { %v6274_v32 = vcombine.high %v873_v27, %v877_v60  ;;  %v6273_v5 = vcombine.low %v873_v27, %v877_v60 }
 0x2a5   : > { %5257 = vmatpush1.bf16.msra.mxu0 %v6207_v42  ;;  %5503 = vmatpush1.bf16.msra.mxu1 %v6209_v2  ;;  %v880_v42 = vld [vmem:[%s6715_s29 + $0x1210] sm:$0xff] }
 0x2a6   : > { %5267 = vmatprep.subr.bf16.mxu0 %v6216_v3  ;;  %5513 = vmatprep.subr.bf16.mxu1 %v6218_v38  ;;  %v884_v2 = vld [vmem:[%s6715_s29 + $0x1230] sm:$0xff]  ;;  %v881_v3 = vld [vmem:[%s6715_s29 + $0x1218] sm:$0xff] }
 0x2a7   : > { %v885_v38 = vld [vmem:[%s6715_s29 + $0x1238] sm:$0xff]  ;;  %v6280_v6 = vcombine.high %v880_v42, %v884_v2 }
 0x2a8   : > { %5259 = vmatmul.mubr.bf16.vlgmr.msra.gmra.mrb[4].mxu0 %v7067_v51  ;;  %5505 = vmatmul.mubr.bf16.vlgmr.msra.gmra.mrb[4].mxu1 %v7067_v51  ;;  %v6231_v51 = vcombine.low %v832_v14, %v836_v15  ;;  %v6282_v8 = vcombine.high %v881_v3, %v885_v38  ;;  %v6279_v14 = vcombine.low %v880_v42, %v884_v2 }
 0x2a9   : > { %5268 = vmatpush1.bf16.msra.mxu0 %v6215_v9  ;;  %5514 = vmatpush1.bf16.msra.mxu1 %v6217_v10  ;;  %v888_v9 = vld [vmem:[%s6715_s29 + $0x1250] sm:$0xff]  ;;  %v6281_v15 = vcombine.low %v881_v3, %v885_v38 }
 0x2aa   : > { %5269 = vmatprep.subr.bf16.mxu0 %v6224_v11  ;;  %5515 = vmatprep.subr.bf16.mxu1 %v6226_v12  ;;  %v892_v10 = vld [vmem:[%s6715_s29 + $0x1270] sm:$0xff]  ;;  %v889_v11 = vld [vmem:[%s6715_s29 + $0x1258] sm:$0xff] }
 0x2ab   : > { %5299 = vmatprep.mubr.bf16.mxu0 %v7074_v61  ;;  %5545 = vmatprep.mubr.bf16.mxu1 %v7074_v61  ;;  %v6241_v61 = vcombine.low %v841_v26, %v845_v29  ;;  %v893_v12 = vld [vmem:[%s6715_s29 + $0x1278] sm:$0xff]  ;;  %v6288_v18 = vcombine.high %v888_v9, %v892_v10  ;;  %v6287_v24 = vcombine.low %v888_v9, %v892_v10 }
 0x2ac   : > { %v6290_v19 = vcombine.high %v889_v11, %v893_v12  ;;  %v6289_v25 = vcombine.low %v889_v11, %v893_v12 }
 0x2ad   : > { %5270 = vmatpush1.bf16.msra.mxu0 %v6223_v56  ;;  %5516 = vmatpush1.bf16.msra.mxu1 %v6225_v20  ;;  %v896_v56 = vld [vmem:[%s6715_s29 + $0x1290] sm:$0xff] }
 0x2ae   : > { %5271 = vmatprep.subr.bf16.mxu0 %v6232_v21  ;;  %5517 = vmatprep.subr.bf16.mxu1 %v6234_v23  ;;  %v900_v20 = vld [vmem:[%s6715_s29 + $0x12b0] sm:$0xff]  ;;  %v897_v21 = vld [vmem:[%s6715_s29 + $0x1298] sm:$0xff] }
 0x2af   : > { %v901_v23 = vld [vmem:[%s6715_s29 + $0x12b8] sm:$0xff]  ;;  %v6296_v26 = vcombine.high %v896_v56, %v900_v20  ;;  %v6295_v33 = vcombine.low %v896_v56, %v900_v20 }
 0x2b0   : > { %v6298_v29 = vcombine.high %v897_v21, %v901_v23  ;;  %v6297_v34 = vcombine.low %v897_v21, %v901_v23 }
 0x2b1   : > { %5272 = vmatpush1.bf16.msra.mxu0 %v6231_v51  ;;  %5518 = vmatpush1.bf16.msra.mxu1 %v6233_v22  ;;  %v904_v51 = vld [vmem:[%s6715_s29 + $0x12d0] sm:$0xff] }
 0x2b2   : > { %5273 = vmatprep.subr.bf16.mxu0 %v6240_v43  ;;  %5519 = vmatprep.subr.bf16.mxu1 %v6242_v30  ;;  %v908_v22 = vld [vmem:[%s6715_s29 + $0x12f0] sm:$0xff]  ;;  %v905_v43 = vld [vmem:[%s6715_s29 + $0x12d8] sm:$0xff] }
 0x2b3   : > { %v909_v30 = vld [vmem:[%s6715_s29 + $0x12f8] sm:$0xff]  ;;  %v6304_v35 = vcombine.high %v904_v51, %v908_v22  ;;  %v6303_v41 = vcombine.low %v904_v51, %v908_v22 }
 0x2b4   : > { %v6306_v37 = vcombine.high %v905_v43, %v909_v30  ;;  %v6305_v7 = vcombine.low %v905_v43, %v909_v30 }
 0x2b5   : > { %5274 = vmatpush1.bf16.msra.mxu0 %v6239_v62  ;;  %5520 = vmatpush1.bf16.msra.mxu1 %v6241_v61  ;;  %v912_v62 = vld [vmem:[%s6715_s29 + $0x1310] sm:$0xff] }
 0x2b6   : > { %5275 = vmatprep.subr.bf16.mxu0 %v6248_v39  ;;  %5521 = vmatprep.subr.bf16.mxu1 %v6250_v40  ;;  %v916_v61 = vld [vmem:[%s6715_s29 + $0x1330] sm:$0xff]  ;;  %v913_v39 = vld [vmem:[%s6715_s29 + $0x1318] sm:$0xff] }
 0x2b7   : > { %v917_v40 = vld [vmem:[%s6715_s29 + $0x1338] sm:$0xff]  ;;  %v6312_v44 = vcombine.high %v912_v62, %v916_v61  ;;  %v6311_v49 = vcombine.low %v912_v62, %v916_v61 }
 0x2b8   : > { %v6314_v13 = vcombine.high %v913_v39, %v917_v40  ;;  %v6313_v50 = vcombine.low %v913_v39, %v917_v40  ;;  %v976_v40 = vld [vmem:[%s6715_s29 + $0x1510] sm:$0xff] }
 0x2b9   : > { %5276 = vmatpush1.bf16.msra.mxu0 %v6247_v45  ;;  %5522 = vmatpush1.bf16.msra.mxu1 %v6249_v46  ;;  %v920_v45 = vld [vmem:[%s6715_s29 + $0x1350] sm:$0xff] }
 0x2ba   : > { %5277 = vmatprep.subr.bf16.mxu0 %v6256_v47  ;;  %5523 = vmatprep.subr.bf16.mxu1 %v6258_v48  ;;  %v924_v46 = vld [vmem:[%s6715_s29 + $0x1370] sm:$0xff]  ;;  %v921_v47 = vld [vmem:[%s6715_s29 + $0x1358] sm:$0xff] }
 0x2bb   : > { %v925_v48 = vld [vmem:[%s6715_s29 + $0x1378] sm:$0xff]  ;;  %v6320_v52 = vcombine.high %v920_v45, %v924_v46  ;;  %v6319_v58 = vcombine.low %v920_v45, %v924_v46 }
 0x2bc   : > { %v6322_v17 = vcombine.high %v921_v47, %v925_v48  ;;  %v6321_v59 = vcombine.low %v921_v47, %v925_v48  ;;  %v984_v47 = vld [vmem:[%s6715_s29 + $0x1550] sm:$0xff] }
 0x2bd   : > { %5278 = vmatpush1.bf16.msra.mxu0 %v6255_v53  ;;  %5524 = vmatpush1.bf16.msra.mxu1 %v6257_v54  ;;  %v928_v53 = vld [vmem:[%s6715_s29 + $0x1390] sm:$0xff] }
 0x2be   : > { %5279 = vmatprep.subr.bf16.mxu0 %v6264_v55  ;;  %5525 = vmatprep.subr.bf16.mxu1 %v6266_v57  ;;  %v932_v54 = vld [vmem:[%s6715_s29 + $0x13b0] sm:$0xff]  ;;  %v929_v55 = vld [vmem:[%s6715_s29 + $0x1398] sm:$0xff] }
 0x2bf   : > { %v933_v57 = vld [vmem:[%s6715_s29 + $0x13b8] sm:$0xff]  ;;  %v6328_v27 = vcombine.high %v928_v53, %v932_v54  ;;  %v6327_v42 = vcombine.low %v928_v53, %v932_v54  ;;  %v988_v48 = vld [vmem:[%s6715_s29 + $0x1570] sm:$0xff] }
 0x2c0   : > { %v6330_v60 = vcombine.high %v929_v55, %v933_v57  ;;  %v6329_v2 = vcombine.low %v929_v55, %v933_v57  ;;  %v6384_v53 = vcombine.high %v984_v47, %v988_v48  ;;  %v992_v55 = vld [vmem:[%s6715_s29 + $0x1590] sm:$0xff] }
 0x2c1   : > { %5280 = vmatpush1.bf16.msra.mxu0 %v6263_v28  ;;  %5526 = vmatpush1.bf16.msra.mxu1 %v6265_v63  ;;  %v936_v28 = vld [vmem:[%s6715_s29 + $0x13d0] sm:$0xff] }
 0x2c2   : > { %5281 = vmatprep.subr.bf16.mxu0 %v6272_v0  ;;  %5527 = vmatprep.subr.bf16.mxu1 %v6274_v32  ;;  %v940_v63 = vld [vmem:[%s6715_s29 + $0x13f0] sm:$0xff]  ;;  %v937_v0 = vld [vmem:[%s6715_s29 + $0x13d8] sm:$0xff] }
 0x2c3   : > { %v941_v32 = vld [vmem:[%s6715_s29 + $0x13f8] sm:$0xff]  ;;  %v6336_v3 = vcombine.high %v936_v28, %v940_v63  ;;  %v6335_v9 = vcombine.low %v936_v28, %v940_v63  ;;  %v996_v57 = vld [vmem:[%s6715_s29 + $0x15b0] sm:$0xff] }
 0x2c4   : > { %v6338_v38 = vcombine.high %v937_v0, %v941_v32  ;;  %v6337_v10 = vcombine.low %v937_v0, %v941_v32  ;;  %v6392_v28 = vcombine.high %v992_v55, %v996_v57  ;;  %v1000_v0 = vld [vmem:[%s6715_s29 + $0x15d0] sm:$0xff] }
 0x2c5   : > { %5282 = vmatpush1.bf16.msra.mxu0 %v6271_v4  ;;  %5528 = vmatpush1.bf16.msra.mxu1 %v6273_v5  ;;  %v944_v4 = vld [vmem:[%s6715_s29 + $0x1410] sm:$0xff] }
 0x2c6   : > { %5283 = vmatprep.subr.bf16.mxu0 %v6280_v6  ;;  %5529 = vmatprep.subr.bf16.mxu1 %v6282_v8  ;;  %v948_v5 = vld [vmem:[%s6715_s29 + $0x1430] sm:$0xff]  ;;  %v945_v6 = vld [vmem:[%s6715_s29 + $0x1418] sm:$0xff] }
 0x2c7   : > { %v949_v8 = vld [vmem:[%s6715_s29 + $0x1438] sm:$0xff]  ;;  %v6344_v11 = vcombine.high %v944_v4, %v948_v5  ;;  %v6343_v56 = vcombine.low %v944_v4, %v948_v5  ;;  %v1004_v32 = vld [vmem:[%s6715_s29 + $0x15f0] sm:$0xff] }
 0x2c8   : > { %v6346_v12 = vcombine.high %v945_v6, %v949_v8  ;;  %v6345_v20 = vcombine.low %v945_v6, %v949_v8  ;;  %v6400_v4 = vcombine.high %v1000_v0, %v1004_v32  ;;  %v6399_v6 = vcombine.low %v1000_v0, %v1004_v32 }
 0x2c9   : > { %5284 = vmatpush1.bf16.msra.mxu0 %v6279_v14  ;;  %5530 = vmatpush1.bf16.msra.mxu1 %v6281_v15  ;;  %v952_v14 = vld [vmem:[%s6715_s29 + $0x1450] sm:$0xff] }
 0x2ca   : > { %5285 = vmatprep.subr.bf16.mxu0 %v6288_v18  ;;  %5531 = vmatprep.subr.bf16.mxu1 %v6290_v19  ;;  %v956_v15 = vld [vmem:[%s6715_s29 + $0x1470] sm:$0xff]  ;;  %v953_v18 = vld [vmem:[%s6715_s29 + $0x1458] sm:$0xff] }
 0x2cb   : > { %v957_v19 = vld [vmem:[%s6715_s29 + $0x1478] sm:$0xff]  ;;  %v6352_v21 = vcombine.high %v952_v14, %v956_v15  ;;  %v6351_v51 = vcombine.low %v952_v14, %v956_v15 }
 0x2cc   : > { %v6354_v23 = vcombine.high %v953_v18, %v957_v19  ;;  %v6353_v22 = vcombine.low %v953_v18, %v957_v19 }
 0x2cd   : > { %5286 = vmatpush1.bf16.msra.mxu0 %v6287_v24  ;;  %5532 = vmatpush1.bf16.msra.mxu1 %v6289_v25  ;;  %v960_v24 = vld [vmem:[%s6715_s29 + $0x1490] sm:$0xff] }
 0x2ce   : > { %5287 = vmatprep.subr.bf16.mxu0 %v6296_v26  ;;  %5533 = vmatprep.subr.bf16.mxu1 %v6298_v29  ;;  %v964_v25 = vld [vmem:[%s6715_s29 + $0x14b0] sm:$0xff]  ;;  %v961_v26 = vld [vmem:[%s6715_s29 + $0x1498] sm:$0xff] }
 0x2cf   : > { %v965_v29 = vld [vmem:[%s6715_s29 + $0x14b8] sm:$0xff]  ;;  %v6360_v43 = vcombine.high %v960_v24, %v964_v25 }
 0x2d0   : > { %v6362_v30 = vcombine.high %v961_v26, %v965_v29  ;;  %v6361_v62 = vcombine.low %v961_v26, %v965_v29 }
 0x2d1   : > { %5288 = vmatpush1.bf16.msra.mxu0 %v6295_v33  ;;  %5534 = vmatpush1.bf16.msra.mxu1 %v6297_v34  ;;  %v968_v33 = vld [vmem:[%s6715_s29 + $0x14d0] sm:$0xff] }
 0x2d2   : > { %5289 = vmatprep.subr.bf16.mxu0 %v6304_v35  ;;  %5535 = vmatprep.subr.bf16.mxu1 %v6306_v37  ;;  %v972_v34 = vld [vmem:[%s6715_s29 + $0x14f0] sm:$0xff]  ;;  %v969_v35 = vld [vmem:[%s6715_s29 + $0x14d8] sm:$0xff] }
 0x2d3   : > { %v973_v37 = vld [vmem:[%s6715_s29 + $0x14f8] sm:$0xff]  ;;  %v6368_v61 = vcombine.high %v968_v33, %v972_v34 }
 0x2d4   : > { %v6370_v39 = vcombine.high %v969_v35, %v973_v37 }
 0x2d5   : > { %5290 = vmatpush1.bf16.msra.mxu0 %v6303_v41  ;;  %5536 = vmatpush1.bf16.msra.mxu1 %v6305_v7  ;;  %v980_v41 = vld [vmem:[%s6715_s29 + $0x1530] sm:$0xff]  ;;  %v977_v7 = vld [vmem:[%s6715_s29 + $0x1518] sm:$0xff] }
 0x2d6   : > { %5291 = vmatprep.subr.bf16.mxu0 %v6312_v44  ;;  %5537 = vmatprep.subr.bf16.mxu1 %v6314_v13  ;;  %v981_v44 = vld [vmem:[%s6715_s29 + $0x1538] sm:$0xff]  ;;  %v6367_v13 = vcombine.low %v968_v33, %v972_v34  ;;  %v6376_v45 = vcombine.high %v976_v40, %v980_v41 }
 0x2d7   : > { %v6378_v46 = vcombine.high %v977_v7, %v981_v44 }
 0x2d9   : > { %5292 = vmatpush1.bf16.msra.mxu0 %v6311_v49  ;;  %5538 = vmatpush1.bf16.msra.mxu1 %v6313_v50  ;;  %v985_v49 = vld [vmem:[%s6715_s29 + $0x1558] sm:$0xff] }
 0x2da   : > { %5293 = vmatprep.subr.bf16.mxu0 %v6320_v52  ;;  %5539 = vmatprep.subr.bf16.mxu1 %v6322_v17  ;;  %v989_v50 = vld [vmem:[%s6715_s29 + $0x1578] sm:$0xff]  ;;  %v6375_v52 = vcombine.low %v976_v40, %v980_v41  ;;  %v6377_v17 = vcombine.low %v977_v7, %v981_v44 }
 0x2db   : > { %v6386_v54 = vcombine.high %v985_v49, %v989_v50 }
 0x2dd   : > { %5294 = vmatpush1.bf16.msra.mxu0 %v6319_v58  ;;  %5540 = vmatpush1.bf16.msra.mxu1 %v6321_v59  ;;  %v993_v58 = vld [vmem:[%s6715_s29 + $0x1598] sm:$0xff] }
 0x2de   : > { %5295 = vmatprep.subr.bf16.mxu0 %v6328_v27  ;;  %5541 = vmatprep.subr.bf16.mxu1 %v6330_v60  ;;  %v997_v59 = vld [vmem:[%s6715_s29 + $0x15b8] sm:$0xff]  ;;  %v6383_v27 = vcombine.low %v984_v47, %v988_v48  ;;  %v6385_v60 = vcombine.low %v985_v49, %v989_v50 }
 0x2df   : > { %v6394_v63 = vcombine.high %v993_v58, %v997_v59 }
 0x2e1   : > { %5296 = vmatpush1.bf16.msra.mxu0 %v6327_v42  ;;  %5542 = vmatpush1.bf16.msra.mxu1 %v6329_v2  ;;  %v1001_v42 = vld [vmem:[%s6715_s29 + $0x15d8] sm:$0xff] }
 0x2e2   : > { %5297 = vmatprep.subr.bf16.mxu0 %v6336_v3  ;;  %5543 = vmatprep.subr.bf16.mxu1 %v6338_v38  ;;  %v1005_v2 = vld [vmem:[%s6715_s29 + $0x15f8] sm:$0xff]  ;;  %v6391_v3 = vcombine.low %v992_v55, %v996_v57  ;;  %v6393_v38 = vcombine.low %v993_v58, %v997_v59 }
 0x2e3   : > { %v6402_v5 = vcombine.high %v1001_v42, %v1005_v2  ;;  %v6401_v8 = vcombine.low %v1001_v42, %v1005_v2 }
 0x2e5   : > { %5298 = vmatpush1.bf16.msra.mxu0 %v6335_v9  ;;  %5544 = vmatpush1.bf16.msra.mxu1 %v6337_v10 }
 0x2e6   : > { %5308 = vmatprep.subr.bf16.mxu0 %v6344_v11  ;;  %5554 = vmatprep.subr.bf16.mxu1 %v6346_v12 }
 0x2e8   : > { %5300 = vmatmul.mubr.bf16.vlgmr.msra.gmra.mrb[4].mxu0 %v7142_v16  ;;  %5546 = vmatmul.mubr.bf16.vlgmr.msra.gmra.mrb[4].mxu1 %v7142_v16  ;;  %v6359_v16 = vcombine.low %v960_v24, %v964_v25  ;;  %v299_v24 = vld [vmem:[%s7591_s3 + $0x8] sm:$0xff] }
 0x2e9   : > { %5309 = vmatpush1.bf16.msra.mxu0 %v6343_v56  ;;  %5555 = vmatpush1.bf16.msra.mxu1 %v6345_v20 }
 0x2ea   : > { %5310 = vmatprep.subr.bf16.mxu0 %v6352_v21  ;;  %5556 = vmatprep.subr.bf16.mxu1 %v6354_v23 }
 0x2eb   : > { %5340 = vmatprep.mubr.bf16.mxu0 %v6607_v36  ;;  %5586 = vmatprep.mubr.bf16.mxu1 %v6607_v36  ;;  %v6369_v36 = vcombine.low %v969_v35, %v973_v37 }
 0x2ed   : > { %5311 = vmatpush1.bf16.msra.mxu0 %v6351_v51  ;;  %5557 = vmatpush1.bf16.msra.mxu1 %v6353_v22 }
 0x2ee   : > { %5312 = vmatprep.subr.bf16.mxu0 %v6360_v43  ;;  %5558 = vmatprep.subr.bf16.mxu1 %v6362_v30 }
 0x2f1   : > { %5313 = vmatpush1.bf16.msra.mxu0 %v6359_v16  ;;  %5559 = vmatpush1.bf16.msra.mxu1 %v6361_v62 }
 0x2f2   : > { %5314 = vmatprep.subr.bf16.mxu0 %v6368_v61  ;;  %5560 = vmatprep.subr.bf16.mxu1 %v6370_v39 }
 0x2f5   : > { %5315 = vmatpush1.bf16.msra.mxu0 %v6367_v13  ;;  %5561 = vmatpush1.bf16.msra.mxu1 %v6369_v36 }
 0x2f6   : > { %5316 = vmatprep.subr.bf16.mxu0 %v6376_v45  ;;  %5562 = vmatprep.subr.bf16.mxu1 %v6378_v46 }
 0x2f9   : > { %5317 = vmatpush1.bf16.msra.mxu0 %v6375_v52  ;;  %5563 = vmatpush1.bf16.msra.mxu1 %v6377_v17 }
 0x2fa   : > { %5318 = vmatprep.subr.bf16.mxu0 %v6384_v53  ;;  %5564 = vmatprep.subr.bf16.mxu1 %v6386_v54 }
 0x2fd   : > { %5319 = vmatpush1.bf16.msra.mxu0 %v6383_v27  ;;  %5565 = vmatpush1.bf16.msra.mxu1 %v6385_v60 }
 0x2fe   : > { %5320 = vmatprep.subr.bf16.mxu0 %v6392_v28  ;;  %5566 = vmatprep.subr.bf16.mxu1 %v6394_v63 }
 0x301   : > { %5321 = vmatpush1.bf16.msra.mxu0 %v6391_v3  ;;  %5567 = vmatpush1.bf16.msra.mxu1 %v6393_v38 }
 0x302   : > { %5322 = vmatprep.subr.bf16.mxu0 %v6400_v4  ;;  %5568 = vmatprep.subr.bf16.mxu1 %v6402_v5 }
 0x305   : > { %5323 = vmatpush1.bf16.msra.mxu0 %v6399_v6  ;;  %5569 = vmatpush1.bf16.msra.mxu1 %v6401_v8 }
 0x308   : > { %5341 = vmatmul.mubr.bf16.vlgmr.msra.gmra.mrb[4].mxu0 %v7182_v31  ;;  %5587 = vmatmul.mubr.bf16.vlgmr.msra.gmra.mrb[4].mxu1 %v7182_v31 }
 0x3db   : > { %v5342_v9 = vpop.f32.mrb[4].mxu0  ;;  %v5588_v10 = vpop.f32.mrb[4].mxu1 }
 0x3dc   : > { %v5344_v11 = vpop.f32.mrb[5].mxu0  ;;  %v5590_v14 = vpop.f32.mrb[5].mxu1 }
 0x3dd   : > { %v5620_v12 = vcombine.low %v5342_v9, %v5344_v11  ;;  %v5346_v15 = vpop.f32.mrb[6].mxu0  ;;  %v5621_v18 = vcombine.low %v5588_v10, %v5590_v14  ;;  %v5592_v19 = vpop.f32.mrb[6].mxu1 }
 0x3de   : > { %v5347_v56 = vpop.f32.mrb[7].mxu0  ;;  %v5593_v21 = vpop.f32.mrb[7].mxu1 }
 0x3df   : > { %v5628_v20 = vrot.slane %v5620_v12, %v7415_v1  ;;  %v5635_v23 = vrot.slane %v5621_v18, %v7415_v1 }
 0x3e1   : > { %v5636_v25 = vcombine.low %v5628_v20, %v5635_v23 }
 0x3e3   : > { %v5640_v31 = vadd.f32 %v5636_v25, %v299_v24 }
 0x3e5   : > { %5642 = vst [vmem:[%s7591_s3 + $0x8] sm:$0xff] %v5640_v31 }
 0x3e6 PF: > { %p13_p7 = scmp.ge.s32.totalorder %s6651_s17, 10   ;;  %s7595_s12 = smov %s6592_s13 }
 0x3e7   : > { %s7596_s13 = smov %s6596_s14  ;;  %s7597_s14 = smov %s6661_s20 }
 0x3e8   : > { %s7598_s15 = smov %s6651_s17  ;;  %15 = sbr.rel (!%p13_p7) target bundleno = 3 (0x3), region = 75 }
 0x3ef   :  { %5654 = vsyncpa [#allocation3], 1 }
 0x3f0   :  { %5656 = vsyncpa [#allocation3 + $0x1], 1 }

</bundles_post_ra>
